<compile_context>
chip_gen: v6e
topology: v6e:2x2x1
jax: 0.10.0
libtpu: 0.0.40
codegen_flags: <defaults>
</compile_context>

<pallas_src>
import numpy as np
import jax
import jax.numpy as jnp
from jax.experimental import pallas as pl
from jax.experimental.pallas import tpu as pltpu

BN_EPS = 1e-5


def _activation(name):
    if name == "leaky_relu":
        return lambda h: jnp.where(h >= 0, h, 0.01 * h)
    if name == "tanh":
        return jnp.tanh
    return lambda h: jnp.maximum(h, 0.0)  # 'relu' (builder default)


def make_miniweather_kernel(*, K, Wp, L, L_ext, act_name):
    act = _activation(act_name)
    taps = [(kh, kw) for kh in range(K) for kw in range(K)]

    def kernel(x_ref, mask_ref, w1_ref, b1_ref, w2_ref, b2_ref,
               rng_ref, mn_ref, out_ref):
        # ---- conv1 (+ folded BN1) over the extended padded grid -------------------
        x = x_ref[0]                                   # (L_in, C) normalized, padded
        c1 = w1_ref.shape[-1]
        acc1 = jnp.zeros((L_ext, c1), jnp.float32)
        for t, (kh, kw) in enumerate(taps):
            s = kh * Wp + kw                           # static slice start
            acc1 = acc1 + jnp.dot(x[s:s + L_ext, :], w1_ref[t],
                                  preferred_element_type=jnp.float32)
        h1 = act(acc1 + b1_ref[...])
        # zero the padding ring / margins -> exact zero-padding seen by conv2
        h1 = h1 * mask_ref[...]

        # ---- conv2 (+ folded BN2) over the padded grid -----------------------------
        c2 = w2_ref.shape[-1]
        acc2 = jnp.zeros((L, c2), jnp.float32)
        for t, (kh, kw) in enumerate(taps):
            s = kh * Wp + kw
            acc2 = acc2 + jnp.dot(h1[s:s + L, :], w2_ref[t],
                                  preferred_element_type=jnp.float32)
        h2 = act(acc2 + b2_ref[...])

        # ---- output de-normalization: x * (max - min) + min ------------------------
        out_ref[0] = h2 * rng_ref[...] + mn_ref[...]

    return kernel


def miniweather_forward(x_nchw, params, cfg):
    N, C, H, W = x_nchw.shape
    K = cfg["conv1_kernel_size"]
    C1 = cfg["conv1_out_channels"]
    act_name = cfg.get("activation_function", "relu")
    assert cfg.get("conv1_stride", 1) == 1, "'same' padding requires stride 1"
    # TODO(synk): only conv1_kernel_size == conv2_kernel_size (odd) is supported here.
    assert cfg["conv2_kernel_size"] == K and K % 2 == 1

    pad = (K - 1) // 2
    Hp, Wp = H + 2 * pad, W + 2 * pad
    L = Hp * Wp                    # flattened padded grid
    M = pad * (Wp + 1)             # max |tap offset| in flattened rows
    L_ext = L + 2 * M              # conv1 output rows (covers conv2's needed window)
    L_in = L + 4 * M               # conv1 input rows (extra zero margins)

    mn = params["min"].astype(jnp.float32)             # (1,C,1,1)
    mx = params["max"].astype(jnp.float32)
    rng = mx - mn

    # ---- wrapper-side prep (plain XLA, fused into the packing ops) -----------------
    # input min/max normalization, applied before zero padding (exact PyTorch 'same')
    x_n = (x_nchw.astype(jnp.float32) - mn) / rng
    x_nhwc = jnp.transpose(x_n, (0, 2, 3, 1))
    x_pad = jnp.pad(x_nhwc, ((0, 0), (pad, pad), (pad, pad), (0, 0)))
    x_ext = jnp.pad(x_pad.reshape(N, L, C), ((0, 0), (2 * M, 2 * M), (0, 0)))

    # fold eval-mode BatchNorm2d into the conv weights / biases
    def fold(w, b, g, be, rm, rv):
        s = g * jax.lax.rsqrt(rv + BN_EPS)
        return w * s[None, None, None, :], (b - rm) * s + be

    if cfg.get("batchnorm", False):
        w1, b1 = fold(params["w1"], params["b1"], params["g1"], params["be1"],
                      params["rm1"], params["rv1"])
        w2, b2 = fold(params["w2"], params["b2"], params["g2"], params["be2"],
                      params["rm2"], params["rv2"])
    else:
        w1, b1, w2, b2 = params["w1"], params["b1"], params["w2"], params["b2"]

    w1 = w1.reshape(K * K, C, C1).astype(jnp.float32)
    w2 = w2.reshape(K * K, C1, C).astype(jnp.float32)
    b1 = b1.reshape(1, C1).astype(jnp.float32)
    b2 = b2.reshape(1, C).astype(jnp.float32)
    rng_row = rng.reshape(1, C)
    mn_row = mn.reshape(1, C)

    # interior mask over the extended padded grid (1 = real pixel, 0 = zero padding)
    mask2d = np.zeros((Hp, Wp), np.float32)
    mask2d[pad:pad + H, pad:pad + W] = 1.0
    mask_ext = np.concatenate([np.zeros((M,), np.float32), mask2d.reshape(-1),
                               np.zeros((M,), np.float32)])[:, None]
    mask_ext = jnp.asarray(mask_ext)                    # (L_ext, 1)

    kernel = make_miniweather_kernel(K=K, Wp=Wp, L=L, L_ext=L_ext, act_name=act_name)

    def full_spec(a):
        nd = a.ndim
        return pl.BlockSpec(a.shape, lambda n, _nd=nd: (0,) * _nd)

    flops = 2 * N * (L_ext * K * K * C * C1 + L * K * K * C1 * C)
    bytes_accessed = 4 * (x_ext.size + N * L * C + w1.size + w2.size + b1.size
                          + b2.size + mask_ext.size + rng_row.size + mn_row.size)

    out_flat = pl.pallas_call(
        kernel,
        out_shape=jax.ShapeDtypeStruct((N, L, C), jnp.float32),
        grid=(N,),
        in_specs=[pl.BlockSpec((1, L_in, C), lambda n: (n, 0, 0)),
                  full_spec(mask_ext),
                  full_spec(w1), full_spec(b1),
                  full_spec(w2), full_spec(b2),
                  full_spec(rng_row), full_spec(mn_row)],
        out_specs=pl.BlockSpec((1, L, C), lambda n: (n, 0, 0)),
        compiler_params=pltpu.CompilerParams(dimension_semantics=("parallel",)),
        cost_estimate=pl.CostEstimate(flops=flops, transcendentals=0,
                                      bytes_accessed=bytes_accessed),
    )(x_ext, mask_ext, w1, b1, w2, b2, rng_row, mn_row)

    # extract the valid HxW interior of the padded grid and return NCHW
    out_nhwc = out_flat.reshape(N, Hp, Wp, C)[:, pad:pad + H, pad:pad + W, :]
    return jnp.transpose(out_nhwc, (0, 3, 1, 2))


# ---------------------------- pure-JAX reference ------------------------------------
def reference_forward(x_nchw, params, cfg):
    act = _activation(cfg.get("activation_function", "relu"))
    mn = params["min"]
    mx = params["max"]
    h = (x_nchw - mn) / (mx - mn)
    h = jnp.transpose(h, (0, 2, 3, 1))                  # NHWC

    def block(h, w, b, bn_p):
        h = jax.lax.conv_general_dilated(
            h, w, window_strides=(1, 1), padding="SAME",
            dimension_numbers=("NHWC", "HWIO", "NHWC"))
        h = h + b[None, None, None, :]
        if bn_p is not None:
            g, be, rm, rv = bn_p
            h = (h - rm) * jax.lax.rsqrt(rv + BN_EPS) * g + be
        return act(h)

    use_bn = cfg.get("batchnorm", False)
    bn1 = (params["g1"], params["be1"], params["rm1"], params["rv1"]) if use_bn else None
    bn2 = (params["g2"], params["be2"], params["rm2"], params["rv2"]) if use_bn else None
    h = block(h, params["w1"], params["b1"], bn1)
    h = block(h, params["w2"], params["b2"], bn2)
    h = jnp.transpose(h, (0, 3, 1, 2))                  # NCHW
    return h * (mx - mn) + mn


def init_params(key, *, C=4, C1=32, K=3):
    ks = iter(jax.random.split(key, 8))

    def conv_init(kk, cin, cout):
        bound = 1.0 / np.sqrt(cin * K * K)
        kw, kb = jax.random.split(kk)
        w = jax.random.uniform(kw, (K, K, cin, cout), jnp.float32, -bound, bound)
        b = jax.random.uniform(kb, (cout,), jnp.float32, -bound, bound)
        return w, b

    def bn_init(kk, c):
        kg, kb, km, kv = jax.random.split(kk, 4)
        return (1.0 + 0.1 * jax.random.normal(kg, (c,), jnp.float32),
                0.1 * jax.random.normal(kb, (c,), jnp.float32),
                0.1 * jax.random.normal(km, (c,), jnp.float32),
                1.0 + 0.1 * jnp.abs(jax.random.normal(kv, (c,), jnp.float32)))

    p = {}
    p["w1"], p["b1"] = conv_init(next(ks), C, C1)
    p["w2"], p["b2"] = conv_init(next(ks), C1, C)
    p["g1"], p["be1"], p["rm1"], p["rv1"] = bn_init(next(ks), C1)
    p["g2"], p["be2"], p["rm2"], p["rv2"] = bn_init(next(ks), C)
    kmin, kmax = jax.random.split(next(ks))
    p["min"] = -0.5 - jnp.abs(jax.random.normal(kmin, (1, C, 1, 1), jnp.float32))
    p["max"] = 0.5 + jnp.abs(jax.random.normal(kmax, (1, C, 1, 1), jnp.float32))
    return p


if __name__ == "__main__":
    cfg = dict(input_channels=4, conv1_out_channels=32, conv1_kernel_size=3,
               conv1_stride=1, conv2_kernel_size=3, batchnorm=True,
               activation_function="relu", dropout=0.1, padding="same")

    key = jax.random.PRNGKey(0)
    kp, kx = jax.random.split(key)
    params = init_params(kp, C=cfg["input_channels"],
                         C1=cfg["conv1_out_channels"], K=cfg["conv1_kernel_size"])

    N, C, H, W = 2, 4, 16, 16
    x = jax.random.normal(kx, (N, C, H, W), jnp.float32)

    y = miniweather_forward(x, params, cfg)
    jax.block_until_ready(y)

    y_ref = reference_forward(x, params, cfg)
    assert y.shape == (N, C, H, W)
    max_err = float(jnp.max(jnp.abs(y - y_ref)))
    assert jnp.allclose(y, y_ref, atol=1e-4, rtol=1e-4), f"mismatch vs reference (max err {max_err})"

    print("KERNEL_OK")
</pallas_src>

<mosaic_0001>
module attributes {stable_mosaic.version = 11 : i64} {
  func.func @kernel(%arg0: i32, %arg1: memref<1x400x4xf32, #tpu.memory_space<vmem>>, %arg2: memref<362x1xf32, #tpu.memory_space<vmem>>, %arg3: memref<9x4x32xf32, #tpu.memory_space<vmem>>, %arg4: memref<1x32xf32, #tpu.memory_space<vmem>>, %arg5: memref<9x32x4xf32, #tpu.memory_space<vmem>>, %arg6: memref<1x4xf32, #tpu.memory_space<vmem>>, %arg7: memref<1x4xf32, #tpu.memory_space<vmem>>, %arg8: memref<1x4xf32, #tpu.memory_space<vmem>>, %arg9: memref<1x324x4xf32, #tpu.memory_space<vmem>>) attributes {dimension_semantics = [#tpu.dimension_semantics<parallel>], iteration_bounds = array<i64: 2>, scalar_prefetch = 0 : i64, scratch_operands = 0 : i64, tpu.core_type = #tpu.core_type<tc>, window_params = [{transform_indices = @transform_0, window_bounds = array<i64: 1, 400, 4>}, {pipeline_mode = #tpu.pipeline_mode<synchronous>, transform_indices = @transform_1, window_bounds = array<i64: 362, 1>}, {pipeline_mode = #tpu.pipeline_mode<synchronous>, transform_indices = @transform_2, window_bounds = array<i64: 9, 4, 32>}, {pipeline_mode = #tpu.pipeline_mode<synchronous>, transform_indices = @transform_3, window_bounds = array<i64: 1, 32>}, {pipeline_mode = #tpu.pipeline_mode<synchronous>, transform_indices = @transform_4, window_bounds = array<i64: 9, 32, 4>}, {pipeline_mode = #tpu.pipeline_mode<synchronous>, transform_indices = @transform_5, window_bounds = array<i64: 1, 4>}, {pipeline_mode = #tpu.pipeline_mode<synchronous>, transform_indices = @transform_6, window_bounds = array<i64: 1, 4>}, {pipeline_mode = #tpu.pipeline_mode<synchronous>, transform_indices = @transform_7, window_bounds = array<i64: 1, 4>}, {transform_indices = @transform_8, window_bounds = array<i64: 1, 324, 4>}]} {
    %c0 = arith.constant 0 : index
    %c0_0 = arith.constant 0 : index
    %c0_1 = arith.constant 0 : index
    %0 = vector.load %arg1[%c0, %c0_0, %c0_1] : memref<1x400x4xf32, #tpu.memory_space<vmem>>, vector<1x400x4xf32>
    %1 = vector.shape_cast %0 : vector<1x400x4xf32> to vector<400x4xf32>
    %cst = arith.constant 0.000000e+00 : f32
    %2 = vector.broadcast %cst : f32 to vector<362x32xf32>
    %3 = vector.extract_strided_slice %1 {offsets = [0, 0], sizes = [362, 4], strides = [1, 1]} : vector<400x4xf32> to vector<362x4xf32>
    %c0_2 = arith.constant 0 : index
    %c0_3 = arith.constant 0 : index
    %c0_4 = arith.constant 0 : index
    %4 = vector.load %arg3[%c0_2, %c0_3, %c0_4] : memref<9x4x32xf32, #tpu.memory_space<vmem>>, vector<1x4x32xf32>
    %5 = vector.shape_cast %4 : vector<1x4x32xf32> to vector<4x32xf32>
    %cst_5 = arith.constant dense<0.000000e+00> : vector<362x32xf32>
    %6 = tpu.matmul %3, %5, %cst_5 {dimension_numbers = #tpu.dot_dimension_numbers<[1], [0], [0], [1], [0, 0, 1, 1], [], []>} : vector<362x4xf32>, vector<4x32xf32>, vector<362x32xf32> -> vector<362x32xf32>
    %7 = arith.addf %2, %6 : vector<362x32xf32>
    %8 = vector.extract_strided_slice %1 {offsets = [1, 0], sizes = [362, 4], strides = [1, 1]} : vector<400x4xf32> to vector<362x4xf32>
    %c1 = arith.constant 1 : index
    %c0_6 = arith.constant 0 : index
    %c0_7 = arith.constant 0 : index
    %9 = vector.load %arg3[%c1, %c0_6, %c0_7] : memref<9x4x32xf32, #tpu.memory_space<vmem>>, vector<1x4x32xf32>
    %10 = vector.shape_cast %9 : vector<1x4x32xf32> to vector<4x32xf32>
    %cst_8 = arith.constant dense<0.000000e+00> : vector<362x32xf32>
    %11 = tpu.matmul %8, %10, %cst_8 {dimension_numbers = #tpu.dot_dimension_numbers<[1], [0], [0], [1], [0, 0, 1, 1], [], []>} : vector<362x4xf32>, vector<4x32xf32>, vector<362x32xf32> -> vector<362x32xf32>
    %12 = arith.addf %7, %11 : vector<362x32xf32>
    %13 = vector.extract_strided_slice %1 {offsets = [2, 0], sizes = [362, 4], strides = [1, 1]} : vector<400x4xf32> to vector<362x4xf32>
    %c2 = arith.constant 2 : index
    %c0_9 = arith.constant 0 : index
    %c0_10 = arith.constant 0 : index
    %14 = vector.load %arg3[%c2, %c0_9, %c0_10] : memref<9x4x32xf32, #tpu.memory_space<vmem>>, vector<1x4x32xf32>
    %15 = vector.shape_cast %14 : vector<1x4x32xf32> to vector<4x32xf32>
    %cst_11 = arith.constant dense<0.000000e+00> : vector<362x32xf32>
    %16 = tpu.matmul %13, %15, %cst_11 {dimension_numbers = #tpu.dot_dimension_numbers<[1], [0], [0], [1], [0, 0, 1, 1], [], []>} : vector<362x4xf32>, vector<4x32xf32>, vector<362x32xf32> -> vector<362x32xf32>
    %17 = arith.addf %12, %16 : vector<362x32xf32>
    %18 = vector.extract_strided_slice %1 {offsets = [18, 0], sizes = [362, 4], strides = [1, 1]} : vector<400x4xf32> to vector<362x4xf32>
    %c3 = arith.constant 3 : index
    %c0_12 = arith.constant 0 : index
    %c0_13 = arith.constant 0 : index
    %19 = vector.load %arg3[%c3, %c0_12, %c0_13] : memref<9x4x32xf32, #tpu.memory_space<vmem>>, vector<1x4x32xf32>
    %20 = vector.shape_cast %19 : vector<1x4x32xf32> to vector<4x32xf32>
    %cst_14 = arith.constant dense<0.000000e+00> : vector<362x32xf32>
    %21 = tpu.matmul %18, %20, %cst_14 {dimension_numbers = #tpu.dot_dimension_numbers<[1], [0], [0], [1], [0, 0, 1, 1], [], []>} : vector<362x4xf32>, vector<4x32xf32>, vector<362x32xf32> -> vector<362x32xf32>
    %22 = arith.addf %17, %21 : vector<362x32xf32>
    %23 = vector.extract_strided_slice %1 {offsets = [19, 0], sizes = [362, 4], strides = [1, 1]} : vector<400x4xf32> to vector<362x4xf32>
    %c4 = arith.constant 4 : index
    %c0_15 = arith.constant 0 : index
    %c0_16 = arith.constant 0 : index
    %24 = vector.load %arg3[%c4, %c0_15, %c0_16] : memref<9x4x32xf32, #tpu.memory_space<vmem>>, vector<1x4x32xf32>
    %25 = vector.shape_cast %24 : vector<1x4x32xf32> to vector<4x32xf32>
    %cst_17 = arith.constant dense<0.000000e+00> : vector<362x32xf32>
    %26 = tpu.matmul %23, %25, %cst_17 {dimension_numbers = #tpu.dot_dimension_numbers<[1], [0], [0], [1], [0, 0, 1, 1], [], []>} : vector<362x4xf32>, vector<4x32xf32>, vector<362x32xf32> -> vector<362x32xf32>
    %27 = arith.addf %22, %26 : vector<362x32xf32>
    %28 = vector.extract_strided_slice %1 {offsets = [20, 0], sizes = [362, 4], strides = [1, 1]} : vector<400x4xf32> to vector<362x4xf32>
    %c5 = arith.constant 5 : index
    %c0_18 = arith.constant 0 : index
    %c0_19 = arith.constant 0 : index
    %29 = vector.load %arg3[%c5, %c0_18, %c0_19] : memref<9x4x32xf32, #tpu.memory_space<vmem>>, vector<1x4x32xf32>
    %30 = vector.shape_cast %29 : vector<1x4x32xf32> to vector<4x32xf32>
    %cst_20 = arith.constant dense<0.000000e+00> : vector<362x32xf32>
    %31 = tpu.matmul %28, %30, %cst_20 {dimension_numbers = #tpu.dot_dimension_numbers<[1], [0], [0], [1], [0, 0, 1, 1], [], []>} : vector<362x4xf32>, vector<4x32xf32>, vector<362x32xf32> -> vector<362x32xf32>
    %32 = arith.addf %27, %31 : vector<362x32xf32>
    %33 = vector.extract_strided_slice %1 {offsets = [36, 0], sizes = [362, 4], strides = [1, 1]} : vector<400x4xf32> to vector<362x4xf32>
    %c6 = arith.constant 6 : index
    %c0_21 = arith.constant 0 : index
    %c0_22 = arith.constant 0 : index
    %34 = vector.load %arg3[%c6, %c0_21, %c0_22] : memref<9x4x32xf32, #tpu.memory_space<vmem>>, vector<1x4x32xf32>
    %35 = vector.shape_cast %34 : vector<1x4x32xf32> to vector<4x32xf32>
    %cst_23 = arith.constant dense<0.000000e+00> : vector<362x32xf32>
    %36 = tpu.matmul %33, %35, %cst_23 {dimension_numbers = #tpu.dot_dimension_numbers<[1], [0], [0], [1], [0, 0, 1, 1], [], []>} : vector<362x4xf32>, vector<4x32xf32>, vector<362x32xf32> -> vector<362x32xf32>
    %37 = arith.addf %32, %36 : vector<362x32xf32>
    %38 = vector.extract_strided_slice %1 {offsets = [37, 0], sizes = [362, 4], strides = [1, 1]} : vector<400x4xf32> to vector<362x4xf32>
    %c7 = arith.constant 7 : index
    %c0_24 = arith.constant 0 : index
    %c0_25 = arith.constant 0 : index
    %39 = vector.load %arg3[%c7, %c0_24, %c0_25] : memref<9x4x32xf32, #tpu.memory_space<vmem>>, vector<1x4x32xf32>
    %40 = vector.shape_cast %39 : vector<1x4x32xf32> to vector<4x32xf32>
    %cst_26 = arith.constant dense<0.000000e+00> : vector<362x32xf32>
    %41 = tpu.matmul %38, %40, %cst_26 {dimension_numbers = #tpu.dot_dimension_numbers<[1], [0], [0], [1], [0, 0, 1, 1], [], []>} : vector<362x4xf32>, vector<4x32xf32>, vector<362x32xf32> -> vector<362x32xf32>
    %42 = arith.addf %37, %41 : vector<362x32xf32>
    %43 = vector.extract_strided_slice %1 {offsets = [38, 0], sizes = [362, 4], strides = [1, 1]} : vector<400x4xf32> to vector<362x4xf32>
    %c8 = arith.constant 8 : index
    %c0_27 = arith.constant 0 : index
    %c0_28 = arith.constant 0 : index
    %44 = vector.load %arg3[%c8, %c0_27, %c0_28] : memref<9x4x32xf32, #tpu.memory_space<vmem>>, vector<1x4x32xf32>
    %45 = vector.shape_cast %44 : vector<1x4x32xf32> to vector<4x32xf32>
    %cst_29 = arith.constant dense<0.000000e+00> : vector<362x32xf32>
    %46 = tpu.matmul %43, %45, %cst_29 {dimension_numbers = #tpu.dot_dimension_numbers<[1], [0], [0], [1], [0, 0, 1, 1], [], []>} : vector<362x4xf32>, vector<4x32xf32>, vector<362x32xf32> -> vector<362x32xf32>
    %47 = arith.addf %42, %46 : vector<362x32xf32>
    %c0_30 = arith.constant 0 : index
    %c0_31 = arith.constant 0 : index
    %48 = vector.load %arg4[%c0_30, %c0_31] : memref<1x32xf32, #tpu.memory_space<vmem>>, vector<1x32xf32>
    %49 = vector.broadcast %48 : vector<1x32xf32> to vector<362x32xf32>
    %50 = arith.addf %47, %49 : vector<362x32xf32>
    %cst_32 = arith.constant 0.000000e+00 : f32
    %51 = vector.broadcast %cst_32 : f32 to vector<362x32xf32>
    %52 = arith.maximumf %50, %51 : vector<362x32xf32>
    %c0_33 = arith.constant 0 : index
    %c0_34 = arith.constant 0 : index
    %53 = vector.load %arg2[%c0_33, %c0_34] : memref<362x1xf32, #tpu.memory_space<vmem>>, vector<362x1xf32>
    %54 = vector.broadcast %53 : vector<362x1xf32> to vector<362x32xf32>
    %55 = arith.mulf %52, %54 : vector<362x32xf32>
    %cst_35 = arith.constant 0.000000e+00 : f32
    %56 = vector.broadcast %cst_35 : f32 to vector<324x4xf32>
    %57 = vector.extract_strided_slice %55 {offsets = [0, 0], sizes = [324, 32], strides = [1, 1]} : vector<362x32xf32> to vector<324x32xf32>
    %c0_36 = arith.constant 0 : index
    %c0_37 = arith.constant 0 : index
    %c0_38 = arith.constant 0 : index
    %58 = vector.load %arg5[%c0_36, %c0_37, %c0_38] : memref<9x32x4xf32, #tpu.memory_space<vmem>>, vector<1x32x4xf32>
    %59 = vector.shape_cast %58 : vector<1x32x4xf32> to vector<32x4xf32>
    %cst_39 = arith.constant dense<0.000000e+00> : vector<324x4xf32>
    %60 = tpu.matmul %57, %59, %cst_39 {dimension_numbers = #tpu.dot_dimension_numbers<[1], [0], [0], [1], [0, 0, 1, 1], [], []>} : vector<324x32xf32>, vector<32x4xf32>, vector<324x4xf32> -> vector<324x4xf32>
    %61 = arith.addf %56, %60 : vector<324x4xf32>
    %62 = vector.extract_strided_slice %55 {offsets = [1, 0], sizes = [324, 32], strides = [1, 1]} : vector<362x32xf32> to vector<324x32xf32>
    %c1_40 = arith.constant 1 : index
    %c0_41 = arith.constant 0 : index
    %c0_42 = arith.constant 0 : index
    %63 = vector.load %arg5[%c1_40, %c0_41, %c0_42] : memref<9x32x4xf32, #tpu.memory_space<vmem>>, vector<1x32x4xf32>
    %64 = vector.shape_cast %63 : vector<1x32x4xf32> to vector<32x4xf32>
    %cst_43 = arith.constant dense<0.000000e+00> : vector<324x4xf32>
    %65 = tpu.matmul %62, %64, %cst_43 {dimension_numbers = #tpu.dot_dimension_numbers<[1], [0], [0], [1], [0, 0, 1, 1], [], []>} : vector<324x32xf32>, vector<32x4xf32>, vector<324x4xf32> -> vector<324x4xf32>
    %66 = arith.addf %61, %65 : vector<324x4xf32>
    %67 = vector.extract_strided_slice %55 {offsets = [2, 0], sizes = [324, 32], strides = [1, 1]} : vector<362x32xf32> to vector<324x32xf32>
    %c2_44 = arith.constant 2 : index
    %c0_45 = arith.constant 0 : index
    %c0_46 = arith.constant 0 : index
    %68 = vector.load %arg5[%c2_44, %c0_45, %c0_46] : memref<9x32x4xf32, #tpu.memory_space<vmem>>, vector<1x32x4xf32>
    %69 = vector.shape_cast %68 : vector<1x32x4xf32> to vector<32x4xf32>
    %cst_47 = arith.constant dense<0.000000e+00> : vector<324x4xf32>
    %70 = tpu.matmul %67, %69, %cst_47 {dimension_numbers = #tpu.dot_dimension_numbers<[1], [0], [0], [1], [0, 0, 1, 1], [], []>} : vector<324x32xf32>, vector<32x4xf32>, vector<324x4xf32> -> vector<324x4xf32>
    %71 = arith.addf %66, %70 : vector<324x4xf32>
    %72 = vector.extract_strided_slice %55 {offsets = [18, 0], sizes = [324, 32], strides = [1, 1]} : vector<362x32xf32> to vector<324x32xf32>
    %c3_48 = arith.constant 3 : index
    %c0_49 = arith.constant 0 : index
    %c0_50 = arith.constant 0 : index
    %73 = vector.load %arg5[%c3_48, %c0_49, %c0_50] : memref<9x32x4xf32, #tpu.memory_space<vmem>>, vector<1x32x4xf32>
    %74 = vector.shape_cast %73 : vector<1x32x4xf32> to vector<32x4xf32>
    %cst_51 = arith.constant dense<0.000000e+00> : vector<324x4xf32>
    %75 = tpu.matmul %72, %74, %cst_51 {dimension_numbers = #tpu.dot_dimension_numbers<[1], [0], [0], [1], [0, 0, 1, 1], [], []>} : vector<324x32xf32>, vector<32x4xf32>, vector<324x4xf32> -> vector<324x4xf32>
    %76 = arith.addf %71, %75 : vector<324x4xf32>
    %77 = vector.extract_strided_slice %55 {offsets = [19, 0], sizes = [324, 32], strides = [1, 1]} : vector<362x32xf32> to vector<324x32xf32>
    %c4_52 = arith.constant 4 : index
    %c0_53 = arith.constant 0 : index
    %c0_54 = arith.constant 0 : index
    %78 = vector.load %arg5[%c4_52, %c0_53, %c0_54] : memref<9x32x4xf32, #tpu.memory_space<vmem>>, vector<1x32x4xf32>
    %79 = vector.shape_cast %78 : vector<1x32x4xf32> to vector<32x4xf32>
    %cst_55 = arith.constant dense<0.000000e+00> : vector<324x4xf32>
    %80 = tpu.matmul %77, %79, %cst_55 {dimension_numbers = #tpu.dot_dimension_numbers<[1], [0], [0], [1], [0, 0, 1, 1], [], []>} : vector<324x32xf32>, vector<32x4xf32>, vector<324x4xf32> -> vector<324x4xf32>
    %81 = arith.addf %76, %80 : vector<324x4xf32>
    %82 = vector.extract_strided_slice %55 {offsets = [20, 0], sizes = [324, 32], strides = [1, 1]} : vector<362x32xf32> to vector<324x32xf32>
    %c5_56 = arith.constant 5 : index
    %c0_57 = arith.constant 0 : index
    %c0_58 = arith.constant 0 : index
    %83 = vector.load %arg5[%c5_56, %c0_57, %c0_58] : memref<9x32x4xf32, #tpu.memory_space<vmem>>, vector<1x32x4xf32>
    %84 = vector.shape_cast %83 : vector<1x32x4xf32> to vector<32x4xf32>
    %cst_59 = arith.constant dense<0.000000e+00> : vector<324x4xf32>
    %85 = tpu.matmul %82, %84, %cst_59 {dimension_numbers = #tpu.dot_dimension_numbers<[1], [0], [0], [1], [0, 0, 1, 1], [], []>} : vector<324x32xf32>, vector<32x4xf32>, vector<324x4xf32> -> vector<324x4xf32>
    %86 = arith.addf %81, %85 : vector<324x4xf32>
    %87 = vector.extract_strided_slice %55 {offsets = [36, 0], sizes = [324, 32], strides = [1, 1]} : vector<362x32xf32> to vector<324x32xf32>
    %c6_60 = arith.constant 6 : index
    %c0_61 = arith.constant 0 : index
    %c0_62 = arith.constant 0 : index
    %88 = vector.load %arg5[%c6_60, %c0_61, %c0_62] : memref<9x32x4xf32, #tpu.memory_space<vmem>>, vector<1x32x4xf32>
    %89 = vector.shape_cast %88 : vector<1x32x4xf32> to vector<32x4xf32>
    %cst_63 = arith.constant dense<0.000000e+00> : vector<324x4xf32>
    %90 = tpu.matmul %87, %89, %cst_63 {dimension_numbers = #tpu.dot_dimension_numbers<[1], [0], [0], [1], [0, 0, 1, 1], [], []>} : vector<324x32xf32>, vector<32x4xf32>, vector<324x4xf32> -> vector<324x4xf32>
    %91 = arith.addf %86, %90 : vector<324x4xf32>
    %92 = vector.extract_strided_slice %55 {offsets = [37, 0], sizes = [324, 32], strides = [1, 1]} : vector<362x32xf32> to vector<324x32xf32>
    %c7_64 = arith.constant 7 : index
    %c0_65 = arith.constant 0 : index
    %c0_66 = arith.constant 0 : index
    %93 = vector.load %arg5[%c7_64, %c0_65, %c0_66] : memref<9x32x4xf32, #tpu.memory_space<vmem>>, vector<1x32x4xf32>
    %94 = vector.shape_cast %93 : vector<1x32x4xf32> to vector<32x4xf32>
    %cst_67 = arith.constant dense<0.000000e+00> : vector<324x4xf32>
    %95 = tpu.matmul %92, %94, %cst_67 {dimension_numbers = #tpu.dot_dimension_numbers<[1], [0], [0], [1], [0, 0, 1, 1], [], []>} : vector<324x32xf32>, vector<32x4xf32>, vector<324x4xf32> -> vector<324x4xf32>
    %96 = arith.addf %91, %95 : vector<324x4xf32>
    %97 = vector.extract_strided_slice %55 {offsets = [38, 0], sizes = [324, 32], strides = [1, 1]} : vector<362x32xf32> to vector<324x32xf32>
    %c8_68 = arith.constant 8 : index
    %c0_69 = arith.constant 0 : index
    %c0_70 = arith.constant 0 : index
    %98 = vector.load %arg5[%c8_68, %c0_69, %c0_70] : memref<9x32x4xf32, #tpu.memory_space<vmem>>, vector<1x32x4xf32>
    %99 = vector.shape_cast %98 : vector<1x32x4xf32> to vector<32x4xf32>
    %cst_71 = arith.constant dense<0.000000e+00> : vector<324x4xf32>
    %100 = tpu.matmul %97, %99, %cst_71 {dimension_numbers = #tpu.dot_dimension_numbers<[1], [0], [0], [1], [0, 0, 1, 1], [], []>} : vector<324x32xf32>, vector<32x4xf32>, vector<324x4xf32> -> vector<324x4xf32>
    %101 = arith.addf %96, %100 : vector<324x4xf32>
    %c0_72 = arith.constant 0 : index
    %c0_73 = arith.constant 0 : index
    %102 = vector.load %arg6[%c0_72, %c0_73] : memref<1x4xf32, #tpu.memory_space<vmem>>, vector<1x4xf32>
    %103 = vector.broadcast %102 : vector<1x4xf32> to vector<324x4xf32>
    %104 = arith.addf %101, %103 : vector<324x4xf32>
    %cst_74 = arith.constant 0.000000e+00 : f32
    %105 = vector.broadcast %cst_74 : f32 to vector<324x4xf32>
    %106 = arith.maximumf %104, %105 : vector<324x4xf32>
    %c0_75 = arith.constant 0 : index
    %c0_76 = arith.constant 0 : index
    %107 = vector.load %arg7[%c0_75, %c0_76] : memref<1x4xf32, #tpu.memory_space<vmem>>, vector<1x4xf32>
    %108 = vector.broadcast %107 : vector<1x4xf32> to vector<324x4xf32>
    %109 = arith.mulf %106, %108 : vector<324x4xf32>
    %c0_77 = arith.constant 0 : index
    %c0_78 = arith.constant 0 : index
    %110 = vector.load %arg8[%c0_77, %c0_78] : memref<1x4xf32, #tpu.memory_space<vmem>>, vector<1x4xf32>
    %111 = vector.broadcast %110 : vector<1x4xf32> to vector<324x4xf32>
    %112 = arith.addf %109, %111 : vector<324x4xf32>
    %c0_79 = arith.constant 0 : index
    %c0_80 = arith.constant 0 : index
    %c0_81 = arith.constant 0 : index
    %113 = vector.load %arg9[%c0_79, %c0_80, %c0_81] : memref<1x324x4xf32, #tpu.memory_space<vmem>>, vector<1x324x4xf32>
    %114 = vector.shape_cast %113 : vector<1x324x4xf32> to vector<324x4xf32>
    %115 = vector.shape_cast %112 : vector<324x4xf32> to vector<1x324x4xf32>
    tpu.vector_store %arg9[%c0_79, %c0_80, %c0_81], %115 {strides = array<i32>} : memref<1x324x4xf32, #tpu.memory_space<vmem>>, vector<1x324x4xf32>,
    return
  }
  func.func @transform_0(%arg0: i32) -> (i32, i32, i32) {
    %c0_i32 = arith.constant 0 : i32
    %c0_i32_0 = arith.constant 0 : i32
    %c0_i32_1 = arith.constant 0 : i32
    return %arg0, %c0_i32, %c0_i32_0 : i32, i32, i32
  }
  func.func @transform_1(%arg0: i32) -> (i32, i32) {
    %c0_i32 = arith.constant 0 : i32
    %c0_i32_0 = arith.constant 0 : i32
    %c0_i32_1 = arith.constant 0 : i32
    return %c0_i32, %c0_i32_0 : i32, i32
  }
  func.func @transform_2(%arg0: i32) -> (i32, i32, i32) {
    %c0_i32 = arith.constant 0 : i32
    %c0_i32_0 = arith.constant 0 : i32
    %c0_i32_1 = arith.constant 0 : i32
    %c0_i32_2 = arith.constant 0 : i32
    return %c0_i32, %c0_i32_0, %c0_i32_1 : i32, i32, i32
  }
  func.func @transform_3(%arg0: i32) -> (i32, i32) {
    %c0_i32 = arith.constant 0 : i32
    %c0_i32_0 = arith.constant 0 : i32
    %c0_i32_1 = arith.constant 0 : i32
    return %c0_i32, %c0_i32_0 : i32, i32
  }
  func.func @transform_4(%arg0: i32) -> (i32, i32, i32) {
    %c0_i32 = arith.constant 0 : i32
    %c0_i32_0 = arith.constant 0 : i32
    %c0_i32_1 = arith.constant 0 : i32
    %c0_i32_2 = arith.constant 0 : i32
    return %c0_i32, %c0_i32_0, %c0_i32_1 : i32, i32, i32
  }
  func.func @transform_5(%arg0: i32) -> (i32, i32) {
    %c0_i32 = arith.constant 0 : i32
    %c0_i32_0 = arith.constant 0 : i32
    %c0_i32_1 = arith.constant 0 : i32
    return %c0_i32, %c0_i32_0 : i32, i32
  }
  func.func @transform_6(%arg0: i32) -> (i32, i32) {
    %c0_i32 = arith.constant 0 : i32
    %c0_i32_0 = arith.constant 0 : i32
    %c0_i32_1 = arith.constant 0 : i32
    return %c0_i32, %c0_i32_0 : i32, i32
  }
  func.func @transform_7(%arg0: i32) -> (i32, i32) {
    %c0_i32 = arith.constant 0 : i32
    %c0_i32_0 = arith.constant 0 : i32
    %c0_i32_1 = arith.constant 0 : i32
    return %c0_i32, %c0_i32_0 : i32, i32
  }
  func.func @transform_8(%arg0: i32) -> (i32, i32, i32) {
    %c0_i32 = arith.constant 0 : i32
    %c0_i32_0 = arith.constant 0 : i32
    %c0_i32_1 = arith.constant 0 : i32
    return %arg0, %c0_i32, %c0_i32_0 : i32, i32, i32
  }
}

</mosaic_0001>

<bundles_post_ra>
// kernel: tpu_custom_call.1
= control target key start
LH: loop header
LB: loop body
LE: loop exit
PB: predicated region body
PF: predicated region fallthrough
CT: control target
= control target key end

     0   :  { %s12895_s27 = smov 0   ;;  %s18845_s0 = inlined_call_operand.vmem [shape: f32[2,400,4], index: 0, kind: input, shape index: {}]   ;;  %s18846_s1 = inlined_call_operand.vmem [shape: f32[362,1], index: 1, kind: input, shape index: {}]   ;;  %s18847_s2 = inlined_call_operand.vmem [shape: f32[9,4,32], index: 2, kind: input, shape index: {}]   ;;  %s18848_s3 = inlined_call_operand.vmem [shape: f32[1,32], index: 3, kind: input, shape index: {}]   ;;  %s18849_s4 = inlined_call_operand.vmem [shape: f32[9,32,4], index: 4, kind: input, shape index: {}]   ;;  %s18850_s5 = inlined_call_operand.vmem [shape: f32[1,4], index: 5, kind: input, shape index: {}]   ;;  %s18851_s6 = inlined_call_operand.vmem [shape: f32[1,4], index: 6, kind: input, shape index: {}]   ;;  %s18852_s7 = inlined_call_operand.vmem [shape: f32[1,4], index: 7, kind: input, shape index: {}]   ;;  %s18853_s8 = inlined_call_operand.vmem [shape: f32[2,324,4], index: 8, kind: output, shape index: {}]  }
   0x1 LB: > { %s9239_s28 = sadd.s32 4294967295, %s12845_s27   ;;  %p9243_p0 = scmp.ge.s32.totalorder %s12845_s27, 1  ;;  %s12845_s27 = sphi %s12895_s27, %s18_s27  }
   0x2   : > { %p262_p1 = scmp.lt.s32.totalorder %s12845_s27, 3 }
   0x4   : > { %p263_p2 = pnand %p9243_p0, %p262_p1 }
   0x6   : > { %266 = sbr.rel (%p263_p2) target bundleno = 1653 (0x675), region = 52 }
   0xb   : > { %v9246_v0 = vld [vmem:[%s18847_s2 + $0x4] sm:$0xf]  ;;  %vm590_vm0 = vcmask 1043456   ;;  %p296_p3 = scmp.lt.s32.totalorder %s9239_s28, 1  ;;  %v356_v1 = vld [vmem:[%s18847_s2] sm:$0xf] }
   0xc   : > { %10912 = vmatprep.subr.msk.mxu0 %vm590_vm0, %v9246_v0  ;;  %12730 = vmatprep.subr.msk.mxu1 %vm590_vm0, %v356_v1  ;;  %vm405_vm1 = vcmask 1046528   ;;  %vm497_vm2 = vcmask 31744   ;;  %v12959_v19 = vld [vmem:[%s18847_s2 + $0x8] sm:$0xf]  ;;  %v9389_v45 = vld [vmem:[%s18847_s2 + $0xc] sm:$0xf] }
   0xd   : > { %10913 = vmatpush3.msk.msra.mxu0 %vm590_vm0, %v9246_v0  ;;  %s19807_s28 = smov (!%p296_p3, %s9239_s28), 1  ;;  %12731 = vmatpush3.msk.msra.mxu1 %vm590_vm0, %v356_v1  ;;  %vm1281_vm3 = vcmask 1045504   ;;  %vm2169_vm4 = vcmask 1044480   ;;  %vm3586_vm5 = vcmask 1042432   ;;  %vm4116_vm6 = vcmask 1041408  }
   0xe   : > { %10983 = vmatprep.subr.msk.mxu0 %vm590_vm0, %v356_v1  ;;  %s12732_s11 = smul.u32 400, %s19807_s28  ;;  %11125 = vmatprep.subr.msk.mxu1 %vm590_vm0, %v9389_v45  ;;  %vm12849_vm7 = vmmov 0   ;;  %vm5196_vm8 = vcmask 261120   ;;  %vm9182_vm9 = vcmask 27648  }
   0xf   : > { %s12733_s26 = smul.u32 328, %s19807_s28 }
  0x10   : > { %s12920_s14 = scalar_lea.vmem %s18845_s0, %s12732_s11 }
  0x11   : > { %v12923_v2 = vld [vmem:[%s12920_s14] sm:$0xff]  ;;  %v12926_v3 = vld [vmem:[%s12920_s14 + $0x8] sm:$0xff]  ;;  %v12929_v4 = vld [vmem:[%s12920_s14 + $0x10] sm:$0xff]  ;;  %s18598_s12 = scalar_lea.vmem %s18853_s8, %s12733_s26 }
  0x12   : > { %v406_v5 = vrot.slane %v12923_v2, 1  ;;  %v407_v6 = vrot.slane %v12926_v3, 1  ;;  %v409_v7 = vrot.slane %v12929_v4, 1  ;;  %v12935_v8 = vld [vmem:[%s12920_s14 + $0x18] sm:$0xff]  ;;  %v12938_v9 = vld [vmem:[%s12920_s14 + $0x20] sm:$0xff]  ;;  %v12941_v10 = vld [vmem:[%s12920_s14 + $0x28] sm:$0xff] }
  0x13   : > { %v411_v11 = vrot.slane %v12935_v8, 1  ;;  %v413_v12 = vrot.slane %v12938_v9, 1  ;;  %v415_v15 = vrot.slane %v12941_v10, 1  ;;  %v12949_v16 = vld [vmem:[%s12920_s14 + $0x30] sm:$0xff]  ;;  %v12954_v18 = vld [vmem:[%s12920_s14 + $0x38] sm:$0xff]  ;;  %v12972_v25 = vld [vmem:[%s12920_s14 + $0x40] sm:$0xff] }
  0x14   : > { %v408_v13 = vsel %vm405_vm1, %v406_v5, %v407_v6  ;;  %v410_v14 = vsel %vm405_vm1, %v407_v6, %v409_v7  ;;  %v417_v21 = vrot.slane %v12949_v16, 1  ;;  %v12967_v22 = vld [vmem:[%s12920_s14 + $0x90] sm:$0xff]  ;;  %v419_v24 = vrot.slane %v12954_v18, 1  ;;  %v12975_v26 = vld [vmem:[%s12920_s14 + $0x98] sm:$0xff]  ;;  %v12982_v27 = vld [vmem:[%s12920_s14 + $0x48] sm:$0xff] }
  0x15   : > { %10914 = vmatprep.mubr.msk.f32.mxu0 %vm497_vm2, %v408_v13  ;;  %v412_v17 = vsel %vm405_vm1, %v409_v7, %v411_v11  ;;  %v414_v20 = vsel %vm405_vm1, %v411_v11, %v413_v12  ;;  %v416_v23 = vsel %vm405_vm1, %v413_v12, %v415_v15  ;;  %11012 = vmatprep.mubr.msk.f32.mxu1 %vm497_vm2, %v12967_v22  ;;  %v12985_v28 = vld [vmem:[%s12920_s14 + $0xa0] sm:$0xff]  ;;  %v421_v30 = vrot.slane %v12972_v25, 1  ;;  %v12998_v33 = vld [vmem:[%s12920_s14 + $0x50] sm:$0xff]  ;;  %v13001_v34 = vld [vmem:[%s12920_s14 + $0xa8] sm:$0xff] }
  0x16   : > { %10915 = vmatmul.mubr.msk.f32.vlgmr.msra.gmra.mxu0 %vm497_vm2, %v410_v14  ;;  %11013 = vmatmul.mubr.msk.f32.vlgmr.msra.gmra.mxu1 %vm497_vm2, %v12975_v26  ;;  %v418_v29 = vsel %vm405_vm1, %v415_v15, %v417_v21  ;;  %v420_v31 = vsel %vm405_vm1, %v417_v21, %v419_v24  ;;  %v423_v32 = vrot.slane %v12982_v27, 1  ;;  %v13004_v35 = vld [vmem:[%s12920_s14 + $0x58] sm:$0xff]  ;;  %v13007_v36 = vld [vmem:[%s12920_s14 + $0xb0] sm:$0xff]  ;;  %v425_v38 = vrot.slane %v12998_v33, 1  ;;  %v13020_v41 = vld [vmem:[%s12920_s14 + $0x60] sm:$0xff] }
  0x17   : > { %10984 = vmatpush3.msk.msra.mxu0 %vm590_vm0, %v356_v1  ;;  %10917 = vmatprep.mubr.msk.f32.mxu0 %vm497_vm2, %v412_v17  ;;  %v422_v37 = vsel %vm405_vm1, %v419_v24, %v421_v30  ;;  %v427_v40 = vrot.slane %v13004_v35, 1  ;;  %v13023_v42 = vld [vmem:[%s12920_s14 + $0xb8] sm:$0xff]  ;;  %v13026_v43 = vld [vmem:[%s12920_s14 + $0x68] sm:$0xff]  ;;  %v13029_v44 = vld [vmem:[%s12920_s14 + $0xc0] sm:$0xff]  ;;  %v429_v47 = vrot.slane %v13020_v41, 1  ;;  %v441_v11 = vrot.slane %v12967_v22, 1 }
  0x18   : > { %11054 = vmatprep.subr.msk.mxu0 %vm590_vm0, %v12959_v19  ;;  %11015 = vmatprep.mubr.msk.f32.mxu1 %vm497_vm2, %v12985_v28  ;;  %v424_v39 = vsel %vm405_vm1, %v421_v30, %v423_v32  ;;  %v426_v46 = vsel %vm405_vm1, %v423_v32, %v425_v38  ;;  %v431_v49 = vrot.slane %v13026_v43, 1  ;;  %v13046_v50 = vld [vmem:[%s12920_s14 + $0x70] sm:$0xff]  ;;  %v13049_v51 = vld [vmem:[%s12920_s14 + $0xc8] sm:$0xff]  ;;  %v13053_v52 = vld [vmem:[%s12920_s14 + $0x78] sm:$0xff]  ;;  %v443_v13 = vrot.slane %v12975_v26, 1 }
  0x19   : > { %v428_v48 = vsel %vm405_vm1, %v425_v38, %v427_v40  ;;  %19048 = vst [vmem:[#allocation2_spill] sm:$0xff] %v13049_v51  ;;  %11126 = vmatpush3.msk.msra.mxu1 %vm590_vm0, %v9389_v45  ;;  %v13056_v53 = vld [vmem:[%s12920_s14 + $0xd0] sm:$0xff]  ;;  %v430_v54 = vsel %vm405_vm1, %v427_v40, %v429_v47  ;;  %v433_v55 = vrot.slane %v13046_v50, 1  ;;  %v435_v57 = vrot.slane %v13053_v52, 1  ;;  %v13069_v58 = vld [vmem:[%s12920_s14 + $0x80] sm:$0xff]  ;;  %v13072_v59 = vld [vmem:[%s12920_s14 + $0xd8] sm:$0xff] }
  0x1a   : > { %10918 = vmatmul.mubr.msk.f32.gmra.mxu0 %vm497_vm2, %v414_v20  ;;  %11016 = vmatmul.mubr.msk.f32.gmra.mxu1 %vm497_vm2, %v13001_v34  ;;  %19049 = vst [vmem:[#allocation3_spill] sm:$0xff] %v13056_v53  ;;  %v432_v56 = vsel %vm405_vm1, %v429_v47, %v431_v49  ;;  %19050 = vst [vmem:[#allocation4_spill] sm:$0xff] %v13072_v59  ;;  %v13075_v60 = vld [vmem:[%s12920_s14 + $0x88] sm:$0xff]  ;;  %v13078_v61 = vld [vmem:[%s12920_s14 + $0xe0] sm:$0xff]  ;;  %v437_v63 = vrot.slane %v13069_v58, 1  ;;  %v445_v20 = vrot.slane %v12985_v28, 1 }
  0x1b   : > { %10920 = vmatprep.mubr.msk.f32.mxu0 %vm497_vm2, %v416_v23  ;;  %11018 = vmatprep.mubr.msk.f32.mxu1 %vm497_vm2, %v13007_v36  ;;  %19051 = vst [vmem:[#allocation5_spill] sm:$0xff] %v13078_v61  ;;  %v434_v62 = vsel %vm405_vm1, %v431_v49, %v433_v55  ;;  %v436_v0 = vsel %vm405_vm1, %v433_v55, %v435_v57  ;;  %v439_v1 = vrot.slane %v13075_v60, 1  ;;  %v13091_v5 = vld [vmem:[%s12920_s14 + $0xe8] sm:$0xff]  ;;  %v13094_v6 = vld [vmem:[%s12920_s14 + $0xf0] sm:$0xff]  ;;  %v13107_v14 = vld [vmem:[%s12920_s14 + $0xf8] sm:$0xff]  ;;  %v447_v23 = vrot.slane %v13001_v34, 1 }
  0x1c   : > { %19052 = vst [vmem:[#allocation6_spill] sm:$0xff] %v13091_v5  ;;  %19053 = vst [vmem:[#allocation7_spill] sm:$0xff] %v13094_v6  ;;  %v438_v7 = vsel %vm405_vm1, %v435_v57, %v437_v63  ;;  %v13110_v15 = vld [vmem:[%s12920_s14 + $0x100] sm:$0xff]  ;;  %v444_v21 = vsel %vm405_vm1, %v441_v11, %v443_v13  ;;  %v13123_v24 = vld [vmem:[%s12920_s14 + $0x108] sm:$0xff]  ;;  %v446_v30 = vsel %vm405_vm1, %v443_v13, %v445_v20  ;;  %v453_v45 = vrot.slane %v13029_v44, 1 }
  0x1d   : > { %v440_v12 = vsel %vm405_vm1, %v437_v63, %v439_v1  ;;  %19054 = vst [vmem:[#allocation8_spill] sm:$0xff] %v13107_v14  ;;  %19055 = vst [vmem:[#allocation9_spill] sm:$0xff] %v13110_v15  ;;  %v442_v17 = vsel %vm405_vm1, %v439_v1, %v441_v11  ;;  %v448_v32 = vsel %vm405_vm1, %v445_v20, %v447_v23  ;;  %v13139_v38 = vld [vmem:[%s12920_s14 + $0x118] sm:$0xff]  ;;  %v455_v47 = vrot.slane %v13049_v51, 1  ;;  %v13158_v49 = vld [vmem:[%s12920_s14 + $0x130] sm:$0xff] }
  0x1e   : > { %10921 = vmatmul.mubr.msk.f32.gmra.mxu0 %vm497_vm2, %v418_v29  ;;  %11019 = vmatmul.mubr.msk.f32.gmra.mxu1 %vm497_vm2, %v13023_v42  ;;  %19056 = vst [vmem:[#allocation10_spill] sm:$0xff] %v13123_v24  ;;  %v13126_v29 = vld [vmem:[%s12920_s14 + $0x110] sm:$0xff]  ;;  %19058 = vst [vmem:[#allocation12_spill] sm:$0xff] %v13139_v38  ;;  %v457_v55 = vrot.slane %v13056_v53, 1  ;;  %v459_v57 = vrot.slane %v13072_v59, 1  ;;  %v13174_v63 = vld [vmem:[%s12920_s14 + $0x140] sm:$0xff] }
  0x1f   : > { %10923 = vmatprep.mubr.msk.f32.mxu0 %vm497_vm2, %v420_v31  ;;  %11021 = vmatprep.mubr.msk.f32.mxu1 %vm497_vm2, %v13029_v44  ;;  %19057 = vst [vmem:[#allocation11_spill] sm:$0xff] %v13126_v29  ;;  %v449_v31 = vrot.slane %v13007_v36, 1  ;;  %19061 = vst [vmem:[#allocation15_spill] sm:$0xff] %v13158_v49  ;;  %v461_v1 = vrot.slane %v13078_v61, 1  ;;  %v463_v11 = vrot.slane %v13091_v5, 1  ;;  %v13190_v13 = vld [vmem:[%s12920_s14 + $0x150] sm:$0xff] }
  0x20   : > { %19064 = vst [vmem:[#allocation18_spill] sm:$0xff] %v13190_v13  ;;  %v465_v20 = vrot.slane %v13094_v6, 1 }
  0x21   : > { %v450_v40 = vsel %vm405_vm1, %v447_v23, %v449_v31  ;;  %v1287_v23 = vrot.slane %v12935_v8, 2 }
  0x22   : > { %10924 = vmatmul.mubr.msk.f32.gmra.mxu0 %vm497_vm2, %v422_v37  ;;  %11022 = vmatmul.mubr.msk.f32.gmra.mxu1 %vm497_vm2, %v13049_v51  ;;  %v451_v37 = vrot.slane %v13023_v42, 1 }
  0x23   : > { %10926 = vmatprep.mubr.msk.f32.mxu0 %vm497_vm2, %v424_v39  ;;  %11024 = vmatprep.mubr.msk.f32.mxu1 %vm497_vm2, %v13056_v53  ;;  %v13142_v39 = vld [vmem:[%s12920_s14 + $0x120] sm:$0xff] }
  0x24   : > { %19059 = vst [vmem:[#allocation13_spill] sm:$0xff] %v13142_v39 }
  0x26   : > { %10927 = vmatmul.mubr.msk.f32.gmra.mxu0 %vm497_vm2, %v426_v46  ;;  %11025 = vmatmul.mubr.msk.f32.gmra.mxu1 %vm497_vm2, %v13072_v59  ;;  %v452_v46 = vsel %vm405_vm1, %v449_v31, %v451_v37  ;;  %v467_v31 = vrot.slane %v13107_v14, 1 }
  0x27   : > { %10929 = vmatprep.mubr.msk.f32.mxu0 %vm497_vm2, %v428_v48  ;;  %11027 = vmatprep.mubr.msk.f32.mxu1 %vm497_vm2, %v13078_v61  ;;  %v13155_v48 = vld [vmem:[%s12920_s14 + $0x128] sm:$0xff] }
  0x28   : > { %19060 = vst [vmem:[#allocation14_spill] sm:$0xff] %v13155_v48 }
  0x2a   : > { %10930 = vmatmul.mubr.msk.f32.gmra.mxu0 %vm497_vm2, %v430_v54  ;;  %11028 = vmatmul.mubr.msk.f32.gmra.mxu1 %vm497_vm2, %v13091_v5  ;;  %v454_v54 = vsel %vm405_vm1, %v451_v37, %v453_v45  ;;  %v13208_v37 = vld [vmem:[%s12920_s14 + $0x160] sm:$0xff] }
  0x2b   : > { %10932 = vmatprep.mubr.msk.f32.mxu0 %vm497_vm2, %v432_v56  ;;  %11030 = vmatprep.mubr.msk.f32.mxu1 %vm497_vm2, %v13094_v6  ;;  %v456_v56 = vsel %vm405_vm1, %v453_v45, %v455_v47  ;;  %19066 = vst [vmem:[#allocation20_spill] sm:$0xff] %v13208_v37  ;;  %v466_v45 = vsel %vm405_vm1, %v463_v11, %v465_v20 }
  0x2e   : > { %10933 = vmatmul.mubr.msk.f32.gmra.mxu0 %vm497_vm2, %v434_v62  ;;  %11031 = vmatmul.mubr.msk.f32.gmra.mxu1 %vm497_vm2, %v13107_v14  ;;  %v13171_v62 = vld [vmem:[%s12920_s14 + $0x138] sm:$0xff] }
  0x2f   : > { %10935 = vmatprep.mubr.msk.f32.mxu0 %vm497_vm2, %v436_v0  ;;  %11033 = vmatprep.mubr.msk.f32.mxu1 %vm497_vm2, %v13110_v15  ;;  %19062 = vst [vmem:[#allocation16_spill] sm:$0xff] %v13171_v62  ;;  %v458_v0 = vsel %vm405_vm1, %v455_v47, %v457_v55 }
  0x32   : > { %10936 = vmatmul.mubr.msk.f32.gmra.mxu0 %vm497_vm2, %v438_v7  ;;  %11034 = vmatmul.mubr.msk.f32.gmra.mxu1 %vm497_vm2, %v13123_v24  ;;  %v460_v7 = vsel %vm405_vm1, %v457_v55, %v459_v57  ;;  %v468_v55 = vsel %vm405_vm1, %v465_v20, %v467_v31  ;;  %v1295_v20 = vrot.slane %v12954_v18, 2 }
  0x33   : > { %10938 = vmatprep.mubr.msk.f32.mxu0 %vm497_vm2, %v440_v12  ;;  %11036 = vmatprep.mubr.msk.f32.mxu1 %vm497_vm2, %v13126_v29  ;;  %v13187_v12 = vld [vmem:[%s12920_s14 + $0x148] sm:$0xff] }
  0x34   : > { %19063 = vst [vmem:[#allocation17_spill] sm:$0xff] %v13187_v12 }
  0x36   : > { %10939 = vmatmul.mubr.msk.f32.gmra.mxu0 %vm497_vm2, %v442_v17  ;;  %11037 = vmatmul.mubr.msk.f32.gmra.mxu1 %vm497_vm2, %v13139_v38  ;;  %v462_v17 = vsel %vm405_vm1, %v459_v57, %v461_v1  ;;  %v13228_v57 = vld [vmem:[%s12920_s14 + $0x168] sm:$0xff] }
  0x37   : > { %10941 = vmatprep.mubr.msk.f32.mxu0 %vm497_vm2, %v444_v21  ;;  %11039 = vmatprep.mubr.msk.f32.mxu1 %vm497_vm2, %v13142_v39  ;;  %v18854_v21 = vrot.slane %v12929_v4, 2  ;;  %19067 = vst [vmem:[#allocation21_spill] sm:$0xff] %v13228_v57 }
  0x39   : > { %v13222_v47 = vsel %vm1281_vm3, %v18854_v21, %v1287_v23  ;;  %v1299_v21 = vrot.slane %v12982_v27, 2 }
  0x3a   : > { %10942 = vmatmul.mubr.msk.f32.gmra.mxu0 %vm497_vm2, %v446_v30  ;;  %11040 = vmatmul.mubr.msk.f32.gmra.mxu1 %vm497_vm2, %v13155_v48  ;;  %v464_v30 = vsel %vm405_vm1, %v461_v1, %v463_v11  ;;  %v1293_v1 = vrot.slane %v12949_v16, 2  ;;  %v473_v11 = vrot.slane %v13126_v29, 1 }
  0x3b   : > { %10944 = vmatprep.mubr.msk.f32.mxu0 %vm497_vm2, %v448_v32  ;;  %11042 = vmatprep.mubr.msk.f32.mxu1 %vm497_vm2, %v13158_v49  ;;  %v13205_v32 = vld [vmem:[%s12920_s14 + $0x158] sm:$0xff] }
  0x3c   : > { %19065 = vst [vmem:[#allocation19_spill] sm:$0xff] %v13205_v32 }
  0x3e   : > { %10945 = vmatmul.mubr.msk.f32.gmra.mxu0 %vm497_vm2, %v450_v40  ;;  %11043 = vmatmul.mubr.msk.f32.gmra.mxu1 %vm497_vm2, %v13171_v62  ;;  %v1289_v40 = vrot.slane %v12938_v9, 2 }
  0x3f   : > { %10947 = vmatprep.mubr.msk.f32.mxu0 %vm497_vm2, %v452_v46  ;;  %11045 = vmatprep.mubr.msk.f32.mxu1 %vm497_vm2, %v13174_v63  ;;  %v469_v46 = vrot.slane %v13110_v15, 1 }
  0x42   : > { %10948 = vmatmul.mubr.msk.f32.gmra.mxu0 %vm497_vm2, %v454_v54  ;;  %11046 = vmatmul.mubr.msk.f32.gmra.mxu1 %vm497_vm2, %v13187_v12  ;;  %v1291_v54 = vrot.slane %v12941_v10, 2 }
  0x43   : > { %10950 = vmatprep.mubr.msk.f32.mxu0 %vm497_vm2, %v456_v56  ;;  %11048 = vmatprep.mubr.msk.f32.mxu1 %vm497_vm2, %v13190_v13  ;;  %v471_v56 = vrot.slane %v13123_v24, 1 }
  0x46   : > { %10951 = vmatmul.mubr.msk.f32.gmra.mxu0 %vm497_vm2, %v458_v0  ;;  %11049 = vmatmul.mubr.msk.f32.gmra.mxu1 %vm497_vm2, %v13205_v32  ;;  %v13236_v0 = vsel %vm1281_vm3, %v1287_v23, %v1289_v40  ;;  %v13254_v23 = vsel %vm1281_vm3, %v1291_v54, %v1293_v1 }
  0x47   : > { %10953 = vmatprep.mubr.msk.f32.mxu0 %vm497_vm2, %v460_v7  ;;  %11051 = vmatprep.mubr.msk.f32.mxu1 %vm497_vm2, %v13208_v37  ;;  %v470_v7 = vsel %vm405_vm1, %v467_v31, %v469_v46  ;;  %19069 = vst [vmem:[#allocation23_spill] sm:$0xff] %v13254_v23  ;;  %v1297_v31 = vrot.slane %v12972_v25, 2 }
  0x4a   : > { %10954 = vmatmul.mubr.msk.f32.gmra.mxu0 %vm497_vm2, %v462_v17  ;;  %11052 = vmatmul.mubr.msk.f32.gmra.mxu1 %vm497_vm2, %v13228_v57  ;;  %v13243_v17 = vsel %vm1281_vm3, %v1289_v40, %v1291_v54  ;;  %v474_v40 = vsel %vm405_vm1, %v471_v56, %v473_v11  ;;  %v13272_v54 = vsel %vm1281_vm3, %v1295_v20, %v1297_v31 }
  0x4b   : > { %10956 = vmatprep.mubr.msk.f32.mxu0 %vm497_vm2, %v464_v30  ;;  %11127 = vmatprep.mubr.msk.f32.mxu1 %vm497_vm2, %v13222_v47  ;;  %19068 = vst [vmem:[#allocation22_spill] sm:$0xff] %v13243_v17  ;;  %v472_v30 = vsel %vm405_vm1, %v469_v46, %v471_v56  ;;  %v477_v46 = vrot.slane %v13142_v39, 1  ;;  %19071 = vst [vmem:[#allocation25_spill] sm:$0xff] %v13272_v54  ;;  %v1301_v56 = vrot.slane %v12998_v33, 2 }
  0x4e   : > { %10957 = vmatmul.mubr.msk.f32.gmra.mxu0 %vm497_vm2, %v466_v45  ;;  %v475_v45 = vrot.slane %v13139_v38, 1  ;;  %11128 = vmatmul.mubr.msk.f32.vlgmr.msra.gmra.mxu1 %vm497_vm2, %v13236_v0 }
  0x4f   : > { %10959 = vmatprep.mubr.msk.f32.mxu0 %vm497_vm2, %v468_v55  ;;  %11130 = vmatprep.mubr.msk.f32.mxu1 %vm497_vm2, %v13243_v17  ;;  %v13261_v55 = vsel %vm1281_vm3, %v1293_v1, %v1295_v20  ;;  %v479_v17 = vrot.slane %v13155_v48, 1  ;;  %v13290_v20 = vsel %vm1281_vm3, %v1299_v21, %v1301_v56 }
  0x50   : > { %19070 = vst [vmem:[#allocation24_spill] sm:$0xff] %v13261_v55  ;;  %v478_v1 = vsel %vm405_vm1, %v475_v45, %v477_v46  ;;  %19073 = vst [vmem:[#allocation27_spill] sm:$0xff] %v13290_v20 }
  0x52   : > { %10960 = vmatmul.mubr.msk.f32.gmra.mxu0 %vm497_vm2, %v470_v7  ;;  %v476_v7 = vsel %vm405_vm1, %v473_v11, %v475_v45  ;;  %11131 = vmatmul.mubr.msk.f32.gmra.mxu1 %vm497_vm2, %v13254_v23  ;;  %v481_v11 = vrot.slane %v13158_v49, 1  ;;  %v1303_v23 = vrot.slane %v13004_v35, 2  ;;  %v1305_v45 = vrot.slane %v13020_v41, 2 }
  0x53   : > { %10962 = vmatprep.mubr.msk.f32.mxu0 %vm497_vm2, %v472_v30  ;;  %11133 = vmatprep.mubr.msk.f32.mxu1 %vm497_vm2, %v13261_v55  ;;  %v13279_v30 = vsel %vm1281_vm3, %v1297_v31, %v1299_v21  ;;  %v483_v55 = vrot.slane %v13171_v62, 1 }
  0x54   : > { %19072 = vst [vmem:[#allocation26_spill] sm:$0xff] %v13279_v30  ;;  %v482_v31 = vsel %vm405_vm1, %v479_v17, %v481_v11  ;;  %v13308_v21 = vsel %vm1281_vm3, %v1303_v23, %v1305_v45 }
  0x55   : > { %19075 = vst [vmem:[#allocation29_spill] sm:$0xff] %v13308_v21 }
  0x56   : > { %10963 = vmatmul.mubr.msk.f32.gmra.mxu0 %vm497_vm2, %v474_v40  ;;  %v480_v40 = vsel %vm405_vm1, %v477_v46, %v479_v17  ;;  %11134 = vmatmul.mubr.msk.f32.gmra.mxu1 %vm497_vm2, %v13272_v54  ;;  %v485_v46 = vrot.slane %v13174_v63, 1  ;;  %v1307_v54 = vrot.slane %v13026_v43, 2  ;;  %v1309_v17 = vrot.slane %v13046_v50, 2 }
  0x57   : > { %10965 = vmatprep.mubr.msk.f32.mxu0 %vm497_vm2, %v476_v7  ;;  %11136 = vmatprep.mubr.msk.f32.mxu1 %vm497_vm2, %v13279_v30  ;;  %v13297_v7 = vsel %vm1281_vm3, %v1301_v56, %v1303_v23  ;;  %v487_v30 = vrot.slane %v13187_v12, 1 }
  0x58   : > { %19074 = vst [vmem:[#allocation28_spill] sm:$0xff] %v13297_v7  ;;  %v486_v56 = vsel %vm405_vm1, %v483_v55, %v485_v46  ;;  %v13326_v23 = vsel %vm1281_vm3, %v1307_v54, %v1309_v17 }
  0x59   : > { %19077 = vst [vmem:[#allocation31_spill] sm:$0xff] %v13326_v23 }
  0x5a   : > { %10966 = vmatmul.mubr.msk.f32.gmra.mxu0 %vm497_vm2, %v478_v1  ;;  %v484_v1 = vsel %vm405_vm1, %v481_v11, %v483_v55  ;;  %11137 = vmatmul.mubr.msk.f32.gmra.mxu1 %vm497_vm2, %v13290_v20  ;;  %v489_v11 = vrot.slane %v13190_v13, 1  ;;  %v1311_v20 = vrot.slane %v13053_v52, 2  ;;  %v1313_v55 = vrot.slane %v13069_v58, 2 }
  0x5b   : > { %10968 = vmatprep.mubr.msk.f32.mxu0 %vm497_vm2, %v480_v40  ;;  %11139 = vmatprep.mubr.msk.f32.mxu1 %vm497_vm2, %v13297_v7  ;;  %v13315_v40 = vsel %vm1281_vm3, %v1305_v45, %v1307_v54  ;;  %v491_v7 = vrot.slane %v13205_v32, 1 }
  0x5c   : > { %19076 = vst [vmem:[#allocation30_spill] sm:$0xff] %v13315_v40  ;;  %v490_v45 = vsel %vm405_vm1, %v487_v30, %v489_v11  ;;  %v13344_v54 = vsel %vm1281_vm3, %v1311_v20, %v1313_v55 }
  0x5e   : > { %10969 = vmatmul.mubr.msk.f32.gmra.mxu0 %vm497_vm2, %v482_v31  ;;  %v488_v31 = vsel %vm405_vm1, %v485_v46, %v487_v30  ;;  %11140 = vmatmul.mubr.msk.f32.gmra.mxu1 %vm497_vm2, %v13308_v21  ;;  %v493_v46 = vrot.slane %v13208_v37, 1  ;;  %v1315_v21 = vrot.slane %v13075_v60, 2  ;;  %v1317_v30 = vrot.slane %v12967_v22, 2 }
  0x5f   : > { %10971 = vmatprep.mubr.msk.f32.mxu0 %vm497_vm2, %v484_v1  ;;  %11142 = vmatprep.mubr.msk.f32.mxu1 %vm497_vm2, %v13315_v40  ;;  %v13333_v1 = vsel %vm1281_vm3, %v1309_v17, %v1311_v20  ;;  %v495_v40 = vrot.slane %v13228_v57, 1 }
  0x60   : > { %v494_v17 = vsel %vm405_vm1, %v491_v7, %v493_v46  ;;  %v13360_v20 = vsel %vm1281_vm3, %v1315_v21, %v1317_v30 }
  0x62   : > { %10972 = vmatmul.mubr.msk.f32.gmra.mxu0 %vm497_vm2, %v486_v56  ;;  %v492_v56 = vsel %vm405_vm1, %v489_v11, %v491_v7  ;;  %11143 = vmatmul.mubr.msk.f32.gmra.mxu1 %vm497_vm2, %v13326_v23  ;;  %v13350_v11 = vsel %vm1281_vm3, %v1313_v55, %v1315_v21  ;;  %v496_v23 = vsel %vm405_vm1, %v493_v46, %v495_v40  ;;  %v1321_v7 = vrot.slane %v12985_v28, 2 }
  0x63   : > { %10974 = vmatprep.mubr.msk.f32.mxu0 %vm497_vm2, %v488_v31  ;;  %11145 = vmatprep.mubr.msk.f32.mxu1 %vm497_vm2, %v13333_v1  ;;  %v1319_v31 = vrot.slane %v12975_v26, 2  ;;  %v1325_v46 = vrot.slane %v13007_v36, 2 }
  0x65   : > { %v13365_v55 = vsel %vm1281_vm3, %v1317_v30, %v1319_v31  ;;  %v13374_v21 = vsel %vm1281_vm3, %v1319_v31, %v1321_v7  ;;  %v13391_v30 = vld [vmem:[%s18847_s2 + $0x10] sm:$0xf]  ;;  %v1329_v31 = vrot.slane %v13029_v44, 2 }
  0x66   : > { %10975 = vmatmul.mubr.msk.f32.gmra.mxu0 %vm497_vm2, %v490_v45  ;;  %11146 = vmatmul.mubr.msk.f32.gmra.mxu1 %vm497_vm2, %v13344_v54  ;;  %v1323_v45 = vrot.slane %v13001_v34, 2 }
  0x67   : > { %10977 = vmatprep.mubr.msk.f32.mxu0 %vm497_vm2, %v492_v56  ;;  %11148 = vmatprep.mubr.msk.f32.mxu1 %vm497_vm2, %v13350_v11 }
  0x68   : > { %v13383_v56 = vsel %vm1281_vm3, %v1321_v7, %v1323_v45 }
  0x6a   : > { %10978 = vmatmul.mubr.msk.f32.gmra.mxu0 %vm497_vm2, %v494_v17  ;;  %11149 = vmatmul.mubr.msk.f32.gmra.mxu1 %vm497_vm2, %v13360_v20  ;;  %v13400_v17 = vsel %vm1281_vm3, %v1323_v45, %v1325_v46  ;;  %v1333_v45 = vrot.slane %v13056_v53, 2  ;;  %v1337_v53 = vrot.slane %v13078_v61, 2  ;;  %v1341_v61 = vrot.slane %v13094_v6, 2 }
  0x6b   : > { %10980 = vmatprep.mubr.msk.f32.mxu0 %vm497_vm2, %v496_v23  ;;  %11151 = vmatprep.mubr.msk.f32.mxu1 %vm497_vm2, %v13365_v55  ;;  %v9485_v23 = vld [vmem:[%s18847_s2 + $0x14] sm:$0xf]  ;;  %v1345_v6 = vrot.slane %v13110_v15, 2  ;;  %v1349_v15 = vrot.slane %v13126_v29, 2  ;;  %v1353_v29 = vrot.slane %v13142_v39, 2  ;;  %v1363_v39 = vrot.slane %v13187_v12, 2 }
  0x6c   : > { %11267 = vmatprep.subr.msk.mxu1 %vm590_vm0, %v9485_v23  ;;  %v19090_v12 = vld [vmem:[#allocation28_spill] sm:$0xff] }
  0x6d   : > { %11268 = vmatpush3.msk.msra.mxu1 %vm590_vm0, %v9485_v23  ;;  %v1331_v23 = vrot.slane %v13049_v51, 2  ;;  %v1335_v51 = vrot.slane %v13072_v59, 2  ;;  %v1339_v59 = vrot.slane %v13091_v5, 2  ;;  %v1343_v5 = vrot.slane %v13107_v14, 2 }
  0x6e   : > { %10981 = vmatmul.mubr.msk.f32.gmra.mxu0 %vm497_vm2, %v495_v40  ;;  %v1327_v40 = vrot.slane %v13023_v42, 2  ;;  %11152 = vmatmul.mubr.msk.f32.gmra.mxu1 %vm497_vm2, %v13374_v21  ;;  %v1347_v14 = vrot.slane %v13123_v24, 2  ;;  %v1351_v24 = vrot.slane %v13139_v38, 2  ;;  %v1355_v38 = vrot.slane %v13155_v48, 2 }
  0x6f   : > { %10985 = vmatprep.mubr.msk.f32.mxu0 %vm497_vm2, %v12923_v2  ;;  %11154 = vmatprep.mubr.msk.f32.mxu1 %vm497_vm2, %v13383_v56 }
  0x70   : > { %v13408_v7 = vsel %vm1281_vm3, %v1325_v46, %v1327_v40  ;;  %v13426_v46 = vsel %vm1281_vm3, %v1329_v31, %v1331_v23 }
  0x72   : > { %10986 = vmatmul.mubr.msk.f32.vlgmr.msra.gmra.mxu0 %vm497_vm2, %v12926_v3  ;;  %11155 = vmatmul.mubr.msk.f32.gmra.mxu1 %vm497_vm2, %v13400_v17 }
  0x73   : > { %11055 = vmatpush3.msk.msra.mxu0 %vm590_vm0, %v12959_v19  ;;  %10988 = vmatprep.mubr.msk.f32.mxu0 %vm497_vm2, %v12929_v4  ;;  %v13420_v19 = vsel %vm1281_vm3, %v1327_v40, %v1329_v31  ;;  %v13436_v40 = vsel %vm1281_vm3, %v1331_v23, %v1333_v45  ;;  %v13442_v31 = vsel %vm1281_vm3, %v1333_v45, %v1335_v51 }
  0x74   : > { %11196 = vmatprep.subr.msk.mxu0 %vm590_vm0, %v13391_v30  ;;  %11157 = vmatprep.mubr.msk.f32.mxu1 %vm497_vm2, %v13408_v7  ;;  %v13452_v23 = vsel %vm1281_vm3, %v1335_v51, %v1337_v53  ;;  %v13458_v45 = vsel %vm1281_vm3, %v1337_v53, %v1339_v59  ;;  %v13468_v51 = vsel %vm1281_vm3, %v1339_v59, %v1341_v61 }
  0x75   : > { %v13474_v53 = vsel %vm1281_vm3, %v1341_v61, %v1343_v5  ;;  %v13484_v59 = vsel %vm1281_vm3, %v1343_v5, %v1345_v6  ;;  %v13490_v61 = vsel %vm1281_vm3, %v1345_v6, %v1347_v14  ;;  %v13500_v5 = vsel %vm1281_vm3, %v1347_v14, %v1349_v15 }
  0x76   : > { %10989 = vmatmul.mubr.msk.f32.gmra.mxu0 %vm497_vm2, %v12935_v8  ;;  %11158 = vmatmul.mubr.msk.f32.gmra.mxu1 %vm497_vm2, %v13420_v19  ;;  %19078 = vst [vmem:[#allocation32_spill] sm:$0xff] %v13474_v53  ;;  %19079 = vst [vmem:[#allocation33_spill] sm:$0xff] %v13484_v59  ;;  %v13506_v6 = vsel %vm1281_vm3, %v1349_v15, %v1351_v24  ;;  %v13518_v14 = vsel %vm1281_vm3, %v1351_v24, %v1353_v29  ;;  %v1357_v15 = vrot.slane %v13158_v49, 2 }
  0x77   : > { %10991 = vmatprep.mubr.msk.f32.mxu0 %vm497_vm2, %v12938_v9  ;;  %11160 = vmatprep.mubr.msk.f32.mxu1 %vm497_vm2, %v13426_v46  ;;  %v1361_v49 = vrot.slane %v13174_v63, 2 }
  0x78   : > { %v13535_v24 = vsel %vm1281_vm3, %v1355_v38, %v1357_v15 }
  0x7a   : > { %10992 = vmatmul.mubr.msk.f32.gmra.mxu0 %vm497_vm2, %v12941_v10  ;;  %11161 = vmatmul.mubr.msk.f32.gmra.mxu1 %vm497_vm2, %v13436_v40 }
  0x7b   : > { %10994 = vmatprep.mubr.msk.f32.mxu0 %vm497_vm2, %v12949_v16  ;;  %11163 = vmatprep.mubr.msk.f32.mxu1 %vm497_vm2, %v13442_v31 }
  0x7e   : > { %10995 = vmatmul.mubr.msk.f32.gmra.mxu0 %vm497_vm2, %v12954_v18  ;;  %11164 = vmatmul.mubr.msk.f32.gmra.mxu1 %vm497_vm2, %v13452_v23 }
  0x7f   : > { %10997 = vmatprep.mubr.msk.f32.mxu0 %vm497_vm2, %v12972_v25  ;;  %11166 = vmatprep.mubr.msk.f32.mxu1 %vm497_vm2, %v13458_v45 }
  0x82   : > { %10998 = vmatmul.mubr.msk.f32.gmra.mxu0 %vm497_vm2, %v12982_v27  ;;  %11167 = vmatmul.mubr.msk.f32.gmra.mxu1 %vm497_vm2, %v13468_v51 }
  0x83   : > { %11000 = vmatprep.mubr.msk.f32.mxu0 %vm497_vm2, %v12998_v33  ;;  %11169 = vmatprep.mubr.msk.f32.mxu1 %vm497_vm2, %v13474_v53  ;;  %v1283_v53 = vrot.slane %v12926_v3, 2  ;;  %v1359_v3 = vrot.slane %v13171_v62, 2 }
  0x85   : > { %v13543_v62 = vsel %vm1281_vm3, %v1357_v15, %v1359_v3  ;;  %v13565_v15 = vsel %vm1281_vm3, %v1361_v49, %v1363_v39 }
  0x86   : > { %11001 = vmatmul.mubr.msk.f32.gmra.mxu0 %vm497_vm2, %v13004_v35  ;;  %11170 = vmatmul.mubr.msk.f32.gmra.mxu1 %vm497_vm2, %v13484_v59  ;;  %v1282_v59 = vrot.slane %v12923_v2, 2  ;;  %v13524_v2 = vsel %vm1281_vm3, %v1353_v29, %v1355_v38  ;;  %v19080_v29 = vrot.slane %v12929_v4, 2  ;;  %v13551_v38 = vld [vmem:[%s18847_s2 + $0x18] sm:$0xf] }
  0x87   : > { %11003 = vmatprep.mubr.msk.f32.mxu0 %vm497_vm2, %v13020_v41  ;;  %11172 = vmatprep.mubr.msk.f32.mxu1 %vm497_vm2, %v13490_v61  ;;  %19081 = vst [vmem:[#allocation34_spill] sm:$0xff] %v13551_v38 }
  0x88   : > { %v1284_v48 = vsel %vm1281_vm3, %v1282_v59, %v1283_v53  ;;  %v1286_v59 = vsel %vm1281_vm3, %v1283_v53, %v19080_v29  ;;  %v1365_v53 = vrot.slane %v13190_v13, 2  ;;  %v1367_v29 = vrot.slane %v13205_v32, 2  ;;  %v13589_v32 = vld [vmem:[%s12920_s14 + $0x170] sm:$0xff]  ;;  %v19089_v13 = vld [vmem:[#allocation27_spill] sm:$0xff] }
  0x8a   : > { %11004 = vmatmul.mubr.msk.f32.gmra.mxu0 %vm497_vm2, %v13026_v43  ;;  %11173 = vmatmul.mubr.msk.f32.gmra.mxu1 %vm497_vm2, %v13500_v5 }
  0x8b   : > { %11006 = vmatprep.mubr.msk.f32.mxu0 %vm497_vm2, %v13046_v50  ;;  %11175 = vmatprep.mubr.msk.f32.mxu1 %vm497_vm2, %v13506_v6 }
  0x8e   : > { %11007 = vmatmul.mubr.msk.f32.gmra.mxu0 %vm497_vm2, %v13053_v52  ;;  %11176 = vmatmul.mubr.msk.f32.gmra.mxu1 %vm497_vm2, %v13518_v14 }
  0x8f   : > { %11009 = vmatprep.mubr.msk.f32.mxu0 %vm497_vm2, %v13069_v58  ;;  %11178 = vmatprep.mubr.msk.f32.mxu1 %vm497_vm2, %v13524_v2 }
  0x92   : > { %11010 = vmatmul.mubr.msk.f32.gmra.mxu0 %vm497_vm2, %v13075_v60  ;;  %11179 = vmatmul.mubr.msk.f32.gmra.mxu1 %vm497_vm2, %v13535_v24 }
  0x93   : > { %11056 = vmatprep.mubr.msk.f32.mxu0 %vm497_vm2, %v1284_v48  ;;  %11181 = vmatprep.mubr.msk.f32.mxu1 %vm497_vm2, %v13543_v62  ;;  %v13557_v48 = vsel %vm1281_vm3, %v1359_v3, %v1361_v49  ;;  %v1369_v49 = vrot.slane %v13208_v37, 2  ;;  %v13583_v3 = vsel %vm1281_vm3, %v1365_v53, %v1367_v29 }
  0x96   : > { %11057 = vmatmul.mubr.msk.f32.vlgmr.msra.gmra.mxu0 %vm497_vm2, %v1286_v59  ;;  %11182 = vmatmul.mubr.msk.f32.gmra.mxu1 %vm497_vm2, %v13557_v48  ;;  %v13586_v59 = vrot.slane %v13228_v57, 2  ;;  %v19086_v57 = vld [vmem:[#allocation24_spill] sm:$0xff] }
  0x97   : > { %11197 = vmatpush3.msk.msra.mxu0 %vm590_vm0, %v13391_v30  ;;  %11059 = vmatprep.mubr.msk.f32.mxu0 %vm497_vm2, %v13222_v47  ;;  %v13577_v30 = vsel %vm1281_vm3, %v1363_v39, %v1365_v53  ;;  %v19082_v47 = vld [vmem:[#allocation22_spill] sm:$0xff]  ;;  %v19085_v39 = vld [vmem:[#allocation23_spill] sm:$0xff]  ;;  %v1813_v53 = vrot.slane %v13589_v32, 2 }
  0x98   : > { %11338 = vmatprep.subr.msk.mxu0 %vm590_vm0, %v13551_v38  ;;  %11184 = vmatprep.mubr.msk.f32.mxu1 %vm497_vm2, %v13565_v15  ;;  %19083 = vst [vmem:[#allocation22_spill] sm:$0xff] %v13589_v32  ;;  %v13608_v37 = vsel %vm1281_vm3, %v1369_v49, %v13586_v59  ;;  %v19088_v32 = vld [vmem:[#allocation26_spill] sm:$0xff] }
  0x9a   : > { %11060 = vmatmul.mubr.msk.f32.gmra.mxu0 %vm497_vm2, %v13236_v0  ;;  %v13592_v0 = vld [vmem:[%s12920_s14 + $0x178] sm:$0xff]  ;;  %11185 = vmatmul.mubr.msk.f32.gmra.mxu1 %vm497_vm2, %v13577_v30 }
  0x9b   : > { %11062 = vmatprep.mubr.msk.f32.mxu0 %vm497_vm2, %v19082_v47  ;;  %19084 = vst [vmem:[#allocation35_spill] sm:$0xff] %v13592_v0  ;;  %11187 = vmatprep.mubr.msk.f32.mxu1 %vm497_vm2, %v13583_v3  ;;  %v13601_v47 = vsel %vm1281_vm3, %v1367_v29, %v1369_v49  ;;  %v1815_v38 = vrot.slane %v13592_v0, 2  ;;  %v1814_v29 = vsel %vm1281_vm3, %v13586_v59, %v1813_v53  ;;  %v2699_v49 = vrot.slane %v12929_v4, 4  ;;  %v19091_v4 = vld [vmem:[#allocation29_spill] sm:$0xff] }
  0x9c   : > { %v2700_v0 = vrot.slane %v12935_v8, 4 }
  0x9e   : > { %11063 = vmatmul.mubr.msk.f32.gmra.mxu0 %vm497_vm2, %v19085_v39  ;;  %11188 = vmatmul.mubr.msk.f32.gmra.mxu1 %vm497_vm2, %v13601_v47  ;;  %v19087_v39 = vld [vmem:[#allocation25_spill] sm:$0xff] }
  0x9f   : > { %11065 = vmatprep.mubr.msk.f32.mxu0 %vm497_vm2, %v19086_v57  ;;  %11190 = vmatprep.mubr.msk.f32.mxu1 %vm497_vm2, %v13608_v37  ;;  %v1816_v57 = vsel %vm1281_vm3, %v1813_v53, %v1815_v38  ;;  %v2704_v53 = vrot.slane %v12941_v10, 4  ;;  %v19093_v10 = vld [vmem:[#allocation31_spill] sm:$0xff] }
  0xa2   : > { %11066 = vmatmul.mubr.msk.f32.gmra.mxu0 %vm497_vm2, %v19087_v39  ;;  %11191 = vmatmul.mubr.msk.f32.gmra.mxu1 %vm497_vm2, %v1814_v29  ;;  %v2702_v39 = vrot.slane %v12938_v9, 4  ;;  %v19092_v29 = vld [vmem:[#allocation30_spill] sm:$0xff] }
  0xa3   : > { %11068 = vmatprep.mubr.msk.f32.mxu0 %vm497_vm2, %v19088_v32  ;;  %11193 = vmatprep.mubr.msk.f32.mxu1 %vm497_vm2, %v1816_v57  ;;  %v2701_v32 = vsel %vm590_vm0, %v2699_v49, %v2700_v0 }
  0xa4   : > { %v2703_v8 = vsel %vm590_vm0, %v2700_v0, %v2702_v39  ;;  %v13642_v9 = vsel %vm590_vm0, %v2702_v39, %v2704_v53  ;;  %v19103_v39 = vld [vmem:[#allocation2_spill] sm:$0xff] }
  0xa6   : > { %11069 = vmatmul.mubr.msk.f32.gmra.mxu0 %vm497_vm2, %v19089_v13  ;;  %11194 = vmatmul.mubr.msk.f32.gmra.mxu1 %vm497_vm2, %v1815_v38  ;;  %v2706_v13 = vrot.slane %v12949_v16, 4  ;;  %v2710_v16 = vrot.slane %v12972_v25, 4  ;;  %v2714_v25 = vrot.slane %v12998_v33, 4  ;;  %v2718_v33 = vrot.slane %v13020_v41, 4 }
  0xa7   : > { %11071 = vmatprep.mubr.msk.f32.mxu0 %vm497_vm2, %v19090_v12  ;;  %11269 = vmatprep.mubr.msk.f32.mxu1 %vm497_vm2, %v2701_v32  ;;  %v2708_v12 = vrot.slane %v12954_v18, 4  ;;  %v2712_v18 = vrot.slane %v12982_v27, 4  ;;  %v2716_v27 = vrot.slane %v13004_v35, 4  ;;  %v2720_v35 = vrot.slane %v13026_v43, 4 }
  0xa8   : > { %v13651_v38 = vsel %vm590_vm0, %v2704_v53, %v2706_v13  ;;  %v2722_v41 = vrot.slane %v13046_v50, 4  ;;  %v2724_v43 = vrot.slane %v13053_v52, 4  ;;  %v2726_v50 = vrot.slane %v13069_v58, 4  ;;  %v19106_v53 = vld [vmem:[#allocation3_spill] sm:$0xff] }
  0xa9   : > { %v13657_v0 = vsel %vm590_vm0, %v2706_v13, %v2708_v12  ;;  %v13667_v57 = vsel %vm590_vm0, %v2708_v12, %v2710_v16  ;;  %v2728_v52 = vrot.slane %v13075_v60, 4  ;;  %v2730_v58 = vrot.slane %v12967_v22, 4  ;;  %v19108_v13 = vld [vmem:[#allocation4_spill] sm:$0xff] }
  0xaa   : > { %11072 = vmatmul.mubr.msk.f32.gmra.mxu0 %vm497_vm2, %v19091_v4  ;;  %11270 = vmatmul.mubr.msk.f32.vlgmr.msra.gmra.mxu1 %vm497_vm2, %v2703_v8  ;;  %v2732_v60 = vrot.slane %v12975_v26, 4  ;;  %v2734_v22 = vrot.slane %v12985_v28, 4  ;;  %v2736_v26 = vrot.slane %v13001_v34, 4  ;;  %v2738_v28 = vrot.slane %v13007_v36, 4 }
  0xab   : > { %11074 = vmatprep.mubr.msk.f32.mxu0 %vm497_vm2, %v19092_v29  ;;  %11272 = vmatprep.mubr.msk.f32.mxu1 %vm497_vm2, %v13642_v9  ;;  %v2740_v34 = vrot.slane %v13023_v42, 4  ;;  %v2742_v42 = vrot.slane %v13029_v44, 4  ;;  %v2744_v32 = vrot.slane %v19103_v39, 4  ;;  %v2746_v4 = vrot.slane %v19106_v53, 4  ;;  %v19123_v53 = vld [vmem:[#allocation11_spill] sm:$0xff] }
  0xac   : > { %v13783_v36 = vsel %vm590_vm0, %v2736_v26, %v2738_v28  ;;  %v2748_v29 = vrot.slane %v19108_v13, 4 }
  0xad   : > { %19100 = vst [vmem:[#allocation29_spill] sm:$0xff] %v13783_v36  ;;  %v13789_v49 = vsel %vm590_vm0, %v2738_v28, %v2740_v34  ;;  %v13800_v44 = vsel %vm590_vm0, %v2740_v34, %v2742_v42  ;;  %v13806_v8 = vsel %vm590_vm0, %v2742_v42, %v2744_v32  ;;  %v19118_v28 = vld [vmem:[#allocation9_spill] sm:$0xff] }
  0xae   : > { %11075 = vmatmul.mubr.msk.f32.gmra.mxu0 %vm497_vm2, %v19093_v10  ;;  %11273 = vmatmul.mubr.msk.f32.gmra.mxu1 %vm497_vm2, %v13651_v38  ;;  %19102 = vst [vmem:[#allocation30_spill] sm:$0xff] %v13789_v49  ;;  %19105 = vst [vmem:[#allocation31_spill] sm:$0xff] %v13800_v44  ;;  %v13818_v10 = vsel %vm590_vm0, %v2744_v32, %v2746_v4  ;;  %v2758_v34 = vrot.slane %v19118_v28, 4  ;;  %v19131_v28 = vld [vmem:[#allocation14_spill] sm:$0xff] }
  0xaf   : > { %11077 = vmatprep.mubr.msk.f32.mxu0 %vm497_vm2, %v13333_v1  ;;  %11275 = vmatprep.mubr.msk.f32.mxu1 %vm497_vm2, %v13657_v0  ;;  %v13673_v1 = vsel %vm590_vm0, %v2710_v16, %v2712_v18  ;;  %19109 = vst [vmem:[#allocation2_spill] sm:$0xff] %v13818_v10 }
  0xb2   : > { %11078 = vmatmul.mubr.msk.f32.gmra.mxu0 %vm497_vm2, %v13344_v54  ;;  %11276 = vmatmul.mubr.msk.f32.gmra.mxu1 %vm497_vm2, %v13667_v57  ;;  %v13683_v54 = vsel %vm590_vm0, %v2712_v18, %v2714_v25  ;;  %v13824_v18 = vsel %vm590_vm0, %v2746_v4, %v2748_v29  ;;  %v2762_v4 = vrot.slane %v19123_v53, 4 }
  0xb3   : > { %11080 = vmatprep.mubr.msk.f32.mxu0 %vm497_vm2, %v13350_v11  ;;  %11278 = vmatprep.mubr.msk.f32.mxu1 %vm497_vm2, %v13673_v1  ;;  %v13689_v11 = vsel %vm590_vm0, %v2714_v25, %v2716_v27  ;;  %v19112_v25 = vld [vmem:[#allocation6_spill] sm:$0xff] }
  0xb6   : > { %11081 = vmatmul.mubr.msk.f32.gmra.mxu0 %vm497_vm2, %v13360_v20  ;;  %11279 = vmatmul.mubr.msk.f32.gmra.mxu1 %vm497_vm2, %v13683_v54  ;;  %v13699_v20 = vsel %vm590_vm0, %v2716_v27, %v2718_v33  ;;  %v2752_v27 = vrot.slane %v19112_v25, 4 }
  0xb7   : > { %11083 = vmatprep.mubr.msk.f32.mxu0 %vm497_vm2, %v13365_v55  ;;  %11281 = vmatprep.mubr.msk.f32.mxu1 %vm497_vm2, %v13689_v11  ;;  %v13705_v55 = vsel %vm590_vm0, %v2718_v33, %v2720_v35 }
  0xba   : > { %11084 = vmatmul.mubr.msk.f32.gmra.mxu0 %vm497_vm2, %v13374_v21  ;;  %11282 = vmatmul.mubr.msk.f32.gmra.mxu1 %vm497_vm2, %v13699_v20  ;;  %v13715_v21 = vsel %vm590_vm0, %v2720_v35, %v2722_v41 }
  0xbb   : > { %11086 = vmatprep.mubr.msk.f32.mxu0 %vm497_vm2, %v13383_v56  ;;  %11284 = vmatprep.mubr.msk.f32.mxu1 %vm497_vm2, %v13705_v55  ;;  %v13721_v56 = vsel %vm590_vm0, %v2722_v41, %v2724_v43  ;;  %v19114_v41 = vld [vmem:[#allocation7_spill] sm:$0xff] }
  0xbe   : > { %11087 = vmatmul.mubr.msk.f32.gmra.mxu0 %vm497_vm2, %v13400_v17  ;;  %11285 = vmatmul.mubr.msk.f32.gmra.mxu1 %vm497_vm2, %v13715_v21  ;;  %v13731_v17 = vsel %vm590_vm0, %v2724_v43, %v2726_v50  ;;  %v2754_v43 = vrot.slane %v19114_v41, 4  ;;  %v19129_v41 = vld [vmem:[#allocation13_spill] sm:$0xff] }
  0xbf   : > { %11089 = vmatprep.mubr.msk.f32.mxu0 %vm497_vm2, %v13408_v7  ;;  %11287 = vmatprep.mubr.msk.f32.mxu1 %vm497_vm2, %v13721_v56  ;;  %19094 = vst [vmem:[#allocation23_spill] sm:$0xff] %v13731_v17  ;;  %v13737_v7 = vsel %vm590_vm0, %v2726_v50, %v2728_v52 }
  0xc0   : > { %19095 = vst [vmem:[#allocation24_spill] sm:$0xff] %v13737_v7 }
  0xc2   : > { %11090 = vmatmul.mubr.msk.f32.gmra.mxu0 %vm497_vm2, %v13420_v19  ;;  %11288 = vmatmul.mubr.msk.f32.gmra.mxu1 %vm497_vm2, %v13731_v17  ;;  %v13747_v19 = vsel %vm590_vm0, %v2728_v52, %v2730_v58 }
  0xc3   : > { %11092 = vmatprep.mubr.msk.f32.mxu0 %vm497_vm2, %v13426_v46  ;;  %11290 = vmatprep.mubr.msk.f32.mxu1 %vm497_vm2, %v13737_v7  ;;  %19096 = vst [vmem:[#allocation25_spill] sm:$0xff] %v13747_v19  ;;  %v13753_v46 = vsel %vm590_vm0, %v2730_v58, %v2732_v60  ;;  %v19116_v58 = vld [vmem:[#allocation8_spill] sm:$0xff] }
  0xc4   : > { %19097 = vst [vmem:[#allocation26_spill] sm:$0xff] %v13753_v46 }
  0xc6   : > { %11093 = vmatmul.mubr.msk.f32.gmra.mxu0 %vm497_vm2, %v13436_v40  ;;  %11291 = vmatmul.mubr.msk.f32.gmra.mxu1 %vm497_vm2, %v13747_v19  ;;  %v13763_v40 = vsel %vm590_vm0, %v2732_v60, %v2734_v22  ;;  %v2756_v60 = vrot.slane %v19116_v58, 4 }
  0xc7   : > { %11095 = vmatprep.mubr.msk.f32.mxu0 %vm497_vm2, %v13442_v31  ;;  %11293 = vmatprep.mubr.msk.f32.mxu1 %vm497_vm2, %v13753_v46  ;;  %19098 = vst [vmem:[#allocation27_spill] sm:$0xff] %v13763_v40  ;;  %v13769_v31 = vsel %vm590_vm0, %v2734_v22, %v2736_v26  ;;  %v14063_v46 = vld [vmem:[%s12920_s14 + $0x58] sm:$0xff] }
  0xc8   : > { %19099 = vst [vmem:[#allocation28_spill] sm:$0xff] %v13769_v31  ;;  %v13872_v42 = vsel %vm590_vm0, %v2754_v43, %v2756_v60 }
  0xc9   : > { %19119 = vst [vmem:[#allocation6_spill] sm:$0xff] %v13872_v42 }
  0xca   : > { %11096 = vmatmul.mubr.msk.f32.gmra.mxu0 %vm497_vm2, %v13452_v23  ;;  %v9581_v23 = vld [vmem:[%s18847_s2 + $0x1c] sm:$0xf]  ;;  %11294 = vmatmul.mubr.msk.f32.gmra.mxu1 %vm497_vm2, %v13763_v40  ;;  %v14050_v40 = vld [vmem:[%s12920_s14 + $0x50] sm:$0xff] }
  0xcb   : > { %11098 = vmatprep.mubr.msk.f32.mxu0 %vm497_vm2, %v13458_v45  ;;  %11409 = vmatprep.subr.msk.mxu1 %vm590_vm0, %v9581_v23  ;;  %v19101_v45 = vld [vmem:[#allocation32_spill] sm:$0xff] }
  0xcc   : > { %11296 = vmatprep.mubr.msk.f32.mxu1 %vm497_vm2, %v13769_v31  ;;  %11410 = vmatpush3.msk.msra.mxu1 %vm590_vm0, %v9581_v23  ;;  %19107 = vst [vmem:[#allocation32_spill] sm:$0xff] %v13806_v8  ;;  %v14029_v31 = vld [vmem:[%s12920_s14 + $0x48] sm:$0xff] }
  0xce   : > { %11099 = vmatmul.mubr.msk.f32.gmra.mxu0 %vm497_vm2, %v13468_v51  ;;  %11297 = vmatmul.mubr.msk.f32.gmra.mxu1 %vm497_vm2, %v13783_v36  ;;  %v19104_v51 = vld [vmem:[#allocation33_spill] sm:$0xff]  ;;  %v14016_v36 = vld [vmem:[%s12920_s14 + $0x40] sm:$0xff] }
  0xcf   : > { %11101 = vmatprep.mubr.msk.f32.mxu0 %vm497_vm2, %v19101_v45  ;;  %11299 = vmatprep.mubr.msk.f32.mxu1 %vm497_vm2, %v13789_v49  ;;  %19111 = vst [vmem:[#allocation33_spill] sm:$0xff] %v13824_v18  ;;  %v19120_v45 = vld [vmem:[#allocation10_spill] sm:$0xff] }
  0xd0   : > { %v2760_v39 = vrot.slane %v19120_v45, 4  ;;  %v12747_v45 = vld [vmem:[%s12920_s14 + $0x10] sm:$0xff] }
  0xd1   : > { %v2170_v53 = vrot.slane %v12747_v45, 3 }
  0xd2   : > { %11102 = vmatmul.mubr.msk.f32.gmra.mxu0 %vm497_vm2, %v19104_v51  ;;  %11300 = vmatmul.mubr.msk.f32.gmra.mxu1 %vm497_vm2, %v13800_v44  ;;  %v19146_v44 = vld [vmem:[#allocation18_spill] sm:$0xff] }
  0xd3   : > { %11104 = vmatprep.mubr.msk.f32.mxu0 %vm497_vm2, %v13490_v61  ;;  %11302 = vmatprep.mubr.msk.f32.mxu1 %vm497_vm2, %v13806_v8  ;;  %v19110_v61 = vld [vmem:[#allocation5_spill] sm:$0xff]  ;;  %v2778_v49 = vrot.slane %v19146_v44, 4 }
  0xd4   : > { %v2750_v16 = vrot.slane %v19110_v61, 4  ;;  %v19125_v61 = vld [vmem:[#allocation12_spill] sm:$0xff]  ;;  %v13990_v8 = vld [vmem:[%s12920_s14 + $0x38] sm:$0xff] }
  0xd6   : > { %v13811_v12 = vpop.f32.mrf.mxu0  ;;  %11105 = vmatmul.mubr.msk.f32.gmra.mxu0 %vm497_vm2, %v13500_v5  ;;  %v13829_v35 = vpop.f32.mrf.mxu1  ;;  %11303 = vmatmul.mubr.msk.f32.gmra.mxu1 %vm497_vm2, %v13818_v10  ;;  %v13848_v52 = vsel %vm590_vm0, %v2750_v16, %v2752_v27  ;;  %v19142_v10 = vld [vmem:[#allocation17_spill] sm:$0xff] }
  0xd7   : > { %11107 = vmatprep.mubr.msk.f32.mxu0 %vm497_vm2, %v13506_v6  ;;  %11305 = vmatprep.mubr.msk.f32.mxu1 %vm497_vm2, %v13824_v18  ;;  %v13840_v6 = vsel %vm590_vm0, %v2748_v29, %v2750_v16  ;;  %19115 = vst [vmem:[#allocation4_spill] sm:$0xff] %v13848_v52  ;;  %v13896_v29 = vsel %vm590_vm0, %v2758_v34, %v2760_v39  ;;  %v2764_v16 = vrot.slane %v19125_v61, 4  ;;  %v12748_v61 = vld [vmem:[%s12920_s14 + $0x18] sm:$0xff] }
  0xd8   : > { %v13827_v33 = vpop.f32.mrf.mxu0  ;;  %19113 = vst [vmem:[#allocation3_spill] sm:$0xff] %v13840_v6  ;;  %v13845_v50 = vpop.f32.mrf.mxu1  ;;  %19124 = vst [vmem:[#allocation9_spill] sm:$0xff] %v13896_v29 }
  0xda   : > { %v13833_v5 = vpop.f32.mrf.mxu0  ;;  %11108 = vmatmul.mubr.msk.f32.gmra.mxu0 %vm497_vm2, %v13518_v14  ;;  %v13853_v14 = vpop.f32.mrf.mxu1  ;;  %11306 = vmatmul.mubr.msk.f32.gmra.mxu1 %vm497_vm2, %v13840_v6  ;;  %v13977_v6 = vld [vmem:[%s12920_s14 + $0x30] sm:$0xff] }
  0xdb   : > { %11110 = vmatprep.mubr.msk.f32.mxu0 %vm497_vm2, %v13524_v2  ;;  %11308 = vmatprep.mubr.msk.f32.mxu1 %vm497_vm2, %v13848_v52  ;;  %v13864_v2 = vsel %vm590_vm0, %v2752_v27, %v2754_v43  ;;  %v2766_v43 = vrot.slane %v19129_v41, 4 }
  0xdc   : > { %v13851_v22 = vpop.f32.mrf.mxu0  ;;  %19117 = vst [vmem:[#allocation5_spill] sm:$0xff] %v13864_v2  ;;  %v13869_v23 = vpop.f32.mrf.mxu1 }
  0xde   : > { %v13857_v26 = vpop.f32.mrf.mxu0  ;;  %11111 = vmatmul.mubr.msk.f32.gmra.mxu0 %vm497_vm2, %v13535_v24  ;;  %v13877_v24 = vpop.f32.mrf.mxu1  ;;  %11309 = vmatmul.mubr.msk.f32.gmra.mxu1 %vm497_vm2, %v13864_v2 }
  0xdf   : > { %11113 = vmatprep.mubr.msk.f32.mxu0 %vm497_vm2, %v13543_v62  ;;  %11311 = vmatprep.mubr.msk.f32.mxu1 %vm497_vm2, %v13872_v42  ;;  %v13888_v62 = vsel %vm590_vm0, %v2756_v60, %v2758_v34  ;;  %v13920_v60 = vsel %vm590_vm0, %v2762_v4, %v2764_v16  ;;  %v2768_v34 = vrot.slane %v19131_v28, 4  ;;  %v19135_v28 = vld [vmem:[#allocation15_spill] sm:$0xff] }
  0xe0   : > { %v13875_v32 = vpop.f32.mrf.mxu0  ;;  %19122 = vst [vmem:[#allocation8_spill] sm:$0xff] %v13888_v62  ;;  %v13893_v13 = vpop.f32.mrf.mxu1  ;;  %19130 = vst [vmem:[#allocation13_spill] sm:$0xff] %v13920_v60  ;;  %v2770_v45 = vrot.slane %v19135_v28, 4  ;;  %v13957_v28 = vld [vmem:[%s12920_s14 + $0x28] sm:$0xff] }
  0xe2   : > { %v13881_v51 = vpop.f32.mrf.mxu0  ;;  %11114 = vmatmul.mubr.msk.f32.gmra.mxu0 %vm497_vm2, %v13557_v48  ;;  %v13901_v25 = vpop.f32.mrf.mxu1  ;;  %11312 = vmatmul.mubr.msk.f32.gmra.mxu1 %vm497_vm2, %v13888_v62  ;;  %v19137_v62 = vld [vmem:[#allocation16_spill] sm:$0xff] }
  0xe3   : > { %19121 = vst [vmem:[#allocation7_spill] sm:$0xff] %v13881_v51  ;;  %11116 = vmatprep.mubr.msk.f32.mxu0 %vm497_vm2, %v13565_v15  ;;  %11314 = vmatprep.mubr.msk.f32.mxu1 %vm497_vm2, %v13896_v29  ;;  %v13912_v15 = vsel %vm590_vm0, %v2760_v39, %v2762_v4  ;;  %v2171_v39 = vrot.slane %v12748_v61, 3  ;;  %v13938_v4 = vsel %vm590_vm0, %v2764_v16, %v2766_v43  ;;  %v13944_v61 = vld [vmem:[%s12920_s14 + $0x20] sm:$0xff] }
  0xe4   : > { %v13899_v48 = vpop.f32.mrf.mxu0  ;;  %19128 = vst [vmem:[#allocation12_spill] sm:$0xff] %v13912_v15  ;;  %v13917_v58 = vpop.f32.mrf.mxu1  ;;  %19134 = vst [vmem:[#allocation37_spill] sm:$0xff] %v13938_v4 }
  0xe5   : > { %19126 = vst [vmem:[#allocation10_spill] sm:$0xff] %v13899_v48  ;;  %v2172_v16 = vsel %vm2169_vm4, %v2170_v53, %v2171_v39  ;;  %v19161_v48 = vld [vmem:[#allocation35_spill] sm:$0xff] }
  0xe6   : > { %v13905_v27 = vpop.f32.mrf.mxu0  ;;  %11117 = vmatmul.mubr.msk.f32.gmra.mxu0 %vm497_vm2, %v13577_v30  ;;  %v13927_v41 = vpop.f32.mrf.mxu1  ;;  %11315 = vmatmul.mubr.msk.f32.gmra.mxu1 %vm497_vm2, %v13912_v15  ;;  %v2173_v15 = vrot.slane %v13944_v61, 3 }
  0xe7   : > { %19127 = vst [vmem:[#allocation11_spill] sm:$0xff] %v13905_v27  ;;  %11119 = vmatprep.mubr.msk.f32.mxu0 %vm497_vm2, %v13583_v3  ;;  %11317 = vmatprep.mubr.msk.f32.mxu1 %vm497_vm2, %v13920_v60  ;;  %v2772_v60 = vrot.slane %v19137_v62, 4  ;;  %v13971_v62 = vsel %vm590_vm0, %v2768_v34, %v2770_v45 }
  0xe8   : > { %v13923_v30 = vpop.f32.mrf.mxu0  ;;  %v13947_v29 = vpop.f32.mrf.mxu1  ;;  %19140 = vst [vmem:[#allocation39_spill] sm:$0xff] %v13971_v62  ;;  %v2174_v53 = vsel %vm2169_vm4, %v2171_v39, %v2173_v15  ;;  %v2179_v39 = vrot.slane %v13990_v8, 3 }
  0xe9   : > { %19132 = vst [vmem:[#allocation14_spill] sm:$0xff] %v13923_v30 }
  0xea   : > { %v13931_v3 = vpop.f32.mrf.mxu0  ;;  %11120 = vmatmul.mubr.msk.f32.gmra.mxu0 %vm497_vm2, %v13601_v47  ;;  %v13950_v47 = vsel %vm590_vm0, %v2766_v43, %v2768_v34  ;;  %v13960_v2 = vpop.f32.mrf.mxu1  ;;  %11318 = vmatmul.mubr.msk.f32.gmra.mxu1 %vm497_vm2, %v13938_v4  ;;  %v2774_v43 = vrot.slane %v13174_v63, 4  ;;  %v2177_v4 = vrot.slane %v13977_v6, 3 }
  0xeb   : > { %19133 = vst [vmem:[#allocation36_spill] sm:$0xff] %v13931_v3  ;;  %11122 = vmatprep.mubr.msk.f32.mxu0 %vm497_vm2, %v13608_v37  ;;  %19136 = vst [vmem:[#allocation15_spill] sm:$0xff] %v13950_v47  ;;  %v2175_v37 = vrot.slane %v13957_v28, 3  ;;  %11320 = vmatprep.mubr.msk.f32.mxu1 %vm497_vm2, %v13950_v47  ;;  %v2776_v47 = vrot.slane %v19142_v10, 4 }
  0xec   : > { %v13953_v42 = vpop.f32.mrf.mxu0  ;;  %v13980_v18 = vpop.f32.mrf.mxu1 }
  0xed   : > { %19138 = vst [vmem:[#allocation16_spill] sm:$0xff] %v13953_v42  ;;  %v2176_v63 = vsel %vm2169_vm4, %v2173_v15, %v2175_v37  ;;  %v14008_v15 = vsel %vm590_vm0, %v2772_v60, %v2774_v43 }
  0xee   : > { %v13964_v52 = vpop.f32.mrf.mxu0  ;;  %11123 = vmatmul.mubr.msk.f32.gmra.mxu0 %vm497_vm2, %v13586_v59  ;;  %v13983_v59 = vsel %vm590_vm0, %v2770_v45, %v2772_v60  ;;  %11321 = vmatmul.mubr.msk.f32.gmra.mxu1 %vm497_vm2, %v13971_v62  ;;  %v14000_v45 = vld [vmem:[%s18847_s2 + $0x20] sm:$0xf]  ;;  %19145 = vst [vmem:[#allocation42_spill] sm:$0xff] %v14008_v15  ;;  %v2178_v62 = vsel %vm2169_vm4, %v2175_v37, %v2177_v4  ;;  %v19149_v60 = vld [vmem:[#allocation19_spill] sm:$0xff]  ;;  %v2183_v37 = vrot.slane %v14029_v31, 3 }
  0xef   : > { %19139 = vst [vmem:[#allocation38_spill] sm:$0xff] %v13964_v52  ;;  %11198 = vmatprep.mubr.msk.f32.mxu0 %vm497_vm2, %v2172_v16  ;;  %19141 = vst [vmem:[#allocation40_spill] sm:$0xff] %v13983_v59  ;;  %v13993_v16 = vpop.f32.mrf.mxu1  ;;  %11323 = vmatprep.mubr.msk.f32.mxu1 %vm497_vm2, %v13983_v59  ;;  %v14022_v59 = vsel %vm590_vm0, %v2774_v43, %v2776_v47  ;;  %v2780_v52 = vrot.slane %v19149_v60, 4  ;;  %v19153_v60 = vld [vmem:[#allocation20_spill] sm:$0xff] }
  0xf0   : > { %v13986_v34 = vpop.f32.mrf.mxu0  ;;  %19148 = vst [vmem:[#allocation18_spill] sm:$0xff] %v14022_v59 }
  0xf1   : > { %19143 = vst [vmem:[#allocation17_spill] sm:$0xff] %v13986_v34  ;;  %v19147_v34 = vld [vmem:[#allocation34_spill] sm:$0xff] }
  0xf2   : > { %v14002_v10 = vpop.f32.mrf.mxu0  ;;  %11199 = vmatmul.mubr.msk.f32.vlgmr.msra.gmra.mxu0 %vm497_vm2, %v2174_v53  ;;  %v14019_v53 = vpop.f32.mrf.mxu1  ;;  %11324 = vmatmul.mubr.msk.f32.gmra.mxu1 %vm497_vm2, %v14008_v15  ;;  %v2185_v15 = vrot.slane %v14050_v40, 3 }
  0xf3   : > { %19144 = vst [vmem:[#allocation41_spill] sm:$0xff] %v14002_v10  ;;  %11339 = vmatpush3.msk.msra.mxu0 %vm590_vm0, %v19147_v34  ;;  %11201 = vmatprep.mubr.msk.f32.mxu0 %vm497_vm2, %v2176_v63  ;;  %v2181_v10 = vrot.slane %v14016_v36, 3  ;;  %v2180_v34 = vsel %vm2169_vm4, %v2177_v4, %v2179_v39  ;;  %v14044_v4 = vsel %vm590_vm0, %v2776_v47, %v2778_v49 }
  0xf4   : > { %v14025_v44 = vpop.f32.mrf.mxu0  ;;  %11480 = vmatprep.subr.msk.mxu0 %vm590_vm0, %v14000_v45  ;;  %v14034_v63 = vpop.f32.mrf.mxu1  ;;  %11326 = vmatprep.mubr.msk.f32.mxu1 %vm497_vm2, %v14022_v59  ;;  %19152 = vst [vmem:[#allocation43_spill] sm:$0xff] %v14044_v4  ;;  %v19155_v59 = vld [vmem:[#allocation21_spill] sm:$0xff] }
  0xf5   : > { %19150 = vst [vmem:[#allocation34_spill] sm:$0xff] %v14025_v44  ;;  %v2782_v44 = vrot.slane %v19153_v60, 4  ;;  %v2182_v42 = vsel %vm2169_vm4, %v2179_v39, %v2181_v10  ;;  %v2784_v3 = vrot.slane %v19155_v59, 4  ;;  %v2184_v60 = vsel %vm2169_vm4, %v2181_v10, %v2183_v37 }
  0xf6   : > { %v14038_v43 = vpop.f32.mrf.mxu0  ;;  %11202 = vmatmul.mubr.msk.f32.gmra.mxu0 %vm497_vm2, %v2178_v62  ;;  %v14056_v62 = vsel %vm590_vm0, %v2778_v49, %v2780_v52  ;;  %11327 = vmatmul.mubr.msk.f32.gmra.mxu1 %vm497_vm2, %v14044_v4  ;;  %v14072_v49 = vld [vmem:[%s12920_s14 + $0x60] sm:$0xff] }
  0xf7   : > { %19151 = vst [vmem:[#allocation19_spill] sm:$0xff] %v14038_v43  ;;  %11204 = vmatprep.mubr.msk.f32.mxu0 %vm497_vm2, %v2180_v34  ;;  %v14053_v43 = vpop.f32.mrf.mxu1  ;;  %19154 = vst [vmem:[#allocation20_spill] sm:$0xff] %v14056_v62  ;;  %v2187_v34 = vrot.slane %v14063_v46, 3  ;;  %v2189_v59 = vrot.slane %v14072_v49, 3  ;;  %11329 = vmatprep.mubr.msk.f32.mxu1 %vm497_vm2, %v14056_v62  ;;  %v14078_v10 = vsel %vm590_vm0, %v2780_v52, %v2782_v44  ;;  %v14092_v62 = vrot.slane %v19161_v48, 4 }
  0xf8   : > { %v14059_v47 = vpop.f32.mrf.mxu0  ;;  %19157 = vst [vmem:[#allocation44_spill] sm:$0xff] %v14078_v10  ;;  %v14089_v7 = vsel %vm590_vm0, %v2782_v44, %v2784_v3 }
  0xf9   : > { %19156 = vst [vmem:[#allocation21_spill] sm:$0xff] %v14059_v47  ;;  %v14066_v39 = vpop.f32.mrf.mxu1  ;;  %v19158_v47 = vld [vmem:[#allocation22_spill] sm:$0xff]  ;;  %19160 = vst [vmem:[#allocation45_spill] sm:$0xff] %v14089_v7  ;;  %v2188_v17 = vsel %vm2169_vm4, %v2185_v15, %v2187_v34  ;;  %v2190_v48 = vsel %vm2169_vm4, %v2187_v34, %v2189_v59 }
  0xfa   : > { %v10943_v30 = vpop.f32.mrf.mxu0  ;;  %11205 = vmatmul.mubr.msk.f32.gmra.mxu0 %vm497_vm2, %v2182_v42  ;;  %v2786_v19 = vrot.slane %v19158_v47, 4  ;;  %v2186_v42 = vsel %vm2169_vm4, %v2183_v37, %v2185_v15  ;;  %19162 = vst [vmem:[#allocation35_spill] sm:$0xff] %v14092_v62  ;;  %v14096_v47 = vld [vmem:[%s12920_s14 + $0x68] sm:$0xff]  ;;  %11330 = vmatmul.mubr.msk.f32.gmra.mxu1 %vm497_vm2, %v14078_v10  ;;  %v14109_v37 = vld [vmem:[%s12920_s14 + $0x70] sm:$0xff] }
  0xfb   : > { %v14082_v27 = vadd.f32 %v13829_v35, %v10943_v30  ;;  %11207 = vmatprep.mubr.msk.f32.mxu0 %vm497_vm2, %v2184_v60  ;;  %v14086_v4 = vpop.f32.mrf.mxu1  ;;  %v2191_v35 = vrot.slane %v14096_v47, 3  ;;  %v2193_v15 = vrot.slane %v14109_v37, 3  ;;  %11332 = vmatprep.mubr.msk.f32.mxu1 %vm497_vm2, %v14089_v7 }
  0xfc   : > { %v750_v52 = vpop.f32.mrf.mxu0  ;;  %v14125_v34 = vsel %vm590_vm0, %v2786_v19, %v14092_v62 }
  0xfd   : > { %19159 = vst [vmem:[#allocation22_spill] sm:$0xff] %v14082_v27  ;;  %v14100_v30 = vadd.f32 %v13845_v50, %v750_v52  ;;  %v14102_v60 = vpop.f32.mrf.mxu1  ;;  %v14115_v50 = vsel %vm590_vm0, %v2784_v3, %v2786_v19  ;;  %19166 = vst [vmem:[#allocation49_spill] sm:$0xff] %v14125_v34  ;;  %v2192_v3 = vsel %vm2169_vm4, %v2189_v59, %v2191_v35  ;;  %v14131_v27 = vld [vmem:[%s12920_s14 + $0x78] sm:$0xff]  ;;  %v3590_v59 = vrot.slane %v13977_v6, 5 }
  0xfe   : > { %v10946_v44 = vpop.f32.mrf.mxu0  ;;  %11208 = vmatmul.mubr.msk.f32.gmra.mxu0 %vm497_vm2, %v2186_v42  ;;  %19164 = vst [vmem:[#allocation47_spill] sm:$0xff] %v14115_v50  ;;  %v3587_v42 = vrot.slane %v13944_v61, 5  ;;  %11333 = vmatmul.mubr.msk.f32.gmra.mxu1 %vm497_vm2, %v14115_v50  ;;  %v14143_v61 = vld [vmem:[%s12920_s14 + $0x80] sm:$0xff] }
  0xff   : > { %19163 = vst [vmem:[#allocation46_spill] sm:$0xff] %v14100_v30  ;;  %v14118_v52 = vadd.f32 %v13853_v14, %v10946_v44  ;;  %11210 = vmatprep.mubr.msk.f32.mxu0 %vm497_vm2, %v2188_v17  ;;  %v14121_v10 = vpop.f32.mrf.mxu1  ;;  %v3588_v30 = vrot.slane %v13957_v28, 5  ;;  %v2195_v14 = vrot.slane %v14131_v27, 3  ;;  %v2197_v28 = vrot.slane %v14143_v61, 3  ;;  %11335 = vmatprep.mubr.msk.f32.mxu1 %vm497_vm2, %v14125_v34  ;;  %v14160_v34 = vld [vmem:[%s12920_s14 + $0x88] sm:$0xff] }
 0x100   : > { %v760_v7 = vpop.f32.mrf.mxu0  ;;  %v2199_v6 = vrot.slane %v14160_v34, 3 }
 0x101   : > { %19165 = vst [vmem:[#allocation48_spill] sm:$0xff] %v14118_v52  ;;  %v14135_v17 = vadd.f32 %v13869_v23, %v760_v7  ;;  %v14137_v44 = vpop.f32.mrf.mxu1  ;;  %v2194_v23 = vsel %vm2169_vm4, %v2191_v35, %v2193_v15  ;;  %v2196_v51 = vsel %vm2169_vm4, %v2193_v15, %v2195_v14  ;;  %v3591_v15 = vsel %vm3586_vm5, %v3588_v30, %v3590_v59 }
 0x102   : > { %v10949_v19 = vpop.f32.mrf.mxu0  ;;  %11211 = vmatmul.mubr.msk.f32.gmra.mxu0 %vm497_vm2, %v2190_v48  ;;  %v3589_v48 = vsel %vm3586_vm5, %v3587_v42, %v3588_v30  ;;  %11336 = vmatmul.mubr.msk.f32.gmra.mxu1 %vm497_vm2, %v14092_v62  ;;  %v3594_v42 = vrot.slane %v14016_v36, 5  ;;  %v2200_v30 = vsel %vm2169_vm4, %v2197_v28, %v2199_v6  ;;  %v14189_v36 = vld [vmem:[%s12920_s14 + $0x98] sm:$0xff] }
 0x103   : > { %19167 = vst [vmem:[#allocation50_spill] sm:$0xff] %v14135_v17  ;;  %v14150_v7 = vadd.f32 %v13877_v24, %v10949_v19  ;;  %11213 = vmatprep.mubr.msk.f32.mxu0 %vm497_vm2, %v2192_v3  ;;  %v14154_v50 = vpop.f32.mrf.mxu1  ;;  %v3592_v17 = vrot.slane %v13990_v8, 5  ;;  %v2198_v8 = vsel %vm2169_vm4, %v2195_v14, %v2197_v28  ;;  %11411 = vmatprep.mubr.msk.f32.mxu1 %vm497_vm2, %v3589_v48 }
 0x104   : > { %v770_v52 = vpop.f32.mrf.mxu0 }
 0x105   : > { %19168 = vst [vmem:[#allocation51_spill] sm:$0xff] %v14150_v7  ;;  %v14164_v24 = vadd.f32 %v13893_v13, %v770_v52  ;;  %v14166_v3 = vpop.f32.mrf.mxu1  ;;  %v14180_v52 = vld [vmem:[%s12920_s14 + $0x90] sm:$0xff]  ;;  %v3593_v14 = vsel %vm3586_vm5, %v3590_v59, %v3592_v17  ;;  %v14200_v59 = vld [vmem:[%s12920_s14 + $0xa0] sm:$0xff]  ;;  %v3595_v28 = vsel %vm3586_vm5, %v3592_v17, %v3594_v42  ;;  %v14217_v17 = vld [vmem:[%s12920_s14 + $0xa8] sm:$0xff] }
 0x106   : > { %v10952_v35 = vpop.f32.mrf.mxu0  ;;  %11214 = vmatmul.mubr.msk.f32.gmra.mxu0 %vm497_vm2, %v2194_v23  ;;  %v2201_v19 = vrot.slane %v14180_v52, 3  ;;  %v3596_v23 = vrot.slane %v14029_v31, 5  ;;  %11412 = vmatmul.mubr.msk.f32.vlgmr.msra.gmra.mxu1 %vm497_vm2, %v3591_v15  ;;  %v2205_v31 = vrot.slane %v14200_v59, 3 }
 0x107   : > { %19169 = vst [vmem:[#allocation52_spill] sm:$0xff] %v14164_v24  ;;  %v14176_v13 = vadd.f32 %v13901_v25, %v10952_v35  ;;  %11216 = vmatprep.mubr.msk.f32.mxu0 %vm497_vm2, %v2196_v51  ;;  %v14183_v62 = vpop.f32.mrf.mxu1  ;;  %v2203_v25 = vrot.slane %v14189_v36, 3  ;;  %11414 = vmatprep.mubr.msk.f32.mxu1 %vm497_vm2, %v3593_v14  ;;  %v3598_v24 = vrot.slane %v14050_v40, 5  ;;  %v2207_v40 = vrot.slane %v14217_v17, 3 }
 0x108   : > { %v780_v48 = vpop.f32.mrf.mxu0  ;;  %v2202_v15 = vsel %vm2169_vm4, %v2199_v6, %v2201_v19 }
 0x109   : > { %19170 = vst [vmem:[#allocation53_spill] sm:$0xff] %v14176_v13  ;;  %v14193_v35 = vadd.f32 %v13917_v58, %v780_v48  ;;  %v14195_v51 = vpop.f32.mrf.mxu1  ;;  %v2204_v14 = vsel %vm2169_vm4, %v2201_v19, %v2203_v25  ;;  %v3602_v19 = vrot.slane %v14072_v49, 5  ;;  %v14245_v49 = vld [vmem:[%s12920_s14 + $0xb8] sm:$0xff] }
 0x10a   : > { %v10955_v13 = vpop.f32.mrf.mxu0  ;;  %11217 = vmatmul.mubr.msk.f32.gmra.mxu0 %vm497_vm2, %v2198_v8  ;;  %v3597_v8 = vsel %vm3586_vm5, %v3594_v42, %v3596_v23  ;;  %11415 = vmatmul.mubr.msk.f32.gmra.mxu1 %vm497_vm2, %v3595_v28  ;;  %v3599_v42 = vsel %vm3586_vm5, %v3596_v23, %v3598_v24  ;;  %v2208_v23 = vsel %vm2169_vm4, %v2205_v31, %v2207_v40 }
 0x10b   : > { %19171 = vst [vmem:[#allocation54_spill] sm:$0xff] %v14193_v35  ;;  %v14207_v58 = vadd.f32 %v13927_v41, %v10955_v13  ;;  %11219 = vmatprep.mubr.msk.f32.mxu0 %vm497_vm2, %v2200_v30  ;;  %v14211_v48 = vpop.f32.mrf.mxu1  ;;  %v3600_v35 = vrot.slane %v14063_v46, 5  ;;  %v2206_v46 = vsel %vm2169_vm4, %v2203_v25, %v2205_v31  ;;  %11417 = vmatprep.mubr.msk.f32.mxu1 %vm497_vm2, %v3597_v8 }
 0x10c   : > { %v790_v7 = vpop.f32.mrf.mxu0 }
 0x10d   : > { %v14221_v41 = vadd.f32 %v13947_v29, %v790_v7  ;;  %v14223_v13 = vpop.f32.mrf.mxu1  ;;  %v14236_v29 = vld [vmem:[%s12920_s14 + $0xb0] sm:$0xff]  ;;  %v3601_v25 = vsel %vm3586_vm5, %v3598_v24, %v3600_v35  ;;  %v14256_v24 = vld [vmem:[%s12920_s14 + $0xc0] sm:$0xff]  ;;  %v3603_v31 = vsel %vm3586_vm5, %v3600_v35, %v3602_v19  ;;  %v14273_v35 = vld [vmem:[%s12920_s14 + $0xc8] sm:$0xff] }
 0x10e   : > { %v10958_v6 = vpop.f32.mrf.mxu0  ;;  %11220 = vmatmul.mubr.msk.f32.gmra.mxu0 %vm497_vm2, %v2202_v15  ;;  %v2209_v7 = vrot.slane %v14236_v29, 3  ;;  %v3604_v15 = vrot.slane %v14096_v47, 5  ;;  %11418 = vmatmul.mubr.msk.f32.gmra.mxu1 %vm497_vm2, %v3599_v42  ;;  %v2213_v47 = vrot.slane %v14256_v24, 3 }
 0x10f   : > { %19172 = vst [vmem:[#allocation55_spill] sm:$0xff] %v14221_v41  ;;  %v14232_v30 = vadd.f32 %v13960_v2, %v10958_v6  ;;  %11222 = vmatprep.mubr.msk.f32.mxu0 %vm497_vm2, %v2204_v14  ;;  %v14239_v28 = vpop.f32.mrf.mxu1  ;;  %v2211_v2 = vrot.slane %v14245_v49, 3  ;;  %11420 = vmatprep.mubr.msk.f32.mxu1 %vm497_vm2, %v3601_v25  ;;  %v3606_v41 = vrot.slane %v14109_v37, 5  ;;  %v2215_v37 = vrot.slane %v14273_v35, 3 }
 0x110   : > { %v800_v8 = vpop.f32.mrf.mxu0  ;;  %v2210_v42 = vsel %vm2169_vm4, %v2207_v40, %v2209_v7 }
 0x111   : > { %19173 = vst [vmem:[#allocation56_spill] sm:$0xff] %v14232_v30  ;;  %v14249_v6 = vadd.f32 %v13980_v18, %v800_v8  ;;  %v14251_v14 = vpop.f32.mrf.mxu1  ;;  %v2212_v25 = vsel %vm2169_vm4, %v2209_v7, %v2211_v2  ;;  %v3610_v7 = vrot.slane %v14143_v61, 5  ;;  %v14301_v61 = vld [vmem:[%s12920_s14 + $0xd8] sm:$0xff] }
 0x112   : > { %19175 = vst [vmem:[#allocation58_spill] sm:$0xff] %v14251_v14  ;;  %v10961_v30 = vpop.f32.mrf.mxu0  ;;  %11223 = vmatmul.mubr.msk.f32.gmra.mxu0 %vm497_vm2, %v2206_v46  ;;  %v3605_v46 = vsel %vm3586_vm5, %v3602_v19, %v3604_v15  ;;  %v3608_v14 = vrot.slane %v14131_v27, 5  ;;  %11421 = vmatmul.mubr.msk.f32.gmra.mxu1 %vm497_vm2, %v3603_v31  ;;  %v2214_v27 = vsel %vm2169_vm4, %v2211_v2, %v2213_v47 }
 0x113   : > { %19174 = vst [vmem:[#allocation57_spill] sm:$0xff] %v14249_v6  ;;  %v14263_v18 = vadd.f32 %v13993_v16, %v10961_v30  ;;  %11225 = vmatprep.mubr.msk.f32.mxu0 %vm497_vm2, %v2208_v23  ;;  %v14267_v8 = vpop.f32.mrf.mxu1  ;;  %11423 = vmatprep.mubr.msk.f32.mxu1 %vm497_vm2, %v3605_v46  ;;  %v3607_v19 = vsel %vm3586_vm5, %v3604_v15, %v3606_v41 }
 0x114   : > { %19176 = vst [vmem:[#allocation59_spill] sm:$0xff] %v14267_v8  ;;  %v810_v6 = vpop.f32.mrf.mxu0  ;;  %v3609_v2 = vsel %vm3586_vm5, %v3606_v41, %v3608_v14  ;;  %v2216_v15 = vsel %vm2169_vm4, %v2213_v47, %v2215_v37  ;;  %v14312_v41 = vld [vmem:[%s12920_s14 + $0xe0] sm:$0xff]  ;;  %v3611_v47 = vsel %vm3586_vm5, %v3608_v14, %v3610_v7  ;;  %v12847_v14 = vmov 0  }
 0x115   : > { %v14277_v16 = vadd.f32 %v14019_v53, %v810_v6  ;;  %v14279_v30 = vpop.f32.mrf.mxu1  ;;  %v14292_v53 = vld [vmem:[%s12920_s14 + $0xd0] sm:$0xff]  ;;  %12745 = vset.pattern.permute.xlu0 %v12847_v14  ;;  %12746 = vset.pattern.permute.xlu1 %v12847_v14 }
 0x116   : > { %19177 = vst [vmem:[#allocation60_spill] sm:$0xff] %v14279_v30  ;;  %v10964_v40 = vpop.f32.mrf.mxu0  ;;  %11226 = vmatmul.mubr.msk.f32.gmra.mxu0 %vm497_vm2, %v2210_v42  ;;  %v2217_v6 = vrot.slane %v14292_v53, 3  ;;  %v3612_v42 = vrot.slane %v14160_v34, 5  ;;  %11424 = vmatmul.mubr.msk.f32.gmra.mxu1 %vm497_vm2, %v3607_v19  ;;  %v2221_v34 = vrot.slane %v14312_v41, 3 }
 0x117   : > { %v14288_v23 = vadd.f32 %v14034_v63, %v10964_v40  ;;  %11228 = vmatprep.mubr.msk.f32.mxu0 %vm497_vm2, %v2212_v25  ;;  %v14295_v31 = vpop.f32.mrf.mxu1  ;;  %v2219_v63 = vrot.slane %v14301_v61, 3  ;;  %11426 = vmatprep.mubr.msk.f32.mxu1 %vm497_vm2, %v3609_v2  ;;  %v3616_v2 = vrot.slane %v14189_v36, 5 }
 0x118   : > { %19178 = vst [vmem:[#allocation61_spill] sm:$0xff] %v14295_v31  ;;  %v820_v46 = vpop.f32.mrf.mxu0  ;;  %v3614_v31 = vrot.slane %v14180_v52, 5 }
 0x119   : > { %v14305_v40 = vadd.f32 %v14053_v43, %v820_v46  ;;  %v14307_v25 = vpop.f32.mrf.mxu1  ;;  %v4743_v43 = vld [vmem:[%s18846_s1] sm:$0xff]  ;;  %v2220_v8 = vsel %vm2169_vm4, %v2217_v6, %v2219_v63 }
 0x11a   : > { %19180 = vst [vmem:[#allocation63_spill] sm:$0xff] %v14307_v25  ;;  %v10967_v30 = vpop.f32.mrf.mxu0  ;;  %11229 = vmatmul.mubr.msk.f32.gmra.mxu0 %vm497_vm2, %v2214_v27  ;;  %v2218_v27 = vsel %vm2169_vm4, %v2215_v37, %v2217_v6  ;;  %v3613_v25 = vsel %vm3586_vm5, %v3610_v7, %v3612_v42  ;;  %4791 = vperm.xlu0 %12745, %v4743_v43  }
 0x11b   : > { %19179 = vst [vmem:[#allocation62_spill] sm:$0xff] %v14305_v40  ;;  %v14322_v19 = vadd.f32 %v14066_v39, %v10967_v30  ;;  %11231 = vmatprep.mubr.msk.f32.mxu0 %vm497_vm2, %v2216_v15  ;;  %v14326_v46 = vpop.f32.mrf.mxu1  ;;  %v14332_v40 = vld [vmem:[%s12920_s14 + $0xe8] sm:$0xff]  ;;  %11427 = vmatmul.mubr.msk.f32.gmra.mxu1 %vm497_vm2, %v3611_v47  ;;  %v2222_v7 = vsel %vm2169_vm4, %v2219_v63, %v2221_v34  ;;  %v3618_v15 = vrot.slane %v14200_v59, 5  ;;  %v14354_v47 = vld [vmem:[%s12920_s14 + $0xf0] sm:$0xff]  ;;  %v3620_v59 = vrot.slane %v14217_v17, 5 }
 0x11c   : > { %19181 = vst [vmem:[#allocation64_spill] sm:$0xff] %v14326_v46  ;;  %v830_v52 = vpop.f32.mrf.mxu0  ;;  %v2223_v39 = vrot.slane %v14332_v40, 3  ;;  %11429 = vmatprep.mubr.msk.f32.mxu1 %vm497_vm2, %v3613_v25  ;;  %v3615_v6 = vsel %vm3586_vm5, %v3612_v42, %v3614_v31  ;;  %v2225_v63 = vrot.slane %v14354_v47, 3  ;;  %v3617_v42 = vsel %vm3586_vm5, %v3614_v31, %v3616_v2  ;;  %v14374_v31 = vld [vmem:[%s12920_s14 + $0x100] sm:$0xff]  ;;  %v14397_v46 = vld [vmem:[%s12920_s14 + $0x108] sm:$0xff] }
 0x11d   : > { %v14336_v37 = vadd.f32 %v14086_v4, %v830_v52  ;;  %v14338_v30 = vpop.f32.mrf.mxu1  ;;  %v4744_v4 = vld [vmem:[%s18846_s1 + $0x8] sm:$0xff]  ;;  %v14363_v52 = vld [vmem:[%s12920_s14 + $0xf8] sm:$0xff]  ;;  %v2229_v17 = vrot.slane %v14374_v31, 3 }
 0x11e   : > { %19182 = vst [vmem:[#allocation65_spill] sm:$0xff] %v14338_v30  ;;  %v10970_v36 = vpop.f32.mrf.mxu0  ;;  %11232 = vmatmul.mubr.msk.f32.gmra.mxu0 %vm497_vm2, %v2218_v27  ;;  %v2224_v14 = vsel %vm2169_vm4, %v2221_v34, %v2223_v39  ;;  %4796 = vperm.xlu0 %12745, %v4744_v4   ;;  %v3619_v34 = vsel %vm3586_vm5, %v3616_v2, %v3618_v15  ;;  %v3622_v4 = vrot.slane %v14236_v29, 5  ;;  %v3624_v29 = vrot.slane %v14245_v49, 5 }
 0x11f   : > { %v14350_v43 = vadd.f32 %v14102_v60, %v10970_v36  ;;  %11234 = vmatprep.mubr.msk.f32.mxu0 %vm497_vm2, %v2220_v8  ;;  %v14357_v27 = vpop.f32.mrf.mxu1  ;;  %v2227_v60 = vrot.slane %v14363_v52, 3  ;;  %11430 = vmatmul.mubr.msk.f32.gmra.mxu1 %vm497_vm2, %v3615_v6  ;;  %v4747_v6 = vld [vmem:[%s18846_s1 + $0x20] sm:$0xff]  ;;  %v3621_v2 = vsel %vm3586_vm5, %v3618_v15, %v3620_v59 }
 0x120   : > { %19183 = vst [vmem:[#allocation66_spill] sm:$0xff] %v14357_v27  ;;  %v840_v25 = vpop.f32.mrf.mxu0  ;;  %11432 = vmatprep.mubr.msk.f32.mxu1 %vm497_vm2, %v3617_v42 }
 0x121   : > { %v14367_v8 = vadd.f32 %v14121_v10, %v840_v25  ;;  %v14369_v36 = vpop.f32.mrf.mxu1  ;;  %v4745_v10 = vld [vmem:[%s18846_s1 + $0x10] sm:$0xff]  ;;  %v2226_v25 = vsel %vm2169_vm4, %v2223_v39, %v2225_v63  ;;  %v2228_v30 = vsel %vm2169_vm4, %v2225_v63, %v2227_v60  ;;  %v2230_v49 = vsel %vm2169_vm4, %v2227_v60, %v2229_v17 }
 0x122   : > { %19184 = vst [vmem:[#allocation67_spill] sm:$0xff] %v14369_v36  ;;  %v10973_v27 = vpop.f32.mrf.mxu0  ;;  %11235 = vmatmul.mubr.msk.f32.gmra.mxu0 %vm497_vm2, %v2222_v7  ;;  %4801 = vperm.xlu1 %12746, %v4745_v10   ;;  %v3623_v63 = vsel %vm3586_vm5, %v3620_v59, %v3622_v4  ;;  %v14422_v60 = vld [vmem:[%s12920_s14 + $0x110] sm:$0xff] }
 0x123   : > { %v14387_v7 = vadd.f32 %v14137_v44, %v10973_v27  ;;  %11237 = vmatprep.mubr.msk.f32.mxu0 %vm497_vm2, %v2224_v14  ;;  %v14391_v42 = vpop.f32.mrf.mxu1  ;;  %v2231_v44 = vrot.slane %v14397_v46, 3  ;;  %4811 = vperm.xlu0 %12745, %v4747_v6   ;;  %v3626_v14 = vrot.slane %v14256_v24, 5  ;;  %v2233_v59 = vrot.slane %v14422_v60, 3 }
 0x124   : > { %19185 = vst [vmem:[#allocation68_spill] sm:$0xff] %v14391_v42  ;;  %v850_v36 = vpop.f32.mrf.mxu0  ;;  %11433 = vmatmul.mubr.msk.f32.gmra.mxu1 %vm497_vm2, %v3619_v34  ;;  %v3625_v24 = vsel %vm3586_vm5, %v3622_v4, %v3624_v29  ;;  %v3628_v6 = vrot.slane %v14273_v35, 5  ;;  %v14442_v35 = vld [vmem:[%s12920_s14 + $0x120] sm:$0xff]  ;;  %v14465_v42 = vld [vmem:[%s12920_s14 + $0x128] sm:$0xff] }
 0x125   : > { %v14401_v27 = vadd.f32 %v14154_v50, %v850_v36  ;;  %v14403_v39 = vpop.f32.mrf.mxu1  ;;  %11435 = vmatprep.mubr.msk.f32.mxu1 %vm497_vm2, %v3621_v2  ;;  %v4746_v50 = vld [vmem:[%s18846_s1 + $0x18] sm:$0xff]  ;;  %v4749_v36 = vld [vmem:[%s18846_s1 + $0x30] sm:$0xff]  ;;  %v2232_v2 = vsel %vm2169_vm4, %v2229_v17, %v2231_v44  ;;  %v2237_v17 = vrot.slane %v14442_v35, 3  ;;  %v3627_v4 = vsel %vm3586_vm5, %v3624_v29, %v3626_v14 }
 0x126   : > { %19186 = vst [vmem:[#allocation69_spill] sm:$0xff] %v14403_v39  ;;  %v10976_v15 = vpop.f32.mrf.mxu0  ;;  %11238 = vmatmul.mubr.msk.f32.gmra.mxu0 %vm497_vm2, %v2226_v25  ;;  %4806 = vperm.xlu1 %12746, %v4746_v50   ;;  %v14431_v39 = vld [vmem:[%s12920_s14 + $0x118] sm:$0xff]  ;;  %v3630_v50 = vrot.slane %v14292_v53, 5  ;;  %v3629_v29 = vsel %vm3586_vm5, %v3626_v14, %v3628_v6  ;;  %v3632_v53 = vrot.slane %v14301_v61, 5 }
 0x127   : > { %v14418_v34 = vadd.f32 %v14166_v3, %v10976_v15  ;;  %11240 = vmatprep.mubr.msk.f32.mxu0 %vm497_vm2, %v2228_v30  ;;  %v14425_v10 = vpop.f32.mrf.mxu1  ;;  %v2235_v3 = vrot.slane %v14431_v39, 3  ;;  %4821 = vperm.xlu0 %12745, %v4749_v36   ;;  %v2234_v36 = vsel %vm2169_vm4, %v2231_v44, %v2233_v59 }
 0x128   : > { %19188 = vst [vmem:[#allocation71_spill] sm:$0xff] %v14425_v10  ;;  %v860_v25 = vpop.f32.mrf.mxu0  ;;  %11436 = vmatmul.mubr.msk.f32.gmra.mxu1 %vm497_vm2, %v3623_v63  ;;  %v4751_v63 = vld [vmem:[%s18846_s1 + $0x40] sm:$0xff] }
 0x129   : > { %19187 = vst [vmem:[#allocation70_spill] sm:$0xff] %v14418_v34  ;;  %v14435_v30 = vadd.f32 %v14183_v62, %v860_v25  ;;  %v14437_v15 = vpop.f32.mrf.mxu1  ;;  %11438 = vmatprep.mubr.msk.f32.mxu1 %vm497_vm2, %v3625_v24  ;;  %v4748_v62 = vld [vmem:[%s18846_s1 + $0x28] sm:$0xff]  ;;  %v2238_v61 = vsel %vm2169_vm4, %v2235_v3, %v2237_v17 }
 0x12a   : > { %19190 = vst [vmem:[#allocation73_spill] sm:$0xff] %v14437_v15  ;;  %v10979_v10 = vpop.f32.mrf.mxu0  ;;  %11241 = vmatmul.mubr.msk.f32.gmra.mxu0 %vm497_vm2, %v2230_v49  ;;  %4816 = vperm.xlu1 %12746, %v4748_v62   ;;  %v2236_v15 = vsel %vm2169_vm4, %v2233_v59, %v2235_v3  ;;  %v3631_v59 = vsel %vm3586_vm5, %v3628_v6, %v3630_v50  ;;  %v14490_v3 = vld [vmem:[%s12920_s14 + $0x130] sm:$0xff] }
 0x12b   : > { %19189 = vst [vmem:[#allocation72_spill] sm:$0xff] %v14435_v30  ;;  %v14455_v49 = vadd.f32 %v14195_v51, %v10979_v10  ;;  %11243 = vmatprep.mubr.msk.f32.mxu0 %vm497_vm2, %v2232_v2  ;;  %v14459_v24 = vpop.f32.mrf.mxu1  ;;  %v2239_v51 = vrot.slane %v14465_v42, 3  ;;  %4831 = vperm.xlu0 %12745, %v4751_v63   ;;  %v3634_v2 = vrot.slane %v14312_v41, 5  ;;  %v2241_v63 = vrot.slane %v14490_v3, 3  ;;  %v14630_v30 = vld [vmem:[%s12920_s14 + $0x178] sm:$0xff] }
 0x12c   : > { %19192 = vst [vmem:[#allocation75_spill] sm:$0xff] %v14459_v24  ;;  %v870_v25 = vpop.f32.mrf.mxu0  ;;  %11439 = vmatmul.mubr.msk.f32.gmra.mxu1 %vm497_vm2, %v3627_v4  ;;  %v4753_v4 = vld [vmem:[%s18846_s1 + $0x50] sm:$0xff]  ;;  %v3633_v41 = vsel %vm3586_vm5, %v3630_v50, %v3632_v53 }
 0x12d   : > { %19191 = vst [vmem:[#allocation74_spill] sm:$0xff] %v14455_v49  ;;  %v14469_v10 = vadd.f32 %v14211_v48, %v870_v25  ;;  %v14471_v44 = vpop.f32.mrf.mxu1  ;;  %11441 = vmatprep.mubr.msk.f32.mxu1 %vm497_vm2, %v3629_v29  ;;  %v4750_v48 = vld [vmem:[%s18846_s1 + $0x38] sm:$0xff]  ;;  %v2240_v25 = vsel %vm2169_vm4, %v2237_v17, %v2239_v51  ;;  %v3638_v17 = vrot.slane %v14354_v47, 5 }
 0x12e   : > { %19194 = vst [vmem:[#allocation77_spill] sm:$0xff] %v14471_v44  ;;  %v10982_v14 = vpop.f32.mrf.mxu0  ;;  %11244 = vmatmul.mubr.msk.f32.gmra.mxu0 %vm497_vm2, %v2234_v36  ;;  %v3636_v36 = vrot.slane %v14332_v40, 5  ;;  %4826 = vperm.xlu1 %12746, %v4750_v48   ;;  %v14499_v44 = vld [vmem:[%s12920_s14 + $0x138] sm:$0xff]  ;;  %v3635_v40 = vsel %vm3586_vm5, %v3632_v53, %v3634_v2  ;;  %v4755_v48 = vld [vmem:[%s18846_s1 + $0x60] sm:$0xff]  ;;  %v3640_v53 = vrot.slane %v14363_v52, 5 }
 0x12f   : > { %19193 = vst [vmem:[#allocation76_spill] sm:$0xff] %v14469_v10  ;;  %v14486_v62 = vadd.f32 %v14223_v13, %v10982_v14  ;;  %11246 = vmatprep.mubr.msk.f32.mxu0 %vm497_vm2, %v2236_v15  ;;  %v14493_v6 = vpop.f32.mrf.mxu1  ;;  %v2243_v13 = vrot.slane %v14499_v44, 3  ;;  %4841 = vperm.xlu0 %12745, %v4753_v4   ;;  %v14598_v10 = vld [vmem:[%s12920_s14 + $0x168] sm:$0xff] }
 0x130   : > { %19196 = vst [vmem:[#allocation79_spill] sm:$0xff] %v14493_v6  ;;  %v880_v29 = vpop.f32.mrf.mxu0  ;;  %11442 = vmatmul.mubr.msk.f32.gmra.mxu1 %vm497_vm2, %v3631_v59  ;;  %v2242_v59 = vsel %vm2169_vm4, %v2239_v51, %v2241_v63  ;;  %v3637_v47 = vsel %vm3586_vm5, %v3634_v2, %v3636_v36  ;;  %v14534_v6 = vld [vmem:[%s12920_s14 + $0x148] sm:$0xff]  ;;  %v3639_v52 = vsel %vm3586_vm5, %v3636_v36, %v3638_v17  ;;  %v3642_v2 = vrot.slane %v14374_v31, 5 }
 0x131   : > { %19195 = vst [vmem:[#allocation78_spill] sm:$0xff] %v14486_v62  ;;  %v14503_v15 = vadd.f32 %v14239_v28, %v880_v29  ;;  %v14505_v14 = vpop.f32.mrf.mxu1  ;;  %11444 = vmatprep.mubr.msk.f32.mxu1 %vm497_vm2, %v3633_v41  ;;  %v4752_v28 = vld [vmem:[%s18846_s1 + $0x48] sm:$0xff]  ;;  %v2247_v51 = vrot.slane %v14534_v6, 3  ;;  %v3641_v31 = vsel %vm3586_vm5, %v3638_v17, %v3640_v53  ;;  %v3644_v36 = vrot.slane %v14397_v46, 5 }
 0x132   : > { %19198 = vst [vmem:[#allocation81_spill] sm:$0xff] %v14505_v14  ;;  %v14508_v50 = vpop.f32.mrf.mxu0  ;;  %11247 = vmatmul.mubr.msk.f32.gmra.mxu0 %vm497_vm2, %v2238_v61  ;;  %v14523_v61 = vld [vmem:[%s12920_s14 + $0x140] sm:$0xff]  ;;  %4836 = vperm.xlu1 %12746, %v4752_v28   ;;  %v2244_v14 = vsel %vm2169_vm4, %v2241_v63, %v2243_v13  ;;  %v4754_v63 = vld [vmem:[%s18846_s1 + $0x58] sm:$0xff]  ;;  %v4757_v28 = vld [vmem:[%s18846_s1 + $0x70] sm:$0xff]  ;;  %v3643_v46 = vsel %vm3586_vm5, %v3640_v53, %v3642_v2  ;;  %v3646_v17 = vrot.slane %v14422_v60, 5  ;;  %v3648_v53 = vrot.slane %v14431_v39, 5 }
 0x133   : > { %19197 = vst [vmem:[#allocation80_spill] sm:$0xff] %v14503_v15  ;;  %11249 = vmatprep.mubr.msk.f32.mxu0 %vm497_vm2, %v2240_v25  ;;  %v2245_v4 = vrot.slane %v14523_v61, 3  ;;  %v14526_v41 = vpop.f32.mrf.mxu1  ;;  %4851 = vperm.xlu0 %12745, %v4755_v48   ;;  %v14555_v48 = vld [vmem:[%s12920_s14 + $0x150] sm:$0xff]  ;;  %v14566_v15 = vld [vmem:[%s12920_s14 + $0x158] sm:$0xff]  ;;  %v3645_v60 = vsel %vm3586_vm5, %v3642_v2, %v3644_v36  ;;  %v3650_v2 = vrot.slane %v14442_v35, 5 }
 0x134   : > { %19199 = vst [vmem:[#allocation82_spill] sm:$0xff] %v14526_v41  ;;  %v14530_v29 = vpop.f32.mrf.mxu0  ;;  %11445 = vmatmul.mubr.msk.f32.gmra.mxu1 %vm497_vm2, %v3635_v40  ;;  %v3647_v39 = vsel %vm3586_vm5, %v3644_v36, %v3646_v17  ;;  %v3649_v35 = vsel %vm3586_vm5, %v3646_v17, %v3648_v53  ;;  %v3652_v36 = vrot.slane %v14465_v42, 5  ;;  %v3654_v17 = vrot.slane %v14490_v3, 5 }
 0x135   : > { %v14537_v25 = vpop.f32.mrf.mxu1  ;;  %11447 = vmatprep.mubr.msk.f32.mxu1 %vm497_vm2, %v3637_v47  ;;  %v2246_v40 = vsel %vm2169_vm4, %v2243_v13, %v2245_v4  ;;  %v2248_v24 = vsel %vm2169_vm4, %v2245_v4, %v2247_v51  ;;  %v2251_v13 = vrot.slane %v14566_v15, 3  ;;  %v4756_v4 = vld [vmem:[%s18846_s1 + $0x68] sm:$0xff]  ;;  %v3651_v42 = vsel %vm3586_vm5, %v3648_v53, %v3650_v2 }
 0x136   : > { %19200 = vst [vmem:[#allocation83_spill] sm:$0xff] %v14537_v25  ;;  %v14540_v41 = vpop.f32.mrf.mxu0  ;;  %11250 = vmatmul.mubr.msk.f32.gmra.mxu0 %vm497_vm2, %v2242_v59  ;;  %v2249_v59 = vrot.slane %v14555_v48, 3  ;;  %4846 = vperm.xlu1 %12746, %v4754_v63   ;;  %v4759_v63 = vld [vmem:[%s18846_s1 + $0x80] sm:$0xff]  ;;  %v3656_v53 = vrot.slane %v14499_v44, 5  ;;  %v3658_v44 = vrot.slane %v14523_v61, 5 }
 0x137   : > { %11252 = vmatprep.mubr.msk.f32.mxu0 %vm497_vm2, %v2244_v14  ;;  %v14558_v47 = vpop.f32.mrf.mxu1  ;;  %4861 = vperm.xlu0 %12745, %v4757_v28   ;;  %v14587_v28 = vld [vmem:[%s12920_s14 + $0x160] sm:$0xff] }
 0x138   : > { %19201 = vst [vmem:[#allocation84_spill] sm:$0xff] %v14558_v47  ;;  %v14562_v25 = vpop.f32.mrf.mxu0  ;;  %11448 = vmatmul.mubr.msk.f32.gmra.mxu1 %vm497_vm2, %v3639_v52  ;;  %v2250_v52 = vsel %vm2169_vm4, %v2247_v51, %v2249_v59  ;;  %v2252_v62 = vsel %vm2169_vm4, %v2249_v59, %v2251_v13  ;;  %v4758_v59 = vld [vmem:[%s18846_s1 + $0x78] sm:$0xff] }
 0x139   : > { %v14569_v14 = vpop.f32.mrf.mxu1  ;;  %11450 = vmatprep.mubr.msk.f32.mxu1 %vm497_vm2, %v3641_v31 }
 0x13a   : > { %19202 = vst [vmem:[#allocation85_spill] sm:$0xff] %v14569_v14  ;;  %v14572_v47 = vpop.f32.mrf.mxu0  ;;  %11253 = vmatmul.mubr.msk.f32.gmra.mxu0 %vm497_vm2, %v2246_v40  ;;  %v2253_v40 = vrot.slane %v14587_v28, 3  ;;  %4856 = vperm.xlu1 %12746, %v4756_v4   ;;  %v4761_v4 = vld [vmem:[%s18846_s1 + $0x90] sm:$0xff] }
 0x13b   : > { %11255 = vmatprep.mubr.msk.f32.mxu0 %vm497_vm2, %v2248_v24  ;;  %v14590_v31 = vpop.f32.mrf.mxu1  ;;  %v2255_v24 = vrot.slane %v14598_v10, 3  ;;  %4871 = vperm.xlu0 %12745, %v4759_v63   ;;  %v14619_v63 = vld [vmem:[%s12920_s14 + $0x170] sm:$0xff] }
 0x13c   : > { %19203 = vst [vmem:[#allocation86_spill] sm:$0xff] %v14590_v31  ;;  %v14594_v14 = vpop.f32.mrf.mxu0  ;;  %11451 = vmatmul.mubr.msk.f32.gmra.mxu1 %vm497_vm2, %v3643_v46  ;;  %v2254_v46 = vsel %vm2169_vm4, %v2251_v13, %v2253_v40 }
 0x13d   : > { %v14601_v51 = vpop.f32.mrf.mxu1  ;;  %11453 = vmatprep.mubr.msk.f32.mxu1 %vm497_vm2, %v3645_v60  ;;  %v2256_v49 = vsel %vm2169_vm4, %v2253_v40, %v2255_v24  ;;  %v4760_v40 = vld [vmem:[%s18846_s1 + $0x88] sm:$0xff] }
 0x13e   : > { %19204 = vst [vmem:[#allocation87_spill] sm:$0xff] %v14601_v51  ;;  %v14604_v31 = vpop.f32.mrf.mxu0  ;;  %11256 = vmatmul.mubr.msk.f32.gmra.mxu0 %vm497_vm2, %v2250_v52  ;;  %v2257_v52 = vrot.slane %v14619_v63, 3  ;;  %4866 = vperm.xlu1 %12746, %v4758_v59   ;;  %v4763_v59 = vld [vmem:[%s18846_s1 + $0xa0] sm:$0xff] }
 0x13f   : > { %11258 = vmatprep.mubr.msk.f32.mxu0 %vm497_vm2, %v2252_v62  ;;  %v14622_v60 = vpop.f32.mrf.mxu1  ;;  %v2259_v62 = vrot.slane %v14630_v30, 3  ;;  %4881 = vperm.xlu0 %12745, %v4761_v4  }
 0x140   : > { %19205 = vst [vmem:[#allocation88_spill] sm:$0xff] %v14622_v60  ;;  %v14626_v51 = vpop.f32.mrf.mxu0  ;;  %11454 = vmatmul.mubr.msk.f32.gmra.mxu1 %vm497_vm2, %v3647_v39  ;;  %v2258_v39 = vsel %vm2169_vm4, %v2255_v24, %v2257_v52  ;;  %v4762_v24 = vld [vmem:[%s18846_s1 + $0x98] sm:$0xff] }
 0x141   : > { %v14633_v13 = vpop.f32.mrf.mxu1  ;;  %11456 = vmatprep.mubr.msk.f32.mxu1 %vm497_vm2, %v3649_v35  ;;  %v2260_v35 = vsel %vm2169_vm4, %v2257_v52, %v2259_v62 }
 0x142   : > { %19206 = vst [vmem:[#allocation89_spill] sm:$0xff] %v14633_v13  ;;  %v14636_v34 = vpop.f32.mrf.mxu0  ;;  %11259 = vmatmul.mubr.msk.f32.gmra.mxu0 %vm497_vm2, %v2254_v46  ;;  %v3653_v46 = vsel %vm3586_vm5, %v3650_v2, %v3652_v36  ;;  %4876 = vperm.xlu1 %12746, %v4760_v40   ;;  %v4765_v2 = vld [vmem:[%s18846_s1 + $0xb0] sm:$0xff]  ;;  %v3660_v40 = vrot.slane %v14534_v6, 5  ;;  %v4764_v6 = vld [vmem:[%s18846_s1 + $0xa8] sm:$0xff] }
 0x143   : > { %11261 = vmatprep.mubr.msk.f32.mxu0 %vm497_vm2, %v2256_v49  ;;  %v14650_v4 = vpop.f32.mrf.mxu1  ;;  %4891 = vperm.xlu0 %12745, %v4763_v59   ;;  %v3655_v49 = vsel %vm3586_vm5, %v3652_v36, %v3654_v17 }
 0x144   : > { %v14654_v3 = vpop.f32.mrf.mxu0  ;;  %11457 = vmatmul.mubr.msk.f32.gmra.mxu1 %vm497_vm2, %v3651_v42  ;;  %v3657_v42 = vsel %vm3586_vm5, %v3654_v17, %v3656_v53  ;;  %v3662_v17 = vrot.slane %v14555_v48, 5 }
 0x145   : > { %v14657_v13 = vpop.f32.mrf.mxu1  ;;  %11459 = vmatprep.mubr.msk.f32.mxu1 %vm497_vm2, %v3653_v46  ;;  %v4767_v46 = vld [vmem:[%s18846_s1 + $0xc0] sm:$0xff] }
 0x146   : > { %v14660_v60 = vpop.f32.mrf.mxu0  ;;  %11262 = vmatmul.mubr.msk.f32.gmra.mxu0 %vm497_vm2, %v2258_v39  ;;  %4886 = vperm.xlu1 %12746, %v4762_v24   ;;  %v3659_v39 = vsel %vm3586_vm5, %v3656_v53, %v3658_v44 }
 0x147   : > { %11264 = vmatprep.mubr.msk.f32.mxu0 %vm497_vm2, %v2260_v35  ;;  %v14673_v52 = vpop.f32.mrf.mxu1  ;;  %4901 = vperm.xlu0 %12745, %v4765_v2   ;;  %v4769_v2 = vld [vmem:[%s18846_s1 + $0xd0] sm:$0xff] }
 0x148   : > { %19207 = vst [vmem:[#allocation90_spill] sm:$0xff] %v14673_v52  ;;  %v14677_v36 = vpop.f32.mrf.mxu0  ;;  %11460 = vmatmul.mubr.msk.f32.gmra.mxu1 %vm497_vm2, %v3655_v49  ;;  %v3664_v49 = vrot.slane %v14566_v15, 5  ;;  %v4766_v15 = vld [vmem:[%s18846_s1 + $0xb8] sm:$0xff]  ;;  %v19262_v52 = vld [vmem:[#allocation8_spill] sm:$0xff] }
 0x149   : > { %v14679_v61 = vpop.f32.mrf.mxu1  ;;  %11462 = vmatprep.mubr.msk.f32.mxu1 %vm497_vm2, %v3657_v42 }
 0x14a   : > { %v14682_v59 = vpop.f32.mrf.mxu0  ;;  %11265 = vmatmul.mubr.msk.f32.gmra.mxu0 %vm497_vm2, %v2259_v62  ;;  %v3661_v62 = vsel %vm3586_vm5, %v3658_v44, %v3660_v40  ;;  %4896 = vperm.xlu1 %12746, %v4764_v6   ;;  %v3666_v44 = vrot.slane %v14587_v28, 5  ;;  %v3665_v42 = vsel %vm3586_vm5, %v3662_v17, %v3664_v49  ;;  %v3668_v28 = vrot.slane %v14598_v10, 5  ;;  %v4768_v10 = vld [vmem:[%s18846_s1 + $0xc8] sm:$0xff] }
 0x14b   : > { %11340 = vmatprep.mubr.msk.f32.mxu0 %vm497_vm2, %v13642_v9  ;;  %v14696_v35 = vpop.f32.mrf.mxu1  ;;  %4911 = vperm.xlu0 %12745, %v4767_v46   ;;  %v3663_v9 = vsel %vm3586_vm5, %v3660_v40, %v3662_v17  ;;  %v4771_v17 = vld [vmem:[%s18846_s1 + $0xe0] sm:$0xff] }
 0x14c   : > { %19208 = vst [vmem:[#allocation91_spill] sm:$0xff] %v14696_v35  ;;  %v14700_v53 = vpop.f32.mrf.mxu0  ;;  %11463 = vmatmul.mubr.msk.f32.gmra.mxu1 %vm497_vm2, %v3659_v39  ;;  %v3669_v46 = vsel %vm3586_vm5, %v3666_v44, %v3668_v28  ;;  %v19260_v35 = vld [vmem:[#allocation50_spill] sm:$0xff] }
 0x14d   : > { %v14702_v48 = vpop.f32.mrf.mxu1  ;;  %11465 = vmatprep.mubr.msk.f32.mxu1 %vm497_vm2, %v3661_v62  ;;  %v3672_v62 = vrot.slane %v14630_v30, 5 }
 0x14e   : > { %v14705_v24 = vpop.f32.mrf.mxu0  ;;  %11341 = vmatmul.mubr.msk.f32.vlgmr.msra.gmra.mxu0 %vm497_vm2, %v13651_v38  ;;  %4906 = vperm.xlu1 %12746, %v4766_v15   ;;  %v14758_v15 = vld [vmem:[%s12920_s14 + $0x180] sm:$0xff] }
 0x14f   : > { %11481 = vmatpush3.msk.msra.mxu0 %vm590_vm0, %v14000_v45  ;;  %11343 = vmatprep.mubr.msk.f32.mxu0 %vm497_vm2, %v13657_v0  ;;  %v14722_v38 = vpop.f32.mrf.mxu1  ;;  %v3667_v0 = vsel %vm3586_vm5, %v3664_v49, %v3666_v44  ;;  %v3670_v45 = vrot.slane %v14619_v63, 5  ;;  %v1056_v63 = vadd.f32 %v14508_v50, %v13811_v12  ;;  %v3674_v44 = vrot.slane %v14758_v15, 5  ;;  %v4770_v12 = vld [vmem:[%s18846_s1 + $0xd8] sm:$0xff]  ;;  %v4773_v50 = vld [vmem:[%s18846_s1 + $0xf0] sm:$0xff] }
 0x150   : > { %19209 = vst [vmem:[#allocation92_spill] sm:$0xff] %v14722_v38  ;;  %v14726_v40 = vpop.f32.mrf.mxu0  ;;  %4921 = vperm.xlu0 %12745, %v4769_v2   ;;  %11466 = vmatmul.mubr.msk.f32.gmra.mxu1 %vm497_vm2, %v3663_v9  ;;  %v14766_v2 = vld [vmem:[%s12920_s14 + $0x188] sm:$0xff] }
 0x151   : > { %v14728_v39 = vpop.f32.mrf.mxu1  ;;  %11468 = vmatprep.mubr.msk.f32.mxu1 %vm497_vm2, %v3665_v42  ;;  %v3671_v30 = vsel %vm3586_vm5, %v3668_v28, %v3670_v45  ;;  %v1051_v42 = vadd.f32 %v14530_v29, %v13827_v33 }
 0x152   : > { %v14731_v6 = vpop.f32.mrf.mxu0  ;;  %11344 = vmatmul.mubr.msk.f32.gmra.mxu0 %vm497_vm2, %v13667_v57  ;;  %4916 = vperm.xlu1 %12746, %v4768_v10   ;;  %v3676_v10 = vrot.slane %v14766_v2, 5 }
 0x153   : > { %11346 = vmatprep.mubr.msk.f32.mxu0 %vm497_vm2, %v13673_v1  ;;  %v14746_v57 = vpop.f32.mrf.mxu1 }
 0x154   : > { %19210 = vst [vmem:[#allocation93_spill] sm:$0xff] %v14746_v57  ;;  %v14750_v49 = vpop.f32.mrf.mxu0  ;;  %4931 = vperm.xlu0 %12745, %v4771_v17   ;;  %11469 = vmatmul.mubr.msk.f32.gmra.mxu1 %vm497_vm2, %v3667_v0  ;;  %v3673_v0 = vsel %vm3586_vm5, %v3670_v45, %v3672_v62  ;;  %v4772_v45 = vld [vmem:[%s18846_s1 + $0xe8] sm:$0xff] }
 0x155   : > { %v14754_v9 = vpop.f32.mrf.mxu1  ;;  %11471 = vmatprep.mubr.msk.f32.mxu1 %vm497_vm2, %v3669_v46  ;;  %v1066_v46 = vadd.f32 %v14540_v41, %v13833_v5  ;;  %v4775_v5 = vld [vmem:[%s18846_s1 + $0x100] sm:$0xff]  ;;  %v1061_v41 = vadd.f32 %v14562_v25, %v13851_v22  ;;  %v1071_v25 = vadd.f32 %v14594_v14, %v13875_v32  ;;  %v19215_v14 = vld [vmem:[#allocation23_spill] sm:$0xff] }
 0x156   : > { %v11058_v1 = vpop.f32.mrf.mxu0  ;;  %11347 = vmatmul.mubr.msk.f32.gmra.mxu0 %vm497_vm2, %v13683_v54  ;;  %4926 = vperm.xlu1 %12746, %v4770_v12  }
 0x157   : > { %v14776_v54 = vadd.f32 %v11058_v1, %v1056_v63  ;;  %11349 = vmatprep.mubr.msk.f32.mxu0 %vm497_vm2, %v13689_v11  ;;  %v14780_v28 = vpop.f32.mrf.mxu1  ;;  %v3675_v11 = vsel %vm3586_vm5, %v3672_v62, %v3674_v44  ;;  %v3677_v62 = vsel %vm3586_vm5, %v3674_v44, %v3676_v10 }
 0x158   : > { %19211 = vst [vmem:[#allocation94_spill] sm:$0xff] %v14780_v28  ;;  %v1534_v17 = vpop.f32.mrf.mxu0  ;;  %4941 = vperm.xlu0 %12745, %v4773_v50   ;;  %11472 = vmatmul.mubr.msk.f32.gmra.mxu1 %vm497_vm2, %v3671_v30  ;;  %v1076_v30 = vadd.f32 %v14572_v47, %v13857_v26  ;;  %v4777_v26 = vld [vmem:[%s18846_s1 + $0x110] sm:$0xff] }
 0x159   : > { %v14786_v57 = vadd.f32 %v1534_v17, %v1051_v42  ;;  %v14788_v33 = vpop.f32.mrf.mxu1  ;;  %11474 = vmatprep.mubr.msk.f32.mxu1 %vm497_vm2, %v3673_v0  ;;  %v19214_v42 = vld [vmem:[#allocation7_spill] sm:$0xff]  ;;  %v19257_v28 = vld [vmem:[#allocation48_spill] sm:$0xff] }
 0x15a   : > { %v11061_v29 = vpop.f32.mrf.mxu0  ;;  %11350 = vmatmul.mubr.msk.f32.gmra.mxu0 %vm497_vm2, %v13699_v20  ;;  %4936 = vperm.xlu1 %12746, %v4772_v45   ;;  %v1086_v0 = vadd.f32 %v14604_v31, %v19214_v42 }
 0x15b   : > { %v14803_v63 = vadd.f32 %v11061_v29, %v1066_v46  ;;  %11352 = vmatprep.mubr.msk.f32.mxu0 %vm497_vm2, %v13705_v55  ;;  %v14807_v20 = vpop.f32.mrf.mxu1  ;;  %v4774_v55 = vld [vmem:[%s18846_s1 + $0xf8] sm:$0xff]  ;;  %v4779_v29 = vld [vmem:[%s18846_s1 + $0x120] sm:$0xff] }
 0x15c   : > { %19212 = vst [vmem:[#allocation95_spill] sm:$0xff] %v14807_v20  ;;  %v1544_v1 = vpop.f32.mrf.mxu0  ;;  %4951 = vperm.xlu0 %12745, %v4775_v5   ;;  %11475 = vmatmul.mubr.msk.f32.gmra.mxu1 %vm497_vm2, %v3675_v11  ;;  %v19216_v11 = vld [vmem:[#allocation10_spill] sm:$0xff]  ;;  %v19217_v5 = vld [vmem:[#allocation24_spill] sm:$0xff]  ;;  %v19256_v20 = vld [vmem:[#allocation5_spill] sm:$0xff] }
 0x15d   : > { %v14812_v12 = vadd.f32 %v1544_v1, %v1061_v41  ;;  %v14814_v50 = vpop.f32.mrf.mxu1  ;;  %11477 = vmatprep.mubr.msk.f32.mxu1 %vm497_vm2, %v3677_v62  ;;  %v1081_v31 = vadd.f32 %v14626_v51, %v19216_v11  ;;  %v19219_v62 = vld [vmem:[#allocation11_spill] sm:$0xff]  ;;  %v4778_v51 = vld [vmem:[%s18846_s1 + $0x118] sm:$0xff] }
 0x15e   : > { %v11064_v22 = vpop.f32.mrf.mxu0  ;;  %11353 = vmatmul.mubr.msk.f32.gmra.mxu0 %vm497_vm2, %v13715_v21  ;;  %4946 = vperm.xlu1 %12746, %v4774_v55   ;;  %v1096_v1 = vadd.f32 %v14636_v34, %v19219_v62  ;;  %v4783_v62 = vld [vmem:[%s18846_s1 + $0x140] sm:$0xff] }
 0x15f   : > { %v14828_v47 = vadd.f32 %v11064_v22, %v1076_v30  ;;  %11355 = vmatprep.mubr.msk.f32.mxu0 %vm497_vm2, %v13721_v56  ;;  %v14832_v44 = vpop.f32.mrf.mxu1  ;;  %v4776_v56 = vld [vmem:[%s18846_s1 + $0x108] sm:$0xff] }
 0x160   : > { %19213 = vst [vmem:[#allocation96_spill] sm:$0xff] %v14832_v44  ;;  %v1554_v21 = vpop.f32.mrf.mxu0  ;;  %4961 = vperm.xlu0 %12745, %v4777_v26   ;;  %11478 = vmatmul.mubr.msk.f32.gmra.mxu1 %vm497_vm2, %v3676_v10  ;;  %v19221_v26 = vld [vmem:[#allocation25_spill] sm:$0xff] }
 0x161   : > { %v14836_v17 = vadd.f32 %v1554_v21, %v1071_v25  ;;  %v14838_v46 = vpop.f32.mrf.mxu1  ;;  %v4781_v25 = vld [vmem:[%s18846_s1 + $0x130] sm:$0xff]  ;;  %v19222_v21 = vld [vmem:[#allocation14_spill] sm:$0xff] }
 0x162   : > { %v11067_v32 = vpop.f32.mrf.mxu0  ;;  %11356 = vmatmul.mubr.msk.f32.gmra.mxu0 %vm497_vm2, %v19215_v14  ;;  %4956 = vperm.xlu1 %12746, %v4776_v56   ;;  %v1091_v42 = vadd.f32 %v14654_v3, %v19222_v21  ;;  %v19225_v56 = vld [vmem:[#allocation36_spill] sm:$0xff]  ;;  %v4780_v3 = vld [vmem:[%s18846_s1 + $0x128] sm:$0xff]  ;;  %v19231_v21 = vld [vmem:[#allocation38_spill] sm:$0xff] }
 0x163   : > { %v14851_v45 = vadd.f32 %v11067_v32, %v1086_v0  ;;  %11358 = vmatprep.mubr.msk.f32.mxu0 %vm497_vm2, %v19217_v5  ;;  %v14855_v10 = vpop.f32.mrf.mxu1  ;;  %v19223_v0 = vld [vmem:[#allocation26_spill] sm:$0xff] }
 0x164   : > { %19218 = vst [vmem:[#allocation7_spill] sm:$0xff] %v14855_v10  ;;  %v1564_v41 = vpop.f32.mrf.mxu0  ;;  %4971 = vperm.xlu0 %12745, %v4779_v29   ;;  %v1106_v29 = vadd.f32 %v14660_v60, %v19225_v56  ;;  %v19239_v10 = vld [vmem:[#allocation31_spill] sm:$0xff] }
 0x165   : > { %v14859_v30 = vadd.f32 %v1564_v41, %v1081_v31  ;;  %v14861_v22 = vpop.f32.mrf.mxu1  ;;  %v19227_v41 = vld [vmem:[#allocation27_spill] sm:$0xff] }
 0x166   : > { %19220 = vst [vmem:[#allocation23_spill] sm:$0xff] %v14861_v22  ;;  %v11070_v55 = vpop.f32.mrf.mxu0  ;;  %11359 = vmatmul.mubr.msk.f32.gmra.mxu0 %vm497_vm2, %v19221_v26  ;;  %4966 = vperm.xlu1 %12746, %v4778_v51   ;;  %v19229_v26 = vld [vmem:[#allocation28_spill] sm:$0xff] }
 0x167   : > { %v14873_v34 = vadd.f32 %v11070_v55, %v1096_v1  ;;  %11361 = vmatprep.mubr.msk.f32.mxu0 %vm497_vm2, %v19223_v0  ;;  %v14877_v32 = vpop.f32.mrf.mxu1  ;;  %v19228_v1 = vld [vmem:[#allocation16_spill] sm:$0xff] }
 0x168   : > { %19224 = vst [vmem:[#allocation10_spill] sm:$0xff] %v14877_v32  ;;  %v1574_v14 = vpop.f32.mrf.mxu0  ;;  %4981 = vperm.xlu0 %12745, %v4781_v25   ;;  %v1101_v55 = vadd.f32 %v14677_v36, %v19228_v1  ;;  %v4782_v36 = vld [vmem:[%s18846_s1 + $0x138] sm:$0xff] }
 0x169   : > { %v14881_v11 = vadd.f32 %v1574_v14, %v1091_v42  ;;  %v14883_v31 = vpop.f32.mrf.mxu1  ;;  %v1116_v42 = vadd.f32 %v14682_v59, %v19231_v21 }
 0x16a   : > { %19226 = vst [vmem:[#allocation24_spill] sm:$0xff] %v14883_v31  ;;  %v11073_v5 = vpop.f32.mrf.mxu0  ;;  %11362 = vmatmul.mubr.msk.f32.gmra.mxu0 %vm497_vm2, %v19227_v41  ;;  %4976 = vperm.xlu1 %12746, %v4780_v3   ;;  %v19233_v41 = vld [vmem:[#allocation29_spill] sm:$0xff]  ;;  %v19311_v31 = vld [vmem:[#allocation76_spill] sm:$0xff] }
 0x16b   : > { %v14895_v60 = vadd.f32 %v11073_v5, %v1106_v29  ;;  %11364 = vmatprep.mubr.msk.f32.mxu0 %vm497_vm2, %v19229_v26  ;;  %v14899_v51 = vpop.f32.mrf.mxu1  ;;  %v4785_v29 = vld [vmem:[%s18846_s1 + $0x150] sm:$0xff]  ;;  %v19234_v5 = vld [vmem:[#allocation17_spill] sm:$0xff] }
 0x16c   : > { %19230 = vst [vmem:[#allocation11_spill] sm:$0xff] %v14899_v51  ;;  %v1584_v25 = vpop.f32.mrf.mxu0  ;;  %4991 = vperm.xlu0 %12745, %v4783_v62   ;;  %v1111_v3 = vadd.f32 %v14700_v53, %v19234_v5  ;;  %v19235_v62 = vld [vmem:[#allocation30_spill] sm:$0xff]  ;;  %v19237_v26 = vld [vmem:[#allocation41_spill] sm:$0xff]  ;;  %v4784_v53 = vld [vmem:[%s18846_s1 + $0x148] sm:$0xff] }
 0x16d   : > { %v14903_v0 = vadd.f32 %v1584_v25, %v1101_v55  ;;  %v14905_v14 = vpop.f32.mrf.mxu1  ;;  %v1126_v25 = vadd.f32 %v14705_v24, %v19237_v26  ;;  %v19245_v51 = vld [vmem:[#allocation2_spill] sm:$0xff] }
 0x16e   : > { %19232 = vst [vmem:[#allocation25_spill] sm:$0xff] %v14905_v14  ;;  %v11076_v56 = vpop.f32.mrf.mxu0  ;;  %11365 = vmatmul.mubr.msk.f32.gmra.mxu0 %vm497_vm2, %v19233_v41  ;;  %4986 = vperm.xlu1 %12746, %v4782_v36   ;;  %v19306_v14 = vld [vmem:[#allocation72_spill] sm:$0xff] }
 0x16f   : > { %v14917_v59 = vadd.f32 %v11076_v56, %v1116_v42  ;;  %11367 = vmatprep.mubr.msk.f32.mxu0 %vm497_vm2, %v19235_v62  ;;  %v14921_v1 = vpop.f32.mrf.mxu1  ;;  %v4787_v42 = vld [vmem:[%s18846_s1 + $0x160] sm:$0xff] }
 0x170   : > { %19236 = vst [vmem:[#allocation14_spill] sm:$0xff] %v14921_v1  ;;  %v1594_v55 = vpop.f32.mrf.mxu0  ;;  %5001 = vperm.xlu0 %12745, %v4785_v29   ;;  %v19240_v56 = vld [vmem:[#allocation34_spill] sm:$0xff]  ;;  %v19241_v29 = vld [vmem:[#allocation32_spill] sm:$0xff]  ;;  %v19269_v1 = vld [vmem:[#allocation53_spill] sm:$0xff] }
 0x171   : > { %v14925_v21 = vadd.f32 %v1594_v55, %v1111_v3  ;;  %v14927_v41 = vpop.f32.mrf.mxu1  ;;  %v1121_v36 = vadd.f32 %v14726_v40, %v19240_v56  ;;  %v4786_v40 = vld [vmem:[%s18846_s1 + $0x158] sm:$0xff] }
 0x172   : > { %19238 = vst [vmem:[#allocation26_spill] sm:$0xff] %v14927_v41  ;;  %v11079_v32 = vpop.f32.mrf.mxu0  ;;  %11368 = vmatmul.mubr.msk.f32.gmra.mxu0 %vm497_vm2, %v19239_v10  ;;  %4996 = vperm.xlu1 %12746, %v4784_v53   ;;  %v19243_v10 = vld [vmem:[#allocation19_spill] sm:$0xff]  ;;  %v19283_v41 = vld [vmem:[#allocation42_spill] sm:$0xff] }
 0x173   : > { %v14939_v24 = vadd.f32 %v11079_v32, %v1126_v25  ;;  %11370 = vmatprep.mubr.msk.f32.mxu0 %vm497_vm2, %v19241_v29  ;;  %v14943_v5 = vpop.f32.mrf.mxu1  ;;  %v1136_v62 = vadd.f32 %v14731_v6, %v19243_v10  ;;  %v19246_v32 = vld [vmem:[#allocation21_spill] sm:$0xff] }
 0x174   : > { %19242 = vst [vmem:[#allocation36_spill] sm:$0xff] %v14943_v5  ;;  %v1604_v3 = vpop.f32.mrf.mxu0  ;;  %5011 = vperm.xlu0 %12745, %v4787_v42   ;;  %v1131_v25 = vadd.f32 %v14750_v49, %v19246_v32  ;;  %v19247_v42 = vld [vmem:[#allocation33_spill] sm:$0xff]  ;;  %v4788_v49 = vld [vmem:[%s18846_s1 + $0x168] sm:$0x3] }
 0x175   : > { %v14947_v55 = vadd.f32 %v1604_v3, %v1121_v36  ;;  %v14949_v26 = vpop.f32.mrf.mxu1  ;;  %v19250_v3 = vld [vmem:[#allocation3_spill] sm:$0xff] }
 0x176   : > { %19244 = vst [vmem:[#allocation27_spill] sm:$0xff] %v14949_v26  ;;  %v11082_v44 = vpop.f32.mrf.mxu0  ;;  %11371 = vmatmul.mubr.msk.f32.gmra.mxu0 %vm497_vm2, %v19245_v51  ;;  %5006 = vperm.xlu1 %12746, %v4786_v40  }
 0x177   : > { %v14958_v53 = vadd.f32 %v11082_v44, %v1136_v62  ;;  %11373 = vmatprep.mubr.msk.f32.mxu0 %vm497_vm2, %v19247_v42  ;;  %v14962_v6 = vpop.f32.mrf.mxu1  ;;  %v19251_v44 = vld [vmem:[#allocation22_spill] sm:$0xff]  ;;  %v19252_v62 = vld [vmem:[#allocation4_spill] sm:$0xff] }
 0x178   : > { %19248 = vst [vmem:[#allocation16_spill] sm:$0xff] %v14962_v6  ;;  %v1614_v56 = vpop.f32.mrf.mxu0 }
 0x179   : > { %v14964_v36 = vadd.f32 %v1614_v56, %v1131_v25  ;;  %v14966_v29 = vpop.f32.mrf.mxu1  ;;  %v19254_v25 = vld [vmem:[#allocation46_spill] sm:$0xff] }
 0x17a   : > { %19249 = vst [vmem:[#allocation28_spill] sm:$0xff] %v14966_v29  ;;  %v11085_v51 = vpop.f32.mrf.mxu0  ;;  %11374 = vmatmul.mubr.msk.f32.gmra.mxu0 %vm497_vm2, %v19250_v3  ;;  %5016 = vperm.xlu1 %12746, %v4788_v49   ;;  %v19277_v29 = vld [vmem:[#allocation39_spill] sm:$0xff] }
 0x17b   : > { %v14974_v10 = vadd.f32 %v11085_v51, %v19251_v44  ;;  %11376 = vmatprep.mubr.msk.f32.mxu0 %vm497_vm2, %v19252_v62  ;;  %v14978_v32 = vpop.f32.mrf.mxu1  ;;  %v19258_v51 = vld [vmem:[#allocation6_spill] sm:$0xff] }
 0x17c   : > { %19253 = vst [vmem:[#allocation38_spill] sm:$0xff] %v14978_v32  ;;  %v1624_v40 = vpop.f32.mrf.mxu0  ;;  %v19263_v32 = vld [vmem:[#allocation51_spill] sm:$0xff] }
 0x17d   : > { %v14981_v42 = vadd.f32 %v1624_v40, %v19254_v25  ;;  %v14983_v56 = vpop.f32.mrf.mxu1 }
 0x17e   : > { %19255 = vst [vmem:[#allocation29_spill] sm:$0xff] %v14983_v56  ;;  %v11088_v3 = vpop.f32.mrf.mxu0  ;;  %11377 = vmatmul.mubr.msk.f32.gmra.mxu0 %vm497_vm2, %v19256_v20  ;;  %v19272_v56 = vld [vmem:[#allocation37_spill] sm:$0xff] }
 0x17f   : > { %v14988_v38 = vadd.f32 %v11088_v3, %v19257_v28  ;;  %11379 = vmatprep.mubr.msk.f32.mxu0 %vm497_vm2, %v19258_v51  ;;  %v14992_v44 = vpop.f32.mrf.mxu1  ;;  %v19264_v28 = vld [vmem:[#allocation9_spill] sm:$0xff] }
 0x180   : > { %19259 = vst [vmem:[#allocation17_spill] sm:$0xff] %v14992_v44  ;;  %v1634_v62 = vpop.f32.mrf.mxu0  ;;  %v19266_v44 = vld [vmem:[#allocation52_spill] sm:$0xff] }
 0x181   : > { %v14995_v49 = vadd.f32 %v1634_v62, %v19260_v35  ;;  %v14997_v40 = vpop.f32.mrf.mxu1  ;;  %v19267_v62 = vld [vmem:[#allocation12_spill] sm:$0xff] }
 0x182   : > { %19261 = vst [vmem:[#allocation30_spill] sm:$0xff] %v14997_v40  ;;  %v11091_v25 = vpop.f32.mrf.mxu0  ;;  %11380 = vmatmul.mubr.msk.f32.gmra.mxu0 %vm497_vm2, %v19262_v52 }
 0x183   : > { %v15002_v20 = vadd.f32 %v11091_v25, %v19263_v32  ;;  %11382 = vmatprep.mubr.msk.f32.mxu0 %vm497_vm2, %v19264_v28  ;;  %v15006_v3 = vpop.f32.mrf.mxu1  ;;  %v19270_v32 = vld [vmem:[#allocation13_spill] sm:$0xff]  ;;  %v19271_v28 = vld [vmem:[#allocation54_spill] sm:$0xff] }
 0x184   : > { %19265 = vst [vmem:[#allocation41_spill] sm:$0xff] %v15006_v3  ;;  %v1644_v51 = vpop.f32.mrf.mxu0 }
 0x185   : > { %v15009_v6 = vadd.f32 %v1644_v51, %v19266_v44  ;;  %v15013_v5 = vpop.f32.mrf.mxu1 }
 0x186   : > { %v11094_v35 = vpop.f32.mrf.mxu0  ;;  %11383 = vmatmul.mubr.msk.f32.gmra.mxu0 %vm497_vm2, %v19267_v62  ;;  %19268 = vst [vmem:[#allocation31_spill] sm:$0xff] %v15013_v5  ;;  %v19274_v62 = vld [vmem:[#allocation15_spill] sm:$0xff] }
 0x187   : > { %v15016_v52 = vadd.f32 %v11094_v35, %v19269_v1  ;;  %11385 = vmatprep.mubr.msk.f32.mxu0 %vm497_vm2, %v19270_v32  ;;  %v15025_v44 = vpop.f32.mrf.mxu1  ;;  %v19275_v35 = vld [vmem:[#allocation55_spill] sm:$0xff] }
 0x188   : > { %v1654_v25 = vpop.f32.mrf.mxu0  ;;  %19273 = vst [vmem:[#allocation34_spill] sm:$0xff] %v15025_v44  ;;  %v19280_v44 = vld [vmem:[#allocation40_spill] sm:$0xff] }
 0x189   : > { %v15021_v40 = vadd.f32 %v1654_v25, %v19271_v28  ;;  %v15037_v25 = vpop.f32.mrf.mxu1  ;;  %v19279_v28 = vld [vmem:[#allocation56_spill] sm:$0xff] }
 0x18a   : > { %v11097_v3 = vpop.f32.mrf.mxu0  ;;  %11386 = vmatmul.mubr.msk.f32.gmra.mxu0 %vm497_vm2, %v19272_v56  ;;  %19278 = vst [vmem:[#allocation19_spill] sm:$0xff] %v15037_v25 }
 0x18b   : > { %v15028_v51 = vadd.f32 %v11097_v3, %v14207_v58  ;;  %11388 = vmatprep.mubr.msk.f32.mxu0 %vm497_vm2, %v19274_v62  ;;  %v19281_v3 = vld [vmem:[#allocation57_spill] sm:$0xff] }
 0x18c   : > { %v1664_v1 = vpop.f32.mrf.mxu0 }
 0x18d   : > { %v15033_v5 = vadd.f32 %v1664_v1, %v19275_v35  ;;  %v15049_v1 = vpop.f32.mrf.mxu1  ;;  %v19285_v35 = vld [vmem:[#allocation18_spill] sm:$0xff] }
 0x18e   : > { %v11100_v32 = vpop.f32.mrf.mxu0  ;;  %11389 = vmatmul.mubr.msk.f32.gmra.mxu0 %vm497_vm2, %v19277_v29  ;;  %19284 = vst [vmem:[#allocation21_spill] sm:$0xff] %v15049_v1  ;;  %v19292_v1 = vld [vmem:[#allocation44_spill] sm:$0xff] }
 0x18f   : > { %19276 = vst [vmem:[#allocation32_spill] sm:$0xff] %v15033_v5  ;;  %v15040_v56 = vadd.f32 %v11100_v32, %v19279_v28  ;;  %11391 = vmatprep.mubr.msk.f32.mxu0 %vm497_vm2, %v19280_v44  ;;  %v19287_v5 = vld [vmem:[#allocation43_spill] sm:$0xff] }
 0x190   : > { %v1674_v58 = vpop.f32.mrf.mxu0 }
 0x191   : > { %v15045_v26 = vadd.f32 %v1674_v58, %v19281_v3  ;;  %v15061_v58 = vpop.f32.mrf.mxu1  ;;  %v19289_v3 = vld [vmem:[#allocation20_spill] sm:$0xff] }
 0x192   : > { %v11103_v62 = vpop.f32.mrf.mxu0  ;;  %11392 = vmatmul.mubr.msk.f32.gmra.mxu0 %vm497_vm2, %v19283_v41  ;;  %19288 = vst [vmem:[#allocation3_spill] sm:$0xff] %v15061_v58 }
 0x193   : > { %19282 = vst [vmem:[#allocation2_spill] sm:$0xff] %v15045_v26  ;;  %v15052_v29 = vadd.f32 %v11103_v62, %v14263_v18  ;;  %11394 = vmatprep.mubr.msk.f32.mxu0 %vm497_vm2, %v19285_v35  ;;  %v19290_v62 = vld [vmem:[#allocation62_spill] sm:$0xff] }
 0x194   : > { %v1684_v32 = vpop.f32.mrf.mxu0 }
 0x195   : > { %v15057_v28 = vadd.f32 %v1684_v32, %v14277_v16  ;;  %v15073_v16 = vpop.f32.mrf.mxu1  ;;  %v19294_v32 = vld [vmem:[#allocation45_spill] sm:$0xff] }
 0x196   : > { %v11106_v44 = vpop.f32.mrf.mxu0  ;;  %11395 = vmatmul.mubr.msk.f32.gmra.mxu0 %vm497_vm2, %v19287_v5  ;;  %19293 = vst [vmem:[#allocation4_spill] sm:$0xff] %v15073_v16 }
 0x197   : > { %19286 = vst [vmem:[#allocation33_spill] sm:$0xff] %v15057_v28  ;;  %v15064_v41 = vadd.f32 %v11106_v44, %v14288_v23  ;;  %11397 = vmatprep.mubr.msk.f32.mxu0 %vm497_vm2, %v19289_v3  ;;  %v3230_v23 = vrot.slane %v14758_v15, 4  ;;  %v3232_v3 = vrot.slane %v14766_v2, 4  ;;  %v19298_v28 = vld [vmem:[#allocation49_spill] sm:$0xff] }
 0x198   : > { %v1694_v18 = vpop.f32.mrf.mxu0 }
 0x199   : > { %v15069_v26 = vadd.f32 %v1694_v18, %v19290_v62  ;;  %v18923_v18 = vmov 0.0   ;;  %v3233_v16 = vsel %vm590_vm0, %v3230_v23, %v3232_v3 }
 0x19a   : > { %v11109_v35 = vpop.f32.mrf.mxu0  ;;  %11398 = vmatmul.mubr.msk.f32.gmra.mxu0 %vm497_vm2, %v19292_v1  ;;  %11551 = vmatprep.subr.mxu1 %v18923_v18 }
 0x19b   : > { %19291 = vst [vmem:[#allocation22_spill] sm:$0xff] %v15069_v26  ;;  %v15076_v5 = vadd.f32 %v11109_v35, %v14322_v19  ;;  %11400 = vmatprep.mubr.msk.f32.mxu0 %vm497_vm2, %v19294_v32  ;;  %11682 = vmatprep.subr.mxu0 %v18923_v18  ;;  %v9681_v19 = vld [vmem:[%s18849_s4 + $0x38] sm:$0xff]  ;;  %v19296_v35 = vld [vmem:[#allocation47_spill] sm:$0xff]  ;;  %v15092_v32 = vpop.f32.mrf.mxu1 }
 0x19c   : > { %v1704_v44 = vpop.f32.mrf.mxu0  ;;  %19297 = vst [vmem:[#allocation5_spill] sm:$0xff] %v15092_v32  ;;  %11552 = vmatpush3.msra.mxu1 %v9681_v19  ;;  %v19299_v18 = vld [vmem:[#allocation35_spill] sm:$0xff] }
 0x19d   : > { %v15085_v1 = vadd.f32 %v1704_v44, %v14336_v37  ;;  %v3231_v37 = vsel %vm590_vm0, %v19299_v18, %v3230_v23  ;;  %v19300_v44 = vmov 0.0   ;;  %v12794_v32 = vld [vmem:[%s12920_s14 + $0x28] sm:$0xff]  ;;  %v12795_v23 = vld [vmem:[%s12920_s14 + $0x30] sm:$0xff] }
 0x19e   : > { %v11112_v62 = vpop.f32.mrf.mxu0  ;;  %11401 = vmatmul.mubr.msk.f32.gmra.mxu0 %vm497_vm2, %v19296_v35  ;;  %11553 = vmatprep.subr.mxu1 %v19300_v44  ;;  %v12793_v35 = vld [vmem:[%s12920_s14 + $0x20] sm:$0xff]  ;;  %v4118_v19 = vrot.slane %v12794_v32, 6  ;;  %v4120_v25 = vrot.slane %v12795_v23, 6 }
 0x19f   : > { %19295 = vst [vmem:[#allocation46_spill] sm:$0xff] %v15085_v1  ;;  %v15095_v26 = vadd.f32 %v11112_v62, %v14350_v43  ;;  %11403 = vmatprep.mubr.msk.f32.mxu0 %vm497_vm2, %v19298_v28  ;;  %v4117_v58 = vrot.slane %v12793_v35, 6  ;;  %v15109_v28 = vpop.f32.mrf.mxu1  ;;  %v12797_v23 = vld [vmem:[%s12920_s14 + $0x40] sm:$0xff]  ;;  %11559 = vmatprep.mubr.msk.f32.mxu1 %vm12849_vm7, %v19300_v44 }
 0x1a0   : > { %v1714_v1 = vpop.f32.mrf.mxu0  ;;  %19302 = vst [vmem:[#allocation6_spill] sm:$0xff] %v15109_v28 }
 0x1a1   : > { %v15106_v43 = vadd.f32 %v1714_v1, %v14367_v8  ;;  %v4119_v32 = vsel %vm4116_vm6, %v4117_v58, %v4118_v19  ;;  %v12796_v8 = vld [vmem:[%s12920_s14 + $0x38] sm:$0xff]  ;;  %v15122_v28 = vpop.f32.mrf.mxu1  ;;  %v4124_v58 = vrot.slane %v12797_v23, 6  ;;  %v12799_v23 = vld [vmem:[%s12920_s14 + $0x50] sm:$0xff] }
 0x1a2   : > { %v11115_v62 = vpop.f32.mrf.mxu0  ;;  %11404 = vmatmul.mubr.msk.f32.gmra.mxu0 %vm497_vm2, %v3231_v37  ;;  %v4122_v1 = vrot.slane %v12796_v8, 6  ;;  %19304 = vst [vmem:[#allocation8_spill] sm:$0xff] %v15122_v28 }
 0x1a3   : > { %19301 = vst [vmem:[#allocation48_spill] sm:$0xff] %v15106_v43  ;;  %v15112_v18 = vadd.f32 %v11115_v62, %v14387_v7  ;;  %11406 = vmatprep.mubr.msk.f32.mxu0 %vm497_vm2, %v3233_v16  ;;  %v19305_v7 = vld [vmem:[#allocation70_spill] sm:$0xff]  ;;  %v4121_v16 = vsel %vm4116_vm6, %v4118_v19, %v4120_v25 }
 0x1a4   : > { %v1724_v35 = vpop.f32.mrf.mxu0  ;;  %v4125_v19 = vsel %vm4116_vm6, %v4122_v1, %v4124_v58 }
 0x1a5   : > { %v15119_v43 = vadd.f32 %v1724_v35, %v14401_v27  ;;  %v4123_v27 = vsel %vm4116_vm6, %v4120_v25, %v4122_v1  ;;  %v12798_v35 = vld [vmem:[%s12920_s14 + $0x48] sm:$0xff]  ;;  %v4128_v25 = vrot.slane %v12799_v23, 6  ;;  %v12801_v23 = vld [vmem:[%s12920_s14 + $0x60] sm:$0xff] }
 0x1a6   : > { %v11118_v37 = vpop.f32.mrf.mxu0  ;;  %11407 = vmatmul.mubr.msk.f32.gmra.mxu0 %vm497_vm2, %v3232_v3 }
 0x1a7   : > { %19303 = vst [vmem:[#allocation50_spill] sm:$0xff] %v15119_v43  ;;  %v15125_v62 = vadd.f32 %v11118_v37, %v19305_v7  ;;  %11482 = vmatprep.mubr.msk.f32.mxu0 %vm497_vm2, %v4119_v32  ;;  %v4126_v43 = vrot.slane %v12798_v35, 6  ;;  %v15136_v37 = vpop.f32.mrf.mxu1  ;;  %v19309_v7 = vld [vmem:[#allocation74_spill] sm:$0xff] }
 0x1a8   : > { %v1734_v8 = vpop.f32.mrf.mxu0  ;;  %19308 = vst [vmem:[#allocation9_spill] sm:$0xff] %v15136_v37 }
 0x1a9   : > { %v15133_v3 = vadd.f32 %v1734_v8, %v19306_v14  ;;  %v4127_v14 = vsel %vm4116_vm6, %v4124_v58, %v4126_v43  ;;  %v12800_v8 = vld [vmem:[%s12920_s14 + $0x58] sm:$0xff]  ;;  %v4129_v1 = vsel %vm4116_vm6, %v4126_v43, %v4128_v25  ;;  %v4132_v58 = vrot.slane %v12801_v23, 6  ;;  %v19320_v43 = vld [vmem:[#allocation59_spill] sm:$0xff] }
 0x1aa   : > { %v11121_v28 = vpop.f32.mrf.mxu0  ;;  %11483 = vmatmul.mubr.msk.f32.vlgmr.msra.gmra.mxu0 %vm497_vm2, %v4121_v16 }
 0x1ab   : > { %19307 = vst [vmem:[#allocation51_spill] sm:$0xff] %v15133_v3  ;;  %v15139_v32 = vadd.f32 %v11121_v28, %v19309_v7  ;;  %11485 = vmatprep.mubr.msk.f32.mxu0 %vm497_vm2, %v4123_v27  ;;  %v4130_v3 = vrot.slane %v12800_v8, 6  ;;  %v15150_v28 = vpop.f32.mrf.mxu1  ;;  %v19314_v7 = vld [vmem:[#allocation78_spill] sm:$0xff] }
 0x1ac   : > { %v1744_v35 = vpop.f32.mrf.mxu0  ;;  %19313 = vst [vmem:[#allocation53_spill] sm:$0xff] %v15150_v28  ;;  %v19317_v28 = vld [vmem:[#allocation80_spill] sm:$0xff] }
 0x1ad   : > { %19310 = vst [vmem:[#allocation52_spill] sm:$0xff] %v15139_v32  ;;  %v15147_v16 = vadd.f32 %v1744_v35, %v19311_v31  ;;  %v4131_v8 = vsel %vm4116_vm6, %v4128_v25, %v4130_v3  ;;  %v12802_v31 = vld [vmem:[%s12920_s14 + $0x68] sm:$0xff]  ;;  %v4133_v25 = vsel %vm4116_vm6, %v4130_v3, %v4132_v58 }
 0x1ae   : > { %v11124_v37 = vpop.f32.mrf.mxu0  ;;  %11486 = vmatmul.mubr.msk.f32.gmra.mxu0 %vm497_vm2, %v4125_v19  ;;  %v4134_v35 = vrot.slane %v12802_v31, 6  ;;  %v19316_v19 = vld [vmem:[#allocation58_spill] sm:$0xff]  ;;  %v12803_v31 = vld [vmem:[%s12920_s14 + $0x70] sm:$0xff] }
 0x1af   : > { %19312 = vst [vmem:[#allocation12_spill] sm:$0xff] %v15147_v16  ;;  %v15153_v27 = vadd.f32 %v11124_v37, %v19314_v7  ;;  %11488 = vmatprep.mubr.msk.f32.mxu0 %vm497_vm2, %v4127_v14  ;;  %v2122_v16 = vadd.f32 %v19316_v19, %v14776_v54  ;;  %v15166_v14 = vpop.f32.mrf.mxu1  ;;  %v2121_v7 = vadd.f32 %v19320_v43, %v14786_v57  ;;  %v9680_v54 = vld [vmem:[%s18849_s4 + $0x30] sm:$0xff]  ;;  %v19323_v43 = vld [vmem:[#allocation61_spill] sm:$0xff] }
 0x1b0   : > { %v1754_v22 = vpop.f32.mrf.mxu0  ;;  %19319 = vst [vmem:[#allocation37_spill] sm:$0xff] %v15166_v14  ;;  %11554 = vmatpush3.msra.mxu1 %v9680_v54  ;;  %v19321_v57 = vld [vmem:[#allocation60_spill] sm:$0xff] }
 0x1b1   : > { %19315 = vst [vmem:[#allocation13_spill] sm:$0xff] %v15153_v27  ;;  %v15163_v32 = vadd.f32 %v1754_v22, %v19317_v28  ;;  %v4136_v27 = vrot.slane %v12803_v31, 6  ;;  %v4135_v28 = vsel %vm4116_vm6, %v4132_v58, %v4134_v35  ;;  %11555 = vmatprep.subr.mxu1 %v19300_v44  ;;  %v2123_v31 = vadd.f32 %v19323_v43, %v14812_v12  ;;  %v12807_v43 = vld [vmem:[%s12920_s14 + $0x90] sm:$0xff] }
 0x1b2   : > { %v11200_v37 = vpop.f32.mrf.mxu0  ;;  %11489 = vmatmul.mubr.msk.f32.gmra.mxu0 %vm497_vm2, %v4129_v1  ;;  %v12804_v1 = vld [vmem:[%s12920_s14 + $0x78] sm:$0xff] }
 0x1b3   : > { %19318 = vst [vmem:[#allocation54_spill] sm:$0xff] %v15163_v32  ;;  %v15170_v23 = vadd.f32 %v11200_v37, %v2122_v16  ;;  %11491 = vmatprep.mubr.msk.f32.mxu0 %vm497_vm2, %v4131_v8  ;;  %v4138_v19 = vrot.slane %v12804_v1, 6  ;;  %v2124_v16 = vadd.f32 %v19321_v57, %v14803_v63  ;;  %v15186_v37 = vpop.f32.mrf.mxu1  ;;  %v4137_v54 = vsel %vm4116_vm6, %v4134_v35, %v4136_v27  ;;  %v12805_v63 = vld [vmem:[%s12920_s14 + $0x80] sm:$0xff]  ;;  %v12806_v57 = vld [vmem:[%s12920_s14 + $0x88] sm:$0xff]  ;;  %v19326_v35 = vld [vmem:[#allocation64_spill] sm:$0xff] }
 0x1b4   : > { %v2422_v22 = vpop.f32.mrf.mxu0  ;;  %v19324_v32 = vld [vmem:[#allocation63_spill] sm:$0xff] }
 0x1b5   : > { %v15182_v8 = vadd.f32 %v2422_v22, %v2121_v7  ;;  %v4140_v7 = vrot.slane %v12805_v63, 6  ;;  %v4139_v1 = vsel %vm4116_vm6, %v4136_v27, %v4138_v19  ;;  %v2126_v14 = vadd.f32 %v19324_v32, %v14828_v47 }
 0x1b6   : > { %v11203_v3 = vpop.f32.mrf.mxu0  ;;  %11492 = vmatmul.mubr.msk.f32.gmra.mxu0 %vm497_vm2, %v4133_v25  ;;  %v4142_v25 = vrot.slane %v12806_v57, 6  ;;  %v4144_v63 = vrot.slane %v12807_v43, 6 }
 0x1b7   : > { %19322 = vst [vmem:[#allocation15_spill] sm:$0xff] %v15182_v8  ;;  %v15190_v58 = vadd.f32 %v11203_v3, %v2124_v16  ;;  %11494 = vmatprep.mubr.msk.f32.mxu0 %vm497_vm2, %v4135_v28  ;;  %v15202_v28 = vpop.f32.mrf.mxu1  ;;  %v2125_v16 = vadd.f32 %v19326_v35, %v14836_v17  ;;  %v4141_v27 = vsel %vm4116_vm6, %v4138_v19, %v4140_v7  ;;  %v19329_v19 = vld [vmem:[#allocation66_spill] sm:$0xff] }
 0x1b8   : > { %v2432_v22 = vpop.f32.mrf.mxu0  ;;  %19325 = vst [vmem:[#allocation55_spill] sm:$0xff] %v15202_v28  ;;  %v4143_v32 = vsel %vm4116_vm6, %v4140_v7, %v4142_v25  ;;  %v4145_v7 = vsel %vm4116_vm6, %v4142_v25, %v4144_v63  ;;  %v12809_v35 = vld [vmem:[%s12920_s14 + $0xa0] sm:$0xff]  ;;  %v19332_v25 = vld [vmem:[#allocation68_spill] sm:$0xff] }
 0x1b9   : > { %v15199_v8 = vadd.f32 %v2432_v22, %v2123_v31  ;;  %v12808_v31 = vld [vmem:[%s12920_s14 + $0x98] sm:$0xff]  ;;  %v4148_v43 = vrot.slane %v12809_v35, 6 }
 0x1ba   : > { %v11206_v12 = vpop.f32.mrf.mxu0  ;;  %11495 = vmatmul.mubr.msk.f32.gmra.mxu0 %vm497_vm2, %v4137_v54  ;;  %v4146_v54 = vrot.slane %v12808_v31, 6  ;;  %v19327_v22 = vld [vmem:[#allocation65_spill] sm:$0xff]  ;;  %v19330_v31 = vld [vmem:[#allocation67_spill] sm:$0xff] }
 0x1bb   : > { %v15206_v3 = vadd.f32 %v11206_v12, %v2126_v14  ;;  %11497 = vmatprep.mubr.msk.f32.mxu0 %vm497_vm2, %v4139_v1  ;;  %v2128_v57 = vadd.f32 %v19327_v22, %v14851_v45  ;;  %v15218_v14 = vpop.f32.mrf.mxu1  ;;  %v2127_v1 = vadd.f32 %v19329_v19, %v14859_v30  ;;  %v2130_v22 = vadd.f32 %v19330_v31, %v14873_v34  ;;  %v12811_v19 = vld [vmem:[%s12920_s14 + $0xb0] sm:$0xff] }
 0x1bc   : > { %v2442_v47 = vpop.f32.mrf.mxu0  ;;  %v4152_v35 = vrot.slane %v12811_v19, 6 }
 0x1bd   : > { %v15215_v28 = vadd.f32 %v2442_v47, %v2125_v16  ;;  %v4147_v16 = vsel %vm4116_vm6, %v4144_v63, %v4146_v54  ;;  %v12810_v47 = vld [vmem:[%s12920_s14 + $0xa8] sm:$0xff]  ;;  %v4149_v63 = vsel %vm4116_vm6, %v4146_v54, %v4148_v43 }
 0x1be   : > { %v11209_v17 = vpop.f32.mrf.mxu0  ;;  %11498 = vmatmul.mubr.msk.f32.gmra.mxu0 %vm497_vm2, %v4141_v27  ;;  %v4150_v27 = vrot.slane %v12810_v47, 6  ;;  %v19333_v47 = vld [vmem:[#allocation69_spill] sm:$0xff]  ;;  %v19335_v54 = vld [vmem:[#allocation71_spill] sm:$0xff] }
 0x1bf   : > { %19328 = vst [vmem:[#allocation39_spill] sm:$0xff] %v15215_v28  ;;  %v15222_v12 = vadd.f32 %v11209_v17, %v2128_v57  ;;  %11500 = vmatprep.mubr.msk.f32.mxu0 %vm497_vm2, %v4143_v32  ;;  %v15234_v32 = vpop.f32.mrf.mxu1  ;;  %v2129_v57 = vadd.f32 %v19332_v25, %v14881_v11  ;;  %v2132_v31 = vadd.f32 %v19333_v47, %v14895_v60  ;;  %v12813_v25 = vld [vmem:[%s12920_s14 + $0xc0] sm:$0xff] }
 0x1c0   : > { %v2452_v45 = vpop.f32.mrf.mxu0  ;;  %19331 = vst [vmem:[#allocation56_spill] sm:$0xff] %v15234_v32  ;;  %v4156_v19 = vrot.slane %v12813_v25, 6 }
 0x1c1   : > { %v15231_v28 = vadd.f32 %v2452_v45, %v2127_v1  ;;  %v4151_v1 = vsel %vm4116_vm6, %v4148_v43, %v4150_v27  ;;  %v12812_v45 = vld [vmem:[%s12920_s14 + $0xb8] sm:$0xff]  ;;  %v4153_v43 = vsel %vm4116_vm6, %v4150_v27, %v4152_v35  ;;  %v19338_v27 = vld [vmem:[#allocation75_spill] sm:$0xff] }
 0x1c2   : > { %v11212_v30 = vpop.f32.mrf.mxu0  ;;  %11501 = vmatmul.mubr.msk.f32.gmra.mxu0 %vm497_vm2, %v4145_v7  ;;  %v4154_v7 = vrot.slane %v12812_v45, 6  ;;  %v19336_v45 = vld [vmem:[#allocation73_spill] sm:$0xff] }
 0x1c3   : > { %v15238_v17 = vadd.f32 %v11212_v30, %v2130_v22  ;;  %11503 = vmatprep.mubr.msk.f32.mxu0 %vm497_vm2, %v4147_v16  ;;  %v15250_v16 = vpop.f32.mrf.mxu1  ;;  %v2131_v22 = vadd.f32 %v19335_v54, %v14903_v0  ;;  %v2134_v47 = vadd.f32 %v19336_v45, %v14917_v59  ;;  %v12815_v54 = vld [vmem:[%s12920_s14 + $0xd0] sm:$0xff]  ;;  %v9679_v59 = vld [vmem:[%s18849_s4 + $0x28] sm:$0xff] }
 0x1c4   : > { %v2462_v34 = vpop.f32.mrf.mxu0  ;;  %v4160_v25 = vrot.slane %v12815_v54, 6  ;;  %11556 = vmatpush3.msra.mxu1 %v9679_v59 }
 0x1c5   : > { %v15247_v32 = vadd.f32 %v2462_v34, %v2129_v57  ;;  %v4155_v57 = vsel %vm4116_vm6, %v4152_v35, %v4154_v7  ;;  %v12814_v34 = vld [vmem:[%s12920_s14 + $0xc8] sm:$0xff]  ;;  %v4157_v35 = vsel %vm4116_vm6, %v4154_v7, %v4156_v19  ;;  %11557 = vmatprep.subr.mxu1 %v19300_v44 }
 0x1c6   : > { %v11215_v11 = vpop.f32.mrf.mxu0  ;;  %11504 = vmatmul.mubr.msk.f32.gmra.mxu0 %vm497_vm2, %v4149_v63  ;;  %v4158_v63 = vrot.slane %v12814_v34, 6 }
 0x1c7   : > { %19334 = vst [vmem:[#allocation40_spill] sm:$0xff] %v15247_v32  ;;  %v15254_v30 = vadd.f32 %v11215_v11, %v2132_v31  ;;  %11506 = vmatprep.mubr.msk.f32.mxu0 %vm497_vm2, %v4151_v1  ;;  %v15266_v1 = vpop.f32.mrf.mxu1  ;;  %v2133_v31 = vadd.f32 %v19338_v27, %v14925_v21  ;;  %v19339_v21 = vld [vmem:[#allocation77_spill] sm:$0xff] }
 0x1c8   : > { %v2472_v60 = vpop.f32.mrf.mxu0  ;;  %19337 = vst [vmem:[#allocation57_spill] sm:$0xff] %v15266_v1  ;;  %v2136_v45 = vadd.f32 %v19339_v21, %v14939_v24  ;;  %v4161_v54 = vsel %vm4116_vm6, %v4158_v63, %v4160_v25  ;;  %v12817_v24 = vld [vmem:[%s12920_s14 + $0xe0] sm:$0xff]  ;;  %v19342_v21 = vld [vmem:[#allocation81_spill] sm:$0xff] }
 0x1c9   : > { %v15263_v32 = vadd.f32 %v2472_v60, %v2131_v22  ;;  %v12816_v60 = vld [vmem:[%s12920_s14 + $0xd8] sm:$0xff]  ;;  %v2138_v1 = vadd.f32 %v19342_v21, %v14958_v53 }
 0x1ca   : > { %v11218_v0 = vpop.f32.mrf.mxu0  ;;  %11507 = vmatmul.mubr.msk.f32.gmra.mxu0 %vm497_vm2, %v4153_v43  ;;  %v4159_v43 = vsel %vm4116_vm6, %v4156_v19, %v4158_v63  ;;  %v4162_v34 = vrot.slane %v12816_v60, 6  ;;  %v12818_v60 = vld [vmem:[%s12920_s14 + $0xe8] sm:$0xff]  ;;  %v19345_v63 = vld [vmem:[#allocation82_spill] sm:$0xff] }
 0x1cb   : > { %v15270_v11 = vadd.f32 %v11218_v0, %v2134_v47  ;;  %11509 = vmatprep.mubr.msk.f32.mxu0 %vm497_vm2, %v4155_v57  ;;  %v15286_v47 = vpop.f32.mrf.mxu1  ;;  %v19341_v0 = vld [vmem:[#allocation79_spill] sm:$0xff] }
 0x1cc   : > { %v2482_v22 = vpop.f32.mrf.mxu0  ;;  %v2135_v27 = vadd.f32 %v19341_v0, %v14947_v55  ;;  %v12819_v0 = vld [vmem:[%s12920_s14 + $0xf0] sm:$0xff] }
 0x1cd   : > { %v15282_v57 = vadd.f32 %v2482_v22, %v2133_v31  ;;  %v4164_v31 = vrot.slane %v12817_v24, 6  ;;  %v4163_v22 = vsel %vm4116_vm6, %v4160_v25, %v4162_v34  ;;  %v4168_v24 = vrot.slane %v12819_v0, 6 }
 0x1ce   : > { %v11221_v7 = vpop.f32.mrf.mxu0  ;;  %11510 = vmatmul.mubr.msk.f32.gmra.mxu0 %vm497_vm2, %v4157_v35  ;;  %v4166_v35 = vrot.slane %v12818_v60, 6  ;;  %v19346_v60 = vld [vmem:[#allocation83_spill] sm:$0xff] }
 0x1cf   : > { %19340 = vst [vmem:[#allocation42_spill] sm:$0xff] %v15282_v57  ;;  %v15290_v19 = vadd.f32 %v11221_v7, %v2136_v45  ;;  %11512 = vmatprep.mubr.msk.f32.mxu0 %vm497_vm2, %v4159_v43  ;;  %v15302_v43 = vpop.f32.mrf.mxu1  ;;  %v2137_v45 = vadd.f32 %v19345_v63, %v14964_v36  ;;  %v4165_v25 = vsel %vm4116_vm6, %v4162_v34, %v4164_v31  ;;  %v19348_v34 = vld [vmem:[#allocation84_spill] sm:$0xff]  ;;  %v12821_v63 = vld [vmem:[%s12920_s14 + $0x100] sm:$0xff] }
 0x1d0   : > { %v2492_v59 = vpop.f32.mrf.mxu0  ;;  %19344 = vst [vmem:[#allocation43_spill] sm:$0xff] %v15302_v43  ;;  %v2140_v21 = vadd.f32 %v19346_v60, %v14974_v10  ;;  %v4172_v0 = vrot.slane %v12821_v63, 6 }
 0x1d1   : > { %v15299_v57 = vadd.f32 %v2492_v59, %v2135_v27  ;;  %v4167_v27 = vsel %vm4116_vm6, %v4164_v31, %v4166_v35  ;;  %v12820_v59 = vld [vmem:[%s12920_s14 + $0xf8] sm:$0xff]  ;;  %v4169_v31 = vsel %vm4116_vm6, %v4166_v35, %v4168_v24  ;;  %v19352_v35 = vld [vmem:[#allocation86_spill] sm:$0xff] }
 0x1d2   : > { %v11224_v55 = vpop.f32.mrf.mxu0  ;;  %11513 = vmatmul.mubr.msk.f32.gmra.mxu0 %vm497_vm2, %v4161_v54  ;;  %v4170_v54 = vrot.slane %v12820_v59, 6  ;;  %v19349_v59 = vld [vmem:[#allocation85_spill] sm:$0xff] }
 0x1d3   : > { %19343 = vst [vmem:[#allocation18_spill] sm:$0xff] %v15299_v57  ;;  %v15306_v7 = vadd.f32 %v11224_v55, %v2138_v1  ;;  %11515 = vmatprep.mubr.msk.f32.mxu0 %vm497_vm2, %v4163_v22  ;;  %v15318_v1 = vpop.f32.mrf.mxu1  ;;  %v2139_v22 = vadd.f32 %v19348_v34, %v14981_v42  ;;  %v2142_v60 = vadd.f32 %v19349_v59, %v14988_v38  ;;  %v12823_v34 = vld [vmem:[%s12920_s14 + $0x110] sm:$0xff] }
 0x1d4   : > { %v2502_v53 = vpop.f32.mrf.mxu0  ;;  %v4176_v63 = vrot.slane %v12823_v34, 6 }
 0x1d5   : > { %v15315_v43 = vadd.f32 %v2502_v53, %v2137_v45  ;;  %v4171_v45 = vsel %vm4116_vm6, %v4168_v24, %v4170_v54  ;;  %v12822_v53 = vld [vmem:[%s12920_s14 + $0x108] sm:$0xff]  ;;  %v4173_v24 = vsel %vm4116_vm6, %v4170_v54, %v4172_v0  ;;  %v19355_v54 = vld [vmem:[#allocation88_spill] sm:$0xff] }
 0x1d6   : > { %v11227_v36 = vpop.f32.mrf.mxu0  ;;  %11516 = vmatmul.mubr.msk.f32.gmra.mxu0 %vm497_vm2, %v4165_v25  ;;  %v4174_v25 = vrot.slane %v12822_v53, 6  ;;  %v19353_v53 = vld [vmem:[#allocation87_spill] sm:$0xff] }
 0x1d7   : > { %19347 = vst [vmem:[#allocation20_spill] sm:$0xff] %v15315_v43  ;;  %v15322_v55 = vadd.f32 %v11227_v36, %v2140_v21  ;;  %11518 = vmatprep.mubr.msk.f32.mxu0 %vm497_vm2, %v4167_v27  ;;  %v15334_v27 = vpop.f32.mrf.mxu1  ;;  %v2141_v21 = vadd.f32 %v19352_v35, %v14995_v49  ;;  %v2144_v59 = vadd.f32 %v19353_v53, %v15002_v20  ;;  %v12825_v35 = vld [vmem:[%s12920_s14 + $0x120] sm:$0xff] }
 0x1d8   : > { %v2512_v10 = vpop.f32.mrf.mxu0  ;;  %19351 = vst [vmem:[#allocation44_spill] sm:$0xff] %v15334_v27  ;;  %v4180_v34 = vrot.slane %v12825_v35, 6  ;;  %v12828_v35 = vld [vmem:[%s12920_s14 + $0x138] sm:$0xff] }
 0x1d9   : > { %v15331_v43 = vadd.f32 %v2512_v10, %v2139_v22  ;;  %v4175_v22 = vsel %vm4116_vm6, %v4172_v0, %v4174_v25  ;;  %v12824_v10 = vld [vmem:[%s12920_s14 + $0x118] sm:$0xff]  ;;  %v4177_v0 = vsel %vm4116_vm6, %v4174_v25, %v4176_v63 }
 0x1da   : > { %v11230_v42 = vpop.f32.mrf.mxu0  ;;  %11519 = vmatmul.mubr.msk.f32.gmra.mxu0 %vm497_vm2, %v4169_v31  ;;  %v4178_v31 = vrot.slane %v12824_v10, 6 }
 0x1db   : > { %19350 = vst [vmem:[#allocation62_spill] sm:$0xff] %v15331_v43  ;;  %v15338_v36 = vadd.f32 %v11230_v42, %v2142_v60  ;;  %11521 = vmatprep.mubr.msk.f32.mxu0 %vm497_vm2, %v4171_v45  ;;  %v15350_v45 = vpop.f32.mrf.mxu1  ;;  %v2143_v60 = vadd.f32 %v19355_v54, %v15009_v6  ;;  %v9678_v6 = vld [vmem:[%s18849_s4 + $0x20] sm:$0xff]  ;;  %v19391_v43 = vld [vmem:[#allocation3_spill] sm:$0xff] }
 0x1dc   : > { %v2522_v38 = vpop.f32.mrf.mxu0  ;;  %11558 = vmatpush3.msra.mxu1 %v9678_v6 }
 0x1dd   : > { %v15347_v27 = vadd.f32 %v2522_v38, %v2141_v21  ;;  %v4179_v21 = vsel %vm4116_vm6, %v4176_v63, %v4178_v31  ;;  %v12826_v38 = vld [vmem:[%s12920_s14 + $0x128] sm:$0xff]  ;;  %v15369_v25 = vpop.f32.mrf.mxu1  ;;  %v2145_v63 = vadd.f32 %v14650_v4, %v15021_v40  ;;  %11813 = vmatprep.subr.mxu1 %v19300_v44  ;;  %v2148_v4 = vadd.f32 %v14657_v13, %v15028_v51 }
 0x1de   : > { %v11233_v49 = vpop.f32.mrf.mxu0  ;;  %11522 = vmatmul.mubr.msk.f32.gmra.mxu0 %vm497_vm2, %v4173_v24  ;;  %v4182_v10 = vrot.slane %v12826_v38, 6  ;;  %v19356_v24 = vld [vmem:[#allocation89_spill] sm:$0xff]  ;;  %19358 = vst [vmem:[#allocation49_spill] sm:$0xff] %v15369_v25  ;;  %v12830_v51 = vld [vmem:[%s12920_s14 + $0x148] sm:$0xff] }
 0x1df   : > { %19354 = vst [vmem:[#allocation45_spill] sm:$0xff] %v15347_v27  ;;  %v15354_v42 = vadd.f32 %v11233_v49, %v2144_v59  ;;  %11524 = vmatprep.mubr.msk.f32.mxu0 %vm497_vm2, %v4175_v22  ;;  %v2146_v53 = vadd.f32 %v19356_v24, %v15016_v52  ;;  %v4181_v52 = vsel %vm4116_vm6, %v4178_v31, %v4180_v34  ;;  %v12827_v49 = vld [vmem:[%s12920_s14 + $0x130] sm:$0xff]  ;;  %v15386_v31 = vpop.f32.mrf.mxu1  ;;  %v19383_v25 = vld [vmem:[#allocation29_spill] sm:$0xff] }
 0x1e0   : > { %v2532_v20 = vpop.f32.mrf.mxu0  ;;  %v4184_v54 = vrot.slane %v12827_v49, 6 }
 0x1e1   : > { %v15363_v27 = vadd.f32 %v2532_v20, %v2143_v60  ;;  %v4186_v20 = vrot.slane %v12828_v35, 6  ;;  %v15400_v49 = vpop.f32.mrf.mxu1 }
 0x1e2   : > { %v11236_v22 = vpop.f32.mrf.mxu0  ;;  %11525 = vmatmul.mubr.msk.f32.gmra.mxu0 %vm497_vm2, %v4177_v0  ;;  %v4183_v0 = vsel %vm4116_vm6, %v4180_v34, %v4182_v10  ;;  %v4185_v24 = vsel %vm4116_vm6, %v4182_v10, %v4184_v54  ;;  %v12829_v34 = vld [vmem:[%s12920_s14 + $0x140] sm:$0xff]  ;;  %19361 = vst [vmem:[#allocation72_spill] sm:$0xff] %v15400_v49  ;;  %v19382_v49 = vld [vmem:[#allocation28_spill] sm:$0xff] }
 0x1e3   : > { %19357 = vst [vmem:[#allocation47_spill] sm:$0xff] %v15363_v27  ;;  %v15373_v59 = vadd.f32 %v11236_v22, %v2146_v53  ;;  %11527 = vmatprep.mubr.msk.f32.mxu0 %vm497_vm2, %v4179_v21  ;;  %v4188_v53 = vrot.slane %v12829_v34, 6  ;;  %v4187_v13 = vsel %vm4116_vm6, %v4184_v54, %v4186_v20  ;;  %v4190_v22 = vrot.slane %v12830_v51, 6  ;;  %v12833_v51 = vld [vmem:[%s12920_s14 + $0x160] sm:$0xff] }
 0x1e4   : > { %v2542_v60 = vpop.f32.mrf.mxu0 }
 0x1e5   : > { %v15383_v40 = vadd.f32 %v2542_v60, %v2145_v63  ;;  %v2150_v63 = vadd.f32 %v14679_v61, %v15040_v56  ;;  %v4189_v10 = vsel %vm4116_vm6, %v4186_v20, %v4188_v53  ;;  %v12832_v61 = vld [vmem:[%s12920_s14 + $0x158] sm:$0xff]  ;;  %v15417_v20 = vpop.f32.mrf.mxu1 }
 0x1e6   : > { %v11239_v38 = vpop.f32.mrf.mxu0  ;;  %11528 = vmatmul.mubr.msk.f32.gmra.mxu0 %vm497_vm2, %v4181_v52  ;;  %v4194_v56 = vrot.slane %v12832_v61, 6 }
 0x1e7   : > { %19359 = vst [vmem:[#allocation35_spill] sm:$0xff] %v15383_v40  ;;  %v15388_v21 = vadd.f32 %v11239_v38, %v2148_v4  ;;  %11530 = vmatprep.mubr.msk.f32.mxu0 %vm497_vm2, %v4183_v0  ;;  %v12831_v0 = vld [vmem:[%s12920_s14 + $0x150] sm:$0xff]  ;;  %v4191_v4 = vsel %vm4116_vm6, %v4188_v53, %v4190_v22  ;;  %v2152_v38 = vadd.f32 %v14702_v48, %v15052_v29  ;;  %v12834_v29 = vld [vmem:[%s12920_s14 + $0x168] sm:$0xff]  ;;  %v15435_v61 = vpop.f32.mrf.mxu1 }
 0x1e8   : > { %v15393_v6 = vpop.f32.mrf.mxu0  ;;  %v4192_v35 = vrot.slane %v12831_v0, 6  ;;  %v4198_v0 = vrot.slane %v12834_v29, 6  ;;  %19364 = vst [vmem:[#allocation78_spill] sm:$0xff] %v15435_v61  ;;  %v19388_v40 = vld [vmem:[#allocation19_spill] sm:$0xff] }
 0x1e9   : > { %19360 = vst [vmem:[#allocation70_spill] sm:$0xff] %v15393_v6 }
 0x1ea   : > { %v11242_v52 = vpop.f32.mrf.mxu0  ;;  %11531 = vmatmul.mubr.msk.f32.gmra.mxu0 %vm497_vm2, %v4185_v24  ;;  %v5068_v24 = vld [vmem:[%s18849_s4 + $0x18] sm:$0xff]  ;;  %v4193_v53 = vsel %vm4116_vm6, %v4190_v22, %v4192_v35  ;;  %v4195_v48 = vsel %vm4116_vm6, %v4192_v35, %v4194_v56  ;;  %v2154_v22 = vadd.f32 %v14728_v39, %v15064_v41  ;;  %v5066_v35 = vld [vmem:[%s18849_s4 + $0x8] sm:$0xff] }
 0x1eb   : > { %v15402_v60 = vadd.f32 %v11242_v52, %v2150_v63  ;;  %11533 = vmatprep.mubr.msk.f32.mxu0 %vm497_vm2, %v4187_v13  ;;  %v4196_v63 = vrot.slane %v12833_v51, 6  ;;  %11683 = vmatpush3.msra.mxu0 %v5068_v24  ;;  %v12836_v51 = vld [vmem:[%s12920_s14 + $0x178] sm:$0xff] }
 0x1ec   : > { %v15407_v54 = vpop.f32.mrf.mxu0  ;;  %11684 = vmatprep.subr.mxu0 %v19300_v44  ;;  %v4202_v29 = vrot.slane %v12836_v51, 6 }
 0x1ed   : > { %19362 = vst [vmem:[#allocation74_spill] sm:$0xff] %v15407_v54  ;;  %v4197_v24 = vsel %vm4116_vm6, %v4194_v56, %v4196_v63  ;;  %v19386_v54 = vld [vmem:[#allocation31_spill] sm:$0xff] }
 0x1ee   : > { %v11245_v34 = vpop.f32.mrf.mxu0  ;;  %11534 = vmatmul.mubr.msk.f32.gmra.mxu0 %vm497_vm2, %v4189_v10  ;;  %v5067_v10 = vld [vmem:[%s18849_s4 + $0x10] sm:$0xff] }
 0x1ef   : > { %v15419_v13 = vadd.f32 %v11245_v34, %v2152_v38  ;;  %11536 = vmatprep.mubr.msk.f32.mxu0 %vm497_vm2, %v4191_v4  ;;  %11685 = vmatpush3.msra.mxu0 %v5067_v10  ;;  %v12835_v34 = vld [vmem:[%s12920_s14 + $0x170] sm:$0xff]  ;;  %v5065_v10 = vld [vmem:[%s18849_s4] sm:$0xff] }
 0x1f0   : > { %v15424_v52 = vpop.f32.mrf.mxu0  ;;  %11686 = vmatprep.subr.mxu0 %v19300_v44  ;;  %v4200_v39 = vrot.slane %v12835_v34, 6  ;;  %v4206_v34 = vrot.slane %v14766_v2, 6  ;;  %v2160_v2 = vadd.f32 %v14814_v50, %v15112_v18 }
 0x1f1   : > { %19363 = vst [vmem:[#allocation76_spill] sm:$0xff] %v15424_v52  ;;  %11687 = vmatpush3.msra.mxu0 %v5066_v35 }
 0x1f2   : > { %v11248_v4 = vpop.f32.mrf.mxu0  ;;  %11537 = vmatmul.mubr.msk.f32.gmra.mxu0 %vm497_vm2, %v4193_v53  ;;  %v4199_v53 = vsel %vm4116_vm6, %v4196_v63, %v4198_v0  ;;  %11688 = vmatprep.subr.mxu0 %v19300_v44  ;;  %v15459_v63 = vpop.f32.mrf.mxu1  ;;  %v4203_v35 = vsel %vm4116_vm6, %v4200_v39, %v4202_v29 }
 0x1f3   : > { %v15441_v38 = vadd.f32 %v11248_v4, %v2154_v22  ;;  %11539 = vmatprep.mubr.msk.f32.mxu0 %vm497_vm2, %v4195_v48  ;;  %v2156_v48 = vadd.f32 %v14754_v9, %v15076_v5  ;;  %11689 = vmatpush3.msra.mxu0 %v5065_v10  ;;  %v4201_v4 = vsel %vm4116_vm6, %v4198_v0, %v4200_v39  ;;  %v4204_v9 = vrot.slane %v14758_v15, 6 }
 0x1f4   : > { %v15446_v41 = vpop.f32.mrf.mxu0  ;;  %11944 = vmatprep.subr.mxu0 %v19300_v44  ;;  %v15474_v10 = vpop.f32.mrf.mxu1 }
 0x1f5   : > { %19365 = vst [vmem:[#allocation58_spill] sm:$0xff] %v15446_v41  ;;  %19367 = vst [vmem:[#allocation59_spill] sm:$0xff] %v15474_v10  ;;  %v4205_v15 = vsel %vm4116_vm6, %v4202_v29, %v4204_v9  ;;  %v4207_v39 = vsel %vm4116_vm6, %v4204_v9, %v4206_v34  ;;  %v2162_v29 = vadd.f32 %v14838_v46, %v15125_v62  ;;  %v19375_v62 = vld [vmem:[#allocation13_spill] sm:$0xff]  ;;  %v19384_v41 = vld [vmem:[#allocation30_spill] sm:$0xff] }
 0x1f6   : > { %v11251_v56 = vpop.f32.mrf.mxu0  ;;  %11540 = vmatmul.mubr.msk.f32.gmra.mxu0 %vm497_vm2, %v4197_v24  ;;  %v2158_v24 = vadd.f32 %v14788_v33, %v15095_v26  ;;  %v15486_v33 = vpop.f32.mrf.mxu1 }
 0x1f7   : > { %v15462_v22 = vadd.f32 %v11251_v56, %v2156_v48  ;;  %11542 = vmatprep.mubr.msk.f32.mxu0 %vm497_vm2, %v4199_v53 }
 0x1f8   : > { %v15467_v5 = vpop.f32.mrf.mxu0  ;;  %v15496_v9 = vpop.f32.mrf.mxu1 }
 0x1f9   : > { %19366 = vst [vmem:[#allocation80_spill] sm:$0xff] %v15467_v5  ;;  %19370 = vst [vmem:[#allocation63_spill] sm:$0xff] %v15496_v9 }
 0x1fa   : > { %v11254_v51 = vpop.f32.mrf.mxu0  ;;  %11543 = vmatmul.mubr.msk.f32.gmra.mxu0 %vm497_vm2, %v4201_v4 }
 0x1fb   : > { %v15476_v48 = vadd.f32 %v11254_v51, %v2158_v24  ;;  %11545 = vmatprep.mubr.msk.f32.mxu0 %vm497_vm2, %v4203_v35  ;;  %v19372_v35 = vld [vmem:[#allocation52_spill] sm:$0xff]  ;;  %v19373_v24 = vld [vmem:[#allocation23_spill] sm:$0xff] }
 0x1fc   : > { %v15480_v0 = vpop.f32.mrf.mxu0  ;;  %v2164_v51 = vadd.f32 %v19373_v24, %v19372_v35 }
 0x1fd   : > { %19368 = vst [vmem:[#allocation60_spill] sm:$0xff] %v15480_v0 }
 0x1fe   : > { %v11257_v53 = vpop.f32.mrf.mxu0  ;;  %11546 = vmatmul.mubr.msk.f32.gmra.mxu0 %vm497_vm2, %v4205_v15 }
 0x1ff   : > { %v15488_v26 = vadd.f32 %v11257_v53, %v2160_v2  ;;  %11548 = vmatprep.mubr.msk.f32.mxu0 %vm497_vm2, %v4207_v39  ;;  %v15506_v39 = vpop.f32.mrf.mxu1 }
 0x200   : > { %v15491_v56 = vpop.f32.mrf.mxu0 }
 0x201   : > { %19369 = vst [vmem:[#allocation61_spill] sm:$0xff] %v15491_v56 }
 0x202   : > { %v11260_v4 = vpop.f32.mrf.mxu0  ;;  %11549 = vmatmul.mubr.msk.f32.gmra.mxu0 %vm497_vm2, %v4206_v34  ;;  %v19376_v34 = vld [vmem:[#allocation24_spill] sm:$0xff] }
 0x203   : > { %v15498_v50 = vadd.f32 %v11260_v4, %v2162_v29  ;;  %11690 = vmatprep.mubr.msk.f32.mxu0 %vm12849_vm7, %v19300_v44  ;;  %v2166_v53 = vadd.f32 %v19376_v34, %v19375_v62  ;;  %v15514_v4 = vpop.f32.mrf.mxu1 }
 0x204   : > { %v15502_v18 = vpop.f32.mrf.mxu0  ;;  %19377 = vst [vmem:[#allocation66_spill] sm:$0xff] %v15514_v4  ;;  %v19381_v4 = vld [vmem:[#allocation27_spill] sm:$0xff] }
 0x205   : > { %19371 = vst [vmem:[#allocation64_spill] sm:$0xff] %v15502_v18  ;;  %v19379_v18 = vld [vmem:[#allocation25_spill] sm:$0xff]  ;;  %v15522_v61 = vpop.f32.mrf.mxu1 }
 0x206   : > { %v11263_v15 = vpop.f32.mrf.mxu0  ;;  %v3181_v35 = vadd.f32 %v19379_v18, %v15170_v23  ;;  %v3185_v23 = vadd.f32 %v19381_v4, %v15206_v3  ;;  %v3189_v3 = vadd.f32 %v19383_v25, %v15238_v17  ;;  %v3193_v17 = vadd.f32 %v19386_v54, %v15270_v11 }
 0x207   : > { %v15508_v2 = vadd.f32 %v11263_v15, %v2164_v51  ;;  %v15530_v56 = vpop.f32.mrf.mxu1  ;;  %v3197_v11 = vadd.f32 %v19391_v43, %v15306_v7 }
 0x208   : > { %v15510_v46 = vpop.f32.mrf.mxu0 }
 0x209   : > { %19374 = vst [vmem:[#allocation65_spill] sm:$0xff] %v15510_v46  ;;  %v19380_v46 = vld [vmem:[#allocation26_spill] sm:$0xff]  ;;  %v15538_v18 = vpop.f32.mrf.mxu1 }
 0x20a   : > { %v11266_v29 = vpop.f32.mrf.mxu0  ;;  %v3183_v62 = vadd.f32 %v19380_v46, %v15190_v58  ;;  %v3187_v58 = vadd.f32 %v19382_v49, %v15222_v12  ;;  %v3191_v12 = vadd.f32 %v19384_v41, %v15254_v30  ;;  %v3195_v30 = vadd.f32 %v19388_v40, %v15290_v19 }
 0x20b   : > { %v15516_v9 = vadd.f32 %v11266_v29, %v2166_v53  ;;  %v15546_v46 = vpop.f32.mrf.mxu1 }
 0x20c   : > { %v15518_v10 = vpop.f32.mrf.mxu0 }
 0x20d   : > { %19378 = vst [vmem:[#allocation67_spill] sm:$0xff] %v15518_v10  ;;  %v15554_v4 = vpop.f32.mrf.mxu1 }
 0x20e   : > { %v11342_v24 = vpop.f32.mrf.mxu0 }
 0x20f   : > { %v15524_v51 = vadd.f32 %v11342_v24, %v3181_v35  ;;  %v15562_v49 = vpop.f32.mrf.mxu1 }
 0x210   : > { %v15526_v15 = vpop.f32.mrf.mxu0 }
 0x211   : > { %v15570_v25 = vpop.f32.mrf.mxu1 }
 0x212   : > { %v11345_v34 = vpop.f32.mrf.mxu0 }
 0x213   : > { %v15532_v53 = vadd.f32 %v11345_v34, %v3183_v62  ;;  %v15578_v41 = vpop.f32.mrf.mxu1 }
 0x214   : > { %v15534_v29 = vpop.f32.mrf.mxu0 }
 0x215   : > { %v15586_v54 = vpop.f32.mrf.mxu1 }
 0x216   : > { %v11348_v10 = vpop.f32.mrf.mxu0 }
 0x217   : > { %v15540_v35 = vadd.f32 %v11348_v10, %v3185_v23  ;;  %v15594_v40 = vpop.f32.mrf.mxu1 }
 0x218   : > { %v15542_v24 = vpop.f32.mrf.mxu0 }
 0x219   : > { %v15602_v7 = vpop.f32.mrf.mxu1 }
 0x21a   : > { %v11351_v0 = vpop.f32.mrf.mxu0 }
 0x21b   : > { %v15548_v62 = vadd.f32 %v11351_v0, %v3187_v58 }
 0x21c   : > { %v15550_v34 = vpop.f32.mrf.mxu0 }
 0x21e   : > { %v11354_v5 = vpop.f32.mrf.mxu0 }
 0x21f   : > { %v15556_v10 = vadd.f32 %v11354_v5, %v3189_v3 }
 0x220   : > { %v15558_v23 = vpop.f32.mrf.mxu0 }
 0x222   : > { %v11357_v52 = vpop.f32.mrf.mxu0 }
 0x223   : > { %v15564_v0 = vadd.f32 %v11357_v52, %v3191_v12 }
 0x224   : > { %v15566_v58 = vpop.f32.mrf.mxu0 }
 0x225   : > { %19385 = vst [vmem:[#allocation68_spill] sm:$0xff] %v15564_v0 }
 0x226   : > { %v11360_v6 = vpop.f32.mrf.mxu0 }
 0x227   : > { %v15572_v5 = vadd.f32 %v11360_v6, %v3193_v17 }
 0x228   : > { %v15574_v3 = vpop.f32.mrf.mxu0 }
 0x229   : > { %19387 = vst [vmem:[#allocation69_spill] sm:$0xff] %v15572_v5  ;;  %v19394_v5 = vld [vmem:[#allocation5_spill] sm:$0xff] }
 0x22a   : > { %v11363_v27 = vpop.f32.mrf.mxu0  ;;  %v3199_v19 = vadd.f32 %v19394_v5, %v15322_v55  ;;  %v15610_v5 = vpop.f32.mrf.mxu1 }
 0x22b   : > { %v15580_v52 = vadd.f32 %v11363_v27, %v3195_v30 }
 0x22c   : > { %v15582_v12 = vpop.f32.mrf.mxu0 }
 0x22d   : > { %19389 = vst [vmem:[#allocation71_spill] sm:$0xff] %v15580_v52  ;;  %19390 = vst [vmem:[#allocation73_spill] sm:$0xff] %v15582_v12  ;;  %v19396_v52 = vld [vmem:[#allocation8_spill] sm:$0xff] }
 0x22e   : > { %v11366_v57 = vpop.f32.mrf.mxu0  ;;  %v3201_v43 = vadd.f32 %v19396_v52, %v15338_v36  ;;  %v3205_v36 = vadd.f32 %v15186_v37, %v15373_v59  ;;  %v15618_v52 = vpop.f32.mrf.mxu1  ;;  %v3209_v37 = vadd.f32 %v15250_v16, %v15402_v60  ;;  %v3213_v16 = vadd.f32 %v15318_v1, %v15441_v38 }
 0x22f   : > { %v15588_v6 = vadd.f32 %v11366_v57, %v3197_v11  ;;  %v3217_v1 = vadd.f32 %v15386_v31, %v15476_v48  ;;  %v3221_v31 = vadd.f32 %v15459_v63, %v15498_v50  ;;  %v3225_v50 = vadd.f32 %v15506_v39, %v15516_v9  ;;  %v15717_v39 = vld [vmem:[%s18848_s3] ss:$0 sm:$0xff] }
 0x230   : > { %v15590_v17 = vpop.f32.mrf.mxu0 }
 0x231   : > { %19392 = vst [vmem:[#allocation75_spill] sm:$0xff] %v15588_v6  ;;  %19393 = vst [vmem:[#allocation77_spill] sm:$0xff] %v15590_v17  ;;  %v19398_v6 = vld [vmem:[#allocation53_spill] sm:$0xff] }
 0x232   : > { %v11369_v0 = vpop.f32.mrf.mxu0  ;;  %v3203_v55 = vadd.f32 %v19398_v6, %v15354_v42  ;;  %v3207_v42 = vadd.f32 %v15218_v14, %v15388_v21  ;;  %v15626_v6 = vpop.f32.mrf.mxu1  ;;  %v3211_v14 = vadd.f32 %v15286_v47, %v15419_v13  ;;  %v3215_v47 = vadd.f32 %v15350_v45, %v15462_v22 }
 0x233   : > { %v15596_v27 = vadd.f32 %v11369_v0, %v3199_v19  ;;  %v3219_v45 = vadd.f32 %v15417_v20, %v15488_v26  ;;  %v3223_v20 = vadd.f32 %v15486_v33, %v15508_v2  ;;  %v19417_v33 = vld [vmem:[#allocation36_spill] sm:$0xff] }
 0x234   : > { %v15598_v30 = vpop.f32.mrf.mxu0  ;;  %v15634_v59 = vpop.f32.mrf.mxu1  ;;  %v3182_v2 = vadd.f32 %v19417_v33, %v15199_v8 }
 0x235   : > { %19395 = vst [vmem:[#allocation79_spill] sm:$0xff] %v15596_v27 }
 0x236   : > { %v11372_v12 = vpop.f32.mrf.mxu0  ;;  %v15642_v21 = vpop.f32.mrf.mxu1 }
 0x237   : > { %v15604_v57 = vadd.f32 %v11372_v12, %v3201_v43 }
 0x238   : > { %v15606_v11 = vpop.f32.mrf.mxu0  ;;  %v15650_v60 = vpop.f32.mrf.mxu1 }
 0x239   : > { %19397 = vst [vmem:[#allocation81_spill] sm:$0xff] %v15604_v57 }
 0x23a   : > { %v11375_v17 = vpop.f32.mrf.mxu0  ;;  %v15658_v13 = vpop.f32.mrf.mxu1 }
 0x23b   : > { %v15612_v0 = vadd.f32 %v11375_v17, %v3203_v55 }
 0x23c   : > { %v15614_v19 = vpop.f32.mrf.mxu0  ;;  %v15666_v38 = vpop.f32.mrf.mxu1 }
 0x23d   : > { %19399 = vst [vmem:[#allocation82_spill] sm:$0xff] %v15612_v0 }
 0x23e   : > { %v11378_v27 = vpop.f32.mrf.mxu0  ;;  %v15674_v22 = vpop.f32.mrf.mxu1 }
 0x23f   : > { %v15620_v12 = vadd.f32 %v11378_v27, %v3205_v36 }
 0x240   : > { %v15622_v43 = vpop.f32.mrf.mxu0  ;;  %v15682_v48 = vpop.f32.mrf.mxu1 }
 0x241   : > { %19400 = vst [vmem:[#allocation83_spill] sm:$0xff] %v15620_v12 }
 0x242   : > { %v11381_v57 = vpop.f32.mrf.mxu0  ;;  %v15690_v26 = vpop.f32.mrf.mxu1 }
 0x243   : > { %v15628_v17 = vadd.f32 %v11381_v57, %v3207_v42 }
 0x244   : > { %v15630_v55 = vpop.f32.mrf.mxu0 }
 0x245   : > { %19401 = vst [vmem:[#allocation84_spill] sm:$0xff] %v15628_v17 }
 0x246   : > { %v11384_v0 = vpop.f32.mrf.mxu0 }
 0x247   : > { %v15636_v27 = vadd.f32 %v11384_v0, %v3209_v37 }
 0x248   : > { %v15638_v36 = vpop.f32.mrf.mxu0 }
 0x249   : > { %19402 = vst [vmem:[#allocation85_spill] sm:$0xff] %v15636_v27 }
 0x24a   : > { %v11387_v12 = vpop.f32.mrf.mxu0 }
 0x24b   : > { %v15644_v57 = vadd.f32 %v11387_v12, %v3211_v14 }
 0x24c   : > { %v15646_v42 = vpop.f32.mrf.mxu0 }
 0x24d   : > { %19403 = vst [vmem:[#allocation86_spill] sm:$0xff] %v15644_v57  ;;  %19404 = vst [vmem:[#allocation87_spill] sm:$0xff] %v15646_v42 }
 0x24e   : > { %v11390_v17 = vpop.f32.mrf.mxu0 }
 0x24f   : > { %v15652_v0 = vadd.f32 %v11390_v17, %v3213_v16 }
 0x250   : > { %v15654_v37 = vpop.f32.mrf.mxu0 }
 0x251   : > { %19405 = vst [vmem:[#allocation88_spill] sm:$0xff] %v15652_v0  ;;  %19406 = vst [vmem:[#allocation89_spill] sm:$0xff] %v15654_v37 }
 0x252   : > { %v11393_v27 = vpop.f32.mrf.mxu0 }
 0x253   : > { %v15660_v12 = vadd.f32 %v11393_v27, %v3215_v47 }
 0x254   : > { %v15662_v14 = vpop.f32.mrf.mxu0 }
 0x255   : > { %19407 = vst [vmem:[#allocation52_spill] sm:$0xff] %v15660_v12  ;;  %19408 = vst [vmem:[#allocation23_spill] sm:$0xff] %v15662_v14 }
 0x256   : > { %v11396_v57 = vpop.f32.mrf.mxu0 }
 0x257   : > { %v15668_v17 = vadd.f32 %v11396_v57, %v3217_v1 }
 0x258   : > { %v15670_v16 = vpop.f32.mrf.mxu0 }
 0x259   : > { %19409 = vst [vmem:[#allocation13_spill] sm:$0xff] %v15668_v17  ;;  %19410 = vst [vmem:[#allocation24_spill] sm:$0xff] %v15670_v16 }
 0x25a   : > { %v11399_v0 = vpop.f32.mrf.mxu0 }
 0x25b   : > { %v15676_v27 = vadd.f32 %v11399_v0, %v3219_v45 }
 0x25c   : > { %v15678_v47 = vpop.f32.mrf.mxu0 }
 0x25d   : > { %19411 = vst [vmem:[#allocation25_spill] sm:$0xff] %v15676_v27  ;;  %19412 = vst [vmem:[#allocation26_spill] sm:$0xff] %v15678_v47  ;;  %v19415_v27 = vld [vmem:[#allocation15_spill] sm:$0xff]  ;;  %v19416_v47 = vld [vmem:[#allocation14_spill] sm:$0xff] }
 0x25e   : > { %v11402_v12 = vpop.f32.mrf.mxu0  ;;  %v3180_v63 = vadd.f32 %v19416_v47, %v19415_v27  ;;  %v3540_v27 = vadd.f32 %v15534_v29, %v3182_v2 }
 0x25f   : > { %v15684_v57 = vadd.f32 %v11402_v12, %v3221_v31  ;;  %v15700_v12 = vpop.f32.mrf.mxu1 }
 0x260   : > { %v15686_v1 = vpop.f32.mrf.mxu0  ;;  %v4070_v2 = vadd.f32 %v15546_v46, %v3540_v27 }
 0x261   : > { %19413 = vst [vmem:[#allocation27_spill] sm:$0xff] %v15686_v1  ;;  %v3538_v1 = vadd.f32 %v15526_v15, %v3180_v63  ;;  %v15712_v47 = vpop.f32.mrf.mxu1 }
 0x262   : > { %v11405_v17 = vpop.f32.mrf.mxu0 }
 0x263   : > { %v15692_v0 = vadd.f32 %v11405_v17, %v3223_v20  ;;  %v4069_v20 = vadd.f32 %v15522_v61, %v15524_v51  ;;  %v4068_v15 = vadd.f32 %v15530_v56, %v3538_v1  ;;  %v4071_v61 = vadd.f32 %v15538_v18, %v15532_v53 }
 0x264   : > { %v15694_v45 = vpop.f32.mrf.mxu0 }
 0x265   : > { %19414 = vst [vmem:[#allocation28_spill] sm:$0xff] %v15694_v45  ;;  %v4792_v45 = vpop.permute.xlu0 %4791 }
 0x266   : > { %v11408_v31 = vpop.f32.mrf.mxu0 }
 0x267   : > { %v15703_v16 = vadd.f32 %v11408_v31, %v3225_v50  ;;  %v19419_v50 = vld [vmem:[#allocation39_spill] sm:$0xff]  ;;  %v19420_v31 = vld [vmem:[#allocation16_spill] sm:$0xff] }
 0x268   : > { %v15707_v17 = vpop.f32.mrf.mxu0  ;;  %v3184_v33 = vadd.f32 %v19420_v31, %v19419_v50  ;;  %v19421_v50 = vld [vmem:[#allocation38_spill] sm:$0xff] }
 0x269   : > { %19418 = vst [vmem:[#allocation29_spill] sm:$0xff] %v15707_v17  ;;  %v15726_v17 = vpop.f32.mrf.mxu1  ;;  %v3186_v31 = vadd.f32 %v19421_v50, %v15231_v28 }
 0x26a   : > { %v11484_v9 = vpop.f32.mrf.mxu0  ;;  %v3542_v37 = vadd.f32 %v15542_v24, %v3184_v33 }
 0x26b   : > { %v4599_v63 = vadd.f32 %v11484_v9, %v4069_v20  ;;  %v4797_v20 = vpop.permute.xlu0 %4796 }
 0x26c   : > { %v4369_v8 = vpop.f32.mrf.mxu0  ;;  %v4072_v24 = vadd.f32 %v15562_v49, %v3542_v37 }
 0x26d   : > { %v4652_v51 = vadd.f32 %v15717_v39, %v4599_v63  ;;  %v4598_v29 = vadd.f32 %v4369_v8, %v4068_v15  ;;  %v15734_v63 = vpop.f32.mrf.mxu1  ;;  %v3544_v8 = vadd.f32 %v15550_v34, %v3186_v31  ;;  %v19423_v31 = vld [vmem:[#allocation40_spill] sm:$0xff] }
 0x26e   : > { %v11487_v14 = vpop.f32.mrf.mxu0 }
 0x26f   : > { %v4698_v42 = vmax.f32 %v4652_v51, 0.0  ;;  %v4651_v56 = vadd.f32 %v15717_v39, %v4598_v29  ;;  %v4601_v1 = vadd.f32 %v11487_v14, %v4071_v61  ;;  %v4802_v14 = vpop.permute.xlu1 %4801  ;;  %v4073_v61 = vadd.f32 %v15554_v4, %v15540_v35  ;;  %v9767_v35 = vld [vmem:[%s18849_s4 + $0x58] sm:$0xff] }
 0x270   : > { %v4379_v9 = vpop.f32.mrf.mxu0  ;;  %v4074_v4 = vadd.f32 %v15578_v41, %v3544_v8  ;;  %v9766_v8 = vld [vmem:[%s18849_s4 + $0x50] sm:$0xff] }
 0x271   : > { %v15732_v53 = vmul.f32 %v4797_v20, %v4698_v42  ;;  %v4697_v18 = vmax.f32 %v4651_v56, 0.0  ;;  %v4600_v15 = vadd.f32 %v4379_v9, %v4070_v2  ;;  %v4654_v46 = vadd.f32 %v15717_v39, %v4601_v1  ;;  %v15744_v1 = vpop.f32.mrf.mxu1 }
 0x272   : > { %v11490_v27 = vpop.f32.mrf.mxu0 }
 0x273   : > { %19422 = vst [vmem:[#allocation30_spill] sm:$0xff] %v15732_v53  ;;  %v5019_v33 = vmul.f32 %v4792_v45, %v4697_v18  ;;  %v4653_v28 = vadd.f32 %v15717_v39, %v4600_v15  ;;  %v5116_v51 = vrot.slane %v15732_v53, 1  ;;  %v18925_v49 = vrot.slane %v15732_v53, 2  ;;  %v19424_v18 = vld [vmem:[#allocation17_spill] sm:$0xff] }
 0x274   : > { %v4389_v42 = vpop.f32.mrf.mxu0  ;;  %v4700_v34 = vmax.f32 %v4654_v46, 0.0  ;;  %v4603_v45 = vadd.f32 %v11490_v27, %v4073_v61  ;;  %v3188_v15 = vadd.f32 %v19424_v18, %v19423_v31 }
 0x275   : > { %v5115_v29 = vrot.slane %v5019_v33, 1  ;;  %v5906_v2 = vrot.slane %v5019_v33, 2  ;;  %v4602_v56 = vadd.f32 %v4389_v42, %v4072_v24  ;;  %11691 = vmatmul.mubr.msk.f32.vlgmr.msra.gmra.mxu0 %vm5196_vm8, %v5019_v33  ;;  %v4699_v37 = vmax.f32 %v4653_v28, 0.0  ;;  %v4807_v33 = vpop.permute.xlu1 %4806  ;;  %v15771_v28 = vpop.f32.mrf.mxu1 }
 0x276   : > { %v11493_v20 = vpop.f32.mrf.mxu0  ;;  %11693 = vmatprep.mubr.msk.f32.mxu0 %vm12849_vm7, %v19300_v44  ;;  %v15773_v42 = vmul.f32 %v4807_v33, %v4700_v34 }
 0x277   : > { %v4655_v9 = vadd.f32 %v15717_v39, %v4602_v56  ;;  %v5117_v50 = vsel %vm405_vm1, %v5115_v29, %v5116_v51  ;;  %v15757_v46 = vmul.f32 %v4802_v14, %v4699_v37  ;;  %v15763_v24 = vsel %vm1281_vm3, %v5906_v2, %v18925_v49  ;;  %v4812_v37 = vpop.permute.xlu0 %4811  ;;  %v19439_v49 = vld [vmem:[#allocation73_spill] sm:$0xff] }
 0x278   : > { %v4399_v27 = vpop.f32.mrf.mxu0  ;;  %11560 = vmatmul.mubr.msk.f32.vlgmr.msra.gmra.mxu1 %vm5196_vm8, %v5117_v50  ;;  %19426 = vst [vmem:[#allocation19_spill] sm:$0xff] %v15763_v24  ;;  %v3546_v14 = vadd.f32 %v15558_v23, %v3188_v15  ;;  %19427 = vst [vmem:[#allocation3_spill] sm:$0xff] %v15773_v42  ;;  %v4656_v29 = vadd.f32 %v15717_v39, %v4603_v45  ;;  %v4075_v23 = vadd.f32 %v15570_v25, %v15548_v62  ;;  %v15795_v62 = vpop.f32.mrf.mxu1  ;;  %v19429_v15 = vld [vmem:[#allocation41_spill] sm:$0xff] }
 0x279   : > { %19425 = vst [vmem:[#allocation31_spill] sm:$0xff] %v15757_v46  ;;  %v4701_v61 = vmax.f32 %v4655_v9, 0.0  ;;  %v4604_v41 = vadd.f32 %v4399_v27, %v4074_v4  ;;  %11814 = vmatpush3.msra.mxu1 %v9767_v35  ;;  %11694 = vmatmul.mubr.msk.f32.gmra.mxu0 %vm5196_vm8, %v15732_v53  ;;  %v5118_v56 = vrot.slane %v15757_v46, 1  ;;  %v9765_v9 = vld [vmem:[%s18849_s4 + $0x48] sm:$0xff]  ;;  %v3190_v27 = vadd.f32 %v19429_v15, %v15263_v32  ;;  %v9764_v32 = vld [vmem:[%s18849_s4 + $0x40] sm:$0xff] }
 0x27a   : > { %v11496_v2 = vpop.f32.mrf.mxu0  ;;  %11562 = vmatprep.mubr.msk.f32.mxu1 %vm12849_vm7, %v19300_v44  ;;  %11696 = vmatprep.mubr.msk.f32.mxu0 %vm12849_vm7, %v19300_v44  ;;  %v4076_v50 = vadd.f32 %v15594_v40, %v3546_v14  ;;  %v4702_v25 = vmax.f32 %v4656_v29, 0.0  ;;  %v4605_v31 = vadd.f32 %v11493_v20, %v4075_v23  ;;  %v15816_v29 = vpop.f32.mrf.mxu1 }
 0x27b   : > { %11815 = vmatprep.subr.mxu1 %v19300_v44  ;;  %v15784_v35 = vmul.f32 %v4812_v37, %v4701_v61  ;;  %v4657_v34 = vadd.f32 %v15717_v39, %v4604_v41  ;;  %v5119_v4 = vsel %vm405_vm1, %v5116_v51, %v5118_v56  ;;  %v5120_v51 = vrot.slane %v15773_v42, 1 }
 0x27c   : > { %v4409_v45 = vpop.f32.mrf.mxu0  ;;  %11816 = vmatpush3.msra.mxu1 %v9766_v8  ;;  %v4817_v8 = vpop.permute.xlu1 %4816  ;;  %v3548_v14 = vadd.f32 %v15566_v58, %v3190_v27  ;;  %v4077_v58 = vadd.f32 %v15586_v54, %v15556_v10 }
 0x27d   : > { %19428 = vst [vmem:[#allocation5_spill] sm:$0xff] %v15784_v35  ;;  %11563 = vmatmul.mubr.msk.f32.gmra.mxu1 %vm5196_vm8, %v5119_v4  ;;  %11697 = vmatmul.mubr.msk.f32.gmra.mxu0 %vm5196_vm8, %v15757_v46  ;;  %v4703_v40 = vmax.f32 %v4657_v34, 0.0  ;;  %v4606_v33 = vadd.f32 %v4409_v45, %v4076_v50  ;;  %v5121_v20 = vsel %vm405_vm1, %v5118_v56, %v5120_v51  ;;  %v5122_v41 = vrot.slane %v15784_v35, 1  ;;  %v4822_v34 = vpop.permute.xlu0 %4821 }
 0x27e   : > { %v15797_v18 = vpop.f32.mrf.mxu0  ;;  %11565 = vmatprep.mubr.msk.f32.mxu1 %vm12849_vm7, %v19300_v44  ;;  %11699 = vmatprep.mubr.msk.f32.mxu0 %vm12849_vm7, %v19300_v44  ;;  %v15818_v37 = vmul.f32 %v4817_v8, %v4702_v25  ;;  %v4658_v56 = vadd.f32 %v15717_v39, %v4605_v31  ;;  %v4078_v25 = vadd.f32 %v15610_v5, %v3548_v14  ;;  %v15838_v31 = vpop.f32.mrf.mxu1 }
 0x27f   : > { %11817 = vmatprep.subr.mxu1 %v19300_v44  ;;  %v15830_v45 = vmul.f32 %v4822_v34, %v4703_v40  ;;  %v4659_v4 = vadd.f32 %v15717_v39, %v4606_v33  ;;  %v5123_v50 = vsel %vm405_vm1, %v5120_v51, %v5122_v41  ;;  %v4607_v27 = vadd.f32 %v11496_v2, %v4077_v58  ;;  %v19432_v51 = vld [vmem:[#allocation42_spill] sm:$0xff] }
 0x280   : > { %v4419_v61 = vpop.f32.mrf.mxu0  ;;  %11818 = vmatpush3.msra.mxu1 %v9765_v9  ;;  %19430 = vst [vmem:[#allocation8_spill] sm:$0xff] %v15818_v37  ;;  %v4704_v15 = vmax.f32 %v4658_v56, 0.0  ;;  %v5124_v54 = vrot.slane %v15818_v37, 1  ;;  %v19433_v40 = vld [vmem:[#allocation34_spill] sm:$0xff]  ;;  %v4827_v14 = vpop.permute.xlu1 %4826 }
 0x281   : > { %11566 = vmatmul.mubr.msk.f32.gmra.mxu1 %vm5196_vm8, %v5121_v20  ;;  %11700 = vmatmul.mubr.msk.f32.gmra.mxu0 %vm5196_vm8, %v15773_v42  ;;  %19431 = vst [vmem:[#allocation53_spill] sm:$0xff] %v15830_v45  ;;  %v3192_v33 = vadd.f32 %v19433_v40, %v19432_v51  ;;  %v4705_v5 = vmax.f32 %v4659_v4, 0.0  ;;  %v4608_v20 = vadd.f32 %v4419_v61, %v4078_v25  ;;  %v15858_v34 = vpop.f32.mrf.mxu1 }
 0x282   : > { %v15821_v23 = vpop.f32.mrf.mxu0  ;;  %11568 = vmatprep.mubr.msk.f32.mxu1 %vm12849_vm7, %v19300_v44  ;;  %11702 = vmatprep.mubr.msk.f32.mxu0 %vm12849_vm7, %v19300_v44  ;;  %v5125_v2 = vsel %vm405_vm1, %v5122_v41, %v5124_v54  ;;  %v15860_v58 = vmul.f32 %v4827_v14, %v4704_v15  ;;  %v4660_v61 = vadd.f32 %v15717_v39, %v4607_v27  ;;  %v4832_v41 = vpop.permute.xlu0 %4831  ;;  %v19438_v14 = vld [vmem:[#allocation21_spill] sm:$0xff] }
 0x283   : > { %11819 = vmatprep.subr.mxu1 %v19300_v44  ;;  %v3550_v56 = vadd.f32 %v15574_v3, %v3192_v33  ;;  %v15871_v51 = vmul.f32 %v4832_v41, %v4705_v5  ;;  %v4661_v3 = vadd.f32 %v15717_v39, %v4608_v20  ;;  %v15881_v33 = vpop.f32.mrf.mxu1 }
 0x284   : > { %v4429_v9 = vpop.f32.mrf.mxu0  ;;  %11820 = vmatpush3.msra.mxu1 %v9764_v32  ;;  %v5126_v32 = vrot.slane %v15830_v45, 1  ;;  %19434 = vst [vmem:[#allocation15_spill] sm:$0xff] %v15860_v58  ;;  %v5128_v20 = vrot.slane %v15860_v58, 1 }
 0x285   : > { %11569 = vmatmul.mubr.msk.f32.gmra.mxu1 %vm5196_vm8, %v5123_v50  ;;  %11703 = vmatmul.mubr.msk.f32.gmra.mxu0 %vm5196_vm8, %v15784_v35  ;;  %v19435_v50 = vld [vmem:[#allocation68_spill] sm:$0xff]  ;;  %19436 = vst [vmem:[#allocation14_spill] sm:$0xff] %v15871_v51  ;;  %v4080_v40 = vadd.f32 %v15626_v6, %v3550_v56 }
 0x286   : > { %v15840_v10 = vpop.f32.mrf.mxu0  ;;  %11571 = vmatprep.mubr.msk.f32.mxu1 %vm12849_vm7, %v19300_v44  ;;  %11705 = vmatprep.mubr.msk.f32.mxu0 %vm12849_vm7, %v19300_v44  ;;  %v4079_v25 = vadd.f32 %v15602_v7, %v19435_v50  ;;  %v5127_v27 = vsel %vm405_vm1, %v5124_v54, %v5126_v32  ;;  %v19437_v54 = vld [vmem:[#allocation18_spill] sm:$0xff]  ;;  %v4707_v50 = vmax.f32 %v4661_v3, 0.0  ;;  %v15904_v3 = vpop.f32.mrf.mxu1 }
 0x287   : > { %12075 = vmatprep.subr.mxu1 %v19300_v44  ;;  %v3194_v41 = vadd.f32 %v19438_v14, %v19437_v54  ;;  %v4610_v6 = vadd.f32 %v4429_v9, %v4080_v40  ;;  %v4842_v14 = vpop.permute.xlu0 %4841 }
 0x288   : > { %v15850_v8 = vpop.f32.mrf.mxu0  ;;  %v4609_v7 = vadd.f32 %v15797_v18, %v4079_v25  ;;  %v5130_v18 = vrot.slane %v15871_v51, 1  ;;  %v4837_v25 = vpop.permute.xlu1 %4836 }
 0x289   : > { %11572 = vmatmul.mubr.msk.f32.gmra.mxu1 %vm5196_vm8, %v5125_v2  ;;  %11706 = vmatmul.mubr.msk.f32.gmra.mxu0 %vm5196_vm8, %v15818_v37  ;;  %v4706_v2 = vmax.f32 %v4660_v61, 0.0  ;;  %v5129_v61 = vsel %vm405_vm1, %v5126_v32, %v5128_v20  ;;  %v3552_v54 = vadd.f32 %v19439_v49, %v3194_v41  ;;  %v15917_v49 = vmul.f32 %v4842_v14, %v4707_v50  ;;  %v15931_v50 = vpop.f32.mrf.mxu1 }
 0x28a   : > { %v15863_v4 = vpop.f32.mrf.mxu0  ;;  %11574 = vmatprep.mubr.msk.f32.mxu1 %vm12849_vm7, %v19300_v44  ;;  %11708 = vmatprep.mubr.msk.f32.mxu0 %vm12849_vm7, %v19300_v44  ;;  %v4662_v32 = vadd.f32 %v15717_v39, %v4609_v7  ;;  %v5131_v7 = vsel %vm405_vm1, %v5128_v20, %v5130_v18 }
 0x28b   : > { %v15906_v9 = vmul.f32 %v4837_v25, %v4706_v2  ;;  %19442 = vst [vmem:[#allocation39_spill] sm:$0xff] %v15917_v49  ;;  %v4663_v2 = vadd.f32 %v15717_v39, %v4610_v6  ;;  %v9811_v25 = vld [vmem:[%s18849_s4 + $0x70] sm:$0xff] }
 0x28c   : > { %v15874_v15 = vpop.f32.mrf.mxu0  ;;  %v4708_v6 = vmax.f32 %v4662_v32, 0.0  ;;  %v4847_v53 = vpop.permute.xlu1 %4846 }
 0x28d   : > { %11575 = vmatmul.mubr.msk.f32.gmra.mxu1 %vm5196_vm8, %v5127_v27  ;;  %11709 = vmatmul.mubr.msk.f32.gmra.mxu0 %vm5196_vm8, %v15830_v45  ;;  %v9812_v27 = vld [vmem:[%s18849_s4 + $0x78] sm:$0xff]  ;;  %19440 = vst [vmem:[#allocation36_spill] sm:$0xff] %v15906_v9  ;;  %v5132_v20 = vrot.slane %v15906_v9, 1  ;;  %v9810_v45 = vld [vmem:[%s18849_s4 + $0x68] sm:$0xff] }
 0x28e   : > { %v15884_v5 = vpop.f32.mrf.mxu0  ;;  %11577 = vmatprep.mubr.msk.f32.mxu1 %vm12849_vm7, %v19300_v44  ;;  %11711 = vmatprep.mubr.msk.f32.mxu0 %vm12849_vm7, %v19300_v44 }
 0x28f   : > { %11945 = vmatpush3.msra.mxu0 %v9812_v27 }
 0x290   : > { %v15893_v56 = vpop.f32.mrf.mxu0  ;;  %11946 = vmatprep.subr.mxu0 %v19300_v44  ;;  %v4857_v37 = vpop.permute.xlu1 %4856 }
 0x291   : > { %11578 = vmatmul.mubr.msk.f32.gmra.mxu1 %vm5196_vm8, %v5129_v61  ;;  %11712 = vmatmul.mubr.msk.f32.gmra.mxu0 %vm5196_vm8, %v15860_v58  ;;  %v19441_v61 = vld [vmem:[#allocation69_spill] sm:$0xff] }
 0x292   : > { %v15909_v40 = vpop.f32.mrf.mxu0  ;;  %11580 = vmatprep.mubr.msk.f32.mxu1 %vm12849_vm7, %v19300_v44  ;;  %11714 = vmatprep.mubr.msk.f32.mxu0 %vm12849_vm7, %v19300_v44  ;;  %v4081_v58 = vadd.f32 %v15618_v52, %v19441_v61  ;;  %v4082_v52 = vadd.f32 %v15642_v21, %v3552_v54  ;;  %v19443_v61 = vld [vmem:[#allocation20_spill] sm:$0xff]  ;;  %v4709_v21 = vmax.f32 %v4663_v2, 0.0  ;;  %v19445_v2 = vld [vmem:[#allocation77_spill] sm:$0xff] }
 0x293   : > { %11947 = vmatpush3.msra.mxu0 %v9811_v25  ;;  %v15956_v25 = vpop.f32.mrf.mxu1 }
 0x294   : > { %v15920_v41 = vpop.f32.mrf.mxu0  ;;  %v4611_v27 = vadd.f32 %v15821_v23, %v4081_v58  ;;  %v4612_v54 = vadd.f32 %v15850_v8, %v4082_v52  ;;  %v5133_v23 = vsel %vm405_vm1, %v5130_v18, %v5132_v20  ;;  %v5134_v58 = vrot.slane %v15917_v49, 1  ;;  %11948 = vmatprep.subr.mxu0 %v19300_v44 }
 0x295   : > { %11581 = vmatmul.mubr.msk.f32.gmra.mxu1 %vm5196_vm8, %v5131_v7  ;;  %11715 = vmatmul.mubr.msk.f32.gmra.mxu0 %vm5196_vm8, %v15871_v51  ;;  %v19444_v7 = vld [vmem:[#allocation4_spill] sm:$0xff]  ;;  %v15958_v52 = vmul.f32 %v4847_v53, %v4708_v6 }
 0x296   : > { %v15934_v14 = vpop.f32.mrf.mxu0  ;;  %11583 = vmatprep.mubr.msk.f32.mxu1 %vm12849_vm7, %v19300_v44  ;;  %11717 = vmatprep.mubr.msk.f32.mxu0 %vm12849_vm7, %v19300_v44  ;;  %v3196_v51 = vadd.f32 %v19444_v7, %v19443_v61  ;;  %v4664_v18 = vadd.f32 %v15717_v39, %v4611_v27  ;;  %v4852_v7 = vpop.permute.xlu0 %4851  ;;  %v4665_v53 = vadd.f32 %v15717_v39, %v4612_v54 }
 0x297   : > { %19446 = vst [vmem:[#allocation16_spill] sm:$0xff] %v15958_v52  ;;  %11949 = vmatpush3.msra.mxu0 %v9810_v45  ;;  %v5135_v27 = vsel %vm405_vm1, %v5132_v20, %v5134_v58  ;;  %v15983_v45 = vpop.f32.mrf.mxu1  ;;  %v5136_v20 = vrot.slane %v15958_v52, 1 }
 0x298   : > { %v15944_v32 = vpop.f32.mrf.mxu0  ;;  %v3554_v8 = vadd.f32 %v19445_v2, %v3196_v51  ;;  %v15969_v51 = vmul.f32 %v4852_v7, %v4709_v21  ;;  %11950 = vmatprep.subr.mxu0 %v19300_v44  ;;  %v9809_v2 = vld [vmem:[%s18849_s4 + $0x60] sm:$0xff]  ;;  %v4710_v21 = vmax.f32 %v4664_v18, 0.0 }
 0x299   : > { %11584 = vmatmul.mubr.msk.f32.gmra.mxu1 %vm5196_vm8, %v5133_v23  ;;  %11718 = vmatmul.mubr.msk.f32.gmra.mxu0 %vm5196_vm8, %v15906_v9  ;;  %v19447_v23 = vld [vmem:[#allocation71_spill] sm:$0xff] }
 0x29a   : > { %v15961_v61 = vpop.f32.mrf.mxu0  ;;  %11586 = vmatprep.mubr.msk.f32.mxu1 %vm12849_vm7, %v19300_v44  ;;  %11720 = vmatprep.mubr.msk.f32.mxu0 %vm12849_vm7, %v19300_v44  ;;  %v4083_v9 = vadd.f32 %v15634_v59, %v19447_v23  ;;  %19448 = vst [vmem:[#allocation38_spill] sm:$0xff] %v15969_v51  ;;  %v4084_v59 = vadd.f32 %v15658_v13, %v3554_v8  ;;  %v19449_v23 = vld [vmem:[#allocation62_spill] sm:$0xff]  ;;  %v4711_v13 = vmax.f32 %v4665_v53, 0.0 }
 0x29b   : > { %11951 = vmatpush3.msra.mxu0 %v9809_v2  ;;  %v16007_v53 = vmul.f32 %v4857_v37, %v4710_v21  ;;  %v4867_v21 = vpop.permute.xlu1 %4866 }
 0x29c   : > { %v15972_v6 = vpop.f32.mrf.mxu0  ;;  %v4613_v54 = vadd.f32 %v15840_v10, %v4083_v9  ;;  %v4614_v8 = vadd.f32 %v15874_v15, %v4084_v59  ;;  %v5137_v10 = vsel %vm405_vm1, %v5134_v58, %v5136_v20  ;;  %v5138_v9 = vrot.slane %v15969_v51, 1  ;;  %12206 = vmatprep.subr.mxu0 %v19300_v44  ;;  %v4862_v58 = vpop.permute.xlu0 %4861  ;;  %v19452_v59 = vld [vmem:[#allocation75_spill] sm:$0xff] }
 0x29d   : > { %11587 = vmatmul.mubr.msk.f32.gmra.mxu1 %vm5196_vm8, %v5135_v27  ;;  %11721 = vmatmul.mubr.msk.f32.gmra.mxu0 %vm5196_vm8, %v15917_v49  ;;  %v19450_v27 = vld [vmem:[#allocation6_spill] sm:$0xff]  ;;  %19451 = vst [vmem:[#allocation40_spill] sm:$0xff] %v16007_v53 }
 0x29e   : > { %v15986_v7 = vpop.f32.mrf.mxu0  ;;  %11589 = vmatprep.mubr.msk.f32.mxu1 %vm12849_vm7, %v19300_v44  ;;  %11723 = vmatprep.mubr.msk.f32.mxu0 %vm12849_vm7, %v19300_v44  ;;  %v3198_v49 = vadd.f32 %v19450_v27, %v19449_v23  ;;  %v16005_v27 = vpop.f32.mrf.mxu1  ;;  %v4666_v15 = vadd.f32 %v15717_v39, %v4613_v54 }
 0x2a0   : > { %v15996_v18 = vpop.f32.mrf.mxu0  ;;  %v3556_v23 = vadd.f32 %v15598_v30, %v3198_v49  ;;  %v4667_v30 = vadd.f32 %v15717_v39, %v4614_v8  ;;  %v5139_v49 = vsel %vm405_vm1, %v5136_v20, %v5138_v9  ;;  %v16028_v24 = vpop.f32.mrf.mxu1  ;;  %v4712_v35 = vmax.f32 %v4666_v15, 0.0  ;;  %v19455_v8 = vld [vmem:[#allocation45_spill] sm:$0xff] }
 0x2a1   : > { %11590 = vmatmul.mubr.msk.f32.gmra.mxu1 %vm5196_vm8, %v5137_v10  ;;  %11724 = vmatmul.mubr.msk.f32.gmra.mxu0 %vm5196_vm8, %v15958_v52  ;;  %v4085_v10 = vadd.f32 %v15650_v60, %v19452_v59  ;;  %v16018_v52 = vmul.f32 %v4862_v58, %v4711_v13  ;;  %19454 = vst [vmem:[#allocation41_spill] sm:$0xff] %v16028_v24  ;;  %v5140_v20 = vrot.slane %v16007_v53, 1  ;;  %v19456_v58 = vld [vmem:[#allocation9_spill] sm:$0xff] }
 0x2a2   : > { %v16010_v2 = vpop.f32.mrf.mxu0  ;;  %11592 = vmatprep.mubr.msk.f32.mxu1 %vm12849_vm7, %v19300_v44  ;;  %11726 = vmatprep.mubr.msk.f32.mxu0 %vm12849_vm7, %v19300_v44  ;;  %v4086_v54 = vadd.f32 %v15674_v22, %v3556_v23  ;;  %v3200_v59 = vadd.f32 %v19456_v58, %v19455_v8  ;;  %v16051_v42 = vmul.f32 %v4867_v21, %v4712_v35  ;;  %v19458_v8 = vld [vmem:[#allocation79_spill] sm:$0xff] }
 0x2a3   : > { %19453 = vst [vmem:[#allocation17_spill] sm:$0xff] %v16018_v52  ;;  %v4615_v60 = vadd.f32 %v15863_v4, %v4085_v10  ;;  %v5141_v4 = vsel %vm405_vm1, %v5138_v9, %v5140_v20  ;;  %v5142_v15 = vrot.slane %v16018_v52, 1  ;;  %v4872_v9 = vpop.permute.xlu0 %4871  ;;  %v4087_v58 = vadd.f32 %v15666_v38, %v19458_v8 }
 0x2a4   : > { %v16021_v37 = vpop.f32.mrf.mxu0  ;;  %v4616_v22 = vadd.f32 %v15893_v56, %v4086_v54  ;;  %v3558_v10 = vadd.f32 %v15606_v11, %v3200_v59  ;;  %19457 = vst [vmem:[#allocation42_spill] sm:$0xff] %v16051_v42  ;;  %v4877_v54 = vpop.permute.xlu1 %4876 }
 0x2a5   : > { %11593 = vmatmul.mubr.msk.f32.gmra.mxu1 %vm5196_vm8, %v5139_v49  ;;  %11727 = vmatmul.mubr.msk.f32.gmra.mxu0 %vm5196_vm8, %v15969_v51  ;;  %v4713_v49 = vmax.f32 %v4667_v30, 0.0  ;;  %v16049_v51 = vpop.f32.mrf.mxu1  ;;  %v4668_v30 = vadd.f32 %v15717_v39, %v4615_v60  ;;  %v5143_v60 = vsel %vm405_vm1, %v5140_v20, %v5142_v15  ;;  %v4617_v46 = vadd.f32 %v15884_v5, %v4087_v58  ;;  %v19460_v20 = vld [vmem:[#allocation47_spill] sm:$0xff] }
 0x2a6   : > { %v16031_v13 = vpop.f32.mrf.mxu0  ;;  %11595 = vmatprep.mubr.msk.f32.mxu1 %vm12849_vm7, %v19300_v44  ;;  %11729 = vmatprep.mubr.msk.f32.mxu0 %vm12849_vm7, %v19300_v44  ;;  %v4669_v35 = vadd.f32 %v15717_v39, %v4616_v22  ;;  %v4088_v59 = vadd.f32 %v15690_v26, %v3558_v10  ;;  %v19461_v22 = vld [vmem:[#allocation37_spill] sm:$0xff] }
 0x2a7   : > { %v16062_v11 = vmul.f32 %v4872_v9, %v4713_v49  ;;  %v5144_v49 = vrot.slane %v16051_v42, 1  ;;  %v3202_v9 = vadd.f32 %v19461_v22, %v19460_v20  ;;  %v4882_v58 = vpop.permute.xlu0 %4881 }
 0x2a8   : > { %v16041_v23 = vpop.f32.mrf.mxu0  ;;  %v4715_v8 = vmax.f32 %v4669_v35, 0.0  ;;  %v4618_v26 = vadd.f32 %v15920_v41, %v4088_v59  ;;  %v4670_v41 = vadd.f32 %v15717_v39, %v4617_v46 }
 0x2a9   : > { %11596 = vmatmul.mubr.msk.f32.gmra.mxu1 %vm5196_vm8, %v5141_v4  ;;  %11730 = vmatmul.mubr.msk.f32.gmra.mxu0 %vm5196_vm8, %v16007_v53  ;;  %19459 = vst [vmem:[#allocation34_spill] sm:$0xff] %v16062_v11  ;;  %v11473_v4 = vpop.f32.mrf.mxu1  ;;  %v4714_v53 = vmax.f32 %v4668_v30, 0.0  ;;  %v5145_v5 = vsel %vm405_vm1, %v5142_v15, %v5144_v49  ;;  %v5146_v30 = vrot.slane %v16062_v11, 1  ;;  %v19465_v15 = vld [vmem:[#allocation81_spill] sm:$0xff] }
 0x2aa   : > { %v16054_v56 = vpop.f32.mrf.mxu0  ;;  %11598 = vmatprep.mubr.msk.f32.mxu1 %vm12849_vm7, %v19300_v44  ;;  %11732 = vmatprep.mubr.msk.f32.mxu0 %vm12849_vm7, %v19300_v44  ;;  %v4089_v20 = vadd.f32 %v15682_v48, %v19465_v15  ;;  %v16104_v22 = vmul.f32 %v4882_v58, %v4715_v8 }
 0x2ab   : > { %v16091_v24 = vpop.f32.mrf.mxu1  ;;  %v16093_v35 = vmul.f32 %v4877_v54, %v4714_v53  ;;  %v5147_v53 = vsel %vm405_vm1, %v5144_v49, %v5146_v30  ;;  %v19468_v49 = vld [vmem:[#allocation35_spill] sm:$0xff]  ;;  %v4892_v15 = vpop.permute.xlu0 %4891 }
 0x2ac   : > { %v16065_v21 = vpop.f32.mrf.mxu0  ;;  %19462 = vst [vmem:[#allocation68_spill] sm:$0xff] %v16091_v24  ;;  %19466 = vst [vmem:[#allocation73_spill] sm:$0xff] %v16104_v22 }
 0x2ad   : > { %11599 = vmatmul.mubr.msk.f32.gmra.mxu1 %vm5196_vm8, %v5143_v60  ;;  %11733 = vmatmul.mubr.msk.f32.gmra.mxu0 %vm5196_vm8, %v16018_v52  ;;  %v4887_v60 = vpop.permute.xlu1 %4886  ;;  %v3560_v52 = vadd.f32 %v15614_v19, %v3202_v9  ;;  %19463 = vst [vmem:[#allocation18_spill] sm:$0xff] %v16093_v35  ;;  %v4671_v19 = vadd.f32 %v15717_v39, %v4618_v26  ;;  %v11476_v54 = vpop.f32.mrf.mxu1  ;;  %v5148_v8 = vrot.slane %v16093_v35, 1  ;;  %v19469_v26 = vld [vmem:[#allocation55_spill] sm:$0xff] }
 0x2ae   : > { %v16073_v38 = vpop.f32.mrf.mxu0  ;;  %11601 = vmatprep.mubr.msk.f32.mxu1 %vm12849_vm7, %v19300_v44  ;;  %11735 = vmatprep.mubr.msk.f32.mxu0 %vm12849_vm7, %v19300_v44  ;;  %v3204_v58 = vadd.f32 %v19469_v26, %v19468_v49 }
 0x2af   : > { %v4090_v46 = vadd.f32 %v15712_v47, %v3560_v52  ;;  %v4717_v47 = vmax.f32 %v4671_v19, 0.0  ;;  %v16136_v49 = vpop.f32.mrf.mxu1 }
 0x2b0   : > { %v16083_v10 = vpop.f32.mrf.mxu0  ;;  %v3562_v19 = vadd.f32 %v15622_v43, %v3204_v58  ;;  %19472 = vst [vmem:[#allocation20_spill] sm:$0xff] %v16136_v49  ;;  %v4902_v58 = vpop.permute.xlu0 %4901  ;;  %v4111_v49 = vadd.f32 %v11476_v54, %v15692_v0  ;;  %v19477_v0 = vld [vmem:[#allocation56_spill] sm:$0xff] }
 0x2b1   : > { %11602 = vmatmul.mubr.msk.f32.gmra.mxu1 %vm5196_vm8, %v5145_v5  ;;  %11736 = vmatmul.mubr.msk.f32.gmra.mxu0 %vm5196_vm8, %v16051_v42  ;;  %v4716_v5 = vmax.f32 %v4670_v41, 0.0  ;;  %v4619_v42 = vadd.f32 %v15909_v40, %v4089_v20  ;;  %v4620_v52 = vadd.f32 %v15944_v32, %v4090_v46  ;;  %v5149_v40 = vsel %vm405_vm1, %v5146_v30, %v5148_v8 }
 0x2b2   : > { %v16096_v59 = vpop.f32.mrf.mxu0  ;;  %11604 = vmatprep.mubr.msk.f32.mxu1 %vm12849_vm7, %v19300_v44  ;;  %11738 = vmatprep.mubr.msk.f32.mxu0 %vm12849_vm7, %v19300_v44  ;;  %v5150_v20 = vrot.slane %v16104_v22, 1  ;;  %v16150_v26 = vmul.f32 %v4892_v15, %v4717_v47 }
 0x2b3   : > { %19464 = vst [vmem:[#allocation21_spill] sm:$0xff] %v16096_v59  ;;  %v4109_v59 = vadd.f32 %v11473_v4, %v15684_v57  ;;  %v16138_v32 = vmul.f32 %v4887_v60, %v4716_v5  ;;  %v4672_v30 = vadd.f32 %v15717_v39, %v4619_v42  ;;  %v19474_v57 = vld [vmem:[#allocation70_spill] sm:$0xff]  ;;  %v4673_v60 = vadd.f32 %v15717_v39, %v4620_v52 }
 0x2b4   : > { %v16107_v9 = vpop.f32.mrf.mxu0  ;;  %19476 = vst [vmem:[#allocation77_spill] sm:$0xff] %v16150_v26  ;;  %v5151_v42 = vsel %vm405_vm1, %v5148_v8, %v5150_v20 }
 0x2b5   : > { %11605 = vmatmul.mubr.msk.f32.gmra.mxu1 %vm5196_vm8, %v5147_v53  ;;  %11739 = vmatmul.mubr.msk.f32.gmra.mxu0 %vm5196_vm8, %v16062_v11  ;;  %v4897_v53 = vpop.permute.xlu1 %4896  ;;  %v19470_v11 = vld [vmem:[#allocation32_spill] sm:$0xff]  ;;  %19473 = vst [vmem:[#allocation4_spill] sm:$0xff] %v16138_v32  ;;  %v5152_v8 = vrot.slane %v16138_v32, 1 }
 0x2b6   : > { %v16115_v48 = vpop.f32.mrf.mxu0  ;;  %11607 = vmatprep.mubr.msk.f32.mxu1 %vm12849_vm7, %v19300_v44  ;;  %11741 = vmatprep.mubr.msk.f32.mxu0 %vm12849_vm7, %v19300_v44 }
 0x2b7   : > { %19467 = vst [vmem:[#allocation69_spill] sm:$0xff] %v16115_v48  ;;  %v19471_v48 = vld [vmem:[#allocation90_spill] sm:$0xff] }
 0x2b8   : > { %v16125_v41 = vpop.f32.mrf.mxu0  ;;  %v2147_v24 = vadd.f32 %v19471_v48, %v19470_v11  ;;  %v19475_v48 = vld [vmem:[#allocation82_spill] sm:$0xff] }
 0x2b9   : > { %11608 = vmatmul.mubr.msk.f32.gmra.mxu1 %vm5196_vm8, %v5149_v40  ;;  %11742 = vmatmul.mubr.msk.f32.gmra.mxu0 %vm5196_vm8, %v16093_v35  ;;  %v4091_v43 = vadd.f32 %v15700_v12, %v19475_v48  ;;  %v4907_v40 = vpop.permute.xlu1 %4906  ;;  %v11479_v12 = vpop.f32.mrf.mxu1  ;;  %v19479_v48 = vld [vmem:[#allocation91_spill] sm:$0xff] }
 0x2ba   : > { %v11544_v46 = vpop.f32.mrf.mxu0  ;;  %11610 = vmatprep.mubr.msk.f32.mxu1 %vm12849_vm7, %v19300_v44  ;;  %11744 = vmatprep.mubr.msk.f32.mxu0 %vm12849_vm7, %v19300_v44  ;;  %v2677_v11 = vadd.f32 %v19474_v57, %v2147_v24  ;;  %v4092_v24 = vadd.f32 %v15734_v63, %v3562_v19  ;;  %v19478_v57 = vld [vmem:[#allocation2_spill] sm:$0xff] }
 0x2bb   : > { %v16146_v4 = vadd.f32 %v11544_v46, %v4109_v59  ;;  %v4718_v59 = vmax.f32 %v4672_v30, 0.0  ;;  %v4621_v15 = vadd.f32 %v15934_v14, %v4091_v43  ;;  %v4719_v46 = vmax.f32 %v4673_v60, 0.0 }
 0x2bc   : > { %v16153_v5 = vpop.f32.mrf.mxu0  ;;  %v3206_v54 = vadd.f32 %v19477_v0, %v2677_v11  ;;  %v4622_v63 = vadd.f32 %v15972_v6, %v4092_v24  ;;  %v5153_v14 = vsel %vm405_vm1, %v5150_v20, %v5152_v8  ;;  %v5154_v30 = vrot.slane %v16150_v26, 1  ;;  %v19481_v20 = vld [vmem:[#allocation74_spill] sm:$0xff]  ;;  %v4912_v0 = vpop.permute.xlu0 %4911 }
 0x2bd   : > { %11611 = vmatmul.mubr.msk.f32.gmra.mxu1 %vm5196_vm8, %v5151_v42  ;;  %11745 = vmatmul.mubr.msk.f32.gmra.mxu0 %vm5196_vm8, %v16104_v22  ;;  %v2149_v43 = vadd.f32 %v19479_v48, %v19478_v57  ;;  %v4113_v42 = vadd.f32 %v11479_v12, %v15703_v16  ;;  %v16182_v11 = vmul.f32 %v4897_v53, %v4718_v59  ;;  %v19482_v12 = vld [vmem:[#allocation83_spill] sm:$0xff] }
 0x2be   : > { %v11547_v47 = vpop.f32.mrf.mxu0  ;;  %11613 = vmatprep.mubr.msk.f32.mxu1 %vm12849_vm7, %v19300_v44  ;;  %11747 = vmatprep.mubr.msk.f32.mxu0 %vm12849_vm7, %v19300_v44  ;;  %v4674_v6 = vadd.f32 %v15717_v39, %v4621_v15  ;;  %v16194_v53 = vmul.f32 %v4902_v58, %v4719_v46  ;;  %v4675_v59 = vadd.f32 %v15717_v39, %v4622_v63  ;;  %v19484_v58 = vld [vmem:[#allocation57_spill] sm:$0xff] }
 0x2bf   : > { %v16168_v52 = vadd.f32 %v11547_v47, %v4111_v49  ;;  %v3564_v49 = vadd.f32 %v15630_v55, %v3206_v54  ;;  %19480 = vst [vmem:[#allocation71_spill] sm:$0xff] %v16182_v11  ;;  %v2679_v16 = vadd.f32 %v19481_v20, %v2149_v43  ;;  %v4093_v47 = vadd.f32 %v15726_v17, %v19482_v12  ;;  %v4917_v55 = vpop.permute.xlu1 %4916  ;;  %v19485_v43 = vld [vmem:[#allocation33_spill] sm:$0xff]  ;;  %v19489_v12 = vld [vmem:[#allocation84_spill] sm:$0xff] }
 0x2c0   : > { %v16171_v19 = vpop.f32.mrf.mxu0  ;;  %19483 = vst [vmem:[#allocation62_spill] sm:$0xff] %v16194_v53  ;;  %v5155_v15 = vsel %vm405_vm1, %v5152_v8, %v5154_v30  ;;  %v5156_v17 = vrot.slane %v16182_v11, 1  ;;  %v4721_v46 = vmax.f32 %v4675_v59, 0.0 }
 0x2c1   : > { %11614 = vmatmul.mubr.msk.f32.gmra.mxu1 %vm5196_vm8, %v5153_v14  ;;  %11748 = vmatmul.mubr.msk.f32.gmra.mxu0 %vm5196_vm8, %v16138_v32  ;;  %v4094_v54 = vadd.f32 %v15771_v28, %v3564_v49  ;;  %v4720_v14 = vmax.f32 %v4674_v6, 0.0  ;;  %v4623_v57 = vadd.f32 %v15961_v61, %v4093_v47  ;;  %v3208_v8 = vadd.f32 %v19484_v58, %v2679_v16  ;;  %v4922_v6 = vpop.permute.xlu0 %4921 }
 0x2c2   : > { %v11550_v60 = vpop.f32.mrf.mxu0  ;;  %11616 = vmatprep.mubr.msk.f32.mxu1 %vm12849_vm7, %v19300_v44  ;;  %11750 = vmatprep.mubr.msk.f32.mxu0 %vm12849_vm7, %v19300_v44  ;;  %v5157_v48 = vsel %vm405_vm1, %v5154_v30, %v5156_v17  ;;  %v5158_v28 = vrot.slane %v16194_v53, 1  ;;  %v19488_v30 = vld [vmem:[#allocation76_spill] sm:$0xff]  ;;  %v4095_v47 = vadd.f32 %v15744_v1, %v19489_v12  ;;  %v16228_v59 = vmul.f32 %v4912_v0, %v4721_v46  ;;  %v19491_v0 = vld [vmem:[#allocation43_spill] sm:$0xff] }
 0x2c3   : > { %v16190_v24 = vadd.f32 %v11550_v60, %v4113_v42  ;;  %v4624_v63 = vadd.f32 %v15996_v18, %v4094_v54  ;;  %v19486_v42 = vld [vmem:[#allocation92_spill] sm:$0xff]  ;;  %v3566_v49 = vadd.f32 %v15638_v36, %v3208_v8  ;;  %v4927_v60 = vpop.permute.xlu1 %4926  ;;  %v16218_v20 = vmul.f32 %v4907_v40, %v4720_v14 }
 0x2c4   : > { %v2151_v61 = vadd.f32 %v19486_v42, %v19485_v43  ;;  %v4676_v18 = vadd.f32 %v15717_v39, %v4623_v57  ;;  %19490 = vst [vmem:[#allocation75_spill] sm:$0xff] %v16228_v59  ;;  %v5159_v40 = vsel %vm405_vm1, %v5156_v17, %v5158_v28  ;;  %v4625_v14 = vadd.f32 %v15986_v7, %v4095_v47  ;;  %v19494_v42 = vld [vmem:[#allocation87_spill] sm:$0xff] }
 0x2c5   : > { %11617 = vmatmul.mubr.msk.f32.gmra.mxu1 %vm5196_vm8, %v5155_v15  ;;  %11751 = vmatmul.mubr.msk.f32.gmra.mxu0 %vm5196_vm8, %v16150_v26  ;;  %19487 = vst [vmem:[#allocation6_spill] sm:$0xff] %v16218_v20  ;;  %v4677_v36 = vadd.f32 %v15717_v39, %v4624_v63  ;;  %v4096_v15 = vadd.f32 %v15816_v29, %v3566_v49  ;;  %v5160_v1 = vrot.slane %v16218_v20, 1  ;;  %v4932_v17 = vpop.permute.xlu0 %4931  ;;  %v5162_v7 = vrot.slane %v16228_v59, 1  ;;  %v19492_v63 = vld [vmem:[#allocation22_spill] sm:$0xff] }
 0x2c6   : > { %11619 = vmatprep.mubr.msk.f32.mxu1 %vm12849_vm7, %v19300_v44  ;;  %11753 = vmatprep.mubr.msk.f32.mxu0 %vm12849_vm7, %v19300_v44  ;;  %v2681_v16 = vadd.f32 %v19488_v30, %v2151_v61  ;;  %v4722_v54 = vmax.f32 %v4676_v18, 0.0  ;;  %v4678_v18 = vadd.f32 %v15717_v39, %v4625_v14  ;;  %v19497_v30 = vld [vmem:[#allocation85_spill] sm:$0xff] }
 0x2c7   : > { %v16243_v58 = vpop.permute.xlu1 %4936  ;;  %v4723_v8 = vmax.f32 %v4677_v36, 0.0  ;;  %v4626_v46 = vadd.f32 %v16021_v37, %v4096_v15  ;;  %v5161_v29 = vsel %vm405_vm1, %v5158_v28, %v5160_v1  ;;  %v19496_v37 = vld [vmem:[#allocation58_spill] sm:$0xff] }
 0x2c8   : > { %v3210_v57 = vadd.f32 %v19491_v0, %v2681_v16  ;;  %v16254_v49 = vmul.f32 %v4917_v55, %v4722_v54  ;;  %v4097_v16 = vadd.f32 %v15795_v62, %v19497_v30  ;;  %v5163_v55 = vsel %vm405_vm1, %v5160_v1, %v5162_v7 }
 0x2c9   : > { %11620 = vmatmul.mubr.msk.f32.gmra.mxu1 %vm5196_vm8, %v5157_v48  ;;  %11754 = vmatmul.mubr.msk.f32.gmra.mxu0 %vm5196_vm8, %v16182_v11  ;;  %v19493_v48 = vld [vmem:[#allocation93_spill] sm:$0xff]  ;;  %v16264_v12 = vmul.f32 %v4922_v6, %v4723_v8  ;;  %v4679_v47 = vadd.f32 %v15717_v39, %v4626_v46  ;;  %v4724_v54 = vmax.f32 %v4678_v18, 0.0  ;;  %v19499_v6 = vld [vmem:[#allocation44_spill] sm:$0xff]  ;;  %v19500_v46 = vld [vmem:[#allocation46_spill] sm:$0xff] }
 0x2ca   : > { %11622 = vmatprep.mubr.msk.f32.mxu1 %vm12849_vm7, %v19300_v44  ;;  %11756 = vmatprep.mubr.msk.f32.mxu0 %vm12849_vm7, %v19300_v44  ;;  %v2153_v43 = vadd.f32 %v19493_v48, %v19492_v63  ;;  %v3568_v61 = vadd.f32 %v19494_v42, %v3210_v57  ;;  %19495 = vst [vmem:[#allocation45_spill] sm:$0xff] %v16254_v49  ;;  %v5164_v62 = vrot.slane %v16254_v49, 1  ;;  %v19502_v63 = vld [vmem:[#allocation89_spill] sm:$0xff] }
 0x2cb   : > { %19498 = vst [vmem:[#allocation9_spill] sm:$0xff] %v16264_v12  ;;  %v16272_v15 = vpop.permute.xlu1 %4946  ;;  %v4627_v14 = vadd.f32 %v16010_v2, %v4097_v16  ;;  %v4725_v0 = vmax.f32 %v4679_v47, 0.0  ;;  %v5166_v8 = vrot.slane %v16264_v12, 1 }
 0x2cc   : > { %v2683_v28 = vadd.f32 %v19496_v37, %v2153_v43  ;;  %v4098_v36 = vadd.f32 %v15858_v34, %v3568_v61  ;;  %v5165_v34 = vsel %vm405_vm1, %v5162_v7, %v5164_v62  ;;  %v16290_v43 = vmul.f32 %v4927_v60, %v4724_v54  ;;  %v19505_v61 = vld [vmem:[#allocation86_spill] sm:$0xff] }
 0x2cd   : > { %11623 = vmatmul.mubr.msk.f32.gmra.mxu1 %vm5196_vm8, %v5159_v40  ;;  %11757 = vmatmul.mubr.msk.f32.gmra.mxu0 %vm5196_vm8, %v16194_v53  ;;  %v4942_v40 = vpop.permute.xlu0 %4941  ;;  %v4680_v42 = vadd.f32 %v15717_v39, %v4627_v14  ;;  %v4099_v18 = vadd.f32 %v15838_v31, %v19505_v61  ;;  %v16302_v30 = vmul.f32 %v4932_v17, %v4725_v0  ;;  %v19507_v17 = vld [vmem:[#allocation49_spill] sm:$0xff]  ;;  %v19509_v0 = vld [vmem:[#allocation95_spill] sm:$0xff] }
 0x2ce   : > { %11625 = vmatprep.mubr.msk.f32.mxu1 %vm12849_vm7, %v19300_v44  ;;  %11759 = vmatprep.mubr.msk.f32.mxu0 %vm12849_vm7, %v19300_v44  ;;  %v3212_v1 = vadd.f32 %v19499_v6, %v2683_v28  ;;  %v4628_v57 = vadd.f32 %v16041_v23, %v4098_v36  ;;  %19503 = vst [vmem:[#allocation79_spill] sm:$0xff] %v16290_v43  ;;  %v19504_v23 = vld [vmem:[#allocation80_spill] sm:$0xff]  ;;  %v5168_v31 = vrot.slane %v16290_v43, 1 }
 0x2cf   : > { %v16300_v28 = vpop.permute.xlu1 %4956  ;;  %19506 = vst [vmem:[#allocation47_spill] sm:$0xff] %v16302_v30  ;;  %v5167_v16 = vsel %vm405_vm1, %v5164_v62, %v5166_v8  ;;  %v4629_v36 = vadd.f32 %v16031_v13, %v4099_v18 }
 0x2d0   : > { %v3570_v48 = vadd.f32 %v19502_v63, %v3212_v1  ;;  %v4681_v60 = vadd.f32 %v15717_v39, %v4628_v57  ;;  %v5169_v6 = vsel %vm405_vm1, %v5166_v8, %v5168_v31  ;;  %v19508_v1 = vld [vmem:[#allocation48_spill] sm:$0xff]  ;;  %v19510_v57 = vld [vmem:[#allocation23_spill] sm:$0xff] }
 0x2d1   : > { %11626 = vmatmul.mubr.msk.f32.gmra.mxu1 %vm5196_vm8, %v5161_v29  ;;  %11760 = vmatmul.mubr.msk.f32.gmra.mxu0 %vm5196_vm8, %v16218_v20  ;;  %v19501_v29 = vld [vmem:[#allocation94_spill] sm:$0xff]  ;;  %v4952_v37 = vpop.permute.xlu0 %4951  ;;  %v2157_v13 = vadd.f32 %v19509_v0, %v19508_v1  ;;  %v4682_v8 = vadd.f32 %v15717_v39, %v4629_v36  ;;  %v19520_v1 = vld [vmem:[#allocation67_spill] sm:$0xff] }
 0x2d2   : > { %11628 = vmatprep.mubr.msk.f32.mxu1 %vm12849_vm7, %v19300_v44  ;;  %11762 = vmatprep.mubr.msk.f32.mxu0 %vm12849_vm7, %v19300_v44  ;;  %v2155_v2 = vadd.f32 %v19501_v29, %v19500_v46  ;;  %v4100_v47 = vadd.f32 %v15904_v3, %v3570_v48  ;;  %v4727_v14 = vmax.f32 %v4681_v60, 0.0  ;;  %v5170_v3 = vrot.slane %v16302_v30, 1  ;;  %v19513_v48 = vld [vmem:[#allocation88_spill] sm:$0xff] }
 0x2d3   : > { %v16328_v29 = vpop.permute.xlu1 %4966  ;;  %v4728_v18 = vmax.f32 %v4682_v8, 0.0  ;;  %v19523_v8 = vld [vmem:[#allocation61_spill] sm:$0xff] }
 0x2d4   : > { %v2685_v7 = vadd.f32 %v19504_v23, %v2155_v2  ;;  %v4630_v62 = vadd.f32 %v16065_v21, %v4100_v47  ;;  %v19512_v2 = vld [vmem:[#allocation60_spill] sm:$0xff]  ;;  %v16341_v23 = vmul.f32 %v4942_v40, %v4727_v14  ;;  %v19516_v40 = vld [vmem:[#allocation11_spill] sm:$0xff]  ;;  %v19518_v14 = vld [vmem:[#allocation50_spill] sm:$0xff] }
 0x2d5   : > { %11629 = vmatmul.mubr.msk.f32.gmra.mxu1 %vm5196_vm8, %v5163_v55  ;;  %11763 = vmatmul.mubr.msk.f32.gmra.mxu0 %vm5196_vm8, %v16228_v59  ;;  %v4726_v55 = vmax.f32 %v4680_v42, 0.0  ;;  %v16326_v46 = vpop.permute.xlu0 %4961  ;;  %v2687_v63 = vadd.f32 %v19512_v2, %v2157_v13  ;;  %v4101_v42 = vadd.f32 %v15881_v33, %v19513_v48  ;;  %v19517_v47 = vld [vmem:[#allocation72_spill] sm:$0xff] }
 0x2d6   : > { %11631 = vmatprep.mubr.msk.f32.mxu1 %vm12849_vm7, %v19300_v44  ;;  %11765 = vmatprep.mubr.msk.f32.mxu0 %vm12849_vm7, %v19300_v44  ;;  %v3214_v54 = vadd.f32 %v19507_v17, %v2685_v7  ;;  %19514 = vst [vmem:[#allocation81_spill] sm:$0xff] %v16341_v23  ;;  %v4683_v7 = vadd.f32 %v15717_v39, %v4630_v62  ;;  %v19515_v39 = vld [vmem:[#allocation54_spill] sm:$0xff]  ;;  %v19519_v62 = vld [vmem:[#allocation96_spill] sm:$0xff] }
 0x2d7   : > { %v16331_v21 = vmul.f32 %v16243_v58, %v4726_v55  ;;  %v5171_v58 = vsel %vm405_vm1, %v5168_v31, %v5170_v3  ;;  %v4631_v60 = vadd.f32 %v16054_v56, %v4101_v42  ;;  %v3216_v55 = vadd.f32 %v19517_v47, %v2687_v63  ;;  %v16360_v31 = vpop.permute.xlu1 %4976  ;;  %v19521_v13 = vld [vmem:[#allocation24_spill] sm:$0xff]  ;;  %v19528_v47 = vld [vmem:[#allocation29_spill] sm:$0xff] }
 0x2d8   : > { %v19524_v63 = vld [vmem:[#allocation52_spill] sm:$0xff] }
 0x2d9   : > { %11632 = vmatmul.mubr.msk.f32.gmra.mxu1 %vm5196_vm8, %v5165_v34  ;;  %11766 = vmatmul.mubr.msk.f32.gmra.mxu0 %vm5196_vm8, %v16254_v49  ;;  %v3572_v34 = vadd.f32 %v19510_v57, %v3214_v54  ;;  %19511 = vst [vmem:[#allocation37_spill] sm:$0xff] %v16331_v21  ;;  %v5172_v33 = vrot.slane %v16331_v21, 1  ;;  %v16358_v36 = vpop.permute.xlu0 %4971  ;;  %v5174_v54 = vrot.slane %v16341_v23, 1  ;;  %v3574_v57 = vadd.f32 %v19521_v13, %v3216_v55 }
 0x2da   : > { %11634 = vmatprep.mubr.msk.f32.mxu1 %vm12849_vm7, %v19300_v44  ;;  %11768 = vmatprep.mubr.msk.f32.mxu0 %vm12849_vm7, %v19300_v44  ;;  %v4103_v48 = vadd.f32 %v15931_v50, %v19524_v63 }
 0x2db   : > { %v4102_v61 = vadd.f32 %v15956_v25, %v3572_v34  ;;  %v4729_v25 = vmax.f32 %v4683_v7, 0.0  ;;  %v5173_v17 = vsel %vm405_vm1, %v5170_v3, %v5172_v33  ;;  %v16373_v34 = vmul.f32 %v16272_v15, %v4728_v18 }
 0x2dc   : > { %v5175_v7 = vsel %vm405_vm1, %v5172_v33, %v5174_v54  ;;  %v4104_v18 = vadd.f32 %v16005_v27, %v3574_v57  ;;  %v4059_v27 = vpop.f32.mrf.mxu1 }
 0x2dd   : > { %11635 = vmatmul.mubr.msk.f32.gmra.mxu1 %vm5196_vm8, %v5167_v16  ;;  %11769 = vmatmul.mubr.msk.f32.gmra.mxu0 %vm5196_vm8, %v16264_v12  ;;  %v2165_v16 = vadd.f32 %v19516_v40, %v19515_v39  ;;  %v4632_v56 = vadd.f32 %v16083_v10, %v4102_v61  ;;  %19522 = vst [vmem:[#allocation35_spill] sm:$0xff] %v16373_v34  ;;  %v16378_v10 = vld [vmem:[%s18848_s3] ss:$0 sm:$0xff]  ;;  %v16399_v39 = vpop.permute.xlu1 %4986  ;;  %v5176_v33 = vrot.slane %v16373_v34, 1 }
 0x2de   : > { %11637 = vmatprep.mubr.msk.f32.mxu1 %vm12849_vm7, %v19300_v44  ;;  %11771 = vmatprep.mubr.msk.f32.mxu0 %vm12849_vm7, %v19300_v44  ;;  %v4684_v3 = vadd.f32 %v16378_v10, %v4631_v60  ;;  %v16388_v15 = vmul.f32 %v4952_v37, %v4729_v25  ;;  %v16397_v60 = vpop.permute.xlu0 %4981  ;;  %v4633_v37 = vadd.f32 %v16073_v38, %v4103_v48  ;;  %v19527_v40 = vld [vmem:[#allocation78_spill] sm:$0xff] }
 0x2df   : > { %v2695_v0 = vadd.f32 %v19520_v1, %v2165_v16  ;;  %v4685_v42 = vadd.f32 %v16378_v10, %v4632_v56  ;;  %v4634_v56 = vadd.f32 %v16107_v9, %v4104_v18  ;;  %v19531_v1 = vld [vmem:[#allocation26_spill] sm:$0xff]  ;;  %v4589_v9 = vpop.f32.mrf.mxu0 }
 0x2e0   : > { %19525 = vst [vmem:[#allocation55_spill] sm:$0xff] %v16388_v15  ;;  %v4730_v50 = vmax.f32 %v4684_v3, 0.0  ;;  %v5178_v38 = vrot.slane %v16388_v15, 1  ;;  %v4686_v57 = vadd.f32 %v16378_v10, %v4633_v37 }
 0x2e1   : > { %11638 = vmatmul.mubr.msk.f32.gmra.mxu1 %vm5196_vm8, %v5169_v6  ;;  %11772 = vmatmul.mubr.msk.f32.gmra.mxu0 %vm5196_vm8, %v16290_v43  ;;  %v2159_v6 = vadd.f32 %v19519_v62, %v19518_v14  ;;  %v4731_v25 = vmax.f32 %v4685_v42, 0.0  ;;  %v19529_v14 = vld [vmem:[#allocation51_spill] sm:$0xff]  ;;  %v16431_v42 = vpop.permute.xlu1 %4996 }
 0x2e2   : > { %11640 = vmatprep.mubr.msk.f32.mxu1 %vm12849_vm7, %v19300_v44  ;;  %11774 = vmatprep.mubr.msk.f32.mxu0 %vm12849_vm7, %v19300_v44  ;;  %v19530_v62 = vld [vmem:[#allocation7_spill] sm:$0xff]  ;;  %v16419_v13 = vmul.f32 %v16300_v28, %v4730_v50  ;;  %v16429_v48 = vpop.permute.xlu0 %4991  ;;  %v19536_v50 = vld [vmem:[#allocation21_spill] sm:$0xff] }
 0x2e3   : > { %v2689_v2 = vadd.f32 %v19523_v8, %v2159_v6  ;;  %v2161_v6 = vadd.f32 %v19530_v62, %v19529_v14  ;;  %v16434_v28 = vmul.f32 %v16326_v46, %v4731_v25  ;;  %v4696_v25 = vadd.f32 %v16378_v10, %v16190_v24  ;;  %v19539_v24 = vld [vmem:[#allocation25_spill] sm:$0xff] }
 0x2e4   : > { %19532 = vst [vmem:[#allocation32_spill] sm:$0xff] %v16419_v13  ;;  %v5180_v46 = vrot.slane %v16419_v13, 1 }
 0x2e5   : > { %11641 = vmatmul.mubr.msk.f32.gmra.mxu1 %vm5196_vm8, %v5171_v58  ;;  %11775 = vmatmul.mubr.msk.f32.gmra.mxu0 %vm5196_vm8, %v16302_v30  ;;  %v19526_v58 = vld [vmem:[#allocation66_spill] sm:$0xff]  ;;  %v3218_v16 = vadd.f32 %v19527_v40, %v2689_v2  ;;  %v19534_v2 = vld [vmem:[#allocation13_spill] sm:$0xff]  ;;  %19535 = vst [vmem:[#allocation90_spill] sm:$0xff] %v16434_v28 }
 0x2e6   : > { %11643 = vmatprep.mubr.msk.f32.mxu1 %vm12849_vm7, %v19300_v44  ;;  %11777 = vmatprep.mubr.msk.f32.mxu0 %vm12849_vm7, %v19300_v44  ;;  %v3224_v61 = vadd.f32 %v19526_v58, %v2695_v0  ;;  %v4105_v63 = vadd.f32 %v15983_v45, %v19534_v2  ;;  %v5179_v58 = vsel %vm405_vm1, %v5176_v33, %v5178_v38  ;;  %v4732_v45 = vmax.f32 %v4686_v57, 0.0 }
 0x2e7   : > { %v3576_v0 = vadd.f32 %v19531_v1, %v3218_v16 }
 0x2e8   : > { %v3582_v55 = vadd.f32 %v19528_v47, %v3224_v61  ;;  %v4635_v37 = vadd.f32 %v19536_v50, %v4105_v63  ;;  %v16464_v62 = vmul.f32 %v16328_v29, %v4732_v45 }
 0x2e9   : > { %11644 = vmatmul.mubr.msk.f32.gmra.mxu1 %vm5196_vm8, %v5173_v17  ;;  %11778 = vmatmul.mubr.msk.f32.gmra.mxu0 %vm5196_vm8, %v16331_v21  ;;  %v5177_v17 = vsel %vm405_vm1, %v5174_v54, %v5176_v33  ;;  %v19533_v54 = vld [vmem:[#allocation64_spill] sm:$0xff]  ;;  %v4106_v18 = vadd.f32 %v16049_v51, %v3576_v0  ;;  %v19537_v33 = vld [vmem:[#allocation59_spill] sm:$0xff]  ;;  %v5182_v51 = vrot.slane %v16434_v28, 1 }
 0x2ea   : > { %11646 = vmatprep.mubr.msk.f32.mxu1 %vm12849_vm7, %v19300_v44  ;;  %11780 = vmatprep.mubr.msk.f32.mxu0 %vm12849_vm7, %v19300_v44  ;;  %v2691_v3 = vadd.f32 %v19533_v54, %v2161_v6  ;;  %v4112_v8 = vadd.f32 %v4059_v27, %v3582_v55  ;;  %v5181_v55 = vsel %vm405_vm1, %v5178_v38, %v5180_v46  ;;  %v5007_v38 = vpop.permute.xlu1 %5006  ;;  %v19540_v6 = vld [vmem:[#allocation41_spill] sm:$0xff]  ;;  %v4742_v54 = vmax.f32 %v4696_v25, 0.0 }
 0x2eb   : > { %v4636_v47 = vadd.f32 %v16125_v41, %v4106_v18  ;;  %v4694_v27 = vadd.f32 %v16378_v10, %v16168_v52  ;;  %v16461_v41 = vpop.permute.xlu0 %5001  ;;  %v4688_v52 = vadd.f32 %v16378_v10, %v4635_v37  ;;  %v4107_v1 = vadd.f32 %v19540_v6, %v19539_v24 }
 0x2ec   : > { %v4642_v61 = vadd.f32 %v4589_v9, %v4112_v8  ;;  %v3220_v40 = vadd.f32 %v19537_v33, %v2691_v3  ;;  %v5183_v9 = vsel %vm405_vm1, %v5180_v46, %v5182_v51  ;;  %v19541_v8 = vld [vmem:[#allocation68_spill] sm:$0xff] }
 0x2ed   : > { %11647 = vmatmul.mubr.msk.f32.gmra.mxu1 %vm5196_vm8, %v5175_v7  ;;  %11781 = vmatmul.mubr.msk.f32.gmra.mxu0 %vm5196_vm8, %v16341_v23  ;;  %v4687_v7 = vadd.f32 %v16378_v10, %v4634_v56  ;;  %v4689_v57 = vadd.f32 %v16378_v10, %v4636_v47  ;;  %v4740_v29 = vmax.f32 %v4694_v27, 0.0  ;;  %v4734_v63 = vmax.f32 %v4688_v52, 0.0 }
 0x2ee   : > { %11649 = vmatprep.mubr.msk.f32.mxu1 %vm12849_vm7, %v19300_v44  ;;  %11783 = vmatprep.mubr.msk.f32.mxu0 %vm12849_vm7, %v19300_v44  ;;  %v4695_v56 = vadd.f32 %v16378_v10, %v4642_v61  ;;  %v5017_v18 = vpop.permute.xlu1 %5016 }
 0x2ef   : > { %v4733_v16 = vmax.f32 %v4687_v7, 0.0  ;;  %v19542_v7 = vld [vmem:[#allocation69_spill] sm:$0xff]  ;;  %v5012_v61 = vpop.permute.xlu0 %5011  ;;  %v4735_v45 = vmax.f32 %v4689_v57, 0.0  ;;  %v16491_v33 = vmul.f32 %v5007_v38, %v4740_v29  ;;  %v16501_v47 = vmul.f32 %v16360_v31, %v4734_v63 }
 0x2f0   : > { %v4741_v3 = vmax.f32 %v4695_v56, 0.0 }
 0x2f1   : > { %11650 = vmatmul.mubr.msk.f32.gmra.mxu1 %vm5196_vm8, %v5177_v17  ;;  %11784 = vmatmul.mubr.msk.f32.gmra.mxu0 %vm5196_vm8, %v16373_v34  ;;  %v19538_v17 = vld [vmem:[#allocation27_spill] sm:$0xff]  ;;  %v16474_v0 = vmul.f32 %v16358_v36, %v4733_v16  ;;  %v5184_v36 = vrot.slane %v16464_v62, 1  ;;  %19543 = vst [vmem:[#allocation70_spill] sm:$0xff] %v16491_v33  ;;  %v18960_v25 = vrot.slane %v16491_v33, 5 }
 0x2f2   : > { %11652 = vmatprep.mubr.msk.f32.mxu1 %vm12849_vm7, %v19300_v44  ;;  %11786 = vmatprep.mubr.msk.f32.mxu0 %vm12849_vm7, %v19300_v44  ;;  %v3578_v14 = vadd.f32 %v19538_v17, %v3220_v40  ;;  %v16493_v40 = vmul.f32 %v5017_v18, %v4742_v54  ;;  %v16495_v16 = vmul.f32 %v5012_v61, %v4741_v3  ;;  %v19550_v61 = vld [vmem:[#allocation5_spill] sm:$0xff] }
 0x2f3   : > { %v5185_v37 = vsel %vm405_vm1, %v5182_v51, %v5184_v36  ;;  %v5186_v46 = vrot.slane %v16474_v0, 1  ;;  %v5913_v18 = vrot.slane %v19550_v61, 2 }
 0x2f4   : > { %v4108_v2 = vadd.f32 %v19541_v8, %v3578_v14  ;;  %19544 = vst [vmem:[#allocation82_spill] sm:$0xff] %v16495_v16  ;;  %v8081_v31 = vrot.slane %v16493_v40, 5  ;;  %v8079_v56 = vrot.slane %v16495_v16, 5  ;;  %v18959_v14 = vrot.slane %v16491_v33, 4 }
 0x2f5   : > { %11653 = vmatmul.mubr.msk.f32.gmra.mxu1 %vm5196_vm8, %v5179_v58  ;;  %11787 = vmatmul.mubr.msk.f32.gmra.mxu0 %vm5196_vm8, %v16388_v15  ;;  %v4637_v58 = vadd.f32 %v19542_v7, %v4107_v1  ;;  %v5187_v27 = vsel %vm405_vm1, %v5184_v36, %v5186_v46  ;;  %v19549_v7 = vld [vmem:[#allocation3_spill] sm:$0xff] }
 0x2f6   : > { %11655 = vmatprep.mubr.msk.f32.mxu1 %vm12849_vm7, %v19300_v44  ;;  %11789 = vmatprep.mubr.msk.f32.mxu0 %vm12849_vm7, %v19300_v44  ;;  %v4638_v50 = vadd.f32 %v16153_v5, %v4108_v2  ;;  %v16529_v38 = vsel %vm3586_vm5, %v18960_v25, %v8079_v56  ;;  %v16532_v52 = vsel %vm3586_vm5, %v8079_v56, %v8081_v31  ;;  %v19548_v2 = vld [vmem:[#allocation31_spill] sm:$0xff]  ;;  %v9856_v31 = vld [vmem:[%s18849_s4 + $0x90] sm:$0xff] }
 0x2f7   : > { %v4690_v5 = vadd.f32 %v16378_v10, %v4637_v58  ;;  %19545 = vst [vmem:[#allocation56_spill] sm:$0xff] %v16529_v38  ;;  %19546 = vst [vmem:[#allocation2_spill] sm:$0xff] %v16532_v52  ;;  %v5909_v63 = vrot.slane %v19548_v2, 2  ;;  %v5911_v58 = vrot.slane %v19549_v7, 2  ;;  %v19554_v56 = vld [vmem:[#allocation8_spill] sm:$0xff] }
 0x2f8   : > { %v4691_v51 = vadd.f32 %v16378_v10, %v4638_v50  ;;  %v5188_v10 = vrot.slane %v16501_v47, 1  ;;  %v8560_v50 = vrot.slane %v16495_v16, 6 }
 0x2f9   : > { %11656 = vmatmul.mubr.msk.f32.gmra.mxu1 %vm5196_vm8, %v5181_v55  ;;  %11790 = vmatmul.mubr.msk.f32.gmra.mxu0 %vm5196_vm8, %v16419_v13  ;;  %v16509_v55 = vmul.f32 %v16397_v60, %v4735_v45  ;;  %v4736_v17 = vmax.f32 %v4690_v5, 0.0  ;;  %v18958_v60 = vrot.slane %v16495_v16, 4  ;;  %v5912_v36 = vsel %vm1281_vm3, %v5909_v63, %v5911_v58 }
 0x2fa   : > { %11658 = vmatprep.mubr.msk.f32.mxu1 %vm12849_vm7, %v19300_v44  ;;  %11792 = vmatprep.mubr.msk.f32.mxu0 %vm12849_vm7, %v19300_v44  ;;  %v4737_v24 = vmax.f32 %v4691_v51, 0.0  ;;  %v5189_v6 = vsel %vm405_vm1, %v5186_v46, %v5188_v10  ;;  %v18957_v45 = vrot.slane %v16491_v33, 6  ;;  %v9857_v46 = vld [vmem:[%s18849_s4 + $0x98] sm:$0xff]  ;;  %v5914_v51 = vsel %vm1281_vm3, %v5911_v58, %v5913_v18 }
 0x2fb   : > { %v5190_v1 = vrot.slane %v16509_v55, 1  ;;  %v16541_v57 = vsel %vm590_vm0, %v18959_v14, %v18958_v60  ;;  %v19565_v14 = vld [vmem:[#allocation17_spill] sm:$0xff] }
 0x2fc   : > { %19547 = vst [vmem:[#allocation91_spill] sm:$0xff] %v16541_v57  ;;  %v16554_v29 = vmul.f32 %v16429_v48, %v4737_v24  ;;  %v16601_v5 = vsel %vm4116_vm6, %v18957_v45, %v8560_v50  ;;  %v5933_v25 = vrot.slane %v19565_v14, 2 }
 0x2fd   : > { %11659 = vmatmul.mubr.msk.f32.gmra.mxu1 %vm5196_vm8, %v5183_v9  ;;  %11793 = vmatmul.mubr.msk.f32.gmra.mxu0 %vm5196_vm8, %v16434_v28  ;;  %v16547_v9 = vmul.f32 %v16399_v39, %v4736_v17  ;;  %v5191_v54 = vsel %vm405_vm1, %v5188_v10, %v5190_v1  ;;  %19551 = vst [vmem:[#allocation74_spill] sm:$0xff] %v16601_v5  ;;  %v5915_v17 = vrot.slane %v19554_v56, 2  ;;  %v19555_v10 = vld [vmem:[#allocation30_spill] sm:$0xff] }
 0x2fe   : > { %11661 = vmatprep.mubr.msk.f32.mxu1 %vm12849_vm7, %v19300_v44  ;;  %11795 = vmatprep.mubr.msk.f32.mxu0 %vm12849_vm7, %v19300_v44  ;;  %v5194_v48 = vrot.slane %v16554_v29, 1  ;;  %v19556_v24 = vrot.slane %v19555_v10, 2 }
 0x2ff   : > { %v5192_v39 = vrot.slane %v16547_v9, 1 }
 0x301   : > { %11662 = vmatmul.mubr.msk.f32.gmra.mxu1 %vm5196_vm8, %v5185_v37  ;;  %11796 = vmatmul.mubr.msk.f32.gmra.mxu0 %vm5196_vm8, %v16464_v62  ;;  %v5193_v3 = vsel %vm405_vm1, %v5190_v1, %v5192_v39  ;;  %v5195_v8 = vsel %vm405_vm1, %v5192_v39, %v5194_v48  ;;  %v8562_v37 = vrot.slane %v16493_v40, 6  ;;  %v19553_v40 = vld [vmem:[#allocation19_spill] sm:$0xff]  ;;  %v5916_v1 = vsel %vm1281_vm3, %v5913_v18, %v5915_v17 }
 0x302   : > { %11664 = vmatprep.mubr.msk.f32.mxu1 %vm12849_vm7, %v19300_v44  ;;  %11798 = vmatprep.mubr.msk.f32.mxu0 %vm12849_vm7, %v19300_v44 }
 0x305   : > { %11665 = vmatmul.mubr.msk.f32.gmra.mxu1 %vm5196_vm8, %v5187_v27  ;;  %11799 = vmatmul.mubr.msk.f32.gmra.mxu0 %vm5196_vm8, %v16474_v0  ;;  %v16605_v27 = vsel %vm4116_vm6, %v8560_v50, %v8562_v37  ;;  %v19559_v50 = vld [vmem:[#allocation14_spill] sm:$0xff] }
 0x306   : > { %11667 = vmatprep.mubr.msk.f32.mxu1 %vm12849_vm7, %v19300_v44  ;;  %11801 = vmatprep.mubr.msk.f32.mxu0 %vm12849_vm7, %v19300_v44  ;;  %19552 = vst [vmem:[#allocation83_spill] sm:$0xff] %v16605_v27 }
 0x309   : > { %11668 = vmatmul.mubr.msk.f32.gmra.mxu1 %vm5196_vm8, %v5189_v6  ;;  %11802 = vmatmul.mubr.msk.f32.gmra.mxu0 %vm5196_vm8, %v16501_v47  ;;  %v5910_v6 = vsel %vm1281_vm3, %v19556_v24, %v5909_v63  ;;  %v19558_v63 = vld [vmem:[#allocation15_spill] sm:$0xff] }
 0x30a   : > { %11670 = vmatprep.mubr.msk.f32.mxu1 %vm12849_vm7, %v19300_v44  ;;  %11804 = vmatprep.mubr.msk.f32.mxu0 %vm12849_vm7, %v19300_v44  ;;  %v5919_v58 = vrot.slane %v19558_v63, 2 }
 0x30d   : > { %11671 = vmatmul.mubr.msk.f32.gmra.mxu1 %vm5196_vm8, %v5191_v54  ;;  %11805 = vmatmul.mubr.msk.f32.gmra.mxu0 %vm5196_vm8, %v16509_v55  ;;  %v19557_v54 = vld [vmem:[#allocation53_spill] sm:$0xff] }
 0x30e   : > { %11673 = vmatprep.mubr.msk.f32.mxu1 %vm12849_vm7, %v19300_v44  ;;  %11807 = vmatprep.mubr.msk.f32.mxu0 %vm12849_vm7, %v19300_v44  ;;  %v5917_v39 = vrot.slane %v19557_v54, 2 }
 0x310   : > { %v5920_v18 = vsel %vm1281_vm3, %v5917_v39, %v5919_v58 }
 0x311   : > { %11674 = vmatmul.mubr.msk.f32.gmra.mxu1 %vm5196_vm8, %v5193_v3  ;;  %11808 = vmatmul.mubr.msk.f32.gmra.mxu0 %vm5196_vm8, %v16547_v9  ;;  %v9855_v3 = vld [vmem:[%s18849_s4 + $0x88] sm:$0xff] }
 0x312   : > { %11676 = vmatprep.mubr.msk.f32.mxu1 %vm12849_vm7, %v19300_v44  ;;  %11810 = vmatprep.mubr.msk.f32.mxu0 %vm12849_vm7, %v19300_v44 }
 0x315   : > { %11677 = vmatmul.mubr.msk.f32.gmra.mxu1 %vm5196_vm8, %v5195_v8  ;;  %11811 = vmatmul.mubr.msk.f32.gmra.mxu0 %vm5196_vm8, %v16554_v29  ;;  %v9854_v8 = vld [vmem:[%s18849_s4 + $0x80] sm:$0xff] }
 0x316   : > { %11679 = vmatprep.mubr.msk.f32.mxu1 %vm12849_vm7, %v19300_v44  ;;  %11952 = vmatprep.mubr.msk.f32.mxu0 %vm12849_vm7, %v19300_v44 }
 0x319   : > { %11680 = vmatmul.mubr.msk.f32.gmra.mxu1 %vm5196_vm8, %v5194_v48  ;;  %11953 = vmatmul.mubr.msk.f32.vlgmr.msra.gmra.mxu0 %vm5196_vm8, %v5912_v36  ;;  %v5918_v48 = vsel %vm1281_vm3, %v5915_v17, %v5917_v39 }
 0x31a   : > { %11821 = vmatprep.mubr.msk.f32.mxu1 %vm12849_vm7, %v19300_v44  ;;  %11955 = vmatprep.mubr.msk.f32.mxu0 %vm12849_vm7, %v19300_v44 }
 0x31d   : > { %11822 = vmatmul.mubr.msk.f32.vlgmr.msra.gmra.mxu1 %vm5196_vm8, %v19553_v40  ;;  %11956 = vmatmul.mubr.msk.f32.gmra.mxu0 %vm5196_vm8, %v5914_v51 }
 0x31e   : > { %12076 = vmatpush3.msra.mxu1 %v9857_v46  ;;  %11824 = vmatprep.mubr.msk.f32.mxu1 %vm12849_vm7, %v19300_v44  ;;  %v19560_v46 = vld [vmem:[#allocation36_spill] sm:$0xff] }
 0x31f   : > { %11958 = vmatprep.mubr.msk.f32.mxu0 %vm12849_vm7, %v19300_v44  ;;  %12077 = vmatprep.subr.mxu1 %v19300_v44 }
 0x320   : > { %12078 = vmatpush3.msra.mxu1 %v9856_v31  ;;  %v19561_v31 = vld [vmem:[#allocation39_spill] sm:$0xff] }
 0x321   : > { %11825 = vmatmul.mubr.msk.f32.gmra.mxu1 %vm5196_vm8, %v5910_v6  ;;  %11959 = vmatmul.mubr.msk.f32.gmra.mxu0 %vm5196_vm8, %v5916_v1  ;;  %v5925_v17 = vrot.slane %v19561_v31, 2  ;;  %v19562_v6 = vld [vmem:[#allocation16_spill] sm:$0xff] }
 0x322   : > { %11827 = vmatprep.mubr.msk.f32.mxu1 %vm12849_vm7, %v19300_v44  ;;  %11961 = vmatprep.mubr.msk.f32.mxu0 %vm12849_vm7, %v19300_v44 }
 0x323   : > { %12079 = vmatprep.subr.mxu1 %v19300_v44 }
 0x324   : > { %12080 = vmatpush3.msra.mxu1 %v9855_v3  ;;  %v9902_v3 = vld [vmem:[%s18849_s4 + $0xb8] sm:$0xff] }
 0x325   : > { %11828 = vmatmul.mubr.msk.f32.gmra.mxu1 %vm5196_vm8, %v5912_v36  ;;  %11962 = vmatmul.mubr.msk.f32.gmra.mxu0 %vm5196_vm8, %v5918_v48  ;;  %v5921_v36 = vrot.slane %v19559_v50, 2 }
 0x326   : > { %11830 = vmatprep.mubr.msk.f32.mxu1 %vm12849_vm7, %v19300_v44  ;;  %11964 = vmatprep.mubr.msk.f32.mxu0 %vm12849_vm7, %v19300_v44 }
 0x327   : > { %12081 = vmatprep.subr.mxu1 %v19300_v44  ;;  %v5922_v37 = vsel %vm1281_vm3, %v5919_v58, %v5921_v36  ;;  %v19563_v58 = vld [vmem:[#allocation38_spill] sm:$0xff]  ;;  %12207 = vmatpush3.msra.mxu0 %v9902_v3  ;;  %v9900_v3 = vld [vmem:[%s18849_s4 + $0xa8] sm:$0xff] }
 0x328   : > { %12082 = vmatpush3.msra.mxu1 %v9854_v8  ;;  %12208 = vmatprep.subr.mxu0 %v19300_v44 }
 0x329   : > { %11831 = vmatmul.mubr.msk.f32.gmra.mxu1 %vm5196_vm8, %v5914_v51  ;;  %11965 = vmatmul.mubr.msk.f32.gmra.mxu0 %vm5196_vm8, %v5920_v18  ;;  %v5923_v51 = vrot.slane %v19560_v46, 2 }
 0x32a   : > { %11833 = vmatprep.mubr.msk.f32.mxu1 %vm12849_vm7, %v19300_v44  ;;  %11967 = vmatprep.mubr.msk.f32.mxu0 %vm12849_vm7, %v19300_v44 }
 0x32b   : > { %12337 = vmatprep.subr.mxu1 %v19300_v44  ;;  %v5924_v40 = vsel %vm1281_vm3, %v5921_v36, %v5923_v51  ;;  %v5926_v10 = vsel %vm1281_vm3, %v5923_v51, %v5925_v17 }
 0x32d   : > { %11834 = vmatmul.mubr.msk.f32.gmra.mxu1 %vm5196_vm8, %v5916_v1  ;;  %11968 = vmatmul.mubr.msk.f32.gmra.mxu0 %vm5196_vm8, %v5922_v37  ;;  %v5927_v1 = vrot.slane %v19562_v6, 2 }
 0x32e   : > { %11836 = vmatprep.mubr.msk.f32.mxu1 %vm12849_vm7, %v19300_v44  ;;  %11970 = vmatprep.mubr.msk.f32.mxu0 %vm12849_vm7, %v19300_v44 }
 0x32f   : > { %v5928_v8 = vsel %vm1281_vm3, %v5925_v17, %v5927_v1  ;;  %v9901_v17 = vld [vmem:[%s18849_s4 + $0xb0] sm:$0xff] }
 0x330   : > { %12209 = vmatpush3.msra.mxu0 %v9901_v17 }
 0x331   : > { %11837 = vmatmul.mubr.msk.f32.gmra.mxu1 %vm5196_vm8, %v5918_v48  ;;  %11971 = vmatmul.mubr.msk.f32.gmra.mxu0 %vm5196_vm8, %v5924_v40 }
 0x332   : > { %11839 = vmatprep.mubr.msk.f32.mxu1 %vm12849_vm7, %v19300_v44  ;;  %11973 = vmatprep.mubr.msk.f32.mxu0 %vm12849_vm7, %v19300_v44 }
 0x333   : > { %12210 = vmatprep.subr.mxu0 %v19300_v44 }
 0x334   : > { %12211 = vmatpush3.msra.mxu0 %v9900_v3 }
 0x335   : > { %11840 = vmatmul.mubr.msk.f32.gmra.mxu1 %vm5196_vm8, %v5920_v18  ;;  %v5697_v24 = vpop.f32.mrf.mxu0  ;;  %11974 = vmatmul.mubr.msk.f32.gmra.mxu0 %vm5196_vm8, %v5926_v10  ;;  %v5929_v18 = vrot.slane %v19563_v58, 2 }
 0x336   : > { %11842 = vmatprep.mubr.msk.f32.mxu1 %vm12849_vm7, %v19300_v44  ;;  %11976 = vmatprep.mubr.msk.f32.mxu0 %vm12849_vm7, %v19300_v44 }
 0x337   : > { %v11692_v39 = vpop.f32.mrf.mxu0  ;;  %12212 = vmatprep.subr.mxu0 %v19300_v44 }
 0x338   : > { %v5345_v48 = vpop.f32.mrf.mxu1 }
 0x339   : > { %v16684_v36 = vadd.f32 %v5697_v24, %v5345_v48  ;;  %11843 = vmatmul.mubr.msk.f32.gmra.mxu1 %vm5196_vm8, %v5922_v37  ;;  %v5702_v51 = vpop.f32.mrf.mxu0  ;;  %11977 = vmatmul.mubr.msk.f32.gmra.mxu0 %vm5196_vm8, %v5928_v8  ;;  %v5930_v24 = vsel %vm1281_vm3, %v5927_v1, %v5929_v18  ;;  %v19564_v1 = vld [vmem:[#allocation40_spill] sm:$0xff] }
 0x33a   : > { %v11561_v45 = vpop.f32.mrf.mxu1  ;;  %11845 = vmatprep.mubr.msk.f32.mxu1 %vm12849_vm7, %v19300_v44  ;;  %11979 = vmatprep.mubr.msk.f32.mxu0 %vm12849_vm7, %v19300_v44  ;;  %v5931_v17 = vrot.slane %v19564_v1, 2 }
 0x33b   : > { %v11695_v39 = vpop.f32.mrf.mxu0 }
 0x33d   : > { %v5350_v37 = vpop.f32.mrf.mxu1  ;;  %11846 = vmatmul.mubr.msk.f32.gmra.mxu1 %vm5196_vm8, %v5924_v40  ;;  %v5707_v45 = vpop.f32.mrf.mxu0  ;;  %11980 = vmatmul.mubr.msk.f32.gmra.mxu0 %vm5196_vm8, %v5930_v24  ;;  %v5932_v40 = vsel %vm1281_vm3, %v5929_v18, %v5931_v17 }
 0x33e   : > { %v16702_v48 = vadd.f32 %v5702_v51, %v5350_v37  ;;  %11848 = vmatprep.mubr.msk.f32.mxu1 %vm12849_vm7, %v19300_v44  ;;  %11982 = vmatprep.mubr.msk.f32.mxu0 %vm12849_vm7, %v19300_v44  ;;  %v9899_v37 = vld [vmem:[%s18849_s4 + $0xa0] sm:$0xff] }
 0x33f   : > { %v11564_v39 = vpop.f32.mrf.mxu1  ;;  %v11698_v60 = vpop.f32.mrf.mxu0  ;;  %12213 = vmatpush3.msra.mxu0 %v9899_v37 }
 0x340   : > { %12468 = vmatprep.subr.mxu0 %v19300_v44 }
 0x341   : > { %v5355_v27 = vpop.f32.mrf.mxu1  ;;  %11849 = vmatmul.mubr.msk.f32.gmra.mxu1 %vm5196_vm8, %v5926_v10  ;;  %v5712_v51 = vpop.f32.mrf.mxu0  ;;  %11983 = vmatmul.mubr.msk.f32.gmra.mxu0 %vm5196_vm8, %v5932_v40  ;;  %v5934_v10 = vsel %vm1281_vm3, %v5931_v17, %v5933_v25 }
 0x342   : > { %v16717_v5 = vadd.f32 %v5707_v45, %v5355_v27  ;;  %11851 = vmatprep.mubr.msk.f32.mxu1 %vm12849_vm7, %v19300_v44  ;;  %11985 = vmatprep.mubr.msk.f32.mxu0 %vm12849_vm7, %v19300_v44  ;;  %v19566_v45 = vld [vmem:[#allocation42_spill] sm:$0xff] }
 0x343   : > { %v11567_v60 = vpop.f32.mrf.mxu1  ;;  %v11701_v18 = vpop.f32.mrf.mxu0 }
 0x344   : > { %v5935_v60 = vrot.slane %v19566_v45, 2 }
 0x345   : > { %v5360_v3 = vpop.f32.mrf.mxu1  ;;  %11852 = vmatmul.mubr.msk.f32.gmra.mxu1 %vm5196_vm8, %v5928_v8  ;;  %v5717_v39 = vpop.f32.mrf.mxu0  ;;  %11986 = vmatmul.mubr.msk.f32.gmra.mxu0 %vm5196_vm8, %v5934_v10  ;;  %v19567_v8 = vld [vmem:[#allocation34_spill] sm:$0xff] }
 0x346   : > { %v16727_v27 = vadd.f32 %v5712_v51, %v5360_v3  ;;  %11854 = vmatprep.mubr.msk.f32.mxu1 %vm12849_vm7, %v19300_v44  ;;  %11988 = vmatprep.mubr.msk.f32.mxu0 %vm12849_vm7, %v19300_v44  ;;  %v5936_v17 = vsel %vm1281_vm3, %v5933_v25, %v5935_v60  ;;  %v5937_v37 = vrot.slane %v19567_v8, 2 }
 0x347   : > { %v11570_v18 = vpop.f32.mrf.mxu1  ;;  %v11704_v16 = vpop.f32.mrf.mxu0 }
 0x348   : > { %v5938_v25 = vsel %vm1281_vm3, %v5935_v60, %v5937_v37 }
 0x349   : > { %v5365_v52 = vpop.f32.mrf.mxu1  ;;  %11855 = vmatmul.mubr.msk.f32.gmra.mxu1 %vm5196_vm8, %v5930_v24  ;;  %v5722_v51 = vpop.f32.mrf.mxu0  ;;  %11989 = vmatmul.mubr.msk.f32.gmra.mxu0 %vm5196_vm8, %v5936_v17 }
 0x34a   : > { %v16739_v3 = vadd.f32 %v5717_v39, %v5365_v52  ;;  %11857 = vmatprep.mubr.msk.f32.mxu1 %vm12849_vm7, %v19300_v44  ;;  %11991 = vmatprep.mubr.msk.f32.mxu0 %vm12849_vm7, %v19300_v44  ;;  %v5939_v52 = vrot.slane %v16093_v35, 2 }
 0x34b   : > { %v11573_v16 = vpop.f32.mrf.mxu1  ;;  %v11707_v18 = vpop.f32.mrf.mxu0 }
 0x34c   : > { %v5940_v60 = vsel %vm1281_vm3, %v5937_v37, %v5939_v52  ;;  %v5941_v18 = vrot.slane %v16104_v22, 2 }
 0x34d   : > { %v5370_v57 = vpop.f32.mrf.mxu1  ;;  %11858 = vmatmul.mubr.msk.f32.gmra.mxu1 %vm5196_vm8, %v5932_v40  ;;  %v5727_v38 = vpop.f32.mrf.mxu0  ;;  %11992 = vmatmul.mubr.msk.f32.gmra.mxu0 %vm5196_vm8, %v5938_v25 }
 0x34e   : > { %v16748_v24 = vadd.f32 %v5722_v51, %v5370_v57  ;;  %11860 = vmatprep.mubr.msk.f32.mxu1 %vm12849_vm7, %v19300_v44  ;;  %11994 = vmatprep.mubr.msk.f32.mxu0 %vm12849_vm7, %v19300_v44  ;;  %v5942_v37 = vsel %vm1281_vm3, %v5939_v52, %v5941_v18 }
 0x34f   : > { %v11576_v39 = vpop.f32.mrf.mxu1  ;;  %v11710_v16 = vpop.f32.mrf.mxu0 }
 0x351   : > { %v5375_v40 = vpop.f32.mrf.mxu1  ;;  %11861 = vmatmul.mubr.msk.f32.gmra.mxu1 %vm5196_vm8, %v5934_v10  ;;  %v5732_v33 = vpop.f32.mrf.mxu0  ;;  %11995 = vmatmul.mubr.msk.f32.gmra.mxu0 %vm5196_vm8, %v5940_v60 }
 0x352   : > { %v16759_v57 = vadd.f32 %v5727_v38, %v5375_v40  ;;  %11863 = vmatprep.mubr.msk.f32.mxu1 %vm12849_vm7, %v19300_v44  ;;  %11997 = vmatprep.mubr.msk.f32.mxu0 %vm12849_vm7, %v19300_v44  ;;  %v5943_v38 = vrot.slane %v16138_v32, 2 }
 0x353   : > { %v11579_v51 = vpop.f32.mrf.mxu1  ;;  %v11713_v39 = vpop.f32.mrf.mxu0 }
 0x354   : > { %19568 = vst [vmem:[#allocation57_spill] sm:$0xff] %v16759_v57  ;;  %v5944_v52 = vsel %vm1281_vm3, %v5941_v18, %v5943_v38  ;;  %v5945_v39 = vrot.slane %v16150_v26, 2 }
 0x355   : > { %v5380_v16 = vpop.f32.mrf.mxu1  ;;  %11864 = vmatmul.mubr.msk.f32.gmra.mxu1 %vm5196_vm8, %v5936_v17  ;;  %v5737_v22 = vpop.f32.mrf.mxu0  ;;  %11998 = vmatmul.mubr.msk.f32.gmra.mxu0 %vm5196_vm8, %v5942_v37 }
 0x356   : > { %v16768_v10 = vadd.f32 %v5732_v33, %v5380_v16  ;;  %11866 = vmatprep.mubr.msk.f32.mxu1 %vm12849_vm7, %v19300_v44  ;;  %12000 = vmatprep.mubr.msk.f32.mxu0 %vm12849_vm7, %v19300_v44  ;;  %v5946_v18 = vsel %vm1281_vm3, %v5943_v38, %v5945_v39 }
 0x357   : > { %v11582_v40 = vpop.f32.mrf.mxu1  ;;  %v11716_v51 = vpop.f32.mrf.mxu0 }
 0x359   : > { %v5385_v17 = vpop.f32.mrf.mxu1  ;;  %11867 = vmatmul.mubr.msk.f32.gmra.mxu1 %vm5196_vm8, %v5938_v25  ;;  %v5742_v57 = vpop.f32.mrf.mxu0  ;;  %12001 = vmatmul.mubr.msk.f32.gmra.mxu0 %vm5196_vm8, %v5944_v52 }
 0x35a   : > { %v16779_v33 = vadd.f32 %v5737_v22, %v5385_v17  ;;  %11869 = vmatprep.mubr.msk.f32.mxu1 %vm12849_vm7, %v19300_v44  ;;  %12003 = vmatprep.mubr.msk.f32.mxu0 %vm12849_vm7, %v19300_v44  ;;  %v5947_v22 = vrot.slane %v16182_v11, 2 }
 0x35b   : > { %v11585_v16 = vpop.f32.mrf.mxu1  ;;  %v11719_v40 = vpop.f32.mrf.mxu0 }
 0x35c   : > { %19569 = vst [vmem:[#allocation33_spill] sm:$0xff] %v16779_v33  ;;  %v5948_v38 = vsel %vm1281_vm3, %v5945_v39, %v5947_v22  ;;  %v5949_v40 = vrot.slane %v16194_v53, 2 }
 0x35d   : > { %v5390_v51 = vpop.f32.mrf.mxu1  ;;  %11870 = vmatmul.mubr.msk.f32.gmra.mxu1 %vm5196_vm8, %v5940_v60  ;;  %v5747_v26 = vpop.f32.mrf.mxu0  ;;  %12004 = vmatmul.mubr.msk.f32.gmra.mxu0 %vm5196_vm8, %v5946_v18 }
 0x35e   : > { %v16788_v25 = vadd.f32 %v5742_v57, %v5390_v51  ;;  %11872 = vmatprep.mubr.msk.f32.mxu1 %vm12849_vm7, %v19300_v44  ;;  %12006 = vmatprep.mubr.msk.f32.mxu0 %vm12849_vm7, %v19300_v44  ;;  %v5950_v39 = vsel %vm1281_vm3, %v5947_v22, %v5949_v40 }
 0x35f   : > { %v11588_v17 = vpop.f32.mrf.mxu1  ;;  %v11722_v16 = vpop.f32.mrf.mxu0 }
 0x361   : > { %v5395_v60 = vpop.f32.mrf.mxu1  ;;  %11873 = vmatmul.mubr.msk.f32.gmra.mxu1 %vm5196_vm8, %v5942_v37  ;;  %v5752_v33 = vpop.f32.mrf.mxu0  ;;  %12007 = vmatmul.mubr.msk.f32.gmra.mxu0 %vm5196_vm8, %v5948_v38 }
 0x362   : > { %v16799_v57 = vadd.f32 %v5747_v26, %v5395_v60  ;;  %11875 = vmatprep.mubr.msk.f32.mxu1 %vm12849_vm7, %v19300_v44  ;;  %12009 = vmatprep.mubr.msk.f32.mxu0 %vm12849_vm7, %v19300_v44  ;;  %v5951_v26 = vrot.slane %v16218_v20, 2 }
 0x363   : > { %v11591_v51 = vpop.f32.mrf.mxu1  ;;  %v11725_v17 = vpop.f32.mrf.mxu0 }
 0x364   : > { %19570 = vst [vmem:[#allocation92_spill] sm:$0xff] %v16799_v57  ;;  %v5952_v22 = vsel %vm1281_vm3, %v5949_v40, %v5951_v26  ;;  %v5953_v17 = vrot.slane %v16228_v59, 2 }
 0x365   : > { %v5400_v16 = vpop.f32.mrf.mxu1  ;;  %11876 = vmatmul.mubr.msk.f32.gmra.mxu1 %vm5196_vm8, %v5944_v52  ;;  %v5757_v53 = vpop.f32.mrf.mxu0  ;;  %12010 = vmatmul.mubr.msk.f32.gmra.mxu0 %vm5196_vm8, %v5950_v39 }
 0x366   : > { %v16808_v37 = vadd.f32 %v5752_v33, %v5400_v16  ;;  %11878 = vmatprep.mubr.msk.f32.mxu1 %vm12849_vm7, %v19300_v44  ;;  %12012 = vmatprep.mubr.msk.f32.mxu0 %vm12849_vm7, %v19300_v44  ;;  %v5954_v40 = vsel %vm1281_vm3, %v5951_v26, %v5953_v17 }
 0x367   : > { %v11594_v60 = vpop.f32.mrf.mxu1  ;;  %v11728_v51 = vpop.f32.mrf.mxu0 }
 0x369   : > { %v5405_v52 = vpop.f32.mrf.mxu1  ;;  %11879 = vmatmul.mubr.msk.f32.gmra.mxu1 %vm5196_vm8, %v5946_v18  ;;  %v5762_v57 = vpop.f32.mrf.mxu0  ;;  %12013 = vmatmul.mubr.msk.f32.gmra.mxu0 %vm5196_vm8, %v5952_v22 }
 0x36a   : > { %v16819_v33 = vadd.f32 %v5757_v53, %v5405_v52  ;;  %11881 = vmatprep.mubr.msk.f32.mxu1 %vm12849_vm7, %v19300_v44  ;;  %12015 = vmatprep.mubr.msk.f32.mxu0 %vm12849_vm7, %v19300_v44  ;;  %v5955_v53 = vrot.slane %v16254_v49, 2 }
 0x36b   : > { %v11597_v16 = vpop.f32.mrf.mxu1  ;;  %v11731_v60 = vpop.f32.mrf.mxu0 }
 0x36c   : > { %19571 = vst [vmem:[#allocation76_spill] sm:$0xff] %v16819_v33  ;;  %v5956_v26 = vsel %vm1281_vm3, %v5953_v17, %v5955_v53  ;;  %v5957_v60 = vrot.slane %v16264_v12, 2 }
 0x36d   : > { %v5410_v51 = vpop.f32.mrf.mxu1  ;;  %11882 = vmatmul.mubr.msk.f32.gmra.mxu1 %vm5196_vm8, %v5948_v38  ;;  %v5767_v59 = vpop.f32.mrf.mxu0  ;;  %12016 = vmatmul.mubr.msk.f32.gmra.mxu0 %vm5196_vm8, %v5954_v40 }
 0x36e   : > { %v16828_v18 = vadd.f32 %v5762_v57, %v5410_v51  ;;  %11884 = vmatprep.mubr.msk.f32.mxu1 %vm12849_vm7, %v19300_v44  ;;  %12018 = vmatprep.mubr.msk.f32.mxu0 %vm12849_vm7, %v19300_v44  ;;  %v5958_v17 = vsel %vm1281_vm3, %v5955_v53, %v5957_v60 }
 0x36f   : > { %v11600_v52 = vpop.f32.mrf.mxu1  ;;  %v11734_v16 = vpop.f32.mrf.mxu0 }
 0x371   : > { %v5415_v38 = vpop.f32.mrf.mxu1  ;;  %11885 = vmatmul.mubr.msk.f32.gmra.mxu1 %vm5196_vm8, %v5950_v39  ;;  %v5772_v33 = vpop.f32.mrf.mxu0  ;;  %12019 = vmatmul.mubr.msk.f32.gmra.mxu0 %vm5196_vm8, %v5956_v26 }
 0x372   : > { %v16839_v57 = vadd.f32 %v5767_v59, %v5415_v38  ;;  %11887 = vmatprep.mubr.msk.f32.mxu1 %vm12849_vm7, %v19300_v44  ;;  %12021 = vmatprep.mubr.msk.f32.mxu0 %vm12849_vm7, %v19300_v44  ;;  %v5959_v59 = vrot.slane %v16290_v43, 2 }
 0x373   : > { %v11603_v51 = vpop.f32.mrf.mxu1  ;;  %v11737_v52 = vpop.f32.mrf.mxu0 }
 0x374   : > { %19572 = vst [vmem:[#allocation84_spill] sm:$0xff] %v16839_v57  ;;  %v5960_v53 = vsel %vm1281_vm3, %v5957_v60, %v5959_v59  ;;  %v5961_v52 = vrot.slane %v16302_v30, 2 }
 0x375   : > { %v5420_v16 = vpop.f32.mrf.mxu1  ;;  %11888 = vmatmul.mubr.msk.f32.gmra.mxu1 %vm5196_vm8, %v5952_v22  ;;  %v5777_v12 = vpop.f32.mrf.mxu0  ;;  %12022 = vmatmul.mubr.msk.f32.gmra.mxu0 %vm5196_vm8, %v5958_v17 }
 0x376   : > { %v16848_v39 = vadd.f32 %v5772_v33, %v5420_v16  ;;  %11890 = vmatprep.mubr.msk.f32.mxu1 %vm12849_vm7, %v19300_v44  ;;  %12024 = vmatprep.mubr.msk.f32.mxu0 %vm12849_vm7, %v19300_v44  ;;  %v5962_v60 = vsel %vm1281_vm3, %v5959_v59, %v5961_v52 }
 0x377   : > { %v11606_v38 = vpop.f32.mrf.mxu1  ;;  %v11740_v51 = vpop.f32.mrf.mxu0 }
 0x379   : > { %v5425_v22 = vpop.f32.mrf.mxu1  ;;  %11891 = vmatmul.mubr.msk.f32.gmra.mxu1 %vm5196_vm8, %v5954_v40  ;;  %v5782_v57 = vpop.f32.mrf.mxu0  ;;  %12025 = vmatmul.mubr.msk.f32.gmra.mxu0 %vm5196_vm8, %v5960_v53 }
 0x37a   : > { %v16859_v33 = vadd.f32 %v5777_v12, %v5425_v22  ;;  %11893 = vmatprep.mubr.msk.f32.mxu1 %vm12849_vm7, %v19300_v44  ;;  %12027 = vmatprep.mubr.msk.f32.mxu0 %vm12849_vm7, %v19300_v44  ;;  %v5963_v12 = vrot.slane %v16331_v21, 2 }
 0x37b   : > { %v11609_v16 = vpop.f32.mrf.mxu1  ;;  %v11743_v38 = vpop.f32.mrf.mxu0 }
 0x37c   : > { %19573 = vst [vmem:[#allocation43_spill] sm:$0xff] %v16859_v33  ;;  %v5964_v59 = vsel %vm1281_vm3, %v5961_v52, %v5963_v12  ;;  %v5965_v38 = vrot.slane %v16341_v23, 2 }
 0x37d   : > { %v5430_v51 = vpop.f32.mrf.mxu1  ;;  %11894 = vmatmul.mubr.msk.f32.gmra.mxu1 %vm5196_vm8, %v5956_v26  ;;  %v5787_v30 = vpop.f32.mrf.mxu0  ;;  %12028 = vmatmul.mubr.msk.f32.gmra.mxu0 %vm5196_vm8, %v5962_v60 }
 0x37e   : > { %v16868_v40 = vadd.f32 %v5782_v57, %v5430_v51  ;;  %11896 = vmatprep.mubr.msk.f32.mxu1 %vm12849_vm7, %v19300_v44  ;;  %12030 = vmatprep.mubr.msk.f32.mxu0 %vm12849_vm7, %v19300_v44  ;;  %v5966_v52 = vsel %vm1281_vm3, %v5963_v12, %v5965_v38 }
 0x37f   : > { %v11612_v22 = vpop.f32.mrf.mxu1  ;;  %v11746_v16 = vpop.f32.mrf.mxu0 }
 0x381   : > { %v5435_v26 = vpop.f32.mrf.mxu1  ;;  %11897 = vmatmul.mubr.msk.f32.gmra.mxu1 %vm5196_vm8, %v5958_v17  ;;  %v5792_v33 = vpop.f32.mrf.mxu0  ;;  %12031 = vmatmul.mubr.msk.f32.gmra.mxu0 %vm5196_vm8, %v5964_v59 }
 0x382   : > { %v16879_v57 = vadd.f32 %v5787_v30, %v5435_v26  ;;  %11899 = vmatprep.mubr.msk.f32.mxu1 %vm12849_vm7, %v19300_v44  ;;  %12033 = vmatprep.mubr.msk.f32.mxu0 %vm12849_vm7, %v19300_v44  ;;  %v5967_v30 = vrot.slane %v16373_v34, 2 }
 0x383   : > { %v11615_v51 = vpop.f32.mrf.mxu1  ;;  %v11749_v22 = vpop.f32.mrf.mxu0 }
 0x384   : > { %19574 = vst [vmem:[#allocation22_spill] sm:$0xff] %v16879_v57  ;;  %v5968_v12 = vsel %vm1281_vm3, %v5965_v38, %v5967_v30  ;;  %v5969_v22 = vrot.slane %v16388_v15, 2 }
 0x385   : > { %v5440_v16 = vpop.f32.mrf.mxu1  ;;  %11900 = vmatmul.mubr.msk.f32.gmra.mxu1 %vm5196_vm8, %v5960_v53  ;;  %v5797_v23 = vpop.f32.mrf.mxu0  ;;  %12034 = vmatmul.mubr.msk.f32.gmra.mxu0 %vm5196_vm8, %v5966_v52 }
 0x386   : > { %v16888_v17 = vadd.f32 %v5792_v33, %v5440_v16  ;;  %11902 = vmatprep.mubr.msk.f32.mxu1 %vm12849_vm7, %v19300_v44  ;;  %12036 = vmatprep.mubr.msk.f32.mxu0 %vm12849_vm7, %v19300_v44  ;;  %v5970_v38 = vsel %vm1281_vm3, %v5967_v30, %v5969_v22 }
 0x387   : > { %v11618_v26 = vpop.f32.mrf.mxu1  ;;  %v11752_v51 = vpop.f32.mrf.mxu0 }
 0x388   : > { %19575 = vst [vmem:[#allocation93_spill] sm:$0xff] %v16888_v17 }
 0x389   : > { %v5445_v53 = vpop.f32.mrf.mxu1  ;;  %11903 = vmatmul.mubr.msk.f32.gmra.mxu1 %vm5196_vm8, %v5962_v60  ;;  %v5802_v57 = vpop.f32.mrf.mxu0  ;;  %12037 = vmatmul.mubr.msk.f32.gmra.mxu0 %vm5196_vm8, %v5968_v12 }
 0x38a   : > { %v16899_v33 = vadd.f32 %v5797_v23, %v5445_v53  ;;  %11905 = vmatprep.mubr.msk.f32.mxu1 %vm12849_vm7, %v19300_v44  ;;  %12039 = vmatprep.mubr.msk.f32.mxu0 %vm12849_vm7, %v19300_v44  ;;  %v5971_v23 = vrot.slane %v16419_v13, 2 }
 0x38b   : > { %v11621_v16 = vpop.f32.mrf.mxu1  ;;  %v11755_v26 = vpop.f32.mrf.mxu0 }
 0x38c   : > { %19576 = vst [vmem:[#allocation87_spill] sm:$0xff] %v16899_v33  ;;  %v5972_v30 = vsel %vm1281_vm3, %v5969_v22, %v5971_v23  ;;  %v5973_v26 = vrot.slane %v16434_v28, 2 }
 0x38d   : > { %v5450_v51 = vpop.f32.mrf.mxu1  ;;  %11906 = vmatmul.mubr.msk.f32.gmra.mxu1 %vm5196_vm8, %v5964_v59  ;;  %v5807_v15 = vpop.f32.mrf.mxu0  ;;  %12040 = vmatmul.mubr.msk.f32.gmra.mxu0 %vm5196_vm8, %v5970_v38 }
 0x38e   : > { %v16908_v60 = vadd.f32 %v5802_v57, %v5450_v51  ;;  %11908 = vmatprep.mubr.msk.f32.mxu1 %vm12849_vm7, %v19300_v44  ;;  %12042 = vmatprep.mubr.msk.f32.mxu0 %vm12849_vm7, %v19300_v44  ;;  %v19578_v57 = vld [vmem:[#allocation12_spill] sm:$0xff]  ;;  %v19579_v51 = vld [vmem:[#allocation10_spill] sm:$0xff] }
 0x38f   : > { %v11624_v53 = vpop.f32.mrf.mxu1  ;;  %v11758_v16 = vpop.f32.mrf.mxu0 }
 0x390   : > { %19577 = vst [vmem:[#allocation58_spill] sm:$0xff] %v16908_v60  ;;  %v2163_v60 = vadd.f32 %v19579_v51, %v19578_v57  ;;  %v19580_v16 = vld [vmem:[#allocation65_spill] sm:$0xff]  ;;  %v19582_v51 = vld [vmem:[#allocation63_spill] sm:$0xff] }
 0x391   : > { %v5455_v59 = vpop.f32.mrf.mxu1  ;;  %11909 = vmatmul.mubr.msk.f32.gmra.mxu1 %vm5196_vm8, %v5966_v52  ;;  %v5812_v33 = vpop.f32.mrf.mxu0  ;;  %12043 = vmatmul.mubr.msk.f32.gmra.mxu0 %vm5196_vm8, %v5972_v30  ;;  %v5974_v52 = vsel %vm1281_vm3, %v5971_v23, %v5973_v26 }
 0x392   : > { %v16921_v34 = vadd.f32 %v5807_v15, %v5455_v59  ;;  %11911 = vmatprep.mubr.msk.f32.mxu1 %vm12849_vm7, %v19300_v44  ;;  %12045 = vmatprep.mubr.msk.f32.mxu0 %vm12849_vm7, %v19300_v44  ;;  %v2693_v28 = vadd.f32 %v19580_v16, %v2163_v60  ;;  %v5975_v59 = vrot.slane %v16464_v62, 2 }
 0x393   : > { %v11627_v22 = vpop.f32.mrf.mxu1  ;;  %v11761_v53 = vpop.f32.mrf.mxu0 }
 0x394   : > { %v3222_v23 = vadd.f32 %v19582_v51, %v2693_v28  ;;  %v5976_v22 = vsel %vm1281_vm3, %v5973_v26, %v5975_v59  ;;  %v19585_v51 = vld [vmem:[#allocation20_spill] sm:$0xff] }
 0x395   : > { %v5460_v13 = vpop.f32.mrf.mxu1  ;;  %11912 = vmatmul.mubr.msk.f32.gmra.mxu1 %vm5196_vm8, %v5968_v12  ;;  %v5817_v17 = vpop.f32.mrf.mxu0  ;;  %12046 = vmatmul.mubr.msk.f32.gmra.mxu0 %vm5196_vm8, %v5974_v52  ;;  %v5977_v12 = vrot.slane %v16474_v0, 2 }
 0x396   : > { %v16931_v15 = vadd.f32 %v5812_v33, %v5460_v13  ;;  %11914 = vmatprep.mubr.msk.f32.mxu1 %vm12849_vm7, %v19300_v44  ;;  %12048 = vmatprep.mubr.msk.f32.mxu0 %vm12849_vm7, %v19300_v44  ;;  %v19583_v33 = vld [vmem:[#allocation28_spill] sm:$0xff] }
 0x397   : > { %v11630_v57 = vpop.f32.mrf.mxu1  ;;  %v11764_v60 = vpop.f32.mrf.mxu0  ;;  %v3580_v16 = vadd.f32 %v19583_v33, %v3222_v23 }
 0x398   : > { %19581 = vst [vmem:[#allocation85_spill] sm:$0xff] %v16931_v15  ;;  %v5978_v57 = vsel %vm1281_vm3, %v5975_v59, %v5977_v12 }
 0x399   : > { %v5465_v53 = vpop.f32.mrf.mxu1  ;;  %11915 = vmatmul.mubr.msk.f32.gmra.mxu1 %vm5196_vm8, %v5970_v38  ;;  %v5822_v13 = vpop.f32.mrf.mxu0  ;;  %12049 = vmatmul.mubr.msk.f32.gmra.mxu0 %vm5196_vm8, %v5976_v22  ;;  %v4110_v23 = vadd.f32 %v19585_v51, %v3580_v16  ;;  %v12838_v16 = vld [vmem:[%s18848_s3] ss:$0 sm:$0xff] }
 0x39a   : > { %v16944_v15 = vadd.f32 %v5817_v17, %v5465_v53  ;;  %11917 = vmatprep.mubr.msk.f32.mxu1 %vm12849_vm7, %v19300_v44  ;;  %12051 = vmatprep.mubr.msk.f32.mxu0 %vm12849_vm7, %v19300_v44  ;;  %v5979_v53 = vrot.slane %v16501_v47, 2 }
 0x39b   : > { %v11633_v28 = vpop.f32.mrf.mxu1  ;;  %v11767_v26 = vpop.f32.mrf.mxu0 }
 0x39c   : > { %19584 = vst [vmem:[#allocation44_spill] sm:$0xff] %v16944_v15  ;;  %v4640_v28 = vadd.f32 %v16171_v19, %v4110_v23  ;;  %v5981_v26 = vrot.slane %v16509_v55, 2 }
 0x39d   : > { %v5470_v60 = vpop.f32.mrf.mxu1  ;;  %11918 = vmatmul.mubr.msk.f32.gmra.mxu1 %vm5196_vm8, %v5972_v30  ;;  %v5827_v38 = vpop.f32.mrf.mxu0  ;;  %12052 = vmatmul.mubr.msk.f32.gmra.mxu0 %vm5196_vm8, %v5978_v57  ;;  %v5980_v30 = vsel %vm1281_vm3, %v5977_v12, %v5979_v53 }
 0x39e   : > { %v16954_v17 = vadd.f32 %v5822_v13, %v5470_v60  ;;  %11920 = vmatprep.mubr.msk.f32.mxu1 %vm12849_vm7, %v19300_v44  ;;  %12054 = vmatprep.mubr.msk.f32.mxu0 %vm12849_vm7, %v19300_v44  ;;  %v4692_v60 = vadd.f32 %v12838_v16, %v16146_v4  ;;  %v5982_v23 = vsel %vm1281_vm3, %v5979_v53, %v5981_v26 }
 0x39f   : > { %v11636_v33 = vpop.f32.mrf.mxu1  ;;  %v11770_v59 = vpop.f32.mrf.mxu0 }
 0x3a0   : > { %v4738_v4 = vmax.f32 %v4692_v60, 0.0 }
 0x3a1   : > { %v5475_v15 = vpop.f32.mrf.mxu1  ;;  %11921 = vmatmul.mubr.msk.f32.gmra.mxu1 %vm5196_vm8, %v5974_v52  ;;  %v5832_v13 = vpop.f32.mrf.mxu0  ;;  %12055 = vmatmul.mubr.msk.f32.gmra.mxu0 %vm5196_vm8, %v5980_v30  ;;  %v4693_v52 = vadd.f32 %v12838_v16, %v4640_v28 }
 0x3a2   : > { %v16970_v51 = vadd.f32 %v5827_v38, %v5475_v15  ;;  %11923 = vmatprep.mubr.msk.f32.mxu1 %vm12849_vm7, %v19300_v44  ;;  %12057 = vmatprep.mubr.msk.f32.mxu0 %vm12849_vm7, %v19300_v44  ;;  %v5983_v38 = vrot.slane %v16547_v9, 2  ;;  %v16991_v60 = vmul.f32 %v16431_v42, %v4738_v4 }
 0x3a3   : > { %v11639_v19 = vpop.f32.mrf.mxu1  ;;  %v11773_v12 = vpop.f32.mrf.mxu0  ;;  %v4739_v53 = vmax.f32 %v4693_v52, 0.0 }
 0x3a4   : > { %v5984_v19 = vsel %vm1281_vm3, %v5981_v26, %v5983_v38  ;;  %19586 = vst [vmem:[#allocation46_spill] sm:$0xff] %v16991_v60  ;;  %v6387_v4 = vrot.slane %v16991_v60, 2 }
 0x3a5   : > { %v5480_v33 = vpop.f32.mrf.mxu1  ;;  %11924 = vmatmul.mubr.msk.f32.gmra.mxu1 %vm5196_vm8, %v5976_v22  ;;  %v5837_v59 = vpop.f32.mrf.mxu0  ;;  %12058 = vmatmul.mubr.msk.f32.gmra.mxu0 %vm5196_vm8, %v5982_v23  ;;  %v5985_v22 = vrot.slane %v16554_v29, 2 }
 0x3a6   : > { %v16979_v15 = vadd.f32 %v5832_v13, %v5480_v33  ;;  %11926 = vmatprep.mubr.msk.f32.mxu1 %vm12849_vm7, %v19300_v44  ;;  %12060 = vmatprep.mubr.msk.f32.mxu0 %vm12849_vm7, %v19300_v44 }
 0x3a7   : > { %v11642_v28 = vpop.f32.mrf.mxu1  ;;  %v11776_v16 = vpop.f32.mrf.mxu0 }
 0x3a8   : > { %v17000_v28 = vmul.f32 %v16461_v41, %v4739_v53 }
 0x3a9   : > { %v5485_v12 = vpop.f32.mrf.mxu1  ;;  %11927 = vmatmul.mubr.msk.f32.gmra.mxu1 %vm5196_vm8, %v5978_v57  ;;  %v5842_v13 = vpop.f32.mrf.mxu0  ;;  %12061 = vmatmul.mubr.msk.f32.gmra.mxu0 %vm5196_vm8, %v5984_v19  ;;  %v5986_v57 = vsel %vm1281_vm3, %v5983_v38, %v5985_v22  ;;  %v6388_v38 = vsel %vm1281_vm3, %v5985_v22, %v6387_v4 }
 0x3aa   : > { %v16993_v33 = vadd.f32 %v5837_v59, %v5485_v12  ;;  %11929 = vmatprep.mubr.msk.f32.mxu1 %vm12849_vm7, %v19300_v44  ;;  %12063 = vmatprep.mubr.msk.f32.mxu0 %vm12849_vm7, %v19300_v44  ;;  %19587 = vst [vmem:[#allocation94_spill] sm:$0xff] %v17000_v28  ;;  %v6389_v12 = vrot.slane %v17000_v28, 2 }
 0x3ab   : > { %v11645_v26 = vpop.f32.mrf.mxu1  ;;  %v11779_v52 = vpop.f32.mrf.mxu0 }
 0x3ad   : > { %v5490_v16 = vpop.f32.mrf.mxu1  ;;  %11930 = vmatmul.mubr.msk.f32.gmra.mxu1 %vm5196_vm8, %v5980_v30  ;;  %v5847_v42 = vpop.f32.mrf.mxu0  ;;  %12064 = vmatmul.mubr.msk.f32.gmra.mxu0 %vm5196_vm8, %v5986_v57 }
 0x3ae   : > { %v17005_v59 = vadd.f32 %v5842_v13, %v5490_v16  ;;  %11932 = vmatprep.mubr.msk.f32.mxu1 %vm12849_vm7, %v19300_v44  ;;  %12066 = vmatprep.mubr.msk.f32.mxu0 %vm12849_vm7, %v19300_v44 }
 0x3af   : > { %v11648_v41 = vpop.f32.mrf.mxu1  ;;  %v11782_v53 = vpop.f32.mrf.mxu0 }
 0x3b0   : > { %v6390_v41 = vsel %vm1281_vm3, %v6387_v4, %v6389_v12 }
 0x3b1   : > { %v5495_v30 = vpop.f32.mrf.mxu1  ;;  %11933 = vmatmul.mubr.msk.f32.gmra.mxu1 %vm5196_vm8, %v5982_v23  ;;  %v5852_v26 = vpop.f32.mrf.mxu0  ;;  %12067 = vmatmul.mubr.msk.f32.gmra.mxu0 %vm5196_vm8, %v6388_v38 }
 0x3b2   : > { %v17016_v13 = vadd.f32 %v5847_v42, %v5495_v30  ;;  %11935 = vmatprep.mubr.msk.f32.mxu1 %vm12849_vm7, %v19300_v44  ;;  %12069 = vmatprep.mubr.msk.f32.mxu0 %vm12849_vm7, %v19300_v44  ;;  %v7192_v30 = vrot.slane %v19548_v2, 4 }
 0x3b3   : > { %v11651_v52 = vpop.f32.mrf.mxu1  ;;  %v11785_v16 = vpop.f32.mrf.mxu0 }
 0x3b5   : > { %v5500_v53 = vpop.f32.mrf.mxu1  ;;  %11936 = vmatmul.mubr.msk.f32.gmra.mxu1 %vm5196_vm8, %v5984_v19  ;;  %v5857_v28 = vpop.f32.mrf.mxu0  ;;  %12070 = vmatmul.mubr.msk.f32.gmra.mxu0 %vm5196_vm8, %v6390_v41 }
 0x3b6   : > { %v17025_v23 = vadd.f32 %v5852_v26, %v5500_v53  ;;  %11938 = vmatprep.mubr.msk.f32.mxu1 %vm12849_vm7, %v19300_v44  ;;  %12072 = vmatprep.mubr.msk.f32.mxu0 %vm12849_vm7, %v19300_v44  ;;  %v7193_v26 = vrot.slane %v19549_v7, 4 }
 0x3b7   : > { %v11654_v42 = vpop.f32.mrf.mxu1  ;;  %v11788_v38 = vpop.f32.mrf.mxu0 }
 0x3b8   : > { %v7194_v53 = vsel %vm590_vm0, %v7192_v30, %v7193_v26  ;;  %v6713_v42 = vrot.slane %v19548_v2, 3 }
 0x3b9   : > { %v5505_v52 = vpop.f32.mrf.mxu1  ;;  %11939 = vmatmul.mubr.msk.f32.gmra.mxu1 %vm5196_vm8, %v5986_v57  ;;  %v5862_v4 = vpop.f32.mrf.mxu0  ;;  %12073 = vmatmul.mubr.msk.f32.gmra.mxu0 %vm5196_vm8, %v6389_v12  ;;  %v7195_v57 = vrot.slane %v19550_v61, 4 }
 0x3ba   : > { %v17034_v19 = vadd.f32 %v5857_v28, %v5505_v52  ;;  %11941 = vmatprep.mubr.msk.f32.mxu1 %vm12849_vm7, %v19300_v44  ;;  %12214 = vmatprep.mubr.msk.f32.mxu0 %vm12849_vm7, %v19300_v44  ;;  %v6714_v52 = vrot.slane %v19549_v7, 3  ;;  %v9946_v7 = vld [vmem:[%s18849_s4 + $0xd0] sm:$0xff] }
 0x3bb   : > { %v11657_v16 = vpop.f32.mrf.mxu1  ;;  %v11791_v41 = vpop.f32.mrf.mxu0 }
 0x3bc   : > { %v9947_v16 = vld [vmem:[%s18849_s4 + $0xd8] sm:$0xff]  ;;  %v7196_v41 = vsel %vm590_vm0, %v7193_v26, %v7195_v57  ;;  %v7197_v26 = vrot.slane %v19554_v56, 4 }
 0x3bd   : > { %v5510_v38 = vpop.f32.mrf.mxu1  ;;  %11942 = vmatmul.mubr.msk.f32.gmra.mxu1 %vm5196_vm8, %v5985_v22  ;;  %v5867_v28 = vpop.f32.mrf.mxu0  ;;  %12215 = vmatmul.mubr.msk.f32.vlgmr.msra.gmra.mxu0 %vm5196_vm8, %v7194_v53  ;;  %v6715_v22 = vsel %vm2169_vm4, %v6713_v42, %v6714_v52 }
 0x3be   : > { %v17046_v12 = vadd.f32 %v5862_v4, %v5510_v38  ;;  %12083 = vmatprep.mubr.msk.f32.mxu1 %vm12849_vm7, %v19300_v44  ;;  %12217 = vmatprep.mubr.msk.f32.mxu0 %vm12849_vm7, %v19300_v44  ;;  %v6716_v4 = vrot.slane %v19550_v61, 3 }
 0x3bf   : > { %v11660_v30 = vpop.f32.mrf.mxu1  ;;  %v11794_v2 = vpop.f32.mrf.mxu0 }
 0x3c1   : > { %v5515_v53 = vpop.f32.mrf.mxu1  ;;  %12084 = vmatmul.mubr.msk.f32.vlgmr.msra.gmra.mxu1 %vm5196_vm8, %v6715_v22  ;;  %v5872_v38 = vpop.f32.mrf.mxu0  ;;  %12218 = vmatmul.mubr.msk.f32.gmra.mxu0 %vm5196_vm8, %v7196_v41  ;;  %v6717_v22 = vsel %vm2169_vm4, %v6714_v52, %v6716_v4  ;;  %v17074_v41 = vsel %vm590_vm0, %v7195_v57, %v7197_v26  ;;  %v6718_v57 = vrot.slane %v19554_v56, 3 }
 0x3c2   : > { %v17064_v30 = vadd.f32 %v5867_v28, %v5515_v53  ;;  %12338 = vmatpush3.msra.mxu1 %v9947_v16  ;;  %12086 = vmatprep.mubr.msk.f32.mxu1 %vm12849_vm7, %v19300_v44  ;;  %19589 = vst [vmem:[#allocation80_spill] sm:$0xff] %v17074_v41  ;;  %v7199_v28 = vrot.slane %v19557_v54, 4 }
 0x3c3   : > { %v11663_v42 = vpop.f32.mrf.mxu1  ;;  %v11797_v2 = vpop.f32.mrf.mxu0  ;;  %12220 = vmatprep.mubr.msk.f32.mxu0 %vm12849_vm7, %v19300_v44  ;;  %12339 = vmatprep.subr.mxu1 %v19300_v44 }
 0x3c4   : > { %19588 = vst [vmem:[#allocation89_spill] sm:$0xff] %v17064_v30  ;;  %12340 = vmatpush3.msra.mxu1 %v9946_v7  ;;  %v9945_v42 = vld [vmem:[%s18849_s4 + $0xc8] sm:$0xff]  ;;  %v17093_v30 = vsel %vm590_vm0, %v7197_v26, %v7199_v28 }
 0x3c5   : > { %v5520_v16 = vpop.f32.mrf.mxu1  ;;  %12087 = vmatmul.mubr.msk.f32.gmra.mxu1 %vm5196_vm8, %v6717_v22  ;;  %v5877_v53 = vpop.f32.mrf.mxu0  ;;  %12221 = vmatmul.mubr.msk.f32.gmra.mxu0 %vm5196_vm8, %v17074_v41  ;;  %v6719_v22 = vsel %vm2169_vm4, %v6716_v4, %v6718_v57  ;;  %19591 = vst [vmem:[#allocation49_spill] sm:$0xff] %v17093_v30  ;;  %v7201_v4 = vrot.slane %v19558_v63, 4 }
 0x3c6   : > { %v17083_v2 = vadd.f32 %v5872_v38, %v5520_v16  ;;  %12089 = vmatprep.mubr.msk.f32.mxu1 %vm12849_vm7, %v19300_v44  ;;  %12223 = vmatprep.mubr.msk.f32.mxu0 %vm12849_vm7, %v19300_v44  ;;  %v6720_v38 = vrot.slane %v19557_v54, 3 }
 0x3c7   : > { %v11666_v52 = vpop.f32.mrf.mxu1  ;;  %v11800_v7 = vpop.f32.mrf.mxu0  ;;  %12341 = vmatprep.subr.mxu1 %v19300_v44 }
 0x3c8   : > { %19590 = vst [vmem:[#allocation86_spill] sm:$0xff] %v17083_v2  ;;  %12342 = vmatpush3.msra.mxu1 %v9945_v42  ;;  %v9944_v52 = vld [vmem:[%s18849_s4 + $0xc0] sm:$0xff] }
 0x3c9   : > { %v5525_v16 = vpop.f32.mrf.mxu1  ;;  %12090 = vmatmul.mubr.msk.f32.gmra.mxu1 %vm5196_vm8, %v6719_v22  ;;  %v5882_v2 = vpop.f32.mrf.mxu0  ;;  %12224 = vmatmul.mubr.msk.f32.gmra.mxu0 %vm5196_vm8, %v17093_v30  ;;  %v6721_v22 = vsel %vm2169_vm4, %v6718_v57, %v6720_v38  ;;  %v17112_v30 = vsel %vm590_vm0, %v7199_v28, %v7201_v4  ;;  %v6722_v57 = vrot.slane %v19558_v63, 3 }
 0x3ca   : > { %v17102_v7 = vadd.f32 %v5877_v53, %v5525_v16  ;;  %12092 = vmatprep.mubr.msk.f32.mxu1 %vm12849_vm7, %v19300_v44  ;;  %12226 = vmatprep.mubr.msk.f32.mxu0 %vm12849_vm7, %v19300_v44  ;;  %19593 = vst [vmem:[#allocation95_spill] sm:$0xff] %v17112_v30  ;;  %v7203_v53 = vrot.slane %v19559_v50, 4 }
 0x3cb   : > { %v11669_v26 = vpop.f32.mrf.mxu1  ;;  %v11803_v42 = vpop.f32.mrf.mxu0  ;;  %12343 = vmatprep.subr.mxu1 %v19300_v44 }
 0x3cc   : > { %19592 = vst [vmem:[#allocation48_spill] sm:$0xff] %v17102_v7  ;;  %12344 = vmatpush3.msra.mxu1 %v9944_v52  ;;  %v6723_v52 = vsel %vm2169_vm4, %v6720_v38, %v6722_v57  ;;  %v17128_v42 = vsel %vm590_vm0, %v7201_v4, %v7203_v53  ;;  %v7205_v38 = vrot.slane %v19560_v46, 4 }
 0x3cd   : > { %v5530_v16 = vpop.f32.mrf.mxu1  ;;  %12093 = vmatmul.mubr.msk.f32.gmra.mxu1 %vm5196_vm8, %v6721_v22  ;;  %v5887_v7 = vpop.f32.mrf.mxu0  ;;  %12227 = vmatmul.mubr.msk.f32.gmra.mxu0 %vm5196_vm8, %v17112_v30  ;;  %19595 = vst [vmem:[#allocation60_spill] sm:$0xff] %v17128_v42  ;;  %v7207_v30 = vrot.slane %v19561_v31, 4 }
 0x3ce   : > { %v17118_v41 = vadd.f32 %v5882_v2, %v5530_v16  ;;  %12095 = vmatprep.mubr.msk.f32.mxu1 %vm12849_vm7, %v19300_v44  ;;  %12229 = vmatprep.mubr.msk.f32.mxu0 %vm12849_vm7, %v19300_v44  ;;  %v6724_v2 = vrot.slane %v19559_v50, 3 }
 0x3cf   : > { %v11672_v28 = vpop.f32.mrf.mxu1  ;;  %v11806_v26 = vpop.f32.mrf.mxu0  ;;  %12599 = vmatprep.subr.mxu1 %v19300_v44 }
 0x3d0   : > { %19594 = vst [vmem:[#allocation23_spill] sm:$0xff] %v17118_v41  ;;  %v6725_v26 = vsel %vm2169_vm4, %v6722_v57, %v6724_v2 }
 0x3d1   : > { %v5535_v22 = vpop.f32.mrf.mxu1  ;;  %12096 = vmatmul.mubr.msk.f32.gmra.mxu1 %vm5196_vm8, %v6723_v52  ;;  %v5892_v16 = vpop.f32.mrf.mxu0  ;;  %12230 = vmatmul.mubr.msk.f32.gmra.mxu0 %vm5196_vm8, %v17128_v42  ;;  %v17143_v52 = vsel %vm590_vm0, %v7203_v53, %v7205_v38 }
 0x3d2   : > { %v17134_v41 = vadd.f32 %v5887_v7, %v5535_v22  ;;  %12098 = vmatprep.mubr.msk.f32.mxu1 %vm12849_vm7, %v19300_v44  ;;  %12232 = vmatprep.mubr.msk.f32.mxu0 %vm12849_vm7, %v19300_v44  ;;  %19597 = vst [vmem:[#allocation54_spill] sm:$0xff] %v17143_v52 }
 0x3d3   : > { %v11675_v4 = vpop.f32.mrf.mxu1  ;;  %v11809_v28 = vpop.f32.mrf.mxu0 }
 0x3d4   : > { %19596 = vst [vmem:[#allocation88_spill] sm:$0xff] %v17134_v41  ;;  %v6726_v4 = vrot.slane %v19560_v46, 3  ;;  %v6728_v41 = vrot.slane %v19561_v31, 3 }
 0x3d5   : > { %v5540_v42 = vpop.f32.mrf.mxu1  ;;  %12099 = vmatmul.mubr.msk.f32.gmra.mxu1 %vm5196_vm8, %v6725_v26  ;;  %v5897_v7 = vpop.f32.mrf.mxu0  ;;  %12233 = vmatmul.mubr.msk.f32.gmra.mxu0 %vm5196_vm8, %v17143_v52  ;;  %v17158_v26 = vsel %vm590_vm0, %v7205_v38, %v7207_v30 }
 0x3d6   : > { %v17149_v22 = vadd.f32 %v5892_v16, %v5540_v42  ;;  %12101 = vmatprep.mubr.msk.f32.mxu1 %vm12849_vm7, %v19300_v44  ;;  %12235 = vmatprep.mubr.msk.f32.mxu0 %vm12849_vm7, %v19300_v44  ;;  %v6727_v28 = vsel %vm2169_vm4, %v6724_v2, %v6726_v4  ;;  %19599 = vst [vmem:[#allocation72_spill] sm:$0xff] %v17158_v26  ;;  %v7209_v2 = vrot.slane %v19562_v6, 4 }
 0x3d7   : > { %v11678_v53 = vpop.f32.mrf.mxu1  ;;  %v11812_v57 = vpop.f32.mrf.mxu0 }
 0x3d8   : > { %19598 = vst [vmem:[#allocation11_spill] sm:$0xff] %v17149_v22  ;;  %v9992_v57 = vld [vmem:[%s18849_s4 + $0xf8] sm:$0xff]  ;;  %v17176_v22 = vsel %vm590_vm0, %v7207_v30, %v7209_v2  ;;  %v9991_v30 = vld [vmem:[%s18849_s4 + $0xf0] sm:$0xff] }
 0x3d9   : > { %v5545_v52 = vpop.f32.mrf.mxu1  ;;  %12102 = vmatmul.mubr.msk.f32.gmra.mxu1 %vm5196_vm8, %v6727_v28  ;;  %v6463_v42 = vpop.f32.mrf.mxu0  ;;  %12236 = vmatmul.mubr.msk.f32.gmra.mxu0 %vm5196_vm8, %v17158_v26  ;;  %v6729_v28 = vsel %vm2169_vm4, %v6726_v4, %v6728_v41  ;;  %19601 = vst [vmem:[#allocation96_spill] sm:$0xff] %v17176_v22  ;;  %v6730_v4 = vrot.slane %v19562_v6, 3 }
 0x3da   : > { %v17164_v16 = vadd.f32 %v5897_v7, %v5545_v52  ;;  %12104 = vmatprep.mubr.msk.f32.mxu1 %vm12849_vm7, %v19300_v44  ;;  %12238 = vmatprep.mubr.msk.f32.mxu0 %vm12849_vm7, %v19300_v44  ;;  %v7211_v52 = vrot.slane %v19563_v58, 4 }
 0x3db   : > { %v11681_v38 = vpop.f32.mrf.mxu1  ;;  %v11954_v53 = vpop.f32.mrf.mxu0  ;;  %12469 = vmatpush3.msra.mxu0 %v9992_v57 }
 0x3dc   : > { %19600 = vst [vmem:[#allocation50_spill] sm:$0xff] %v17164_v16  ;;  %12470 = vmatprep.subr.mxu0 %v19300_v44 }
 0x3dd   : > { %v6135_v7 = vpop.f32.mrf.mxu1  ;;  %12105 = vmatmul.mubr.msk.f32.gmra.mxu1 %vm5196_vm8, %v6729_v28  ;;  %v6468_v16 = vpop.f32.mrf.mxu0  ;;  %12239 = vmatmul.mubr.msk.f32.gmra.mxu0 %vm5196_vm8, %v17176_v22  ;;  %v6731_v28 = vsel %vm2169_vm4, %v6728_v41, %v6730_v4 }
 0x3de   : > { %v6339_v38 = vadd.f32 %v6135_v7, %v16684_v36  ;;  %12107 = vmatprep.mubr.msk.f32.mxu1 %vm12849_vm7, %v19300_v44  ;;  %12241 = vmatprep.mubr.msk.f32.mxu0 %vm12849_vm7, %v19300_v44  ;;  %v17194_v36 = vsel %vm590_vm0, %v7209_v2, %v7211_v52  ;;  %v6732_v7 = vrot.slane %v19563_v58, 3 }
 0x3df   : > { %v11823_v53 = vpop.f32.mrf.mxu1  ;;  %v11957_v57 = vpop.f32.mrf.mxu0  ;;  %12471 = vmatpush3.msra.mxu0 %v9991_v30 }
 0x3e0   : > { %v17197_v22 = vadd.f32 %v6463_v42, %v6339_v38  ;;  %v9990_v53 = vld [vmem:[%s18849_s4 + $0xe8] sm:$0xff]  ;;  %v7213_v42 = vrot.slane %v19564_v1, 4  ;;  %12472 = vmatprep.subr.mxu0 %v19300_v44  ;;  %v6733_v30 = vsel %vm2169_vm4, %v6730_v4, %v6732_v7 }
 0x3e1   : > { %v6140_v26 = vpop.f32.mrf.mxu1  ;;  %12108 = vmatmul.mubr.msk.f32.gmra.mxu1 %vm5196_vm8, %v6731_v28  ;;  %v6473_v6 = vpop.f32.mrf.mxu0  ;;  %12242 = vmatmul.mubr.msk.f32.gmra.mxu0 %vm5196_vm8, %v17194_v36  ;;  %v7215_v28 = vrot.slane %v19565_v14, 4 }
 0x3e2   : > { %19602 = vst [vmem:[#allocation67_spill] sm:$0xff] %v17197_v22  ;;  %v6340_v41 = vadd.f32 %v6140_v26, %v16702_v48  ;;  %12110 = vmatprep.mubr.msk.f32.mxu1 %vm12849_vm7, %v19300_v44  ;;  %12244 = vmatprep.mubr.msk.f32.mxu0 %vm12849_vm7, %v19300_v44  ;;  %v17214_v57 = vsel %vm590_vm0, %v7211_v52, %v7213_v42  ;;  %v6734_v52 = vrot.slane %v19564_v1, 3 }
 0x3e3   : > { %v11826_v2 = vpop.f32.mrf.mxu1  ;;  %v11960_v38 = vpop.f32.mrf.mxu0  ;;  %12473 = vmatpush3.msra.mxu0 %v9990_v53 }
 0x3e4   : > { %v17217_v48 = vadd.f32 %v6468_v16, %v6340_v41  ;;  %v9989_v2 = vld [vmem:[%s18849_s4 + $0xe0] sm:$0xff]  ;;  %12474 = vmatprep.subr.mxu0 %v19300_v44  ;;  %v6735_v41 = vsel %vm2169_vm4, %v6732_v7, %v6734_v52  ;;  %v17234_v38 = vsel %vm590_vm0, %v7213_v42, %v7215_v28  ;;  %v7217_v7 = vrot.slane %v19566_v45, 4 }
 0x3e5   : > { %v6145_v26 = vpop.f32.mrf.mxu1  ;;  %12111 = vmatmul.mubr.msk.f32.gmra.mxu1 %vm5196_vm8, %v6733_v30  ;;  %v6478_v22 = vpop.f32.mrf.mxu0  ;;  %12245 = vmatmul.mubr.msk.f32.gmra.mxu0 %vm5196_vm8, %v17214_v57  ;;  %v6736_v30 = vrot.slane %v19565_v14, 3 }
 0x3e6   : > { %19603 = vst [vmem:[#allocation24_spill] sm:$0xff] %v17217_v48  ;;  %v6341_v4 = vadd.f32 %v6145_v26, %v16717_v5  ;;  %12113 = vmatprep.mubr.msk.f32.mxu1 %vm12849_vm7, %v19300_v44  ;;  %12247 = vmatprep.mubr.msk.f32.mxu0 %vm12849_vm7, %v19300_v44 }
 0x3e7   : > { %v11829_v16 = vpop.f32.mrf.mxu1  ;;  %v11963_v53 = vpop.f32.mrf.mxu0  ;;  %12475 = vmatpush3.msra.mxu0 %v9989_v2  ;;  %v6737_v2 = vsel %vm2169_vm4, %v6734_v52, %v6736_v30  ;;  %v6738_v52 = vrot.slane %v19566_v45, 3 }
 0x3e8   : > { %v17237_v5 = vadd.f32 %v6473_v6, %v6341_v4  ;;  %v17250_v4 = vsel %vm590_vm0, %v7215_v28, %v7217_v7  ;;  %v7219_v53 = vrot.slane %v19567_v8, 4 }
 0x3e9   : > { %v6150_v26 = vpop.f32.mrf.mxu1  ;;  %12114 = vmatmul.mubr.msk.f32.gmra.mxu1 %vm5196_vm8, %v6735_v41  ;;  %v6483_v48 = vpop.f32.mrf.mxu0  ;;  %12248 = vmatmul.mubr.msk.f32.gmra.mxu0 %vm5196_vm8, %v17234_v38  ;;  %19605 = vst [vmem:[#allocation52_spill] sm:$0xff] %v17250_v4 }
 0x3ea   : > { %19604 = vst [vmem:[#allocation61_spill] sm:$0xff] %v17237_v5  ;;  %v6342_v16 = vadd.f32 %v6150_v26, %v16727_v27  ;;  %12116 = vmatprep.mubr.msk.f32.mxu1 %vm12849_vm7, %v19300_v44  ;;  %12250 = vmatprep.mubr.msk.f32.mxu0 %vm12849_vm7, %v19300_v44 }
 0x3eb   : > { %v11832_v42 = vpop.f32.mrf.mxu1  ;;  %v11966_v6 = vpop.f32.mrf.mxu0 }
 0x3ec   : > { %v17253_v41 = vadd.f32 %v6478_v22, %v6342_v16  ;;  %v6739_v16 = vsel %vm2169_vm4, %v6736_v30, %v6738_v52  ;;  %v17266_v42 = vsel %vm590_vm0, %v7217_v7, %v7219_v53  ;;  %v6740_v6 = vrot.slane %v19567_v8, 3 }
 0x3ed   : > { %v6155_v27 = vpop.f32.mrf.mxu1  ;;  %12117 = vmatmul.mubr.msk.f32.gmra.mxu1 %vm5196_vm8, %v6737_v2  ;;  %v6488_v26 = vpop.f32.mrf.mxu0  ;;  %12251 = vmatmul.mubr.msk.f32.gmra.mxu0 %vm5196_vm8, %v17250_v4  ;;  %19607 = vst [vmem:[#allocation78_spill] sm:$0xff] %v17266_v42  ;;  %v7221_v30 = vrot.slane %v16093_v35, 4 }
 0x3ee   : > { %19606 = vst [vmem:[#allocation66_spill] sm:$0xff] %v17253_v41  ;;  %v6343_v5 = vadd.f32 %v6155_v27, %v16739_v3  ;;  %12119 = vmatprep.mubr.msk.f32.mxu1 %vm12849_vm7, %v19300_v44  ;;  %12253 = vmatprep.mubr.msk.f32.mxu0 %vm12849_vm7, %v19300_v44 }
 0x3ef   : > { %v11835_v28 = vpop.f32.mrf.mxu1  ;;  %v11969_v22 = vpop.f32.mrf.mxu0 }
 0x3f0   : > { %v17269_v2 = vadd.f32 %v6483_v48, %v6343_v5  ;;  %v6741_v5 = vsel %vm2169_vm4, %v6738_v52, %v6740_v6  ;;  %v17282_v28 = vsel %vm590_vm0, %v7219_v53, %v7221_v30  ;;  %v19610_v22 = vld [vmem:[#allocation73_spill] sm:$0xff]  ;;  %v6742_v52 = vrot.slane %v16093_v35, 3 }
 0x3f1   : > { %v6160_v3 = vpop.f32.mrf.mxu1  ;;  %12120 = vmatmul.mubr.msk.f32.gmra.mxu1 %vm5196_vm8, %v6739_v16  ;;  %v6493_v27 = vpop.f32.mrf.mxu0  ;;  %12254 = vmatmul.mubr.msk.f32.gmra.mxu0 %vm5196_vm8, %v17266_v42  ;;  %19609 = vst [vmem:[#allocation51_spill] sm:$0xff] %v17282_v28  ;;  %v7223_v16 = vrot.slane %v19610_v22, 4  ;;  %v19612_v42 = vld [vmem:[#allocation57_spill] sm:$0xff] }
 0x3f2   : > { %19608 = vst [vmem:[#allocation29_spill] sm:$0xff] %v17269_v2  ;;  %v6344_v41 = vadd.f32 %v6160_v3, %v16748_v24  ;;  %12122 = vmatprep.mubr.msk.f32.mxu1 %vm12849_vm7, %v19300_v44  ;;  %12256 = vmatprep.mubr.msk.f32.mxu0 %vm12849_vm7, %v19300_v44 }
 0x3f3   : > { %v11838_v7 = vpop.f32.mrf.mxu1  ;;  %v11972_v48 = vpop.f32.mrf.mxu0 }
 0x3f4   : > { %v17285_v2 = vadd.f32 %v6488_v26, %v6344_v41  ;;  %v6743_v26 = vsel %vm2169_vm4, %v6740_v6, %v6742_v52  ;;  %v17298_v7 = vsel %vm590_vm0, %v7221_v30, %v7223_v16  ;;  %v6744_v48 = vrot.slane %v19610_v22, 3 }
 0x3f5   : > { %v6165_v24 = vpop.f32.mrf.mxu1  ;;  %12123 = vmatmul.mubr.msk.f32.gmra.mxu1 %vm5196_vm8, %v6741_v5  ;;  %v6498_v3 = vpop.f32.mrf.mxu0  ;;  %12257 = vmatmul.mubr.msk.f32.gmra.mxu0 %vm5196_vm8, %v17282_v28  ;;  %19613 = vst [vmem:[#allocation26_spill] sm:$0xff] %v17298_v7  ;;  %v7225_v6 = vrot.slane %v16138_v32, 4 }
 0x3f6   : > { %19611 = vst [vmem:[#allocation7_spill] sm:$0xff] %v17285_v2  ;;  %v6345_v4 = vadd.f32 %v6165_v24, %v19612_v42  ;;  %12125 = vmatprep.mubr.msk.f32.mxu1 %vm12849_vm7, %v19300_v44  ;;  %12259 = vmatprep.mubr.msk.f32.mxu0 %vm12849_vm7, %v19300_v44 }
 0x3f7   : > { %v11841_v53 = vpop.f32.mrf.mxu1  ;;  %v11975_v41 = vpop.f32.mrf.mxu0 }
 0x3f8   : > { %v17301_v5 = vadd.f32 %v6493_v27, %v6345_v4  ;;  %v6745_v27 = vsel %vm2169_vm4, %v6742_v52, %v6744_v48  ;;  %v17314_v53 = vsel %vm590_vm0, %v7223_v16, %v7225_v6  ;;  %v19616_v41 = vld [vmem:[#allocation77_spill] sm:$0xff]  ;;  %v6746_v52 = vrot.slane %v16138_v32, 3 }
 0x3f9   : > { %v6170_v42 = vpop.f32.mrf.mxu1  ;;  %12126 = vmatmul.mubr.msk.f32.gmra.mxu1 %vm5196_vm8, %v6743_v26  ;;  %v6503_v24 = vpop.f32.mrf.mxu0  ;;  %12260 = vmatmul.mubr.msk.f32.gmra.mxu0 %vm5196_vm8, %v17298_v7  ;;  %19615 = vst [vmem:[#allocation13_spill] sm:$0xff] %v17314_v53  ;;  %v7227_v26 = vrot.slane %v19616_v41, 4  ;;  %v19618_v7 = vld [vmem:[#allocation33_spill] sm:$0xff] }
 0x3fa   : > { %19614 = vst [vmem:[#allocation64_spill] sm:$0xff] %v17301_v5  ;;  %v6346_v2 = vadd.f32 %v6170_v42, %v16768_v10  ;;  %12128 = vmatprep.mubr.msk.f32.mxu1 %vm12849_vm7, %v19300_v44  ;;  %12262 = vmatprep.mubr.msk.f32.mxu0 %vm12849_vm7, %v19300_v44 }
 0x3fb   : > { %v11844_v30 = vpop.f32.mrf.mxu1  ;;  %v11978_v4 = vpop.f32.mrf.mxu0 }
 0x3fc   : > { %v17317_v5 = vadd.f32 %v6498_v3, %v6346_v2  ;;  %v6747_v3 = vsel %vm2169_vm4, %v6744_v48, %v6746_v52  ;;  %v17330_v30 = vsel %vm590_vm0, %v7225_v6, %v7227_v26  ;;  %v6748_v4 = vrot.slane %v19616_v41, 3 }
 0x3fd   : > { %v6175_v10 = vpop.f32.mrf.mxu1  ;;  %12129 = vmatmul.mubr.msk.f32.gmra.mxu1 %vm5196_vm8, %v6745_v27  ;;  %v6508_v42 = vpop.f32.mrf.mxu0  ;;  %12263 = vmatmul.mubr.msk.f32.gmra.mxu0 %vm5196_vm8, %v17314_v53  ;;  %19619 = vst [vmem:[#allocation59_spill] sm:$0xff] %v17330_v30  ;;  %v7229_v48 = vrot.slane %v16182_v11, 4 }
 0x3fe   : > { %19617 = vst [vmem:[#allocation21_spill] sm:$0xff] %v17317_v5  ;;  %v6347_v28 = vadd.f32 %v6175_v10, %v19618_v7  ;;  %12131 = vmatprep.mubr.msk.f32.mxu1 %vm12849_vm7, %v19300_v44  ;;  %12265 = vmatprep.mubr.msk.f32.mxu0 %vm12849_vm7, %v19300_v44 }
 0x3ff   : > { %v11847_v16 = vpop.f32.mrf.mxu1  ;;  %v11981_v2 = vpop.f32.mrf.mxu0 }
 0x400   : > { %v17333_v27 = vadd.f32 %v6503_v24, %v6347_v28  ;;  %v6749_v24 = vsel %vm2169_vm4, %v6746_v52, %v6748_v4  ;;  %v17346_v16 = vsel %vm590_vm0, %v7227_v26, %v7229_v48  ;;  %v19622_v2 = vld [vmem:[#allocation62_spill] sm:$0xff]  ;;  %v6750_v52 = vrot.slane %v16182_v11, 3 }
 0x401   : > { %v6180_v7 = vpop.f32.mrf.mxu1  ;;  %12132 = vmatmul.mubr.msk.f32.gmra.mxu1 %vm5196_vm8, %v6747_v3  ;;  %v6513_v10 = vpop.f32.mrf.mxu0  ;;  %12266 = vmatmul.mubr.msk.f32.gmra.mxu0 %vm5196_vm8, %v17330_v30  ;;  %19621 = vst [vmem:[#allocation25_spill] sm:$0xff] %v17346_v16  ;;  %v7231_v3 = vrot.slane %v19622_v2, 4  ;;  %v19624_v30 = vld [vmem:[#allocation92_spill] sm:$0xff] }
 0x402   : > { %19620 = vst [vmem:[#allocation27_spill] sm:$0xff] %v17333_v27  ;;  %v6348_v5 = vadd.f32 %v6180_v7, %v16788_v25  ;;  %12134 = vmatprep.mubr.msk.f32.mxu1 %vm12849_vm7, %v19300_v44  ;;  %12268 = vmatprep.mubr.msk.f32.mxu0 %vm12849_vm7, %v19300_v44 }
 0x403   : > { %v11850_v6 = vpop.f32.mrf.mxu1  ;;  %v11984_v28 = vpop.f32.mrf.mxu0 }
 0x404   : > { %v17349_v27 = vadd.f32 %v6508_v42, %v6348_v5  ;;  %v6751_v42 = vsel %vm2169_vm4, %v6748_v4, %v6750_v52  ;;  %v17362_v6 = vsel %vm590_vm0, %v7229_v48, %v7231_v3  ;;  %v6752_v28 = vrot.slane %v19622_v2, 3 }
 0x405   : > { %v6185_v25 = vpop.f32.mrf.mxu1  ;;  %12135 = vmatmul.mubr.msk.f32.gmra.mxu1 %vm5196_vm8, %v6749_v24  ;;  %v6518_v7 = vpop.f32.mrf.mxu0  ;;  %12269 = vmatmul.mubr.msk.f32.gmra.mxu0 %vm5196_vm8, %v17346_v16  ;;  %19625 = vst [vmem:[#allocation68_spill] sm:$0xff] %v17362_v6  ;;  %v7233_v4 = vrot.slane %v16218_v20, 4 }
 0x406   : > { %19623 = vst [vmem:[#allocation41_spill] sm:$0xff] %v17349_v27  ;;  %v6349_v53 = vadd.f32 %v6185_v25, %v19624_v30  ;;  %12137 = vmatprep.mubr.msk.f32.mxu1 %vm12849_vm7, %v19300_v44  ;;  %12271 = vmatprep.mubr.msk.f32.mxu0 %vm12849_vm7, %v19300_v44 }
 0x407   : > { %v11853_v26 = vpop.f32.mrf.mxu1  ;;  %v11987_v5 = vpop.f32.mrf.mxu0 }
 0x408   : > { %v17365_v24 = vadd.f32 %v6513_v10, %v6349_v53  ;;  %v6753_v10 = vsel %vm2169_vm4, %v6750_v52, %v6752_v28  ;;  %v17378_v26 = vsel %vm590_vm0, %v7231_v3, %v7233_v4  ;;  %v19628_v5 = vld [vmem:[#allocation75_spill] sm:$0xff]  ;;  %v6754_v52 = vrot.slane %v16218_v20, 3 }
 0x409   : > { %v6190_v30 = vpop.f32.mrf.mxu1  ;;  %12138 = vmatmul.mubr.msk.f32.gmra.mxu1 %vm5196_vm8, %v6751_v42  ;;  %v6523_v25 = vpop.f32.mrf.mxu0  ;;  %12272 = vmatmul.mubr.msk.f32.gmra.mxu0 %vm5196_vm8, %v17362_v6  ;;  %19627 = vst [vmem:[#allocation31_spill] sm:$0xff] %v17378_v26  ;;  %v7235_v42 = vrot.slane %v19628_v5, 4  ;;  %v19630_v6 = vld [vmem:[#allocation76_spill] sm:$0xff] }
 0x40a   : > { %19626 = vst [vmem:[#allocation69_spill] sm:$0xff] %v17365_v24  ;;  %v6350_v27 = vadd.f32 %v6190_v30, %v16808_v37  ;;  %12140 = vmatprep.mubr.msk.f32.mxu1 %vm12849_vm7, %v19300_v44  ;;  %12274 = vmatprep.mubr.msk.f32.mxu0 %vm12849_vm7, %v19300_v44 }
 0x40b   : > { %v11856_v48 = vpop.f32.mrf.mxu1  ;;  %v11990_v53 = vpop.f32.mrf.mxu0 }
 0x40c   : > { %v17381_v24 = vadd.f32 %v6518_v7, %v6350_v27  ;;  %v6755_v7 = vsel %vm2169_vm4, %v6752_v28, %v6754_v52  ;;  %v17394_v48 = vsel %vm590_vm0, %v7233_v4, %v7235_v42  ;;  %v6756_v53 = vrot.slane %v19628_v5, 3 }
 0x40d   : > { %v6195_v37 = vpop.f32.mrf.mxu1  ;;  %12141 = vmatmul.mubr.msk.f32.gmra.mxu1 %vm5196_vm8, %v6753_v10  ;;  %v6528_v30 = vpop.f32.mrf.mxu0  ;;  %12275 = vmatmul.mubr.msk.f32.gmra.mxu0 %vm5196_vm8, %v17378_v26  ;;  %19631 = vst [vmem:[#allocation19_spill] sm:$0xff] %v17394_v48  ;;  %v7237_v28 = vrot.slane %v16254_v49, 4 }
 0x40e   : > { %19629 = vst [vmem:[#allocation3_spill] sm:$0xff] %v17381_v24  ;;  %v6351_v16 = vadd.f32 %v6195_v37, %v19630_v6  ;;  %12143 = vmatprep.mubr.msk.f32.mxu1 %vm12849_vm7, %v19300_v44  ;;  %12277 = vmatprep.mubr.msk.f32.mxu0 %vm12849_vm7, %v19300_v44 }
 0x40f   : > { %v11859_v3 = vpop.f32.mrf.mxu1  ;;  %v11993_v27 = vpop.f32.mrf.mxu0 }
 0x410   : > { %v17397_v10 = vadd.f32 %v6523_v25, %v6351_v16  ;;  %v6757_v25 = vsel %vm2169_vm4, %v6754_v52, %v6756_v53  ;;  %v17410_v3 = vsel %vm590_vm0, %v7235_v42, %v7237_v28  ;;  %v19634_v27 = vld [vmem:[#allocation9_spill] sm:$0xff]  ;;  %v6758_v52 = vrot.slane %v16254_v49, 3 }
 0x411   : > { %v6200_v6 = vpop.f32.mrf.mxu1  ;;  %12144 = vmatmul.mubr.msk.f32.gmra.mxu1 %vm5196_vm8, %v6755_v7  ;;  %v6533_v37 = vpop.f32.mrf.mxu0  ;;  %12278 = vmatmul.mubr.msk.f32.gmra.mxu0 %vm5196_vm8, %v17394_v48  ;;  %19633 = vst [vmem:[#allocation40_spill] sm:$0xff] %v17410_v3  ;;  %v7239_v7 = vrot.slane %v19634_v27, 4  ;;  %v19636_v48 = vld [vmem:[#allocation84_spill] sm:$0xff] }
 0x412   : > { %19632 = vst [vmem:[#allocation30_spill] sm:$0xff] %v17397_v10  ;;  %v6352_v24 = vadd.f32 %v6200_v6, %v16828_v18  ;;  %12146 = vmatprep.mubr.msk.f32.mxu1 %vm12849_vm7, %v19300_v44  ;;  %12280 = vmatprep.mubr.msk.f32.mxu0 %vm12849_vm7, %v19300_v44 }
 0x413   : > { %v11862_v4 = vpop.f32.mrf.mxu1  ;;  %v11996_v16 = vpop.f32.mrf.mxu0 }
 0x414   : > { %v17413_v10 = vadd.f32 %v6528_v30, %v6352_v24  ;;  %v6759_v30 = vsel %vm2169_vm4, %v6756_v53, %v6758_v52  ;;  %v17426_v4 = vsel %vm590_vm0, %v7237_v28, %v7239_v7  ;;  %v6760_v16 = vrot.slane %v19634_v27, 3 }
 0x415   : > { %v6205_v18 = vpop.f32.mrf.mxu1  ;;  %12147 = vmatmul.mubr.msk.f32.gmra.mxu1 %vm5196_vm8, %v6757_v25  ;;  %v6538_v6 = vpop.f32.mrf.mxu0  ;;  %12281 = vmatmul.mubr.msk.f32.gmra.mxu0 %vm5196_vm8, %v17410_v3  ;;  %19637 = vst [vmem:[#allocation12_spill] sm:$0xff] %v17426_v4  ;;  %v7241_v53 = vrot.slane %v16290_v43, 4 }
 0x416   : > { %19635 = vst [vmem:[#allocation17_spill] sm:$0xff] %v17413_v10  ;;  %v6353_v26 = vadd.f32 %v6205_v18, %v19636_v48  ;;  %12149 = vmatprep.mubr.msk.f32.mxu1 %vm12849_vm7, %v19300_v44  ;;  %12283 = vmatprep.mubr.msk.f32.mxu0 %vm12849_vm7, %v19300_v44 }
 0x417   : > { %v11865_v42 = vpop.f32.mrf.mxu1  ;;  %v11999_v24 = vpop.f32.mrf.mxu0 }
 0x418   : > { %v17429_v25 = vadd.f32 %v6533_v37, %v6353_v26  ;;  %v6761_v37 = vsel %vm2169_vm4, %v6758_v52, %v6760_v16  ;;  %v17442_v42 = vsel %vm590_vm0, %v7239_v7, %v7241_v53  ;;  %v19640_v24 = vld [vmem:[#allocation47_spill] sm:$0xff]  ;;  %v6762_v52 = vrot.slane %v16290_v43, 3 }
 0x419   : > { %v6210_v48 = vpop.f32.mrf.mxu1  ;;  %12150 = vmatmul.mubr.msk.f32.gmra.mxu1 %vm5196_vm8, %v6759_v30  ;;  %v6543_v18 = vpop.f32.mrf.mxu0  ;;  %12284 = vmatmul.mubr.msk.f32.gmra.mxu0 %vm5196_vm8, %v17426_v4  ;;  %19639 = vst [vmem:[#allocation65_spill] sm:$0xff] %v17442_v42  ;;  %v7243_v30 = vrot.slane %v19640_v24, 4  ;;  %v19642_v4 = vld [vmem:[#allocation43_spill] sm:$0xff] }
 0x41a   : > { %19638 = vst [vmem:[#allocation10_spill] sm:$0xff] %v17429_v25  ;;  %v6354_v10 = vadd.f32 %v6210_v48, %v16848_v39  ;;  %12152 = vmatprep.mubr.msk.f32.mxu1 %vm12849_vm7, %v19300_v44  ;;  %12286 = vmatprep.mubr.msk.f32.mxu0 %vm12849_vm7, %v19300_v44 }
 0x41b   : > { %v11868_v28 = vpop.f32.mrf.mxu1  ;;  %v12002_v26 = vpop.f32.mrf.mxu0 }
 0x41c   : > { %v17445_v25 = vadd.f32 %v6538_v6, %v6354_v10  ;;  %v6763_v6 = vsel %vm2169_vm4, %v6760_v16, %v6762_v52  ;;  %v17458_v28 = vsel %vm590_vm0, %v7241_v53, %v7243_v30  ;;  %v6764_v26 = vrot.slane %v19640_v24, 3 }
 0x41d   : > { %v6215_v39 = vpop.f32.mrf.mxu1  ;;  %12153 = vmatmul.mubr.msk.f32.gmra.mxu1 %vm5196_vm8, %v6761_v37  ;;  %v6548_v48 = vpop.f32.mrf.mxu0  ;;  %12287 = vmatmul.mubr.msk.f32.gmra.mxu0 %vm5196_vm8, %v17442_v42  ;;  %19643 = vst [vmem:[#allocation28_spill] sm:$0xff] %v17458_v28  ;;  %v7245_v16 = vrot.slane %v16331_v21, 4 }
 0x41e   : > { %19641 = vst [vmem:[#allocation63_spill] sm:$0xff] %v17445_v25  ;;  %v6355_v3 = vadd.f32 %v6215_v39, %v19642_v4  ;;  %12155 = vmatprep.mubr.msk.f32.mxu1 %vm12849_vm7, %v19300_v44  ;;  %12289 = vmatprep.mubr.msk.f32.mxu0 %vm12849_vm7, %v19300_v44 }
 0x41f   : > { %v11871_v7 = vpop.f32.mrf.mxu1  ;;  %v12005_v10 = vpop.f32.mrf.mxu0 }
 0x420   : > { %v17461_v37 = vadd.f32 %v6543_v18, %v6355_v3  ;;  %v6765_v18 = vsel %vm2169_vm4, %v6762_v52, %v6764_v26  ;;  %v17474_v7 = vsel %vm590_vm0, %v7243_v30, %v7245_v16  ;;  %v19646_v10 = vld [vmem:[#allocation81_spill] sm:$0xff]  ;;  %v6766_v52 = vrot.slane %v16331_v21, 3 }
 0x421   : > { %v6220_v4 = vpop.f32.mrf.mxu1  ;;  %12156 = vmatmul.mubr.msk.f32.gmra.mxu1 %vm5196_vm8, %v6763_v6  ;;  %v6553_v39 = vpop.f32.mrf.mxu0  ;;  %12290 = vmatmul.mubr.msk.f32.gmra.mxu0 %vm5196_vm8, %v17458_v28  ;;  %19645 = vst [vmem:[#allocation57_spill] sm:$0xff] %v17474_v7  ;;  %v7247_v6 = vrot.slane %v19646_v10, 4  ;;  %v19648_v28 = vld [vmem:[#allocation22_spill] sm:$0xff] }
 0x422   : > { %19644 = vst [vmem:[#allocation20_spill] sm:$0xff] %v17461_v37  ;;  %v6356_v25 = vadd.f32 %v6220_v4, %v16868_v40  ;;  %12158 = vmatprep.mubr.msk.f32.mxu1 %vm12849_vm7, %v19300_v44  ;;  %12292 = vmatprep.mubr.msk.f32.mxu0 %vm12849_vm7, %v19300_v44 }
 0x423   : > { %v11874_v53 = vpop.f32.mrf.mxu1  ;;  %v12008_v3 = vpop.f32.mrf.mxu0 }
 0x424   : > { %v17477_v37 = vadd.f32 %v6548_v48, %v6356_v25  ;;  %v6767_v48 = vsel %vm2169_vm4, %v6764_v26, %v6766_v52  ;;  %v17490_v53 = vsel %vm590_vm0, %v7245_v16, %v7247_v6  ;;  %v6768_v3 = vrot.slane %v19646_v10, 3  ;;  %v19652_v26 = vld [vmem:[#allocation35_spill] sm:$0xff] }
 0x425   : > { %v6225_v40 = vpop.f32.mrf.mxu1  ;;  %12159 = vmatmul.mubr.msk.f32.gmra.mxu1 %vm5196_vm8, %v6765_v18  ;;  %v6558_v4 = vpop.f32.mrf.mxu0  ;;  %12293 = vmatmul.mubr.msk.f32.gmra.mxu0 %vm5196_vm8, %v17474_v7  ;;  %19649 = vst [vmem:[#allocation92_spill] sm:$0xff] %v17490_v53  ;;  %v7249_v16 = vrot.slane %v19652_v26, 4  ;;  %v19656_v10 = vld [vmem:[#allocation87_spill] sm:$0xff] }
 0x426   : > { %19647 = vst [vmem:[#allocation33_spill] sm:$0xff] %v17477_v37  ;;  %v6357_v42 = vadd.f32 %v6225_v40, %v19648_v28  ;;  %12161 = vmatprep.mubr.msk.f32.mxu1 %vm12849_vm7, %v19300_v44  ;;  %12295 = vmatprep.mubr.msk.f32.mxu0 %vm12849_vm7, %v19300_v44  ;;  %v19651_v37 = vld [vmem:[#allocation93_spill] sm:$0xff] }
 0x427   : > { %v11877_v30 = vpop.f32.mrf.mxu1  ;;  %v12011_v25 = vpop.f32.mrf.mxu0 }
 0x428   : > { %v17493_v18 = vadd.f32 %v6553_v39, %v6357_v42  ;;  %v6769_v39 = vsel %vm2169_vm4, %v6766_v52, %v6768_v3  ;;  %v17506_v25 = vsel %vm590_vm0, %v7247_v6, %v7249_v16  ;;  %v6770_v52 = vrot.slane %v19652_v26, 3 }
 0x429   : > { %v6230_v28 = vpop.f32.mrf.mxu1  ;;  %12162 = vmatmul.mubr.msk.f32.gmra.mxu1 %vm5196_vm8, %v6767_v48  ;;  %v6563_v40 = vpop.f32.mrf.mxu0  ;;  %12296 = vmatmul.mubr.msk.f32.gmra.mxu0 %vm5196_vm8, %v17490_v53  ;;  %19653 = vst [vmem:[#allocation84_spill] sm:$0xff] %v17506_v25  ;;  %v19654_v48 = vld [vmem:[#allocation55_spill] sm:$0xff] }
 0x42a   : > { %19650 = vst [vmem:[#allocation76_spill] sm:$0xff] %v17493_v18  ;;  %v6358_v7 = vadd.f32 %v6230_v28, %v19651_v37  ;;  %12164 = vmatprep.mubr.msk.f32.mxu1 %vm12849_vm7, %v19300_v44  ;;  %12298 = vmatprep.mubr.msk.f32.mxu0 %vm12849_vm7, %v19300_v44  ;;  %v7251_v18 = vrot.slane %v19654_v48, 4 }
 0x42b   : > { %v11880_v30 = vpop.f32.mrf.mxu1  ;;  %v12014_v42 = vpop.f32.mrf.mxu0 }
 0x42c   : > { %v17509_v53 = vadd.f32 %v6558_v4, %v6358_v7  ;;  %v6771_v4 = vsel %vm2169_vm4, %v6768_v3, %v6770_v52  ;;  %v17522_v30 = vsel %vm590_vm0, %v7249_v16, %v7251_v18  ;;  %v6772_v42 = vrot.slane %v19654_v48, 3  ;;  %v19660_v3 = vld [vmem:[#allocation32_spill] sm:$0xff] }
 0x42d   : > { %v6235_v37 = vpop.f32.mrf.mxu1  ;;  %12165 = vmatmul.mubr.msk.f32.gmra.mxu1 %vm5196_vm8, %v6769_v39  ;;  %v6568_v28 = vpop.f32.mrf.mxu0  ;;  %12299 = vmatmul.mubr.msk.f32.gmra.mxu0 %vm5196_vm8, %v17506_v25  ;;  %19657 = vst [vmem:[#allocation22_spill] sm:$0xff] %v17522_v30  ;;  %v7253_v16 = vrot.slane %v19660_v3, 4 }
 0x42e   : > { %19655 = vst [vmem:[#allocation43_spill] sm:$0xff] %v17509_v53  ;;  %v6359_v21 = vadd.f32 %v6235_v37, %v19656_v10  ;;  %12167 = vmatprep.mubr.msk.f32.mxu1 %vm12849_vm7, %v19300_v44  ;;  %12301 = vmatprep.mubr.msk.f32.mxu0 %vm12849_vm7, %v19300_v44  ;;  %v19659_v53 = vld [vmem:[#allocation58_spill] sm:$0xff] }
 0x42f   : > { %v11883_v6 = vpop.f32.mrf.mxu1  ;;  %v12017_v7 = vpop.f32.mrf.mxu0 }
 0x430   : > { %v17525_v39 = vadd.f32 %v6563_v40, %v6359_v21  ;;  %v6773_v40 = vsel %vm2169_vm4, %v6770_v52, %v6772_v42  ;;  %v17538_v7 = vsel %vm590_vm0, %v7251_v18, %v7253_v16  ;;  %v6774_v52 = vrot.slane %v19660_v3, 3 }
 0x431   : > { %v6240_v10 = vpop.f32.mrf.mxu1  ;;  %12168 = vmatmul.mubr.msk.f32.gmra.mxu1 %vm5196_vm8, %v6771_v4  ;;  %v6573_v37 = vpop.f32.mrf.mxu0  ;;  %12302 = vmatmul.mubr.msk.f32.gmra.mxu0 %vm5196_vm8, %v17522_v30  ;;  %19661 = vst [vmem:[#allocation87_spill] sm:$0xff] %v17538_v7  ;;  %v19662_v4 = vld [vmem:[#allocation90_spill] sm:$0xff] }
 0x432   : > { %19658 = vst [vmem:[#allocation93_spill] sm:$0xff] %v17525_v39  ;;  %v6360_v25 = vadd.f32 %v6240_v10, %v19659_v53  ;;  %12170 = vmatprep.mubr.msk.f32.mxu1 %vm12849_vm7, %v19300_v44  ;;  %12304 = vmatprep.mubr.msk.f32.mxu0 %vm12849_vm7, %v19300_v44  ;;  %v7255_v39 = vrot.slane %v19662_v4, 4 }
 0x433   : > { %v11886_v6 = vpop.f32.mrf.mxu1  ;;  %v12020_v21 = vpop.f32.mrf.mxu0 }
 0x434   : > { %v17541_v30 = vadd.f32 %v6568_v28, %v6360_v25  ;;  %v6775_v28 = vsel %vm2169_vm4, %v6772_v42, %v6774_v52  ;;  %v17554_v6 = vsel %vm590_vm0, %v7253_v16, %v7255_v39  ;;  %v6776_v21 = vrot.slane %v19662_v4, 3 }
 0x435   : > { %v6245_v53 = vpop.f32.mrf.mxu1  ;;  %12171 = vmatmul.mubr.msk.f32.gmra.mxu1 %vm5196_vm8, %v6773_v40  ;;  %v6578_v10 = vpop.f32.mrf.mxu0  ;;  %12305 = vmatmul.mubr.msk.f32.gmra.mxu0 %vm5196_vm8, %v17538_v7  ;;  %19664 = vst [vmem:[#allocation97_spill] sm:$0xff] %v17554_v6  ;;  %v7257_v42 = vrot.slane %v16464_v62, 4 }
 0x436   : > { %19663 = vst [vmem:[#allocation58_spill] sm:$0xff] %v17541_v30  ;;  %v6361_v48 = vadd.f32 %v6245_v53, %v16921_v34  ;;  %12173 = vmatprep.mubr.msk.f32.mxu1 %vm12849_vm7, %v19300_v44  ;;  %12307 = vmatprep.mubr.msk.f32.mxu0 %vm12849_vm7, %v19300_v44  ;;  %v19666_v30 = vld [vmem:[#allocation85_spill] sm:$0xff] }
 0x437   : > { %v11889_v18 = vpop.f32.mrf.mxu1  ;;  %v12023_v25 = vpop.f32.mrf.mxu0 }
 0x438   : > { %v17557_v40 = vadd.f32 %v6573_v37, %v6361_v48  ;;  %v6777_v37 = vsel %vm2169_vm4, %v6774_v52, %v6776_v21  ;;  %v17570_v18 = vsel %vm590_vm0, %v7255_v39, %v7257_v42  ;;  %v7259_v25 = vrot.slane %v16474_v0, 4 }
 0x439   : > { %v6250_v34 = vpop.f32.mrf.mxu1  ;;  %12174 = vmatmul.mubr.msk.f32.gmra.mxu1 %vm5196_vm8, %v6775_v28  ;;  %v6583_v53 = vpop.f32.mrf.mxu0  ;;  %12308 = vmatmul.mubr.msk.f32.gmra.mxu0 %vm5196_vm8, %v17554_v6  ;;  %v6778_v52 = vrot.slane %v16464_v62, 3 }
 0x43a   : > { %19665 = vst [vmem:[#allocation98_spill] sm:$0xff] %v17557_v40  ;;  %v6362_v7 = vadd.f32 %v6250_v34, %v19666_v30  ;;  %12176 = vmatprep.mubr.msk.f32.mxu1 %vm12849_vm7, %v19300_v44  ;;  %12310 = vmatprep.mubr.msk.f32.mxu0 %vm12849_vm7, %v19300_v44  ;;  %v19668_v40 = vld [vmem:[#allocation44_spill] sm:$0xff] }
 0x43b   : > { %v11892_v16 = vpop.f32.mrf.mxu1  ;;  %v12026_v48 = vpop.f32.mrf.mxu0 }
 0x43c   : > { %v17573_v28 = vadd.f32 %v6578_v10, %v6362_v7  ;;  %v6779_v10 = vsel %vm2169_vm4, %v6776_v21, %v6778_v52  ;;  %v17586_v16 = vsel %vm590_vm0, %v7257_v42, %v7259_v25  ;;  %v6780_v48 = vrot.slane %v16474_v0, 3 }
 0x43d   : > { %v6255_v30 = vpop.f32.mrf.mxu1  ;;  %12177 = vmatmul.mubr.msk.f32.gmra.mxu1 %vm5196_vm8, %v6777_v37  ;;  %v6588_v34 = vpop.f32.mrf.mxu0  ;;  %12311 = vmatmul.mubr.msk.f32.gmra.mxu0 %vm5196_vm8, %v17570_v18  ;;  %v7261_v21 = vrot.slane %v16501_v47, 4 }
 0x43e   : > { %19667 = vst [vmem:[#allocation85_spill] sm:$0xff] %v17573_v28  ;;  %v6363_v6 = vadd.f32 %v6255_v30, %v19668_v40  ;;  %12179 = vmatprep.mubr.msk.f32.mxu1 %vm12849_vm7, %v19300_v44  ;;  %12313 = vmatprep.mubr.msk.f32.mxu0 %vm12849_vm7, %v19300_v44 }
 0x43f   : > { %v11895_v39 = vpop.f32.mrf.mxu1  ;;  %v12029_v7 = vpop.f32.mrf.mxu0 }
 0x440   : > { %v17589_v37 = vadd.f32 %v6583_v53, %v6363_v6  ;;  %v6781_v53 = vsel %vm2169_vm4, %v6778_v52, %v6780_v48  ;;  %v17602_v39 = vsel %vm590_vm0, %v7259_v25, %v7261_v21  ;;  %v7263_v7 = vrot.slane %v16509_v55, 4 }
 0x441   : > { %v6260_v40 = vpop.f32.mrf.mxu1  ;;  %12180 = vmatmul.mubr.msk.f32.gmra.mxu1 %vm5196_vm8, %v6779_v10  ;;  %v6593_v30 = vpop.f32.mrf.mxu0  ;;  %12314 = vmatmul.mubr.msk.f32.gmra.mxu0 %vm5196_vm8, %v17586_v16  ;;  %v6782_v52 = vrot.slane %v16501_v47, 3 }
 0x442   : > { %19669 = vst [vmem:[#allocation44_spill] sm:$0xff] %v17589_v37  ;;  %v6364_v28 = vadd.f32 %v6260_v40, %v16954_v17  ;;  %12182 = vmatprep.mubr.msk.f32.mxu1 %vm12849_vm7, %v19300_v44  ;;  %12316 = vmatprep.mubr.msk.f32.mxu0 %vm12849_vm7, %v19300_v44 }
 0x443   : > { %v11898_v42 = vpop.f32.mrf.mxu1  ;;  %v12032_v6 = vpop.f32.mrf.mxu0 }
 0x444   : > { %v17605_v10 = vadd.f32 %v6588_v34, %v6364_v28  ;;  %v6783_v34 = vsel %vm2169_vm4, %v6780_v48, %v6782_v52  ;;  %v17618_v42 = vsel %vm590_vm0, %v7261_v21, %v7263_v7  ;;  %v6784_v6 = vrot.slane %v16509_v55, 3 }
 0x445   : > { %v6265_v17 = vpop.f32.mrf.mxu1  ;;  %12183 = vmatmul.mubr.msk.f32.gmra.mxu1 %vm5196_vm8, %v6781_v53  ;;  %v6598_v40 = vpop.f32.mrf.mxu0  ;;  %12317 = vmatmul.mubr.msk.f32.gmra.mxu0 %vm5196_vm8, %v17602_v39  ;;  %v7265_v48 = vrot.slane %v16547_v9, 4 }
 0x446   : > { %19670 = vst [vmem:[#allocation99_spill] sm:$0xff] %v17605_v10  ;;  %v6365_v37 = vadd.f32 %v6265_v17, %v16970_v51  ;;  %12185 = vmatprep.mubr.msk.f32.mxu1 %vm12849_vm7, %v19300_v44  ;;  %12319 = vmatprep.mubr.msk.f32.mxu0 %vm12849_vm7, %v19300_v44 }
 0x447   : > { %v11901_v25 = vpop.f32.mrf.mxu1  ;;  %v12035_v28 = vpop.f32.mrf.mxu0 }
 0x448   : > { %v17621_v53 = vadd.f32 %v6593_v30, %v6365_v37  ;;  %v6785_v30 = vsel %vm2169_vm4, %v6782_v52, %v6784_v6  ;;  %v17634_v25 = vsel %vm590_vm0, %v7263_v7, %v7265_v48  ;;  %v7267_v28 = vrot.slane %v16554_v29, 4 }
 0x449   : > { %v6270_v51 = vpop.f32.mrf.mxu1  ;;  %12186 = vmatmul.mubr.msk.f32.gmra.mxu1 %vm5196_vm8, %v6783_v34  ;;  %v6603_v17 = vpop.f32.mrf.mxu0  ;;  %12320 = vmatmul.mubr.msk.f32.gmra.mxu0 %vm5196_vm8, %v17618_v42  ;;  %v6786_v52 = vrot.slane %v16547_v9, 3 }
 0x44a   : > { %19671 = vst [vmem:[#allocation100_spill] sm:$0xff] %v17621_v53  ;;  %v6366_v10 = vadd.f32 %v6270_v51, %v16979_v15  ;;  %12188 = vmatprep.mubr.msk.f32.mxu1 %vm12849_vm7, %v19300_v44  ;;  %12322 = vmatprep.mubr.msk.f32.mxu0 %vm12849_vm7, %v19300_v44 }
 0x44b   : > { %v11904_v21 = vpop.f32.mrf.mxu1  ;;  %v12038_v37 = vpop.f32.mrf.mxu0 }
 0x44c   : > { %v17637_v34 = vadd.f32 %v6598_v40, %v6366_v10  ;;  %v6787_v40 = vsel %vm2169_vm4, %v6784_v6, %v6786_v52  ;;  %v17650_v21 = vsel %vm590_vm0, %v7265_v48, %v7267_v28  ;;  %v6788_v37 = vrot.slane %v16554_v29, 3 }
 0x44d   : > { %v6275_v15 = vpop.f32.mrf.mxu1  ;;  %12189 = vmatmul.mubr.msk.f32.gmra.mxu1 %vm5196_vm8, %v6785_v30  ;;  %v6608_v51 = vpop.f32.mrf.mxu0  ;;  %12323 = vmatmul.mubr.msk.f32.gmra.mxu0 %vm5196_vm8, %v17634_v25  ;;  %v7269_v6 = vrot.slane %v16991_v60, 4 }
 0x44e   : > { %19672 = vst [vmem:[#allocation101_spill] sm:$0xff] %v17637_v34  ;;  %v6367_v53 = vadd.f32 %v6275_v15, %v16993_v33  ;;  %12191 = vmatprep.mubr.msk.f32.mxu1 %vm12849_vm7, %v19300_v44  ;;  %12325 = vmatprep.mubr.msk.f32.mxu0 %vm12849_vm7, %v19300_v44 }
 0x44f   : > { %v11907_v7 = vpop.f32.mrf.mxu1  ;;  %v12041_v10 = vpop.f32.mrf.mxu0 }
 0x450   : > { %v17653_v30 = vadd.f32 %v6603_v17, %v6367_v53  ;;  %v6789_v17 = vsel %vm2169_vm4, %v6786_v52, %v6788_v37  ;;  %v17666_v7 = vsel %vm590_vm0, %v7267_v28, %v7269_v6  ;;  %v19674_v10 = vld [vmem:[#allocation94_spill] sm:$0xff]  ;;  %v6790_v28 = vrot.slane %v16991_v60, 3 }
 0x451   : > { %v6280_v33 = vpop.f32.mrf.mxu1  ;;  %12192 = vmatmul.mubr.msk.f32.gmra.mxu1 %vm5196_vm8, %v6787_v40  ;;  %v6613_v15 = vpop.f32.mrf.mxu0  ;;  %12326 = vmatmul.mubr.msk.f32.gmra.mxu0 %vm5196_vm8, %v17650_v21  ;;  %v17669_v40 = vrot.slane %v19674_v10, 4 }
 0x452   : > { %19673 = vst [vmem:[#allocation102_spill] sm:$0xff] %v17653_v30  ;;  %v6368_v34 = vadd.f32 %v6280_v33, %v17005_v59  ;;  %12194 = vmatprep.mubr.msk.f32.mxu1 %vm12849_vm7, %v19300_v44  ;;  %12328 = vmatprep.mubr.msk.f32.mxu0 %vm12849_vm7, %v19300_v44 }
 0x453   : > { %v11910_v48 = vpop.f32.mrf.mxu1  ;;  %v12044_v53 = vpop.f32.mrf.mxu0 }
 0x454   : > { %v17671_v30 = vadd.f32 %v6608_v51, %v6368_v34  ;;  %v6791_v51 = vsel %vm2169_vm4, %v6788_v37, %v6790_v28  ;;  %v17685_v53 = vsel %vm590_vm0, %v7269_v6, %v17669_v40 }
 0x455   : > { %v6285_v59 = vpop.f32.mrf.mxu1  ;;  %12195 = vmatmul.mubr.msk.f32.gmra.mxu1 %vm5196_vm8, %v6789_v17  ;;  %v6618_v33 = vpop.f32.mrf.mxu0  ;;  %12329 = vmatmul.mubr.msk.f32.gmra.mxu0 %vm5196_vm8, %v17666_v7  ;;  %v6792_v17 = vrot.slane %v19674_v10, 3 }
 0x456   : > { %19675 = vst [vmem:[#allocation103_spill] sm:$0xff] %v17671_v30  ;;  %v6369_v48 = vadd.f32 %v6285_v59, %v17016_v13  ;;  %12197 = vmatprep.mubr.msk.f32.mxu1 %vm12849_vm7, %v19300_v44  ;;  %12331 = vmatprep.mubr.msk.f32.mxu0 %vm12849_vm7, %v19300_v44 }
 0x457   : > { %v11913_v52 = vpop.f32.mrf.mxu1  ;;  %v12047_v34 = vpop.f32.mrf.mxu0 }
 0x458   : > { %v17688_v30 = vadd.f32 %v6613_v15, %v6369_v48  ;;  %v6793_v15 = vsel %vm2169_vm4, %v6790_v28, %v6792_v17  ;;  %v8000_v48 = vrot.slane %v19550_v61, 5  ;;  %v8001_v28 = vrot.slane %v19554_v56, 5  ;;  %v19691_v61 = vld [vmem:[#allocation72_spill] sm:$0xff] }
 0x459   : > { %v6290_v13 = vpop.f32.mrf.mxu1  ;;  %12198 = vmatmul.mubr.msk.f32.gmra.mxu1 %vm5196_vm8, %v6791_v51  ;;  %v6623_v59 = vpop.f32.mrf.mxu0  ;;  %12332 = vmatmul.mubr.msk.f32.gmra.mxu0 %vm5196_vm8, %v17685_v53 }
 0x45a   : > { %19676 = vst [vmem:[#allocation104_spill] sm:$0xff] %v17688_v30  ;;  %v6370_v52 = vadd.f32 %v6290_v13, %v17025_v23  ;;  %12200 = vmatprep.mubr.msk.f32.mxu1 %vm12849_vm7, %v19300_v44  ;;  %12334 = vmatprep.mubr.msk.f32.mxu0 %vm12849_vm7, %v19300_v44 }
 0x45b   : > { %v11916_v37 = vpop.f32.mrf.mxu1  ;;  %v12050_v6 = vpop.f32.mrf.mxu0 }
 0x45c   : > { %v17700_v34 = vadd.f32 %v6618_v33, %v6370_v52  ;;  %v8002_v52 = vsel %vm3586_vm5, %v8000_v48, %v8001_v28  ;;  %v8003_v37 = vrot.slane %v19557_v54, 5 }
 0x45d   : > { %v6295_v51 = vpop.f32.mrf.mxu1  ;;  %12201 = vmatmul.mubr.msk.f32.gmra.mxu1 %vm5196_vm8, %v6793_v15  ;;  %v6628_v30 = vpop.f32.mrf.mxu0  ;;  %12335 = vmatmul.mubr.msk.f32.gmra.mxu0 %vm5196_vm8, %v17669_v40 }
 0x45e   : > { %v6371_v23 = vadd.f32 %v6295_v51, %v17034_v19  ;;  %12203 = vmatprep.mubr.msk.f32.mxu1 %vm12849_vm7, %v19300_v44  ;;  %12476 = vmatprep.mubr.msk.f32.mxu0 %vm12849_vm7, %v19300_v44 }
 0x45f   : > { %v11919_v13 = vpop.f32.mrf.mxu1  ;;  %v12053_v33 = vpop.f32.mrf.mxu0 }
 0x460   : > { %v17713_v6 = vadd.f32 %v6623_v59, %v6371_v23  ;;  %v10037_v59 = vld [vmem:[%s18849_s4 + $0x118] sm:$0xff]  ;;  %v8004_v23 = vsel %vm3586_vm5, %v8001_v28, %v8003_v37 }
 0x461   : > { %v6300_v15 = vpop.f32.mrf.mxu1  ;;  %12204 = vmatmul.mubr.msk.f32.gmra.mxu1 %vm5196_vm8, %v6792_v17  ;;  %v6633_v19 = vpop.f32.mrf.mxu0  ;;  %12477 = vmatmul.mubr.msk.f32.vlgmr.msra.gmra.mxu0 %vm5196_vm8, %v8002_v52  ;;  %v19679_v52 = vld [vmem:[#allocation80_spill] sm:$0xff] }
 0x462   : > { %19677 = vst [vmem:[#allocation105_spill] sm:$0xff] %v17713_v6  ;;  %v6372_v51 = vadd.f32 %v6300_v15, %v17046_v12  ;;  %12345 = vmatprep.mubr.msk.f32.mxu1 %vm12849_vm7, %v19300_v44  ;;  %12479 = vmatprep.mubr.msk.f32.mxu0 %vm12849_vm7, %v19300_v44  ;;  %v10036_v15 = vld [vmem:[%s18849_s4 + $0x110] sm:$0xff] }
 0x463   : > { %v11922_v13 = vpop.f32.mrf.mxu1  ;;  %v12056_v48 = vpop.f32.mrf.mxu0 }
 0x464   : > { %v17726_v17 = vadd.f32 %v6628_v30, %v6372_v51  ;;  %v19680_v13 = vld [vmem:[#allocation89_spill] sm:$0xff]  ;;  %v8005_v30 = vrot.slane %v19558_v63, 5 }
 0x465   : > { %v6305_v33 = vpop.f32.mrf.mxu1  ;;  %12346 = vmatmul.mubr.msk.f32.vlgmr.msra.gmra.mxu1 %vm5196_vm8, %v19679_v52  ;;  %v17730_v12 = vpop.f32.mrf.mxu0  ;;  %12480 = vmatmul.mubr.msk.f32.gmra.mxu0 %vm5196_vm8, %v8004_v23  ;;  %v8007_v52 = vrot.slane %v19559_v50, 5 }
 0x466   : > { %19678 = vst [vmem:[#allocation106_spill] sm:$0xff] %v17726_v17  ;;  %v6373_v48 = vadd.f32 %v6305_v33, %v19680_v13  ;;  %12600 = vmatpush3.msra.mxu1 %v10037_v59  ;;  %12348 = vmatprep.mubr.msk.f32.mxu1 %vm12849_vm7, %v19300_v44  ;;  %v8006_v23 = vsel %vm3586_vm5, %v8003_v37, %v8005_v30  ;;  %v19682_v33 = vld [vmem:[#allocation49_spill] sm:$0xff]  ;;  %v8015_v17 = vrot.slane %v19563_v58, 5  ;;  %v19693_v58 = vld [vmem:[#allocation96_spill] sm:$0xff] }
 0x467   : > { %v11925_v28 = vpop.f32.mrf.mxu1  ;;  %v12059_v51 = vpop.f32.mrf.mxu0  ;;  %12482 = vmatprep.mubr.msk.f32.mxu0 %vm12849_vm7, %v19300_v44  ;;  %12601 = vmatprep.subr.mxu1 %v19300_v44 }
 0x468   : > { %12602 = vmatpush3.msra.mxu1 %v10036_v15  ;;  %v17745_v54 = vadd.f32 %v6633_v19, %v6373_v48  ;;  %v10035_v28 = vld [vmem:[%s18849_s4 + $0x108] sm:$0xff]  ;;  %v19683_v51 = vld [vmem:[#allocation86_spill] sm:$0xff]  ;;  %v8008_v15 = vsel %vm3586_vm5, %v8005_v30, %v8007_v52  ;;  %v8009_v30 = vrot.slane %v19560_v46, 5 }
 0x469   : > { %v6310_v59 = vpop.f32.mrf.mxu1  ;;  %12349 = vmatmul.mubr.msk.f32.gmra.mxu1 %vm5196_vm8, %v19682_v33  ;;  %v6643_v13 = vpop.f32.mrf.mxu0  ;;  %12483 = vmatmul.mubr.msk.f32.gmra.mxu0 %vm5196_vm8, %v8006_v23  ;;  %v19684_v23 = vld [vmem:[#allocation95_spill] sm:$0xff] }
 0x46a   : > { %19681 = vst [vmem:[#allocation80_spill] sm:$0xff] %v17745_v54  ;;  %v6374_v63 = vadd.f32 %v6310_v59, %v19683_v51  ;;  %12351 = vmatprep.mubr.msk.f32.mxu1 %vm12849_vm7, %v19300_v44  ;;  %12485 = vmatprep.mubr.msk.f32.mxu0 %vm12849_vm7, %v19300_v44  ;;  %v10034_v59 = vld [vmem:[%s18849_s4 + $0x100] sm:$0xff]  ;;  %v19685_v51 = vld [vmem:[#allocation48_spill] sm:$0xff] }
 0x46b   : > { %v11928_v37 = vpop.f32.mrf.mxu1  ;;  %v12062_v19 = vpop.f32.mrf.mxu0  ;;  %12603 = vmatprep.subr.mxu1 %v19300_v44  ;;  %v19686_v54 = vld [vmem:[#allocation60_spill] sm:$0xff] }
 0x46c   : > { %12604 = vmatpush3.msra.mxu1 %v10035_v28  ;;  %v8010_v19 = vsel %vm3586_vm5, %v8007_v52, %v8009_v30 }
 0x46d   : > { %v6315_v48 = vpop.f32.mrf.mxu1  ;;  %12352 = vmatmul.mubr.msk.f32.gmra.mxu1 %vm5196_vm8, %v19684_v23  ;;  %v6648_v33 = vpop.f32.mrf.mxu0  ;;  %12486 = vmatmul.mubr.msk.f32.gmra.mxu0 %vm5196_vm8, %v8008_v15  ;;  %v8011_v15 = vrot.slane %v19561_v31, 5  ;;  %v19688_v31 = vld [vmem:[#allocation54_spill] sm:$0xff] }
 0x46e   : > { %v6375_v50 = vadd.f32 %v6315_v48, %v19685_v51  ;;  %12354 = vmatprep.mubr.msk.f32.mxu1 %vm12849_vm7, %v19300_v44  ;;  %12488 = vmatprep.mubr.msk.f32.mxu0 %vm12849_vm7, %v19300_v44  ;;  %v19687_v51 = vld [vmem:[#allocation23_spill] sm:$0xff] }
 0x46f   : > { %v11931_v28 = vpop.f32.mrf.mxu1  ;;  %v12065_v37 = vpop.f32.mrf.mxu0  ;;  %12605 = vmatprep.subr.mxu1 %v19300_v44 }
 0x470   : > { %12606 = vmatpush3.msra.mxu1 %v10034_v59  ;;  %v8012_v37 = vsel %vm3586_vm5, %v8009_v30, %v8011_v15  ;;  %v17794_v30 = vadd.f32 %v17730_v12, %v6374_v63 }
 0x471   : > { %v6320_v23 = vpop.f32.mrf.mxu1  ;;  %12355 = vmatmul.mubr.msk.f32.gmra.mxu1 %vm5196_vm8, %v19686_v54  ;;  %v6653_v48 = vpop.f32.mrf.mxu0  ;;  %12489 = vmatmul.mubr.msk.f32.gmra.mxu0 %vm5196_vm8, %v8010_v19  ;;  %v19689_v19 = vld [vmem:[#allocation88_spill] sm:$0xff] }
 0x472   : > { %v6376_v56 = vadd.f32 %v6320_v23, %v19687_v51  ;;  %12357 = vmatprep.mubr.msk.f32.mxu1 %vm12849_vm7, %v19300_v44  ;;  %12491 = vmatprep.mubr.msk.f32.mxu0 %vm12849_vm7, %v19300_v44  ;;  %v19690_v23 = vld [vmem:[#allocation16_spill] sm:$0xff] }
 0x473   : > { %v11934_v28 = vpop.f32.mrf.mxu1  ;;  %v12068_v52 = vpop.f32.mrf.mxu0  ;;  %v8013_v51 = vrot.slane %v19690_v23, 5 }
 0x475   : > { %v6325_v59 = vpop.f32.mrf.mxu1  ;;  %12358 = vmatmul.mubr.msk.f32.gmra.mxu1 %vm5196_vm8, %v19688_v31  ;;  %v6658_v54 = vpop.f32.mrf.mxu0  ;;  %12492 = vmatmul.mubr.msk.f32.gmra.mxu0 %vm5196_vm8, %v8012_v37  ;;  %v8014_v31 = vsel %vm3586_vm5, %v8011_v15, %v8013_v51  ;;  %v17806_v15 = vadd.f32 %v6643_v13, %v6375_v50  ;;  %v8017_v50 = vrot.slane %v19564_v1, 5 }
 0x476   : > { %v6377_v46 = vadd.f32 %v6325_v59, %v19689_v19  ;;  %12360 = vmatprep.mubr.msk.f32.mxu1 %vm12849_vm7, %v19300_v44  ;;  %12494 = vmatprep.mubr.msk.f32.mxu0 %vm12849_vm7, %v19300_v44  ;;  %v19692_v19 = vld [vmem:[#allocation11_spill] sm:$0xff] }
 0x477   : > { %v11937_v28 = vpop.f32.mrf.mxu1  ;;  %v12071_v52 = vpop.f32.mrf.mxu0 }
 0x478   : > { %v8016_v28 = vsel %vm3586_vm5, %v8013_v51, %v8015_v17  ;;  %v17818_v51 = vadd.f32 %v6648_v33, %v6376_v56 }
 0x479   : > { %v6330_v37 = vpop.f32.mrf.mxu1  ;;  %12361 = vmatmul.mubr.msk.f32.gmra.mxu1 %vm5196_vm8, %v19691_v61  ;;  %v6663_v59 = vpop.f32.mrf.mxu0  ;;  %12495 = vmatmul.mubr.msk.f32.gmra.mxu0 %vm5196_vm8, %v8014_v31  ;;  %v19694_v31 = vld [vmem:[#allocation50_spill] sm:$0xff] }
 0x47a   : > { %v6378_v6 = vadd.f32 %v6330_v37, %v19692_v19  ;;  %12363 = vmatprep.mubr.msk.f32.mxu1 %vm12849_vm7, %v19300_v44  ;;  %12497 = vmatprep.mubr.msk.f32.mxu0 %vm12849_vm7, %v19300_v44 }
 0x47b   : > { %v11940_v63 = vpop.f32.mrf.mxu1  ;;  %v12074_v12 = vpop.f32.mrf.mxu0 }
 0x47c   : > { %v8018_v63 = vsel %vm3586_vm5, %v8015_v17, %v8017_v50  ;;  %v17830_v17 = vadd.f32 %v6653_v48, %v6377_v46  ;;  %v8021_v46 = vrot.slane %v19566_v45, 5 }
 0x47d   : > { %v6335_v52 = vpop.f32.mrf.mxu1  ;;  %12364 = vmatmul.mubr.msk.f32.gmra.mxu1 %vm5196_vm8, %v19693_v58  ;;  %v7421_v61 = vpop.f32.mrf.mxu0  ;;  %12498 = vmatmul.mubr.msk.f32.gmra.mxu0 %vm5196_vm8, %v8016_v28  ;;  %v8019_v58 = vrot.slane %v19565_v14, 5 }
 0x47e   : > { %v6379_v37 = vadd.f32 %v6335_v52, %v19694_v31  ;;  %12366 = vmatprep.mubr.msk.f32.mxu1 %vm12849_vm7, %v19300_v44  ;;  %12500 = vmatprep.mubr.msk.f32.mxu0 %vm12849_vm7, %v19300_v44  ;;  %v19695_v52 = vld [vmem:[#allocation67_spill] sm:$0xff] }
 0x47f   : > { %v11943_v13 = vpop.f32.mrf.mxu1  ;;  %v12216_v19 = vpop.f32.mrf.mxu0 }
 0x480   : > { %v8020_v13 = vsel %vm3586_vm5, %v8017_v50, %v8019_v58  ;;  %v17842_v50 = vadd.f32 %v6658_v54, %v6378_v6 }
 0x481   : > { %v6942_v12 = vpop.f32.mrf.mxu1  ;;  %12367 = vmatmul.mubr.msk.f32.gmra.mxu1 %vm5196_vm8, %v17194_v36  ;;  %v7426_v28 = vpop.f32.mrf.mxu0  ;;  %12501 = vmatmul.mubr.msk.f32.gmra.mxu0 %vm5196_vm8, %v8018_v63  ;;  %v19696_v63 = vld [vmem:[#allocation24_spill] sm:$0xff] }
 0x482   : > { %v7146_v31 = vadd.f32 %v6942_v12, %v19695_v52  ;;  %12369 = vmatprep.mubr.msk.f32.mxu1 %vm12849_vm7, %v19300_v44  ;;  %12503 = vmatprep.mubr.msk.f32.mxu0 %vm12849_vm7, %v19300_v44 }
 0x483   : > { %v12085_v56 = vpop.f32.mrf.mxu1  ;;  %v12219_v33 = vpop.f32.mrf.mxu0 }
 0x484   : > { %v8022_v56 = vsel %vm3586_vm5, %v8019_v58, %v8021_v46  ;;  %v17854_v58 = vadd.f32 %v6663_v59, %v6379_v37  ;;  %v8025_v59 = vrot.slane %v16093_v35, 5 }
 0x485   : > { %v6947_v19 = vpop.f32.mrf.mxu1  ;;  %12370 = vmatmul.mubr.msk.f32.gmra.mxu1 %vm5196_vm8, %v17214_v57  ;;  %v7431_v36 = vpop.f32.mrf.mxu0  ;;  %12504 = vmatmul.mubr.msk.f32.gmra.mxu0 %vm5196_vm8, %v8020_v13  ;;  %v8023_v57 = vrot.slane %v19567_v8, 5  ;;  %v19698_v8 = vld [vmem:[#allocation52_spill] sm:$0xff] }
 0x486   : > { %v7147_v12 = vadd.f32 %v6947_v19, %v19696_v63  ;;  %12372 = vmatprep.mubr.msk.f32.mxu1 %vm12849_vm7, %v19300_v44  ;;  %12506 = vmatprep.mubr.msk.f32.mxu0 %vm12849_vm7, %v19300_v44  ;;  %v19697_v19 = vld [vmem:[#allocation61_spill] sm:$0xff] }
 0x487   : > { %v12088_v48 = vpop.f32.mrf.mxu1  ;;  %v12222_v52 = vpop.f32.mrf.mxu0 }
 0x488   : > { %v8024_v48 = vsel %vm3586_vm5, %v8021_v46, %v8023_v57  ;;  %v17866_v46 = vadd.f32 %v7421_v61, %v7146_v31 }
 0x489   : > { %v6952_v33 = vpop.f32.mrf.mxu1  ;;  %12373 = vmatmul.mubr.msk.f32.gmra.mxu1 %vm5196_vm8, %v17234_v38  ;;  %v7436_v13 = vpop.f32.mrf.mxu0  ;;  %12507 = vmatmul.mubr.msk.f32.gmra.mxu0 %vm5196_vm8, %v8022_v56  ;;  %v19699_v56 = vld [vmem:[#allocation66_spill] sm:$0xff] }
 0x48a   : > { %v7148_v63 = vadd.f32 %v6952_v33, %v19697_v19  ;;  %12375 = vmatprep.mubr.msk.f32.mxu1 %vm12849_vm7, %v19300_v44  ;;  %12509 = vmatprep.mubr.msk.f32.mxu0 %vm12849_vm7, %v19300_v44 }
 0x48b   : > { %v12091_v6 = vpop.f32.mrf.mxu1  ;;  %v12225_v54 = vpop.f32.mrf.mxu0 }
 0x48c   : > { %v8026_v6 = vsel %vm3586_vm5, %v8023_v57, %v8025_v59  ;;  %v17878_v57 = vadd.f32 %v7426_v28, %v7147_v12  ;;  %v8029_v28 = vrot.slane %v16138_v32, 5 }
 0x48d   : > { %v6957_v52 = vpop.f32.mrf.mxu1  ;;  %12376 = vmatmul.mubr.msk.f32.gmra.mxu1 %vm5196_vm8, %v19698_v8  ;;  %v7441_v38 = vpop.f32.mrf.mxu0  ;;  %12510 = vmatmul.mubr.msk.f32.gmra.mxu0 %vm5196_vm8, %v8024_v48  ;;  %v8027_v8 = vrot.slane %v19610_v22, 5  ;;  %v19700_v48 = vld [vmem:[#allocation78_spill] sm:$0xff]  ;;  %v19702_v22 = vld [vmem:[#allocation51_spill] sm:$0xff] }
 0x48e   : > { %v7149_v33 = vadd.f32 %v6957_v52, %v19699_v56  ;;  %12378 = vmatprep.mubr.msk.f32.mxu1 %vm12849_vm7, %v19300_v44  ;;  %12512 = vmatprep.mubr.msk.f32.mxu0 %vm12849_vm7, %v19300_v44  ;;  %v19701_v56 = vld [vmem:[#allocation29_spill] sm:$0xff] }
 0x48f   : > { %v12094_v37 = vpop.f32.mrf.mxu1  ;;  %v12228_v19 = vpop.f32.mrf.mxu0 }
 0x490   : > { %v8028_v37 = vsel %vm3586_vm5, %v8025_v59, %v8027_v8  ;;  %v17890_v59 = vadd.f32 %v7431_v36, %v7148_v63 }
 0x491   : > { %v6962_v54 = vpop.f32.mrf.mxu1  ;;  %12379 = vmatmul.mubr.msk.f32.gmra.mxu1 %vm5196_vm8, %v19700_v48  ;;  %v7446_v52 = vpop.f32.mrf.mxu0  ;;  %12513 = vmatmul.mubr.msk.f32.gmra.mxu0 %vm5196_vm8, %v8026_v6  ;;  %v19703_v6 = vld [vmem:[#allocation7_spill] sm:$0xff] }
 0x492   : > { %v7150_v45 = vadd.f32 %v6962_v54, %v19701_v56  ;;  %12381 = vmatprep.mubr.msk.f32.mxu1 %vm12849_vm7, %v19300_v44  ;;  %12515 = vmatprep.mubr.msk.f32.mxu0 %vm12849_vm7, %v19300_v44 }
 0x493   : > { %v12097_v61 = vpop.f32.mrf.mxu1  ;;  %v12231_v31 = vpop.f32.mrf.mxu0 }
 0x494   : > { %v8030_v61 = vsel %vm3586_vm5, %v8027_v8, %v8029_v28  ;;  %v17902_v8 = vadd.f32 %v7436_v13, %v7149_v33  ;;  %v8033_v13 = vrot.slane %v16182_v11, 5 }
 0x495   : > { %v6967_v19 = vpop.f32.mrf.mxu1  ;;  %12382 = vmatmul.mubr.msk.f32.gmra.mxu1 %vm5196_vm8, %v19702_v22  ;;  %v7451_v48 = vpop.f32.mrf.mxu0  ;;  %12516 = vmatmul.mubr.msk.f32.gmra.mxu0 %vm5196_vm8, %v8028_v37  ;;  %v8031_v22 = vrot.slane %v19616_v41, 5  ;;  %v19704_v37 = vld [vmem:[#allocation26_spill] sm:$0xff]  ;;  %v19706_v41 = vld [vmem:[#allocation13_spill] sm:$0xff] }
 0x496   : > { %v7151_v54 = vadd.f32 %v6967_v19, %v19703_v6  ;;  %12384 = vmatprep.mubr.msk.f32.mxu1 %vm12849_vm7, %v19300_v44  ;;  %12518 = vmatprep.mubr.msk.f32.mxu0 %vm12849_vm7, %v19300_v44  ;;  %v19705_v6 = vld [vmem:[#allocation64_spill] sm:$0xff] }
 0x497   : > { %v12100_v12 = vpop.f32.mrf.mxu1  ;;  %v12234_v56 = vpop.f32.mrf.mxu0 }
 0x498   : > { %v8032_v12 = vsel %vm3586_vm5, %v8029_v28, %v8031_v22  ;;  %v17914_v28 = vadd.f32 %v7441_v38, %v7150_v45 }
 0x499   : > { %v6972_v31 = vpop.f32.mrf.mxu1  ;;  %12385 = vmatmul.mubr.msk.f32.gmra.mxu1 %vm5196_vm8, %v19704_v37  ;;  %v7456_v19 = vpop.f32.mrf.mxu0  ;;  %12519 = vmatmul.mubr.msk.f32.gmra.mxu0 %vm5196_vm8, %v8030_v61  ;;  %v19707_v61 = vld [vmem:[#allocation21_spill] sm:$0xff] }
 0x49a   : > { %v7152_v35 = vadd.f32 %v6972_v31, %v19705_v6  ;;  %12387 = vmatprep.mubr.msk.f32.mxu1 %vm12849_vm7, %v19300_v44  ;;  %12521 = vmatprep.mubr.msk.f32.mxu0 %vm12849_vm7, %v19300_v44 }
 0x49b   : > { %v12103_v36 = vpop.f32.mrf.mxu1  ;;  %v12237_v63 = vpop.f32.mrf.mxu0 }
 0x49c   : > { %v8034_v36 = vsel %vm3586_vm5, %v8031_v22, %v8033_v13  ;;  %v17926_v22 = vadd.f32 %v7446_v52, %v7151_v54  ;;  %v8037_v52 = vrot.slane %v16218_v20, 5 }
 0x49d   : > { %v6977_v56 = vpop.f32.mrf.mxu1  ;;  %12388 = vmatmul.mubr.msk.f32.gmra.mxu1 %vm5196_vm8, %v19706_v41  ;;  %v7461_v37 = vpop.f32.mrf.mxu0  ;;  %12522 = vmatmul.mubr.msk.f32.gmra.mxu0 %vm5196_vm8, %v8032_v12  ;;  %v8035_v41 = vrot.slane %v19622_v2, 5  ;;  %v19708_v12 = vld [vmem:[#allocation59_spill] sm:$0xff]  ;;  %v19710_v2 = vld [vmem:[#allocation25_spill] sm:$0xff] }
 0x49e   : > { %v7153_v31 = vadd.f32 %v6977_v56, %v19707_v61  ;;  %12390 = vmatprep.mubr.msk.f32.mxu1 %vm12849_vm7, %v19300_v44  ;;  %12524 = vmatprep.mubr.msk.f32.mxu0 %vm12849_vm7, %v19300_v44  ;;  %v19709_v61 = vld [vmem:[#allocation27_spill] sm:$0xff] }
 0x49f   : > { %v12106_v33 = vpop.f32.mrf.mxu1  ;;  %v12240_v6 = vpop.f32.mrf.mxu0 }
 0x4a0   : > { %v8036_v33 = vsel %vm3586_vm5, %v8033_v13, %v8035_v41  ;;  %v17938_v13 = vadd.f32 %v7451_v48, %v7152_v35 }
 0x4a1   : > { %v6982_v63 = vpop.f32.mrf.mxu1  ;;  %12391 = vmatmul.mubr.msk.f32.gmra.mxu1 %vm5196_vm8, %v19708_v12  ;;  %v7466_v56 = vpop.f32.mrf.mxu0  ;;  %12525 = vmatmul.mubr.msk.f32.gmra.mxu0 %vm5196_vm8, %v8034_v36  ;;  %v19711_v36 = vld [vmem:[#allocation41_spill] sm:$0xff] }
 0x4a2   : > { %v7154_v32 = vadd.f32 %v6982_v63, %v19709_v61  ;;  %12393 = vmatprep.mubr.msk.f32.mxu1 %vm12849_vm7, %v19300_v44  ;;  %12527 = vmatprep.mubr.msk.f32.mxu0 %vm12849_vm7, %v19300_v44 }
 0x4a3   : > { %v12109_v45 = vpop.f32.mrf.mxu1  ;;  %v12243_v38 = vpop.f32.mrf.mxu0 }
 0x4a4   : > { %v8038_v45 = vsel %vm3586_vm5, %v8035_v41, %v8037_v52  ;;  %v17950_v41 = vadd.f32 %v7456_v19, %v7153_v31  ;;  %v8041_v19 = vrot.slane %v16254_v49, 5 }
 0x4a5   : > { %v6987_v6 = vpop.f32.mrf.mxu1  ;;  %12394 = vmatmul.mubr.msk.f32.gmra.mxu1 %vm5196_vm8, %v19710_v2  ;;  %v7471_v12 = vpop.f32.mrf.mxu0  ;;  %12528 = vmatmul.mubr.msk.f32.gmra.mxu0 %vm5196_vm8, %v8036_v33  ;;  %v8039_v2 = vrot.slane %v19628_v5, 5  ;;  %v19712_v33 = vld [vmem:[#allocation68_spill] sm:$0xff]  ;;  %v19714_v5 = vld [vmem:[#allocation31_spill] sm:$0xff] }
 0x4a6   : > { %v7155_v63 = vadd.f32 %v6987_v6, %v19711_v36  ;;  %12396 = vmatprep.mubr.msk.f32.mxu1 %vm12849_vm7, %v19300_v44  ;;  %12530 = vmatprep.mubr.msk.f32.mxu0 %vm12849_vm7, %v19300_v44  ;;  %v19713_v36 = vld [vmem:[#allocation69_spill] sm:$0xff] }
 0x4a7   : > { %v12112_v54 = vpop.f32.mrf.mxu1  ;;  %v12246_v61 = vpop.f32.mrf.mxu0 }
 0x4a8   : > { %v8040_v54 = vsel %vm3586_vm5, %v8037_v52, %v8039_v2  ;;  %v17962_v52 = vadd.f32 %v7461_v37, %v7154_v32 }
 0x4a9   : > { %v6992_v38 = vpop.f32.mrf.mxu1  ;;  %12397 = vmatmul.mubr.msk.f32.gmra.mxu1 %vm5196_vm8, %v19712_v33  ;;  %v7476_v6 = vpop.f32.mrf.mxu0  ;;  %12531 = vmatmul.mubr.msk.f32.gmra.mxu0 %vm5196_vm8, %v8038_v45  ;;  %v19715_v45 = vld [vmem:[#allocation3_spill] sm:$0xff] }
 0x4aa   : > { %v7156_v11 = vadd.f32 %v6992_v38, %v19713_v36  ;;  %12399 = vmatprep.mubr.msk.f32.mxu1 %vm12849_vm7, %v19300_v44  ;;  %12533 = vmatprep.mubr.msk.f32.mxu0 %vm12849_vm7, %v19300_v44 }
 0x4ab   : > { %v12115_v35 = vpop.f32.mrf.mxu1  ;;  %v12249_v48 = vpop.f32.mrf.mxu0 }
 0x4ac   : > { %v8042_v35 = vsel %vm3586_vm5, %v8039_v2, %v8041_v19  ;;  %v17974_v2 = vadd.f32 %v7466_v56, %v7155_v63  ;;  %v8045_v56 = vrot.slane %v16290_v43, 5 }
 0x4ad   : > { %v6997_v61 = vpop.f32.mrf.mxu1  ;;  %12400 = vmatmul.mubr.msk.f32.gmra.mxu1 %vm5196_vm8, %v19714_v5  ;;  %v7481_v33 = vpop.f32.mrf.mxu0  ;;  %12534 = vmatmul.mubr.msk.f32.gmra.mxu0 %vm5196_vm8, %v8040_v54  ;;  %v8043_v5 = vrot.slane %v19634_v27, 5  ;;  %v19716_v54 = vld [vmem:[#allocation19_spill] sm:$0xff]  ;;  %v19718_v27 = vld [vmem:[#allocation40_spill] sm:$0xff] }
 0x4ae   : > { %v7157_v38 = vadd.f32 %v6997_v61, %v19715_v45  ;;  %12402 = vmatprep.mubr.msk.f32.mxu1 %vm12849_vm7, %v19300_v44  ;;  %12536 = vmatprep.mubr.msk.f32.mxu0 %vm12849_vm7, %v19300_v44  ;;  %v19717_v45 = vld [vmem:[#allocation30_spill] sm:$0xff] }
 0x4af   : > { %v12118_v31 = vpop.f32.mrf.mxu1  ;;  %v12252_v36 = vpop.f32.mrf.mxu0 }
 0x4b0   : > { %v8044_v31 = vsel %vm3586_vm5, %v8041_v19, %v8043_v5  ;;  %v17986_v19 = vadd.f32 %v7471_v12, %v7156_v11 }
 0x4b1   : > { %v7002_v48 = vpop.f32.mrf.mxu1  ;;  %12403 = vmatmul.mubr.msk.f32.gmra.mxu1 %vm5196_vm8, %v19716_v54  ;;  %v7486_v61 = vpop.f32.mrf.mxu0  ;;  %12537 = vmatmul.mubr.msk.f32.gmra.mxu0 %vm5196_vm8, %v8042_v35  ;;  %v19719_v35 = vld [vmem:[#allocation17_spill] sm:$0xff] }
 0x4b2   : > { %v7158_v20 = vadd.f32 %v7002_v48, %v19717_v45  ;;  %12405 = vmatprep.mubr.msk.f32.mxu1 %vm12849_vm7, %v19300_v44  ;;  %12539 = vmatprep.mubr.msk.f32.mxu0 %vm12849_vm7, %v19300_v44  ;;  %19720 = vst [vmem:[#allocation89_spill] sm:$0xff] %v17986_v19 }
 0x4b3   : > { %v12121_v32 = vpop.f32.mrf.mxu1  ;;  %v12255_v37 = vpop.f32.mrf.mxu0 }
 0x4b4   : > { %v8046_v32 = vsel %vm3586_vm5, %v8043_v5, %v8045_v56  ;;  %v17998_v5 = vadd.f32 %v7476_v6, %v7157_v38 }
 0x4b5   : > { %v7007_v36 = vpop.f32.mrf.mxu1  ;;  %12406 = vmatmul.mubr.msk.f32.gmra.mxu1 %vm5196_vm8, %v19718_v27  ;;  %v7491_v54 = vpop.f32.mrf.mxu0  ;;  %12540 = vmatmul.mubr.msk.f32.gmra.mxu0 %vm5196_vm8, %v8044_v31  ;;  %v8047_v27 = vrot.slane %v19640_v24, 5  ;;  %v19721_v31 = vld [vmem:[#allocation12_spill] sm:$0xff]  ;;  %v19724_v24 = vld [vmem:[#allocation65_spill] sm:$0xff] }
 0x4b6   : > { %v7159_v48 = vadd.f32 %v7007_v36, %v19719_v35  ;;  %12408 = vmatprep.mubr.msk.f32.mxu1 %vm12849_vm7, %v19300_v44  ;;  %12542 = vmatprep.mubr.msk.f32.mxu0 %vm12849_vm7, %v19300_v44  ;;  %v19722_v35 = vld [vmem:[#allocation10_spill] sm:$0xff]  ;;  %19723 = vst [vmem:[#allocation49_spill] sm:$0xff] %v17998_v5 }
 0x4b7   : > { %v12124_v63 = vpop.f32.mrf.mxu1  ;;  %v12258_v45 = vpop.f32.mrf.mxu0 }
 0x4b8   : > { %v8048_v63 = vsel %vm3586_vm5, %v8045_v56, %v8047_v27  ;;  %v18010_v56 = vadd.f32 %v7481_v33, %v7158_v20 }
 0x4b9   : > { %v7012_v37 = vpop.f32.mrf.mxu1  ;;  %12409 = vmatmul.mubr.msk.f32.gmra.mxu1 %vm5196_vm8, %v19721_v31  ;;  %v7496_v36 = vpop.f32.mrf.mxu0  ;;  %12543 = vmatmul.mubr.msk.f32.gmra.mxu0 %vm5196_vm8, %v8046_v32  ;;  %v19725_v32 = vld [vmem:[#allocation63_spill] sm:$0xff] }
 0x4ba   : > { %v7160_v49 = vadd.f32 %v7012_v37, %v19722_v35  ;;  %12411 = vmatprep.mubr.msk.f32.mxu1 %vm12849_vm7, %v19300_v44  ;;  %12545 = vmatprep.mubr.msk.f32.mxu0 %vm12849_vm7, %v19300_v44  ;;  %v19726_v35 = vld [vmem:[#allocation37_spill] sm:$0xff] }
 0x4bb   : > { %v12127_v11 = vpop.f32.mrf.mxu1  ;;  %v12261_v12 = vpop.f32.mrf.mxu0  ;;  %v8049_v6 = vrot.slane %v19726_v35, 5 }
 0x4bd   : > { %v7017_v45 = vpop.f32.mrf.mxu1  ;;  %12412 = vmatmul.mubr.msk.f32.gmra.mxu1 %vm5196_vm8, %v19724_v24  ;;  %v7501_v31 = vpop.f32.mrf.mxu0  ;;  %12546 = vmatmul.mubr.msk.f32.gmra.mxu0 %vm5196_vm8, %v8048_v63  ;;  %v8050_v12 = vsel %vm3586_vm5, %v8047_v27, %v8049_v6  ;;  %v19727_v24 = vld [vmem:[#allocation81_spill] sm:$0xff]  ;;  %v19728_v63 = vld [vmem:[#allocation28_spill] sm:$0xff]  ;;  %v18022_v27 = vadd.f32 %v7486_v61, %v7159_v48  ;;  %v8053_v61 = vrot.slane %v19652_v26, 5 }
 0x4be   : > { %v7161_v37 = vadd.f32 %v7017_v45, %v19725_v32  ;;  %12414 = vmatprep.mubr.msk.f32.mxu1 %vm12849_vm7, %v19300_v44  ;;  %12548 = vmatprep.mubr.msk.f32.mxu0 %vm12849_vm7, %v19300_v44  ;;  %v8051_v43 = vrot.slane %v19727_v24, 5  ;;  %v19729_v32 = vld [vmem:[#allocation20_spill] sm:$0xff]  ;;  %v19731_v24 = vld [vmem:[#allocation57_spill] sm:$0xff] }
 0x4bf   : > { %v12130_v38 = vpop.f32.mrf.mxu1  ;;  %v12264_v11 = vpop.f32.mrf.mxu0  ;;  %19730 = vst [vmem:[#allocation86_spill] sm:$0xff] %v18022_v27 }
 0x4c0   : > { %v8052_v38 = vsel %vm3586_vm5, %v8049_v6, %v8051_v43  ;;  %v18034_v6 = vadd.f32 %v7491_v54, %v7160_v49 }
 0x4c1   : > { %v7022_v5 = vpop.f32.mrf.mxu1  ;;  %12415 = vmatmul.mubr.msk.f32.gmra.mxu1 %vm5196_vm8, %v19728_v63  ;;  %v7506_v45 = vpop.f32.mrf.mxu0  ;;  %12549 = vmatmul.mubr.msk.f32.gmra.mxu0 %vm5196_vm8, %v8050_v12 }
 0x4c2   : > { %v7162_v19 = vadd.f32 %v7022_v5, %v19729_v32  ;;  %12417 = vmatprep.mubr.msk.f32.mxu1 %vm12849_vm7, %v19300_v44  ;;  %12551 = vmatprep.mubr.msk.f32.mxu0 %vm12849_vm7, %v19300_v44  ;;  %v19732_v5 = vld [vmem:[#allocation33_spill] sm:$0xff] }
 0x4c3   : > { %v12133_v20 = vpop.f32.mrf.mxu1  ;;  %v12267_v33 = vpop.f32.mrf.mxu0 }
 0x4c4   : > { %v8054_v20 = vsel %vm3586_vm5, %v8051_v43, %v8053_v61  ;;  %v18046_v43 = vadd.f32 %v7496_v36, %v7161_v37  ;;  %v8057_v36 = vrot.slane %v19660_v3, 5 }
 0x4c5   : > { %v7027_v11 = vpop.f32.mrf.mxu1  ;;  %12418 = vmatmul.mubr.msk.f32.gmra.mxu1 %vm5196_vm8, %v19731_v24  ;;  %v7511_v63 = vpop.f32.mrf.mxu0  ;;  %12552 = vmatmul.mubr.msk.f32.gmra.mxu0 %vm5196_vm8, %v8052_v38  ;;  %v19733_v24 = vld [vmem:[#allocation55_spill] sm:$0xff]  ;;  %v19734_v38 = vld [vmem:[#allocation92_spill] sm:$0xff] }
 0x4c6   : > { %v7163_v12 = vadd.f32 %v7027_v11, %v19732_v5  ;;  %12420 = vmatprep.mubr.msk.f32.mxu1 %vm12849_vm7, %v19300_v44  ;;  %12554 = vmatprep.mubr.msk.f32.mxu0 %vm12849_vm7, %v19300_v44  ;;  %v8055_v33 = vrot.slane %v19733_v24, 5  ;;  %v19735_v5 = vld [vmem:[#allocation76_spill] sm:$0xff] }
 0x4c7   : > { %v12136_v48 = vpop.f32.mrf.mxu1  ;;  %v12270_v32 = vpop.f32.mrf.mxu0  ;;  %v19736_v24 = vld [vmem:[#allocation84_spill] sm:$0xff] }
 0x4c8   : > { %v8056_v48 = vsel %vm3586_vm5, %v8053_v61, %v8055_v33  ;;  %v18058_v61 = vadd.f32 %v7501_v31, %v7162_v19 }
 0x4c9   : > { %v7032_v35 = vpop.f32.mrf.mxu1  ;;  %12421 = vmatmul.mubr.msk.f32.gmra.mxu1 %vm5196_vm8, %v19734_v38  ;;  %v7516_v11 = vpop.f32.mrf.mxu0  ;;  %12555 = vmatmul.mubr.msk.f32.gmra.mxu0 %vm5196_vm8, %v8054_v20 }
 0x4ca   : > { %v7164_v27 = vadd.f32 %v7032_v35, %v19735_v5  ;;  %12423 = vmatprep.mubr.msk.f32.mxu1 %vm12849_vm7, %v19300_v44  ;;  %12557 = vmatprep.mubr.msk.f32.mxu0 %vm12849_vm7, %v19300_v44  ;;  %v19737_v35 = vld [vmem:[#allocation43_spill] sm:$0xff] }
 0x4cb   : > { %v12139_v49 = vpop.f32.mrf.mxu1  ;;  %v12273_v54 = vpop.f32.mrf.mxu0 }
 0x4cc   : > { %v8058_v49 = vsel %vm3586_vm5, %v8055_v33, %v8057_v36  ;;  %v18070_v33 = vadd.f32 %v7506_v45, %v7163_v12  ;;  %v8061_v45 = vrot.slane %v16464_v62, 5 }
 0x4cd   : > { %v7037_v32 = vpop.f32.mrf.mxu1  ;;  %12424 = vmatmul.mubr.msk.f32.gmra.mxu1 %vm5196_vm8, %v19736_v24  ;;  %v7521_v38 = vpop.f32.mrf.mxu0  ;;  %12558 = vmatmul.mubr.msk.f32.gmra.mxu0 %vm5196_vm8, %v8056_v48  ;;  %v8059_v24 = vrot.slane %v19662_v4, 5  ;;  %v19738_v48 = vld [vmem:[#allocation22_spill] sm:$0xff]  ;;  %v19740_v4 = vld [vmem:[#allocation87_spill] sm:$0xff] }
 0x4ce   : > { %v7165_v20 = vadd.f32 %v7037_v32, %v19737_v35  ;;  %12426 = vmatprep.mubr.msk.f32.mxu1 %vm12849_vm7, %v19300_v44  ;;  %12560 = vmatprep.mubr.msk.f32.mxu0 %vm12849_vm7, %v19300_v44  ;;  %v19739_v35 = vld [vmem:[#allocation93_spill] sm:$0xff] }
 0x4cf   : > { %v12142_v37 = vpop.f32.mrf.mxu1  ;;  %v12276_v5 = vpop.f32.mrf.mxu0 }
 0x4d0   : > { %v8060_v37 = vsel %vm3586_vm5, %v8057_v36, %v8059_v24  ;;  %v18082_v36 = vadd.f32 %v7511_v63, %v7164_v27 }
 0x4d1   : > { %v7042_v54 = vpop.f32.mrf.mxu1  ;;  %12427 = vmatmul.mubr.msk.f32.gmra.mxu1 %vm5196_vm8, %v19738_v48  ;;  %v7526_v32 = vpop.f32.mrf.mxu0  ;;  %12561 = vmatmul.mubr.msk.f32.gmra.mxu0 %vm5196_vm8, %v8058_v49  ;;  %v19741_v49 = vld [vmem:[#allocation58_spill] sm:$0xff] }
 0x4d2   : > { %v7166_v26 = vadd.f32 %v7042_v54, %v19739_v35  ;;  %12429 = vmatprep.mubr.msk.f32.mxu1 %vm12849_vm7, %v19300_v44  ;;  %12563 = vmatprep.mubr.msk.f32.mxu0 %vm12849_vm7, %v19300_v44 }
 0x4d3   : > { %v12145_v19 = vpop.f32.mrf.mxu1  ;;  %v12279_v31 = vpop.f32.mrf.mxu0 }
 0x4d4   : > { %v8062_v19 = vsel %vm3586_vm5, %v8059_v24, %v8061_v45  ;;  %v18094_v24 = vadd.f32 %v7516_v11, %v7165_v20  ;;  %v8065_v11 = vrot.slane %v16501_v47, 5 }
 0x4d5   : > { %v7047_v5 = vpop.f32.mrf.mxu1  ;;  %12430 = vmatmul.mubr.msk.f32.gmra.mxu1 %vm5196_vm8, %v19740_v4  ;;  %v7531_v48 = vpop.f32.mrf.mxu0  ;;  %12564 = vmatmul.mubr.msk.f32.gmra.mxu0 %vm5196_vm8, %v8060_v37  ;;  %v8063_v4 = vrot.slane %v16474_v0, 5  ;;  %v19742_v37 = vld [vmem:[#allocation97_spill] sm:$0xff] }
 0x4d6   : > { %v7167_v54 = vadd.f32 %v7047_v5, %v19741_v49  ;;  %12432 = vmatprep.mubr.msk.f32.mxu1 %vm12849_vm7, %v19300_v44  ;;  %12566 = vmatprep.mubr.msk.f32.mxu0 %vm12849_vm7, %v19300_v44  ;;  %v19743_v49 = vld [vmem:[#allocation98_spill] sm:$0xff] }
 0x4d7   : > { %v12148_v12 = vpop.f32.mrf.mxu1  ;;  %v12282_v35 = vpop.f32.mrf.mxu0 }
 0x4d8   : > { %v8064_v12 = vsel %vm3586_vm5, %v8061_v45, %v8063_v4  ;;  %v18106_v45 = vadd.f32 %v7521_v38, %v7166_v26 }
 0x4d9   : > { %v7052_v31 = vpop.f32.mrf.mxu1  ;;  %12433 = vmatmul.mubr.msk.f32.gmra.mxu1 %vm5196_vm8, %v19742_v37  ;;  %v7536_v5 = vpop.f32.mrf.mxu0  ;;  %12567 = vmatmul.mubr.msk.f32.gmra.mxu0 %vm5196_vm8, %v8062_v19  ;;  %v19744_v19 = vld [vmem:[#allocation85_spill] sm:$0xff] }
 0x4da   : > { %v7168_v3 = vadd.f32 %v7052_v31, %v19743_v49  ;;  %12435 = vmatprep.mubr.msk.f32.mxu1 %vm12849_vm7, %v19300_v44  ;;  %12569 = vmatprep.mubr.msk.f32.mxu0 %vm12849_vm7, %v19300_v44 }
 0x4db   : > { %v12151_v27 = vpop.f32.mrf.mxu1  ;;  %v12285_v63 = vpop.f32.mrf.mxu0 }
 0x4dc   : > { %v8066_v27 = vsel %vm3586_vm5, %v8063_v4, %v8065_v11  ;;  %v18118_v4 = vadd.f32 %v7526_v32, %v7167_v54  ;;  %v8069_v32 = vrot.slane %v16547_v9, 5 }
 0x4dd   : > { %v7057_v35 = vpop.f32.mrf.mxu1  ;;  %12436 = vmatmul.mubr.msk.f32.gmra.mxu1 %vm5196_vm8, %v17570_v18  ;;  %v7541_v37 = vpop.f32.mrf.mxu0  ;;  %12570 = vmatmul.mubr.msk.f32.gmra.mxu0 %vm5196_vm8, %v8064_v12  ;;  %v8067_v18 = vrot.slane %v16509_v55, 5 }
 0x4de   : > { %v7169_v31 = vadd.f32 %v7057_v35, %v19744_v19  ;;  %12438 = vmatprep.mubr.msk.f32.mxu1 %vm12849_vm7, %v19300_v44  ;;  %12572 = vmatprep.mubr.msk.f32.mxu0 %vm12849_vm7, %v19300_v44  ;;  %v19745_v35 = vld [vmem:[#allocation44_spill] sm:$0xff] }
 0x4df   : > { %v12154_v20 = vpop.f32.mrf.mxu1  ;;  %v12288_v49 = vpop.f32.mrf.mxu0 }
 0x4e0   : > { %v8068_v20 = vsel %vm3586_vm5, %v8065_v11, %v8067_v18  ;;  %v18130_v11 = vadd.f32 %v7531_v48, %v7168_v3 }
 0x4e1   : > { %v7062_v63 = vpop.f32.mrf.mxu1  ;;  %12439 = vmatmul.mubr.msk.f32.gmra.mxu1 %vm5196_vm8, %v17586_v16  ;;  %v7546_v12 = vpop.f32.mrf.mxu0  ;;  %12573 = vmatmul.mubr.msk.f32.gmra.mxu0 %vm5196_vm8, %v8066_v27  ;;  %v19746_v27 = vld [vmem:[#allocation99_spill] sm:$0xff] }
 0x4e2   : > { %v7170_v19 = vadd.f32 %v7062_v63, %v19745_v35  ;;  %12441 = vmatprep.mubr.msk.f32.mxu1 %vm12849_vm7, %v19300_v44  ;;  %12575 = vmatprep.mubr.msk.f32.mxu0 %vm12849_vm7, %v19300_v44 }
 0x4e3   : > { %v12157_v26 = vpop.f32.mrf.mxu1  ;;  %v12291_v38 = vpop.f32.mrf.mxu0 }
 0x4e4   : > { %v8070_v26 = vsel %vm3586_vm5, %v8067_v18, %v8069_v32  ;;  %v18142_v18 = vadd.f32 %v7536_v5, %v7169_v31  ;;  %v8073_v5 = vrot.slane %v16991_v60, 5  ;;  %v19765_v60 = vld [vmem:[#allocation106_spill] sm:$0xff] }
 0x4e5   : > { %v7067_v49 = vpop.f32.mrf.mxu1  ;;  %12442 = vmatmul.mubr.msk.f32.gmra.mxu1 %vm5196_vm8, %v17602_v39  ;;  %v7551_v16 = vpop.f32.mrf.mxu0  ;;  %12576 = vmatmul.mubr.msk.f32.gmra.mxu0 %vm5196_vm8, %v8068_v20  ;;  %v8071_v39 = vrot.slane %v16554_v29, 5 }
 0x4e6   : > { %v7171_v63 = vadd.f32 %v7067_v49, %v19746_v27  ;;  %12444 = vmatprep.mubr.msk.f32.mxu1 %vm12849_vm7, %v19300_v44  ;;  %12578 = vmatprep.mubr.msk.f32.mxu0 %vm12849_vm7, %v19300_v44  ;;  %v19747_v49 = vld [vmem:[#allocation100_spill] sm:$0xff] }
 0x4e7   : > { %v12160_v54 = vpop.f32.mrf.mxu1  ;;  %v12294_v35 = vpop.f32.mrf.mxu0 }
 0x4e8   : > { %v8072_v54 = vsel %vm3586_vm5, %v8069_v32, %v8071_v39  ;;  %v18154_v32 = vadd.f32 %v7541_v37, %v7170_v19 }
 0x4e9   : > { %v7072_v38 = vpop.f32.mrf.mxu1  ;;  %12445 = vmatmul.mubr.msk.f32.gmra.mxu1 %vm5196_vm8, %v17618_v42  ;;  %v7556_v20 = vpop.f32.mrf.mxu0  ;;  %12579 = vmatmul.mubr.msk.f32.gmra.mxu0 %vm5196_vm8, %v8070_v26  ;;  %v19748_v26 = vld [vmem:[#allocation101_spill] sm:$0xff] }
 0x4ea   : > { %v7172_v27 = vadd.f32 %v7072_v38, %v19747_v49  ;;  %12447 = vmatprep.mubr.msk.f32.mxu1 %vm12849_vm7, %v19300_v44  ;;  %12581 = vmatprep.mubr.msk.f32.mxu0 %vm12849_vm7, %v19300_v44 }
 0x4eb   : > { %v12163_v3 = vpop.f32.mrf.mxu1  ;;  %v12297_v48 = vpop.f32.mrf.mxu0 }
 0x4ec   : > { %v8074_v3 = vsel %vm3586_vm5, %v8071_v39, %v8073_v5  ;;  %v18166_v39 = vadd.f32 %v7546_v12, %v7171_v63  ;;  %v18177_v63 = vadd.f32 %v7551_v16, %v7172_v27 }
 0x4ed   : > { %v7077_v35 = vpop.f32.mrf.mxu1  ;;  %12448 = vmatmul.mubr.msk.f32.gmra.mxu1 %vm5196_vm8, %v17634_v25  ;;  %v7561_v42 = vpop.f32.mrf.mxu0  ;;  %12582 = vmatmul.mubr.msk.f32.gmra.mxu0 %vm5196_vm8, %v8072_v54  ;;  %v8075_v25 = vrot.slane %v19674_v10, 5 }
 0x4ee   : > { %v7173_v38 = vadd.f32 %v7077_v35, %v19748_v26  ;;  %12450 = vmatprep.mubr.msk.f32.mxu1 %vm12849_vm7, %v19300_v44  ;;  %12584 = vmatprep.mubr.msk.f32.mxu0 %vm12849_vm7, %v19300_v44  ;;  %v19749_v35 = vld [vmem:[#allocation102_spill] sm:$0xff] }
 0x4ef   : > { %v12166_v31 = vpop.f32.mrf.mxu1  ;;  %v12300_v49 = vpop.f32.mrf.mxu0 }
 0x4f0   : > { %v8076_v31 = vsel %vm3586_vm5, %v8073_v5, %v8075_v25  ;;  %v19751_v5 = vld [vmem:[#allocation70_spill] sm:$0xff] }
 0x4f1   : > { %v7082_v48 = vpop.f32.mrf.mxu1  ;;  %12451 = vmatmul.mubr.msk.f32.gmra.mxu1 %vm5196_vm8, %v17650_v21  ;;  %v7566_v54 = vpop.f32.mrf.mxu0  ;;  %12585 = vmatmul.mubr.msk.f32.gmra.mxu0 %vm5196_vm8, %v8074_v3  ;;  %v19750_v3 = vld [vmem:[#allocation103_spill] sm:$0xff] }
 0x4f2   : > { %v7174_v26 = vadd.f32 %v7082_v48, %v19749_v35  ;;  %12453 = vmatprep.mubr.msk.f32.mxu1 %vm12849_vm7, %v19300_v44  ;;  %12587 = vmatprep.mubr.msk.f32.mxu0 %vm12849_vm7, %v19300_v44 }
 0x4f3   : > { %v12169_v37 = vpop.f32.mrf.mxu1  ;;  %v12303_v19 = vpop.f32.mrf.mxu0 }
 0x4f4   : > { %v19752_v37 = vrot.slane %v19751_v5, 5 }
 0x4f5   : > { %v7087_v49 = vpop.f32.mrf.mxu1  ;;  %12454 = vmatmul.mubr.msk.f32.gmra.mxu1 %vm5196_vm8, %v17666_v7  ;;  %v7571_v21 = vpop.f32.mrf.mxu0  ;;  %12588 = vmatmul.mubr.msk.f32.gmra.mxu0 %vm5196_vm8, %v8076_v31 }
 0x4f6   : > { %v7175_v48 = vadd.f32 %v7087_v49, %v19750_v3  ;;  %12456 = vmatprep.mubr.msk.f32.mxu1 %vm12849_vm7, %v19300_v44  ;;  %12590 = vmatprep.mubr.msk.f32.mxu0 %vm12849_vm7, %v19300_v44  ;;  %v8078_v19 = vsel %vm3586_vm5, %v8075_v25, %v19752_v37  ;;  %v19753_v49 = vld [vmem:[#allocation104_spill] sm:$0xff]  ;;  %v19755_v25 = vrot.slane %v19751_v5, 4 }
 0x4f7   : > { %v12172_v35 = vpop.f32.mrf.mxu1  ;;  %v12306_v12 = vpop.f32.mrf.mxu0 }
 0x4f8   : > { %v18190_v35 = vadd.f32 %v7556_v20, %v7173_v38  ;;  %v18213_v5 = vadd.f32 %v7566_v54, %v7175_v48  ;;  %v19767_v48 = vld [vmem:[#allocation53_spill] sm:$0xff] }
 0x4f9   : > { %v7092_v7 = vpop.f32.mrf.mxu1  ;;  %12457 = vmatmul.mubr.msk.f32.gmra.mxu1 %vm5196_vm8, %v17685_v53  ;;  %v7576_v31 = vpop.f32.mrf.mxu0  ;;  %12591 = vmatmul.mubr.msk.f32.gmra.mxu0 %vm5196_vm8, %v8078_v19  ;;  %v7674_v53 = vsel %vm590_vm0, %v17669_v40, %v19755_v25  ;;  %v19756_v19 = vld [vmem:[#allocation56_spill] sm:$0xff]  ;;  %v19759_v25 = vld [vmem:[#allocation2_spill] sm:$0xff] }
 0x4fa   : > { %v7176_v3 = vadd.f32 %v7092_v7, %v19753_v49  ;;  %12459 = vmatprep.mubr.msk.f32.mxu1 %vm12849_vm7, %v19300_v44  ;;  %12593 = vmatprep.mubr.msk.f32.mxu0 %vm12849_vm7, %v19300_v44  ;;  %19754 = vst [vmem:[#allocation95_spill] sm:$0xff] %v18190_v35  ;;  %v18204_v49 = vadd.f32 %v7561_v42, %v7174_v26  ;;  %19761 = vst [vmem:[#allocation60_spill] sm:$0xff] %v18213_v5 }
 0x4fb   : > { %v12175_v16 = vpop.f32.mrf.mxu1  ;;  %v12309_v27 = vpop.f32.mrf.mxu0 }
 0x4fc   : > { %19757 = vst [vmem:[#allocation48_spill] sm:$0xff] %v18204_v49  ;;  %v19758_v16 = vld [vmem:[#allocation91_spill] sm:$0xff] }
 0x4fd   : > { %v7097_v12 = vpop.f32.mrf.mxu1  ;;  %12460 = vmatmul.mubr.msk.f32.gmra.mxu1 %vm5196_vm8, %v7674_v53  ;;  %v7581_v37 = vpop.f32.mrf.mxu0  ;;  %12594 = vmatmul.mubr.msk.f32.gmra.mxu0 %vm5196_vm8, %v19756_v19  ;;  %v19760_v53 = vld [vmem:[#allocation105_spill] sm:$0xff] }
 0x4fe   : > { %v7177_v7 = vadd.f32 %v7097_v12, %v17700_v34  ;;  %12462 = vmatprep.mubr.msk.f32.mxu1 %vm12849_vm7, %v19300_v44  ;;  %12596 = vmatprep.mubr.msk.f32.mxu0 %vm12849_vm7, %v19300_v44 }
 0x4ff   : > { %v12178_v20 = vpop.f32.mrf.mxu1  ;;  %v12312_v38 = vpop.f32.mrf.mxu0 }
 0x500   : > { %v19762_v20 = vld [vmem:[#allocation5_spill] sm:$0xff]  ;;  %v19763_v38 = vld [vmem:[#allocation82_spill] sm:$0xff] }
 0x501   : > { %v7102_v40 = vpop.f32.mrf.mxu1  ;;  %12463 = vmatmul.mubr.msk.f32.gmra.mxu1 %vm5196_vm8, %v19758_v16  ;;  %v7586_v27 = vpop.f32.mrf.mxu0  ;;  %12597 = vmatmul.mubr.msk.f32.gmra.mxu0 %vm5196_vm8, %v19759_v25  ;;  %v8481_v42 = vrot.slane %v19762_v20, 6  ;;  %v19764_v10 = vrot.slane %v19763_v38, 4  ;;  %v8484_v20 = vrot.slane %v19767_v48, 6  ;;  %v19768_v38 = vld [vmem:[#allocation80_spill] sm:$0xff] }
 0x502   : > { %v7178_v34 = vadd.f32 %v7102_v40, %v19760_v53  ;;  %12465 = vmatprep.mubr.msk.f32.mxu1 %vm12849_vm7, %v19300_v44  ;;  %v19766_v40 = vld [vmem:[#allocation8_spill] sm:$0xff] }
 0x503   : > { %v12181_v12 = vpop.f32.mrf.mxu1  ;;  %v12315_v19 = vpop.f32.mrf.mxu0  ;;  %v8482_v25 = vrot.slane %v19766_v40, 6  ;;  %v18231_v40 = vadd.f32 %v7576_v31, %v7177_v7  ;;  %v19770_v7 = vld [vmem:[#allocation14_spill] sm:$0xff] }
 0x504   : > { %v18223_v19 = vadd.f32 %v7571_v21, %v7176_v3 }
 0x505   : > { %v7107_v26 = vpop.f32.mrf.mxu1  ;;  %12466 = vmatmul.mubr.msk.f32.gmra.mxu1 %vm5196_vm8, %v19764_v10  ;;  %v7591_v16 = vpop.f32.mrf.mxu0  ;;  %v8483_v54 = vsel %vm4116_vm6, %v8481_v42, %v8482_v25  ;;  %v8485_v21 = vsel %vm4116_vm6, %v8482_v25, %v8484_v20 }
 0x506   : > { %v7179_v49 = vadd.f32 %v7107_v26, %v19765_v60  ;;  %12607 = vmatprep.mubr.msk.f32.mxu1 %vm12849_vm7, %v19300_v44 }
 0x507   : > { %v12184_v53 = vpop.f32.mrf.mxu1  ;;  %v12318_v12 = vpop.f32.mrf.mxu0 }
 0x508   : > { %v19769_v12 = vld [vmem:[#allocation15_spill] sm:$0xff] }
 0x509   : > { %v7112_v5 = vpop.f32.mrf.mxu1  ;;  %12608 = vmatmul.mubr.msk.f32.vlgmr.msra.gmra.mxu1 %vm5196_vm8, %v8483_v54  ;;  %v7596_v10 = vpop.f32.mrf.mxu0 }
 0x50a   : > { %v7180_v35 = vadd.f32 %v7112_v5, %v19768_v38  ;;  %12610 = vmatprep.mubr.msk.f32.mxu1 %vm12849_vm7, %v19300_v44  ;;  %v8486_v5 = vrot.slane %v19769_v12, 6  ;;  %v18239_v38 = vadd.f32 %v7581_v37, %v7178_v34  ;;  %v18247_v12 = vadd.f32 %v7586_v27, %v7179_v49  ;;  %v19772_v27 = vld [vmem:[#allocation39_spill] sm:$0xff] }
 0x50b   : > { %v12187_v60 = vpop.f32.mrf.mxu1  ;;  %v12321_v26 = vpop.f32.mrf.mxu0 }
 0x50c   : > { %v8487_v31 = vsel %vm4116_vm6, %v8484_v20, %v8486_v5  ;;  %v8488_v60 = vrot.slane %v19770_v7, 6 }
 0x50d   : > { %v7117_v3 = vpop.f32.mrf.mxu1  ;;  %12611 = vmatmul.mubr.msk.f32.gmra.mxu1 %vm5196_vm8, %v8485_v21  ;;  %v7601_v42 = vpop.f32.mrf.mxu0 }
 0x50e   : > { %v7181_v53 = vadd.f32 %v7117_v3, %v17794_v30  ;;  %12613 = vmatprep.mubr.msk.f32.mxu1 %vm12849_vm7, %v19300_v44  ;;  %v8489_v37 = vsel %vm4116_vm6, %v8486_v5, %v8488_v60 }
 0x50f   : > { %v12190_v54 = vpop.f32.mrf.mxu1  ;;  %v12324_v48 = vpop.f32.mrf.mxu0 }
 0x510   : > { %v19771_v48 = vld [vmem:[#allocation36_spill] sm:$0xff] }
 0x511   : > { %v7122_v25 = vpop.f32.mrf.mxu1  ;;  %12614 = vmatmul.mubr.msk.f32.gmra.mxu1 %vm5196_vm8, %v8487_v31  ;;  %v7606_v26 = vpop.f32.mrf.mxu0 }
 0x512   : > { %v7182_v21 = vadd.f32 %v7122_v25, %v17806_v15  ;;  %12616 = vmatprep.mubr.msk.f32.mxu1 %vm12849_vm7, %v19300_v44  ;;  %v8490_v15 = vrot.slane %v19771_v48, 6  ;;  %v18255_v25 = vadd.f32 %v7591_v16, %v7180_v35  ;;  %v18263_v48 = vadd.f32 %v7596_v10, %v7181_v53  ;;  %v19773_v53 = vld [vmem:[#allocation38_spill] sm:$0xff] }
 0x513   : > { %v12193_v30 = vpop.f32.mrf.mxu1  ;;  %v12327_v3 = vpop.f32.mrf.mxu0 }
 0x514   : > { %v8491_v49 = vsel %vm4116_vm6, %v8488_v60, %v8490_v15  ;;  %v8492_v30 = vrot.slane %v19772_v27, 6  ;;  %v18271_v27 = vadd.f32 %v7601_v42, %v7182_v21 }
 0x515   : > { %v7127_v34 = vpop.f32.mrf.mxu1  ;;  %12617 = vmatmul.mubr.msk.f32.gmra.mxu1 %vm5196_vm8, %v8489_v37  ;;  %v7611_v20 = vpop.f32.mrf.mxu0 }
 0x516   : > { %v7183_v54 = vadd.f32 %v7127_v34, %v17818_v51  ;;  %12619 = vmatprep.mubr.msk.f32.mxu1 %vm12849_vm7, %v19300_v44  ;;  %v8493_v35 = vsel %vm4116_vm6, %v8490_v15, %v8492_v30 }
 0x517   : > { %v12196_v31 = vpop.f32.mrf.mxu1  ;;  %v12330_v7 = vpop.f32.mrf.mxu0 }
 0x519   : > { %v7132_v5 = vpop.f32.mrf.mxu1  ;;  %12620 = vmatmul.mubr.msk.f32.gmra.mxu1 %vm5196_vm8, %v8491_v49  ;;  %v7616_v3 = vpop.f32.mrf.mxu0 }
 0x51a   : > { %v7184_v37 = vadd.f32 %v7132_v5, %v17830_v17  ;;  %12622 = vmatprep.mubr.msk.f32.mxu1 %vm12849_vm7, %v19300_v44  ;;  %v8494_v17 = vrot.slane %v19690_v23, 6  ;;  %v8496_v5 = vrot.slane %v19773_v53, 6  ;;  %v18279_v23 = vadd.f32 %v7606_v26, %v7183_v54 }
 0x51b   : > { %v12199_v51 = vpop.f32.mrf.mxu1  ;;  %v12333_v34 = vpop.f32.mrf.mxu0  ;;  %v8500_v54 = vrot.slane %v19565_v14, 6 }
 0x51c   : > { %v8495_v10 = vsel %vm4116_vm6, %v8492_v30, %v8494_v17  ;;  %v8497_v42 = vsel %vm4116_vm6, %v8494_v17, %v8496_v5 }
 0x51d   : > { %v7137_v16 = vpop.f32.mrf.mxu1  ;;  %12623 = vmatmul.mubr.msk.f32.gmra.mxu1 %vm5196_vm8, %v8493_v35  ;;  %v7621_v60 = vpop.f32.mrf.mxu0 }
 0x51e   : > { %v7185_v31 = vadd.f32 %v7137_v16, %v17842_v50  ;;  %12625 = vmatprep.mubr.msk.f32.mxu1 %vm12849_vm7, %v19300_v44 }
 0x51f   : > { %v12202_v7 = vpop.f32.mrf.mxu1  ;;  %v12336_v49 = vpop.f32.mrf.mxu0 }
 0x521   : > { %v7142_v15 = vpop.f32.mrf.mxu1  ;;  %12626 = vmatmul.mubr.msk.f32.gmra.mxu1 %vm5196_vm8, %v8495_v10  ;;  %v8231_v51 = vpop.f32.mrf.mxu0  ;;  %v18287_v10 = vadd.f32 %v7611_v20, %v7184_v37 }
 0x522   : > { %v7186_v34 = vadd.f32 %v7142_v15, %v17854_v58  ;;  %12628 = vmatprep.mubr.msk.f32.mxu1 %vm12849_vm7, %v19300_v44  ;;  %v8498_v58 = vrot.slane %v19564_v1, 6  ;;  %v18295_v1 = vadd.f32 %v7616_v3, %v7185_v31  ;;  %v19775_v31 = vld [vmem:[#allocation34_spill] sm:$0xff] }
 0x523   : > { %v12205_v50 = vpop.f32.mrf.mxu1  ;;  %v12478_v35 = vpop.f32.mrf.mxu0 }
 0x524   : > { %v8499_v26 = vsel %vm4116_vm6, %v8496_v5, %v8498_v58  ;;  %v8501_v20 = vsel %vm4116_vm6, %v8498_v58, %v8500_v54  ;;  %v19774_v35 = vld [vmem:[#allocation42_spill] sm:$0xff] }
 0x525   : > { %v7749_v21 = vpop.f32.mrf.mxu1  ;;  %12629 = vmatmul.mubr.msk.f32.gmra.mxu1 %vm5196_vm8, %v8497_v42  ;;  %v8236_v30 = vpop.f32.mrf.mxu0 }
 0x526   : > { %v7953_v16 = vadd.f32 %v7749_v21, %v17866_v46  ;;  %12631 = vmatprep.mubr.msk.f32.mxu1 %vm12849_vm7, %v19300_v44 }
 0x527   : > { %v12347_v7 = vpop.f32.mrf.mxu1  ;;  %v12481_v49 = vpop.f32.mrf.mxu0 }
 0x528   : > { %v18303_v7 = vadd.f32 %v7621_v60, %v7186_v34  ;;  %v8504_v49 = vrot.slane %v19775_v31, 6 }
 0x529   : > { %v7754_v17 = vpop.f32.mrf.mxu1  ;;  %12632 = vmatmul.mubr.msk.f32.gmra.mxu1 %vm5196_vm8, %v8499_v26  ;;  %v8241_v53 = vpop.f32.mrf.mxu0 }
 0x52a   : > { %v7954_v15 = vadd.f32 %v7754_v17, %v17878_v57  ;;  %12634 = vmatprep.mubr.msk.f32.mxu1 %vm12849_vm7, %v19300_v44  ;;  %v8502_v57 = vrot.slane %v19774_v35, 6 }
 0x52b   : > { %v12350_v46 = vpop.f32.mrf.mxu1  ;;  %v12484_v50 = vpop.f32.mrf.mxu0 }
 0x52c   : > { %v8503_v3 = vsel %vm4116_vm6, %v8500_v54, %v8502_v57  ;;  %v18311_v50 = vadd.f32 %v8231_v51, %v7953_v16  ;;  %v8505_v60 = vsel %vm4116_vm6, %v8502_v57, %v8504_v49  ;;  %v19777_v16 = vld [vmem:[#allocation73_spill] sm:$0xff] }
 0x52d   : > { %v7759_v37 = vpop.f32.mrf.mxu1  ;;  %12635 = vmatmul.mubr.msk.f32.gmra.mxu1 %vm5196_vm8, %v8501_v20  ;;  %v8246_v5 = vpop.f32.mrf.mxu0 }
 0x52e   : > { %v7955_v14 = vadd.f32 %v7759_v37, %v17890_v59  ;;  %12637 = vmatprep.mubr.msk.f32.mxu1 %vm12849_vm7, %v19300_v44  ;;  %v19776_v37 = vld [vmem:[#allocation18_spill] sm:$0xff] }
 0x52f   : > { %v12353_v42 = vpop.f32.mrf.mxu1  ;;  %v12487_v21 = vpop.f32.mrf.mxu0 }
 0x530   : > { %v18319_v21 = vadd.f32 %v8236_v30, %v7954_v15 }
 0x531   : > { %v7764_v58 = vpop.f32.mrf.mxu1  ;;  %12638 = vmatmul.mubr.msk.f32.gmra.mxu1 %vm5196_vm8, %v8503_v3  ;;  %v8251_v26 = vpop.f32.mrf.mxu0  ;;  %v8508_v3 = vrot.slane %v19777_v16, 6 }
 0x532   : > { %v7956_v17 = vadd.f32 %v7764_v58, %v17902_v8  ;;  %12640 = vmatprep.mubr.msk.f32.mxu1 %vm12849_vm7, %v19300_v44  ;;  %v8506_v8 = vrot.slane %v19776_v37, 6 }
 0x533   : > { %v12356_v59 = vpop.f32.mrf.mxu1  ;;  %v12490_v46 = vpop.f32.mrf.mxu0 }
 0x534   : > { %v8507_v51 = vsel %vm4116_vm6, %v8504_v49, %v8506_v8  ;;  %v18327_v46 = vadd.f32 %v8241_v53, %v7955_v14  ;;  %v8509_v30 = vsel %vm4116_vm6, %v8506_v8, %v8508_v3  ;;  %v19779_v14 = vld [vmem:[#allocation77_spill] sm:$0xff] }
 0x535   : > { %v7769_v34 = vpop.f32.mrf.mxu1  ;;  %12641 = vmatmul.mubr.msk.f32.gmra.mxu1 %vm5196_vm8, %v8505_v60  ;;  %v8256_v54 = vpop.f32.mrf.mxu0 }
 0x536   : > { %v7957_v20 = vadd.f32 %v7769_v34, %v17914_v28  ;;  %12643 = vmatprep.mubr.msk.f32.mxu1 %vm12849_vm7, %v19300_v44  ;;  %v19778_v34 = vld [vmem:[#allocation4_spill] sm:$0xff] }
 0x537   : > { %v12359_v35 = vpop.f32.mrf.mxu1  ;;  %v12493_v42 = vpop.f32.mrf.mxu0 }
 0x538   : > { %v18335_v42 = vadd.f32 %v8246_v5, %v7956_v17 }
 0x539   : > { %v7774_v57 = vpop.f32.mrf.mxu1  ;;  %12644 = vmatmul.mubr.msk.f32.gmra.mxu1 %vm5196_vm8, %v8507_v51  ;;  %v8261_v31 = vpop.f32.mrf.mxu0  ;;  %v8512_v51 = vrot.slane %v19779_v14, 6 }
 0x53a   : > { %v7958_v58 = vadd.f32 %v7774_v57, %v17926_v22  ;;  %12646 = vmatprep.mubr.msk.f32.mxu1 %vm12849_vm7, %v19300_v44  ;;  %v8510_v22 = vrot.slane %v19778_v34, 6 }
 0x53b   : > { %v12362_v28 = vpop.f32.mrf.mxu1  ;;  %v12496_v59 = vpop.f32.mrf.mxu0 }
 0x53c   : > { %v8511_v53 = vsel %vm4116_vm6, %v8508_v3, %v8510_v22  ;;  %v18343_v59 = vadd.f32 %v8251_v26, %v7957_v20  ;;  %v8513_v5 = vsel %vm4116_vm6, %v8510_v22, %v8512_v51  ;;  %v19781_v20 = vld [vmem:[#allocation62_spill] sm:$0xff] }
 0x53d   : > { %v7779_v15 = vpop.f32.mrf.mxu1  ;;  %12647 = vmatmul.mubr.msk.f32.gmra.mxu1 %vm5196_vm8, %v8509_v30  ;;  %v8266_v49 = vpop.f32.mrf.mxu0 }
 0x53e   : > { %v7959_v60 = vadd.f32 %v7779_v15, %v17938_v13  ;;  %12649 = vmatprep.mubr.msk.f32.mxu1 %vm12849_vm7, %v19300_v44  ;;  %v19780_v15 = vld [vmem:[#allocation71_spill] sm:$0xff] }
 0x53f   : > { %v12365_v37 = vpop.f32.mrf.mxu1  ;;  %v12499_v35 = vpop.f32.mrf.mxu0 }
 0x540   : > { %v18351_v35 = vadd.f32 %v8256_v54, %v7958_v58 }
 0x541   : > { %v7784_v8 = vpop.f32.mrf.mxu1  ;;  %12650 = vmatmul.mubr.msk.f32.gmra.mxu1 %vm5196_vm8, %v8511_v53  ;;  %v8271_v16 = vpop.f32.mrf.mxu0  ;;  %v8516_v53 = vrot.slane %v19781_v20, 6 }
 0x542   : > { %v7960_v57 = vadd.f32 %v7784_v8, %v17950_v41  ;;  %12652 = vmatprep.mubr.msk.f32.mxu1 %vm12849_vm7, %v19300_v44  ;;  %v8514_v41 = vrot.slane %v19780_v15, 6  ;;  %v19783_v15 = vld [vmem:[#allocation6_spill] sm:$0xff] }
 0x543   : > { %v12368_v13 = vpop.f32.mrf.mxu1  ;;  %v12502_v28 = vpop.f32.mrf.mxu0 }
 0x544   : > { %v8515_v26 = vsel %vm4116_vm6, %v8512_v51, %v8514_v41  ;;  %v18359_v28 = vadd.f32 %v8261_v31, %v7959_v60  ;;  %v8517_v54 = vsel %vm4116_vm6, %v8514_v41, %v8516_v53  ;;  %v19784_v60 = vld [vmem:[#allocation75_spill] sm:$0xff] }
 0x545   : > { %v7789_v17 = vpop.f32.mrf.mxu1  ;;  %12653 = vmatmul.mubr.msk.f32.gmra.mxu1 %vm5196_vm8, %v8513_v5  ;;  %v8276_v3 = vpop.f32.mrf.mxu0  ;;  %v19782_v5 = vld [vmem:[#allocation89_spill] sm:$0xff]  ;;  %v8520_v20 = vrot.slane %v19784_v60, 6 }
 0x546   : > { %v7961_v30 = vadd.f32 %v7789_v17, %v17962_v52  ;;  %12655 = vmatprep.mubr.msk.f32.mxu1 %vm12849_vm7, %v19300_v44 }
 0x547   : > { %v12371_v34 = vpop.f32.mrf.mxu1  ;;  %v12505_v37 = vpop.f32.mrf.mxu0 }
 0x549   : > { %v7794_v22 = vpop.f32.mrf.mxu1  ;;  %12656 = vmatmul.mubr.msk.f32.gmra.mxu1 %vm5196_vm8, %v8515_v26  ;;  %v8281_v14 = vpop.f32.mrf.mxu0  ;;  %v18367_v26 = vadd.f32 %v8266_v49, %v7960_v57 }
 0x54a   : > { %v7962_v8 = vadd.f32 %v7794_v22, %v17974_v2  ;;  %12658 = vmatprep.mubr.msk.f32.mxu1 %vm12849_vm7, %v19300_v44  ;;  %v8518_v2 = vrot.slane %v19783_v15, 6 }
 0x54b   : > { %v12374_v52 = vpop.f32.mrf.mxu1  ;;  %v12508_v13 = vpop.f32.mrf.mxu0 }
 0x54c   : > { %v8519_v31 = vsel %vm4116_vm6, %v8516_v53, %v8518_v2  ;;  %v19785_v52 = vld [vmem:[#allocation49_spill] sm:$0xff]  ;;  %v8521_v49 = vsel %vm4116_vm6, %v8518_v2, %v8520_v20 }
 0x54d   : > { %v7799_v58 = vpop.f32.mrf.mxu1  ;;  %12659 = vmatmul.mubr.msk.f32.gmra.mxu1 %vm5196_vm8, %v8517_v54  ;;  %v8286_v51 = vpop.f32.mrf.mxu0 }
 0x54e   : > { %v7963_v17 = vadd.f32 %v7799_v58, %v19782_v5  ;;  %12661 = vmatprep.mubr.msk.f32.mxu1 %vm12849_vm7, %v19300_v44  ;;  %v18375_v5 = vadd.f32 %v8271_v16, %v7961_v30  ;;  %v19787_v30 = vld [vmem:[#allocation9_spill] sm:$0xff] }
 0x54f   : > { %v12377_v34 = vpop.f32.mrf.mxu1  ;;  %v12511_v37 = vpop.f32.mrf.mxu0 }
 0x550   : > { %v19786_v34 = vld [vmem:[#allocation45_spill] sm:$0xff] }
 0x551   : > { %v7804_v41 = vpop.f32.mrf.mxu1  ;;  %12662 = vmatmul.mubr.msk.f32.gmra.mxu1 %vm5196_vm8, %v8519_v31  ;;  %v8291_v22 = vpop.f32.mrf.mxu0  ;;  %v8522_v37 = vrot.slane %v19786_v34, 6  ;;  %v18391_v34 = vadd.f32 %v8281_v14, %v7963_v17  ;;  %v19790_v17 = vld [vmem:[#allocation47_spill] sm:$0xff] }
 0x552   : > { %v7964_v13 = vadd.f32 %v7804_v41, %v19785_v52  ;;  %12664 = vmatprep.mubr.msk.f32.mxu1 %vm12849_vm7, %v19300_v44  ;;  %v18383_v41 = vadd.f32 %v8276_v3, %v7962_v8  ;;  %v8524_v52 = vrot.slane %v19787_v30, 6 }
 0x553   : > { %v12380_v54 = vpop.f32.mrf.mxu1  ;;  %v12514_v58 = vpop.f32.mrf.mxu0  ;;  %v8523_v16 = vsel %vm4116_vm6, %v8520_v20, %v8522_v37 }
 0x554   : > { %v19788_v58 = vld [vmem:[#allocation86_spill] sm:$0xff]  ;;  %v8525_v3 = vsel %vm4116_vm6, %v8522_v37, %v8524_v52 }
 0x555   : > { %v7809_v57 = vpop.f32.mrf.mxu1  ;;  %12665 = vmatmul.mubr.msk.f32.gmra.mxu1 %vm5196_vm8, %v8521_v49  ;;  %v8296_v53 = vpop.f32.mrf.mxu0 }
 0x556   : > { %v7965_v15 = vadd.f32 %v7809_v57, %v18010_v56  ;;  %12667 = vmatprep.mubr.msk.f32.mxu1 %vm12849_vm7, %v19300_v44 }
 0x557   : > { %v12383_v31 = vpop.f32.mrf.mxu1  ;;  %v12517_v60 = vpop.f32.mrf.mxu0 }
 0x558   : > { %v19789_v60 = vld [vmem:[#allocation79_spill] sm:$0xff] }
 0x559   : > { %v7814_v2 = vpop.f32.mrf.mxu1  ;;  %12668 = vmatmul.mubr.msk.f32.gmra.mxu1 %vm5196_vm8, %v8523_v16  ;;  %v8301_v54 = vpop.f32.mrf.mxu0  ;;  %v8526_v16 = vrot.slane %v19789_v60, 6  ;;  %v18407_v60 = vadd.f32 %v8291_v22, %v7965_v15  ;;  %v19792_v15 = vld [vmem:[#allocation81_spill] sm:$0xff] }
 0x55a   : > { %v7966_v49 = vadd.f32 %v7814_v2, %v19788_v58  ;;  %12670 = vmatprep.mubr.msk.f32.mxu1 %vm12849_vm7, %v19300_v44  ;;  %v18399_v58 = vadd.f32 %v8286_v51, %v7964_v13 }
 0x55b   : > { %v12386_v56 = vpop.f32.mrf.mxu1  ;;  %v12520_v57 = vpop.f32.mrf.mxu0  ;;  %v8527_v14 = vsel %vm4116_vm6, %v8524_v52, %v8526_v16 }
 0x55c   : > { %v8528_v56 = vrot.slane %v19790_v17, 6 }
 0x55d   : > { %v7819_v8 = vpop.f32.mrf.mxu1  ;;  %12671 = vmatmul.mubr.msk.f32.gmra.mxu1 %vm5196_vm8, %v8525_v3  ;;  %v8306_v20 = vpop.f32.mrf.mxu0 }
 0x55e   : > { %v7967_v31 = vadd.f32 %v7819_v8, %v18034_v6  ;;  %12673 = vmatprep.mubr.msk.f32.mxu1 %vm12849_vm7, %v19300_v44  ;;  %v8529_v51 = vsel %vm4116_vm6, %v8526_v16, %v8528_v56 }
 0x55f   : > { %v12389_v30 = vpop.f32.mrf.mxu1  ;;  %v12523_v2 = vpop.f32.mrf.mxu0 }
 0x560   : > { %v19791_v2 = vld [vmem:[#allocation37_spill] sm:$0xff] }
 0x561   : > { %v7824_v37 = vpop.f32.mrf.mxu1  ;;  %12674 = vmatmul.mubr.msk.f32.gmra.mxu1 %vm5196_vm8, %v8527_v14  ;;  %v8311_v57 = vpop.f32.mrf.mxu0 }
 0x562   : > { %v7968_v3 = vadd.f32 %v7824_v37, %v18046_v43  ;;  %12676 = vmatprep.mubr.msk.f32.mxu1 %vm12849_vm7, %v19300_v44  ;;  %v8530_v43 = vrot.slane %v19791_v2, 6  ;;  %v18415_v37 = vadd.f32 %v8296_v53, %v7966_v49  ;;  %v18423_v2 = vadd.f32 %v8301_v54, %v7967_v31  ;;  %v19794_v31 = vld [vmem:[#allocation55_spill] sm:$0xff] }
 0x563   : > { %v12392_v6 = vpop.f32.mrf.mxu1  ;;  %v12526_v8 = vpop.f32.mrf.mxu0 }
 0x564   : > { %v8531_v22 = vsel %vm4116_vm6, %v8528_v56, %v8530_v43  ;;  %v8532_v6 = vrot.slane %v19792_v15, 6 }
 0x565   : > { %v7829_v13 = vpop.f32.mrf.mxu1  ;;  %12677 = vmatmul.mubr.msk.f32.gmra.mxu1 %vm5196_vm8, %v8529_v51  ;;  %v8316_v52 = vpop.f32.mrf.mxu0 }
 0x566   : > { %v7969_v30 = vadd.f32 %v7829_v13, %v18058_v61  ;;  %12679 = vmatprep.mubr.msk.f32.mxu1 %vm12849_vm7, %v19300_v44  ;;  %v8533_v53 = vsel %vm4116_vm6, %v8530_v43, %v8532_v6 }
 0x567   : > { %v12395_v14 = vpop.f32.mrf.mxu1  ;;  %v12529_v17 = vpop.f32.mrf.mxu0 }
 0x568   : > { %v19793_v17 = vld [vmem:[#allocation35_spill] sm:$0xff] }
 0x569   : > { %v7834_v16 = vpop.f32.mrf.mxu1  ;;  %12680 = vmatmul.mubr.msk.f32.gmra.mxu1 %vm5196_vm8, %v8531_v22  ;;  %v8321_v8 = vpop.f32.mrf.mxu0 }
 0x56a   : > { %v7970_v51 = vadd.f32 %v7834_v16, %v18070_v33  ;;  %12682 = vmatprep.mubr.msk.f32.mxu1 %vm12849_vm7, %v19300_v44  ;;  %v8534_v33 = vrot.slane %v19793_v17, 6  ;;  %v18431_v16 = vadd.f32 %v8306_v20, %v7968_v3  ;;  %v18439_v17 = vadd.f32 %v8311_v57, %v7969_v30  ;;  %v19796_v30 = vld [vmem:[#allocation90_spill] sm:$0xff] }
 0x56b   : > { %v12398_v61 = vpop.f32.mrf.mxu1  ;;  %v12532_v13 = vpop.f32.mrf.mxu0 }
 0x56c   : > { %v8535_v54 = vsel %vm4116_vm6, %v8532_v6, %v8534_v33  ;;  %v8536_v61 = vrot.slane %v19794_v31, 6 }
 0x56d   : > { %v7839_v49 = vpop.f32.mrf.mxu1  ;;  %12683 = vmatmul.mubr.msk.f32.gmra.mxu1 %vm5196_vm8, %v8533_v53  ;;  %v8326_v56 = vpop.f32.mrf.mxu0 }
 0x56e   : > { %v7971_v14 = vadd.f32 %v7839_v49, %v18082_v36  ;;  %12685 = vmatprep.mubr.msk.f32.mxu1 %vm12849_vm7, %v19300_v44  ;;  %v8537_v20 = vsel %vm4116_vm6, %v8534_v33, %v8536_v61 }
 0x56f   : > { %v12401_v22 = vpop.f32.mrf.mxu1  ;;  %v12535_v15 = vpop.f32.mrf.mxu0 }
 0x570   : > { %v19795_v15 = vld [vmem:[#allocation32_spill] sm:$0xff] }
 0x571   : > { %v7844_v43 = vpop.f32.mrf.mxu1  ;;  %12686 = vmatmul.mubr.msk.f32.gmra.mxu1 %vm5196_vm8, %v8535_v54  ;;  %v8331_v13 = vpop.f32.mrf.mxu0 }
 0x572   : > { %v7972_v53 = vadd.f32 %v7844_v43, %v18094_v24  ;;  %12688 = vmatprep.mubr.msk.f32.mxu1 %vm12849_vm7, %v19300_v44  ;;  %v8538_v24 = vrot.slane %v19795_v15, 6  ;;  %v18447_v43 = vadd.f32 %v8316_v52, %v7970_v51  ;;  %v18455_v15 = vadd.f32 %v8321_v8, %v7971_v14 }
 0x573   : > { %v12404_v36 = vpop.f32.mrf.mxu1  ;;  %v12538_v49 = vpop.f32.mrf.mxu0  ;;  %v8544_v14 = vrot.slane %v16474_v0, 6 }
 0x574   : > { %v8539_v57 = vsel %vm4116_vm6, %v8536_v61, %v8538_v24  ;;  %v8540_v36 = vrot.slane %v19796_v30, 6  ;;  %v18463_v30 = vadd.f32 %v8326_v56, %v7972_v53 }
 0x575   : > { %v7849_v3 = vpop.f32.mrf.mxu1  ;;  %12689 = vmatmul.mubr.msk.f32.gmra.mxu1 %vm5196_vm8, %v8537_v20  ;;  %v8336_v6 = vpop.f32.mrf.mxu0 }
 0x576   : > { %v7973_v22 = vadd.f32 %v7849_v3, %v18106_v45  ;;  %12691 = vmatprep.mubr.msk.f32.mxu1 %vm12849_vm7, %v19300_v44  ;;  %v8541_v52 = vsel %vm4116_vm6, %v8538_v24, %v8540_v36 }
 0x577   : > { %v12407_v54 = vpop.f32.mrf.mxu1  ;;  %v12541_v31 = vpop.f32.mrf.mxu0 }
 0x579   : > { %v7854_v33 = vpop.f32.mrf.mxu1  ;;  %12692 = vmatmul.mubr.msk.f32.gmra.mxu1 %vm5196_vm8, %v8539_v57  ;;  %v8341_v49 = vpop.f32.mrf.mxu0 }
 0x57a   : > { %v7974_v20 = vadd.f32 %v7854_v33, %v18118_v4  ;;  %12694 = vmatprep.mubr.msk.f32.mxu1 %vm12849_vm7, %v19300_v44  ;;  %v8542_v4 = vrot.slane %v16464_v62, 6  ;;  %v18471_v62 = vadd.f32 %v8331_v13, %v7973_v22  ;;  %v8548_v22 = vrot.slane %v16509_v55, 6 }
 0x57b   : > { %v12410_v45 = vpop.f32.mrf.mxu1  ;;  %v12544_v3 = vpop.f32.mrf.mxu0 }
 0x57c   : > { %v8543_v8 = vsel %vm4116_vm6, %v8540_v36, %v8542_v4  ;;  %v8545_v56 = vsel %vm4116_vm6, %v8542_v4, %v8544_v14 }
 0x57d   : > { %v7859_v51 = vpop.f32.mrf.mxu1  ;;  %12695 = vmatmul.mubr.msk.f32.gmra.mxu1 %vm5196_vm8, %v8541_v52  ;;  %v8346_v61 = vpop.f32.mrf.mxu0 }
 0x57e   : > { %v7975_v54 = vadd.f32 %v7859_v51, %v18130_v11  ;;  %12697 = vmatprep.mubr.msk.f32.mxu1 %vm12849_vm7, %v19300_v44 }
 0x57f   : > { %v12413_v31 = vpop.f32.mrf.mxu1  ;;  %v12547_v57 = vpop.f32.mrf.mxu0 }
 0x580   : > { %v18479_v31 = vadd.f32 %v8336_v6, %v7974_v20 }
 0x581   : > { %v7864_v24 = vpop.f32.mrf.mxu1  ;;  %12698 = vmatmul.mubr.msk.f32.gmra.mxu1 %vm5196_vm8, %v8543_v8  ;;  %v8351_v33 = vpop.f32.mrf.mxu0 }
 0x582   : > { %v7976_v45 = vadd.f32 %v7864_v24, %v18142_v18  ;;  %12700 = vmatprep.mubr.msk.f32.mxu1 %vm12849_vm7, %v19300_v44  ;;  %v8546_v18 = vrot.slane %v16501_v47, 6  ;;  %v18487_v47 = vadd.f32 %v8341_v49, %v7975_v54  ;;  %v8552_v54 = vrot.slane %v16554_v29, 6  ;;  %v19798_v29 = vld [vmem:[#allocation48_spill] sm:$0xff] }
 0x583   : > { %v12416_v11 = vpop.f32.mrf.mxu1  ;;  %v12550_v3 = vpop.f32.mrf.mxu0 }
 0x584   : > { %v8547_v13 = vsel %vm4116_vm6, %v8544_v14, %v8546_v18  ;;  %v8549_v6 = vsel %vm4116_vm6, %v8546_v18, %v8548_v22 }
 0x585   : > { %v7869_v53 = vpop.f32.mrf.mxu1  ;;  %12701 = vmatmul.mubr.msk.f32.gmra.mxu1 %vm5196_vm8, %v8545_v56  ;;  %v8356_v36 = vpop.f32.mrf.mxu0  ;;  %v18495_v56 = vadd.f32 %v8346_v61, %v7976_v45 }
 0x586   : > { %v7977_v0 = vadd.f32 %v7869_v53, %v18154_v32  ;;  %12703 = vmatprep.mubr.msk.f32.mxu1 %vm12849_vm7, %v19300_v44 }
 0x587   : > { %v12419_v52 = vpop.f32.mrf.mxu1  ;;  %v12553_v51 = vpop.f32.mrf.mxu0 }
 0x588   : > { %v19797_v52 = vld [vmem:[#allocation95_spill] sm:$0xff] }
 0x589   : > { %v7874_v4 = vpop.f32.mrf.mxu1  ;;  %12704 = vmatmul.mubr.msk.f32.gmra.mxu1 %vm5196_vm8, %v8547_v13  ;;  %v8361_v57 = vpop.f32.mrf.mxu0 }
 0x58a   : > { %v7978_v8 = vadd.f32 %v7874_v4, %v18166_v39  ;;  %12706 = vmatprep.mubr.msk.f32.mxu1 %vm12849_vm7, %v19300_v44  ;;  %v8550_v39 = vrot.slane %v16547_v9, 6  ;;  %v18503_v9 = vadd.f32 %v8351_v33, %v7977_v0  ;;  %v19800_v0 = vld [vmem:[#allocation94_spill] sm:$0xff] }
 0x58b   : > { %v12422_v32 = vpop.f32.mrf.mxu1  ;;  %v12556_v24 = vpop.f32.mrf.mxu0 }
 0x58c   : > { %v8551_v49 = vsel %vm4116_vm6, %v8548_v22, %v8550_v39  ;;  %v8553_v61 = vsel %vm4116_vm6, %v8550_v39, %v8552_v54  ;;  %v19799_v32 = vld [vmem:[#allocation46_spill] sm:$0xff] }
 0x58d   : > { %v7879_v20 = vpop.f32.mrf.mxu1  ;;  %12707 = vmatmul.mubr.msk.f32.gmra.mxu1 %vm5196_vm8, %v8549_v6  ;;  %v8366_v14 = vpop.f32.mrf.mxu0  ;;  %v8554_v24 = vrot.slane %v19799_v32, 6 }
 0x58e   : > { %v7979_v55 = vadd.f32 %v7879_v20, %v18177_v63  ;;  %12709 = vmatprep.mubr.msk.f32.mxu1 %vm12849_vm7, %v19300_v44 }
 0x58f   : > { %v12425_v11 = vpop.f32.mrf.mxu1  ;;  %v12559_v3 = vpop.f32.mrf.mxu0  ;;  %v8555_v33 = vsel %vm4116_vm6, %v8552_v54, %v8554_v24 }
 0x590   : > { %v18511_v11 = vadd.f32 %v8356_v36, %v7978_v8  ;;  %v8556_v3 = vrot.slane %v19800_v0, 6 }
 0x591   : > { %v7884_v53 = vpop.f32.mrf.mxu1  ;;  %12710 = vmatmul.mubr.msk.f32.gmra.mxu1 %vm5196_vm8, %v8551_v49  ;;  %v8371_v18 = vpop.f32.mrf.mxu0 }
 0x592   : > { %v7980_v51 = vadd.f32 %v7884_v53, %v19797_v52  ;;  %12712 = vmatprep.mubr.msk.f32.mxu1 %vm12849_vm7, %v19300_v44  ;;  %v19801_v53 = vld [vmem:[#allocation60_spill] sm:$0xff]  ;;  %v8557_v36 = vsel %vm4116_vm6, %v8554_v24, %v8556_v3 }
 0x593   : > { %v12428_v63 = vpop.f32.mrf.mxu1  ;;  %v12562_v13 = vpop.f32.mrf.mxu0 }
 0x595   : > { %v7889_v45 = vpop.f32.mrf.mxu1  ;;  %12713 = vmatmul.mubr.msk.f32.gmra.mxu1 %vm5196_vm8, %v8553_v61  ;;  %v8376_v22 = vpop.f32.mrf.mxu0  ;;  %v18519_v61 = vadd.f32 %v8361_v57, %v7979_v55 }
 0x596   : > { %v7981_v4 = vadd.f32 %v7889_v45, %v19798_v29  ;;  %12715 = vmatprep.mubr.msk.f32.mxu1 %vm12849_vm7, %v19300_v44 }
 0x597   : > { %v12431_v6 = vpop.f32.mrf.mxu1  ;;  %v12565_v20 = vpop.f32.mrf.mxu0 }
 0x598   : > { %v18526_v6 = vadd.f32 %v8366_v14, %v7980_v51  ;;  %v19802_v20 = vld [vmem:[#allocation70_spill] sm:$0xff] }
 0x599   : > { %v7894_v39 = vpop.f32.mrf.mxu1  ;;  %12716 = vmatmul.mubr.msk.f32.gmra.mxu1 %vm5196_vm8, %v8555_v33  ;;  %v8381_v49 = vpop.f32.mrf.mxu0  ;;  %v19803_v33 = vrot.slane %v19802_v20, 6  ;;  %v19804_v14 = vld [vmem:[#allocation74_spill] sm:$0xff] }
 0x59a   : > { %v7982_v52 = vadd.f32 %v7894_v39, %v19801_v53  ;;  %12718 = vmatprep.mubr.msk.f32.mxu1 %vm12849_vm7, %v19300_v44  ;;  %v18535_v53 = vadd.f32 %v8371_v18, %v7981_v4 }
 0x59b   : > { %v12434_v63 = vpop.f32.mrf.mxu1  ;;  %v12568_v13 = vpop.f32.mrf.mxu0  ;;  %v8559_v57 = vsel %vm4116_vm6, %v8556_v3, %v19803_v33 }
 0x59d   : > { %v7899_v8 = vpop.f32.mrf.mxu1  ;;  %12719 = vmatmul.mubr.msk.f32.gmra.mxu1 %vm5196_vm8, %v8557_v36  ;;  %v8386_v54 = vpop.f32.mrf.mxu0 }
 0x59e   : > { %v7983_v45 = vadd.f32 %v7899_v8, %v18223_v19  ;;  %12721 = vmatprep.mubr.msk.f32.mxu1 %vm12849_vm7, %v19300_v44 }
 0x59f   : > { %v12437_v29 = vpop.f32.mrf.mxu1  ;;  %v12571_v32 = vpop.f32.mrf.mxu0 }
 0x5a0   : > { %v19805_v29 = vld [vmem:[#allocation83_spill] sm:$0xff]  ;;  %v18547_v33 = vadd.f32 %v8381_v49, %v7983_v45 }
 0x5a1   : > { %v7904_v55 = vpop.f32.mrf.mxu1  ;;  %12722 = vmatmul.mubr.msk.f32.gmra.mxu1 %vm5196_vm8, %v8559_v57  ;;  %v8391_v24 = vpop.f32.mrf.mxu0 }
 0x5a2   : > { %v7984_v0 = vadd.f32 %v7904_v55, %v18231_v40  ;;  %12724 = vmatprep.mubr.msk.f32.mxu1 %vm12849_vm7, %v19300_v44  ;;  %v18542_v40 = vadd.f32 %v8376_v22, %v7982_v52 }
 0x5a3   : > { %v12440_v19 = vpop.f32.mrf.mxu1  ;;  %v12574_v39 = vpop.f32.mrf.mxu0 }
 0x5a4   : > { %v18550_v39 = vadd.f32 %v8386_v54, %v7984_v0 }
 0x5a5   : > { %v7909_v63 = vpop.f32.mrf.mxu1  ;;  %12725 = vmatmul.mubr.msk.f32.gmra.mxu1 %vm5196_vm8, %v19804_v14  ;;  %v8396_v51 = vpop.f32.mrf.mxu0 }
 0x5a6   : > { %v7985_v3 = vadd.f32 %v7909_v63, %v18239_v38  ;;  %12727 = vmatprep.mubr.msk.f32.mxu1 %vm12849_vm7, %v19300_v44 }
 0x5a7   : > { %v12443_v13 = vpop.f32.mrf.mxu1  ;;  %v12577_v36 = vpop.f32.mrf.mxu0 }
 0x5a8   : > { %v18553_v36 = vadd.f32 %v8391_v24, %v7985_v3 }
 0x5a9   : > { %v7914_v8 = vpop.f32.mrf.mxu1  ;;  %12728 = vmatmul.mubr.msk.f32.gmra.mxu1 %vm5196_vm8, %v19805_v29  ;;  %v8401_v18 = vpop.f32.mrf.mxu0 }
 0x5aa   : > { %v7986_v4 = vadd.f32 %v7914_v8, %v18247_v12 }
 0x5ab   : > { %v12446_v32 = vpop.f32.mrf.mxu1  ;;  %v12580_v20 = vpop.f32.mrf.mxu0 }
 0x5ac   : > { %v18556_v32 = vadd.f32 %v8396_v51, %v7986_v4 }
 0x5ad   : > { %v7919_v57 = vpop.f32.mrf.mxu1  ;;  %v8406_v38 = vpop.f32.mrf.mxu0 }
 0x5ae   : > { %v7987_v55 = vadd.f32 %v7919_v57, %v18255_v25 }
 0x5af   : > { %v12449_v44 = vpop.f32.mrf.mxu1  ;;  %v12583_v19 = vpop.f32.mrf.mxu0 }
 0x5b0   : > { %v18559_v44 = vadd.f32 %v8401_v18, %v7987_v55 }
 0x5b1   : > { %v7924_v22 = vpop.f32.mrf.mxu1  ;;  %v8411_v52 = vpop.f32.mrf.mxu0 }
 0x5b2   : > { %v7988_v63 = vadd.f32 %v7924_v22, %v18263_v48 }
 0x5b3   : > { %v12452_v14 = vpop.f32.mrf.mxu1  ;;  %v12586_v13 = vpop.f32.mrf.mxu0 }
 0x5b4   : > { %v18562_v14 = vadd.f32 %v8406_v38, %v7988_v63  ;;  %v18573_v38 = vld [vmem:[%s18850_s5] ss:$0 sm:$0xff] }
 0x5b5   : > { %v7929_v12 = vpop.f32.mrf.mxu1  ;;  %v8416_v8 = vpop.f32.mrf.mxu0 }
 0x5b6   : > { %v7989_v49 = vadd.f32 %v7929_v12, %v18271_v27 }
 0x5b7   : > { %v12455_v45 = vpop.f32.mrf.mxu1  ;;  %v12589_v29 = vpop.f32.mrf.mxu0 }
 0x5b9   : > { %v7934_v25 = vpop.f32.mrf.mxu1  ;;  %v8421_v20 = vpop.f32.mrf.mxu0 }
 0x5ba   : > { %v7990_v54 = vadd.f32 %v7934_v25, %v18279_v23  ;;  %v18565_v23 = vadd.f32 %v8411_v52, %v7989_v49 }
 0x5bb   : > { %v12458_v0 = vpop.f32.mrf.mxu1  ;;  %v12592_v57 = vpop.f32.mrf.mxu0 }
 0x5bc   : > { %v18568_v29 = vadd.f32 %v8416_v8, %v7990_v54  ;;  %v18589_v0 = vld [vmem:[%s18852_s7] ss:$0 sm:$0xff] }
 0x5bd   : > { %v7939_v48 = vpop.f32.mrf.mxu1  ;;  %v8426_v19 = vpop.f32.mrf.mxu0 }
 0x5be   : > { %v7991_v24 = vadd.f32 %v7939_v48, %v18287_v10 }
 0x5bf   : > { %v12461_v3 = vpop.f32.mrf.mxu1  ;;  %v12595_v22 = vpop.f32.mrf.mxu0 }
 0x5c1   : > { %v7944_v27 = vpop.f32.mrf.mxu1  ;;  %v8431_v51 = vpop.f32.mrf.mxu0 }
 0x5c2   : > { %v7992_v4 = vadd.f32 %v7944_v27, %v18295_v1  ;;  %v18576_v1 = vadd.f32 %v8421_v20, %v7991_v24 }
 0x5c3   : > { %v12464_v13 = vpop.f32.mrf.mxu1  ;;  %v12598_v12 = vpop.f32.mrf.mxu0 }
 0x5c4   : > { %v18591_v20 = vadd.f32 %v8426_v19, %v7992_v4 }
 0x5c5   : > { %v7949_v45 = vpop.f32.mrf.mxu1 }
 0x5c6   : > { %v7993_v18 = vadd.f32 %v7949_v45, %v18303_v7  ;;  %v18583_v7 = vld [vmem:[%s18851_s6] ss:$0 sm:$0xff] }
 0x5c7   : > { %v12467_v55 = vpop.f32.mrf.mxu1 }
 0x5c8   : > { %v18602_v19 = vadd.f32 %v8431_v51, %v7993_v18 }
 0x5c9   : > { %v8712_v10 = vpop.f32.mrf.mxu1 }
 0x5ca   : > { %v8916_v63 = vadd.f32 %v8712_v10, %v18311_v50 }
 0x5cb   : > { %v12609_v25 = vpop.f32.mrf.mxu1 }
 0x5cc   : > { %v8964_v52 = vadd.f32 %v18573_v38, %v8916_v63 }
 0x5cd   : > { %v8717_v8 = vpop.f32.mrf.mxu1 }
 0x5ce   : > { %v9005_v49 = vmax.f32 %v8964_v52, 0.0  ;;  %v8917_v54 = vadd.f32 %v8717_v8, %v18319_v21 }
 0x5cf   : > { %v12612_v50 = vpop.f32.mrf.mxu1 }
 0x5d0   : > { %v9053_v57 = vmul.f32 %v18583_v7, %v9005_v49  ;;  %v8965_v48 = vadd.f32 %v18573_v38, %v8917_v54 }
 0x5d1   : > { %v8722_v21 = vpop.f32.mrf.mxu1 }
 0x5d2   : > { %v9101_v24 = vadd.f32 %v18589_v0, %v9053_v57  ;;  %v9006_v3 = vmax.f32 %v8965_v48, 0.0  ;;  %v8918_v22 = vadd.f32 %v8722_v21, %v18327_v46 }
 0x5d3   : > { %v12615_v27 = vpop.f32.mrf.mxu1 }
 0x5d4   : > { %9142 = vst.msk [vmem:[%s18598_s12] sm:$0xff] %vm497_vm2, %v9101_v24  ;;  %v9054_v4 = vmul.f32 %v18583_v7, %v9006_v3  ;;  %v8966_v13 = vadd.f32 %v18573_v38, %v8918_v22 }
 0x5d5   : > { %v8727_v12 = vpop.f32.mrf.mxu1 }
 0x5d6   : > { %v9102_v45 = vadd.f32 %v18589_v0, %v9054_v4  ;;  %v9007_v55 = vmax.f32 %v8966_v13, 0.0  ;;  %v8919_v10 = vadd.f32 %v8727_v12, %v18335_v42 }
 0x5d7   : > { %v12618_v63 = vpop.f32.mrf.mxu1 }
 0x5d8   : > { %9143 = vst.msk [vmem:[%s18598_s12 + $0x8] sm:$0xff] %vm497_vm2, %v9102_v45  ;;  %v9055_v46 = vmul.f32 %v18583_v7, %v9007_v55  ;;  %v8967_v51 = vadd.f32 %v18573_v38, %v8919_v10 }
 0x5d9   : > { %v8732_v18 = vpop.f32.mrf.mxu1 }
 0x5da   : > { %v9103_v25 = vadd.f32 %v18589_v0, %v9055_v46  ;;  %v9008_v52 = vmax.f32 %v8967_v51, 0.0  ;;  %v8920_v8 = vadd.f32 %v8732_v18, %v18343_v59 }
 0x5db   : > { %v12621_v49 = vpop.f32.mrf.mxu1 }
 0x5dc   : > { %9144 = vst.msk [vmem:[%s18598_s12 + $0x10] sm:$0xff] %vm497_vm2, %v9103_v25  ;;  %v9056_v42 = vmul.f32 %v18583_v7, %v9008_v52  ;;  %v8968_v54 = vadd.f32 %v18573_v38, %v8920_v8 }
 0x5dd   : > { %v8737_v50 = vpop.f32.mrf.mxu1 }
 0x5de   : > { %v9104_v57 = vadd.f32 %v18589_v0, %v9056_v42  ;;  %v9009_v48 = vmax.f32 %v8968_v54, 0.0  ;;  %v8921_v21 = vadd.f32 %v8737_v50, %v18351_v35 }
 0x5df   : > { %v12624_v24 = vpop.f32.mrf.mxu1 }
 0x5e0   : > { %9145 = vst.msk [vmem:[%s18598_s12 + $0x18] sm:$0xff] %vm497_vm2, %v9104_v57  ;;  %v9057_v59 = vmul.f32 %v18583_v7, %v9009_v48  ;;  %v8969_v3 = vadd.f32 %v18573_v38, %v8921_v21 }
 0x5e1   : > { %v8742_v22 = vpop.f32.mrf.mxu1 }
 0x5e2   : > { %v9105_v27 = vadd.f32 %v18589_v0, %v9057_v59  ;;  %v9010_v4 = vmax.f32 %v8969_v3, 0.0  ;;  %v8922_v13 = vadd.f32 %v8742_v22, %v18359_v28 }
 0x5e3   : > { %v12627_v12 = vpop.f32.mrf.mxu1 }
 0x5e4   : > { %9146 = vst.msk [vmem:[%s18598_s12 + $0x20] sm:$0xff] %vm497_vm2, %v9105_v27  ;;  %v9058_v35 = vmul.f32 %v18583_v7, %v9010_v4  ;;  %v8970_v45 = vadd.f32 %v18573_v38, %v8922_v13 }
 0x5e5   : > { %v8747_v55 = vpop.f32.mrf.mxu1 }
 0x5e6   : > { %v9106_v10 = vadd.f32 %v18589_v0, %v9058_v35  ;;  %v9011_v63 = vmax.f32 %v8970_v45, 0.0  ;;  %v8923_v46 = vadd.f32 %v8747_v55, %v18367_v26 }
 0x5e7   : > { %v12630_v51 = vpop.f32.mrf.mxu1 }
 0x5e8   : > { %9147 = vst.msk [vmem:[%s18598_s12 + $0x28] sm:$0xff] %vm497_vm2, %v9106_v10  ;;  %v9059_v28 = vmul.f32 %v18583_v7, %v9011_v63  ;;  %v8971_v18 = vadd.f32 %v18573_v38, %v8923_v46 }
 0x5e9   : > { %v8752_v25 = vpop.f32.mrf.mxu1 }
 0x5ea   : > { %v9107_v52 = vadd.f32 %v18589_v0, %v9059_v28  ;;  %v9012_v8 = vmax.f32 %v8971_v18, 0.0  ;;  %v8924_v49 = vadd.f32 %v8752_v25, %v18375_v5 }
 0x5eb   : > { %v12633_v42 = vpop.f32.mrf.mxu1 }
 0x5ec   : > { %9148 = vst.msk [vmem:[%s18598_s12 + $0x30] sm:$0xff] %vm497_vm2, %v9107_v52  ;;  %v9060_v26 = vmul.f32 %v18583_v7, %v9012_v8  ;;  %v8972_v54 = vadd.f32 %v18573_v38, %v8924_v49 }
 0x5ed   : > { %v8757_v50 = vpop.f32.mrf.mxu1 }
 0x5ee   : > { %v9108_v57 = vadd.f32 %v18589_v0, %v9060_v26  ;;  %v9013_v48 = vmax.f32 %v8972_v54, 0.0  ;;  %v8925_v21 = vadd.f32 %v8757_v50, %v18383_v41 }
 0x5ef   : > { %v12636_v24 = vpop.f32.mrf.mxu1 }
 0x5f0   : > { %9149 = vst.msk [vmem:[%s18598_s12 + $0x38] sm:$0xff] %vm497_vm2, %v9108_v57  ;;  %v9061_v5 = vmul.f32 %v18583_v7, %v9013_v48  ;;  %v8973_v59 = vadd.f32 %v18573_v38, %v8925_v21 }
 0x5f1   : > { %v8762_v3 = vpop.f32.mrf.mxu1 }
 0x5f2   : > { %v9109_v22 = vadd.f32 %v18589_v0, %v9061_v5  ;;  %v9014_v27 = vmax.f32 %v8973_v59, 0.0  ;;  %v8926_v4 = vadd.f32 %v8762_v3, %v18391_v34 }
 0x5f3   : > { %v12639_v13 = vpop.f32.mrf.mxu1 }
 0x5f4   : > { %9150 = vst.msk [vmem:[%s18598_s12 + $0x40] sm:$0xff] %vm497_vm2, %v9109_v22  ;;  %v9062_v41 = vmul.f32 %v18583_v7, %v9014_v27  ;;  %v8974_v12 = vadd.f32 %v18573_v38, %v8926_v4 }
 0x5f5   : > { %v8767_v35 = vpop.f32.mrf.mxu1 }
 0x5f6   : > { %v9110_v45 = vadd.f32 %v18589_v0, %v9062_v41  ;;  %v9015_v55 = vmax.f32 %v8974_v12, 0.0  ;;  %v8927_v10 = vadd.f32 %v8767_v35, %v18399_v58 }
 0x5f7   : > { %v12642_v63 = vpop.f32.mrf.mxu1 }
 0x5f8   : > { %9151 = vst.msk [vmem:[%s18598_s12 + $0x48] sm:$0xff] %vm497_vm2, %v9110_v45  ;;  %v9063_v34 = vmul.f32 %v18583_v7, %v9015_v55  ;;  %v8975_v46 = vadd.f32 %v18573_v38, %v8927_v10 }
 0x5f9   : > { %v8772_v51 = vpop.f32.mrf.mxu1 }
 0x5fa   : > { %v9111_v28 = vadd.f32 %v18589_v0, %v9063_v34  ;;  %v9016_v18 = vmax.f32 %v8975_v46, 0.0  ;;  %v8928_v25 = vadd.f32 %v8772_v51, %v18407_v60 }
 0x5fb   : > { %v12645_v52 = vpop.f32.mrf.mxu1 }
 0x5fc   : > { %9152 = vst.msk [vmem:[%s18598_s12 + $0x50] sm:$0xff] %vm497_vm2, %v9111_v28  ;;  %v9064_v58 = vmul.f32 %v18583_v7, %v9016_v18  ;;  %v8976_v8 = vadd.f32 %v18573_v38, %v8928_v25 }
 0x5fd   : > { %v8777_v49 = vpop.f32.mrf.mxu1 }
 0x5fe   : > { %v9112_v42 = vadd.f32 %v18589_v0, %v9064_v58  ;;  %v9017_v26 = vmax.f32 %v8976_v8, 0.0  ;;  %v8929_v54 = vadd.f32 %v8777_v49, %v18415_v37 }
 0x5ff   : > { %v12648_v50 = vpop.f32.mrf.mxu1 }
 0x600   : > { %9153 = vst.msk [vmem:[%s18598_s12 + $0x58] sm:$0xff] %vm497_vm2, %v9112_v42  ;;  %v9065_v60 = vmul.f32 %v18583_v7, %v9017_v26  ;;  %v8977_v57 = vadd.f32 %v18573_v38, %v8929_v54 }
 0x601   : > { %v8782_v48 = vpop.f32.mrf.mxu1 }
 0x602   : > { %v9113_v21 = vadd.f32 %v18589_v0, %v9065_v60  ;;  %v9018_v24 = vmax.f32 %v8977_v57, 0.0  ;;  %v8930_v5 = vadd.f32 %v8782_v48, %v18423_v2 }
 0x603   : > { %v12651_v59 = vpop.f32.mrf.mxu1 }
 0x604   : > { %9154 = vst.msk [vmem:[%s18598_s12 + $0x60] sm:$0xff] %vm497_vm2, %v9113_v21  ;;  %v9066_v37 = vmul.f32 %v18583_v7, %v9018_v24  ;;  %v8978_v3 = vadd.f32 %v18573_v38, %v8930_v5 }
 0x605   : > { %v8787_v22 = vpop.f32.mrf.mxu1 }
 0x606   : > { %v9114_v27 = vadd.f32 %v18589_v0, %v9066_v37  ;;  %v9019_v4 = vmax.f32 %v8978_v3, 0.0  ;;  %v8931_v13 = vadd.f32 %v8787_v22, %v18431_v16 }
 0x607   : > { %v12654_v41 = vpop.f32.mrf.mxu1 }
 0x608   : > { %9155 = vst.msk [vmem:[%s18598_s12 + $0x68] sm:$0xff] %vm497_vm2, %v9114_v27  ;;  %v9067_v2 = vmul.f32 %v18583_v7, %v9019_v4  ;;  %v8979_v12 = vadd.f32 %v18573_v38, %v8931_v13 }
 0x609   : > { %v8792_v35 = vpop.f32.mrf.mxu1 }
 0x60a   : > { %v9115_v45 = vadd.f32 %v18589_v0, %v9067_v2  ;;  %v9020_v55 = vmax.f32 %v8979_v12, 0.0  ;;  %v8932_v10 = vadd.f32 %v8792_v35, %v18439_v17 }
 0x60b   : > { %v12657_v63 = vpop.f32.mrf.mxu1 }
 0x60c   : > { %9156 = vst.msk [vmem:[%s18598_s12 + $0x70] sm:$0xff] %vm497_vm2, %v9115_v45  ;;  %v9068_v16 = vmul.f32 %v18583_v7, %v9020_v55  ;;  %v8980_v34 = vadd.f32 %v18573_v38, %v8932_v10 }
 0x60d   : > { %v8797_v46 = vpop.f32.mrf.mxu1 }
 0x60e   : > { %v9116_v51 = vadd.f32 %v18589_v0, %v9068_v16  ;;  %v9021_v28 = vmax.f32 %v8980_v34, 0.0  ;;  %v8933_v18 = vadd.f32 %v8797_v46, %v18447_v43 }
 0x60f   : > { %v12660_v25 = vpop.f32.mrf.mxu1 }
 0x610   : > { %9157 = vst.msk [vmem:[%s18598_s12 + $0x78] sm:$0xff] %vm497_vm2, %v9116_v51  ;;  %v9069_v17 = vmul.f32 %v18583_v7, %v9021_v28  ;;  %v8981_v52 = vadd.f32 %v18573_v38, %v8933_v18 }
 0x611   : > { %v8802_v58 = vpop.f32.mrf.mxu1 }
 0x612   : > { %v9117_v8 = vadd.f32 %v18589_v0, %v9069_v17  ;;  %v9022_v49 = vmax.f32 %v8981_v52, 0.0  ;;  %v8934_v42 = vadd.f32 %v8802_v58, %v18455_v15 }
 0x613   : > { %v12663_v26 = vpop.f32.mrf.mxu1 }
 0x614   : > { %9158 = vst.msk [vmem:[%s18598_s12 + $0x80] sm:$0xff] %vm497_vm2, %v9117_v8  ;;  %v9070_v43 = vmul.f32 %v18583_v7, %v9022_v49  ;;  %v8982_v54 = vadd.f32 %v18573_v38, %v8934_v42 }
 0x615   : > { %v8807_v50 = vpop.f32.mrf.mxu1 }
 0x616   : > { %v9118_v60 = vadd.f32 %v18589_v0, %v9070_v43  ;;  %v9023_v57 = vmax.f32 %v8982_v54, 0.0  ;;  %v8935_v48 = vadd.f32 %v8807_v50, %v18463_v30 }
 0x617   : > { %v12666_v21 = vpop.f32.mrf.mxu1 }
 0x618   : > { %9159 = vst.msk [vmem:[%s18598_s12 + $0x88] sm:$0xff] %vm497_vm2, %v9118_v60  ;;  %v9071_v15 = vmul.f32 %v18583_v7, %v9023_v57  ;;  %v8983_v24 = vadd.f32 %v18573_v38, %v8935_v48 }
 0x619   : > { %v8812_v5 = vpop.f32.mrf.mxu1 }
 0x61a   : > { %v9119_v59 = vadd.f32 %v18589_v0, %v9071_v15  ;;  %v9024_v37 = vmax.f32 %v8983_v24, 0.0  ;;  %v8936_v3 = vadd.f32 %v8812_v5, %v18471_v62 }
 0x61b   : > { %v12669_v22 = vpop.f32.mrf.mxu1 }
 0x61c   : > { %9160 = vst.msk [vmem:[%s18598_s12 + $0x90] sm:$0xff] %vm497_vm2, %v9119_v59  ;;  %v9072_v30 = vmul.f32 %v18583_v7, %v9024_v37  ;;  %v8984_v27 = vadd.f32 %v18573_v38, %v8936_v3 }
 0x61d   : > { %v8817_v4 = vpop.f32.mrf.mxu1 }
 0x61e   : > { %v9120_v13 = vadd.f32 %v18589_v0, %v9072_v30  ;;  %v9025_v41 = vmax.f32 %v8984_v27, 0.0  ;;  %v8937_v2 = vadd.f32 %v8817_v4, %v18479_v31 }
 0x61f   : > { %v12672_v12 = vpop.f32.mrf.mxu1 }
 0x620   : > { %9161 = vst.msk [vmem:[%s18598_s12 + $0x98] sm:$0xff] %vm497_vm2, %v9120_v13  ;;  %v9073_v62 = vmul.f32 %v18583_v7, %v9025_v41  ;;  %v8985_v35 = vadd.f32 %v18573_v38, %v8937_v2 }
 0x621   : > { %v8822_v45 = vpop.f32.mrf.mxu1 }
 0x622   : > { %v9121_v55 = vadd.f32 %v18589_v0, %v9073_v62  ;;  %v9026_v10 = vmax.f32 %v8985_v35, 0.0  ;;  %v8938_v63 = vadd.f32 %v8822_v45, %v18487_v47 }
 0x623   : > { %v12675_v16 = vpop.f32.mrf.mxu1 }
 0x624   : > { %9162 = vst.msk [vmem:[%s18598_s12 + $0xa0] sm:$0xff] %vm497_vm2, %v9121_v55  ;;  %v9074_v31 = vmul.f32 %v18583_v7, %v9026_v10  ;;  %v8986_v34 = vadd.f32 %v18573_v38, %v8938_v63 }
 0x625   : > { %v8827_v46 = vpop.f32.mrf.mxu1 }
 0x626   : > { %v9122_v51 = vadd.f32 %v18589_v0, %v9074_v31  ;;  %v9027_v28 = vmax.f32 %v8986_v34, 0.0  ;;  %v8939_v18 = vadd.f32 %v8827_v46, %v18495_v56 }
 0x627   : > { %v12678_v25 = vpop.f32.mrf.mxu1 }
 0x628   : > { %9163 = vst.msk [vmem:[%s18598_s12 + $0xa8] sm:$0xff] %vm497_vm2, %v9122_v51  ;;  %v9075_v47 = vmul.f32 %v18583_v7, %v9027_v28  ;;  %v8987_v17 = vadd.f32 %v18573_v38, %v8939_v18 }
 0x629   : > { %v8832_v52 = vpop.f32.mrf.mxu1 }
 0x62a   : > { %v9123_v58 = vadd.f32 %v18589_v0, %v9075_v47  ;;  %v9028_v8 = vmax.f32 %v8987_v17, 0.0  ;;  %v8940_v49 = vadd.f32 %v8832_v52, %v18503_v9 }
 0x62b   : > { %v12681_v42 = vpop.f32.mrf.mxu1 }
 0x62c   : > { %9164 = vst.msk [vmem:[%s18598_s12 + $0xb0] sm:$0xff] %vm497_vm2, %v9123_v58  ;;  %v9076_v56 = vmul.f32 %v18583_v7, %v9028_v8  ;;  %v8988_v26 = vadd.f32 %v18573_v38, %v8940_v49 }
 0x62d   : > { %v8837_v43 = vpop.f32.mrf.mxu1 }
 0x62e   : > { %v9124_v54 = vadd.f32 %v18589_v0, %v9076_v56  ;;  %v9029_v50 = vmax.f32 %v8988_v26, 0.0  ;;  %v8941_v60 = vadd.f32 %v8837_v43, %v18511_v11 }
 0x62f   : > { %v12684_v57 = vpop.f32.mrf.mxu1 }
 0x630   : > { %9165 = vst.msk [vmem:[%s18598_s12 + $0xb8] sm:$0xff] %vm497_vm2, %v9124_v54  ;;  %v9077_v9 = vmul.f32 %v18583_v7, %v9029_v50  ;;  %v8989_v48 = vadd.f32 %v18573_v38, %v8941_v60 }
 0x631   : > { %v8842_v21 = vpop.f32.mrf.mxu1 }
 0x632   : > { %v9125_v15 = vadd.f32 %v18589_v0, %v9077_v9  ;;  %v9030_v24 = vmax.f32 %v8989_v48, 0.0  ;;  %v8942_v5 = vadd.f32 %v8842_v21, %v18519_v61 }
 0x633   : > { %v12687_v59 = vpop.f32.mrf.mxu1 }
 0x634   : > { %9166 = vst.msk [vmem:[%s18598_s12 + $0xc0] sm:$0xff] %vm497_vm2, %v9125_v15  ;;  %v9078_v11 = vmul.f32 %v18583_v7, %v9030_v24  ;;  %v8990_v37 = vadd.f32 %v18573_v38, %v8942_v5 }
 0x635   : > { %v8847_v3 = vpop.f32.mrf.mxu1 }
 0x636   : > { %v9126_v22 = vadd.f32 %v18589_v0, %v9078_v11  ;;  %v9031_v30 = vmax.f32 %v8990_v37, 0.0  ;;  %v8943_v27 = vadd.f32 %v8847_v3, %v18526_v6 }
 0x637   : > { %v12690_v4 = vpop.f32.mrf.mxu1 }
 0x638   : > { %9167 = vst.msk [vmem:[%s18598_s12 + $0xc8] sm:$0xff] %vm497_vm2, %v9126_v22  ;;  %v9079_v61 = vmul.f32 %v18583_v7, %v9031_v30  ;;  %v8991_v13 = vadd.f32 %v18573_v38, %v8943_v27 }
 0x639   : > { %v8852_v41 = vpop.f32.mrf.mxu1 }
 0x63a   : > { %v9127_v2 = vadd.f32 %v18589_v0, %v9079_v61  ;;  %v9032_v12 = vmax.f32 %v8991_v13, 0.0  ;;  %v8944_v62 = vadd.f32 %v8852_v41, %v18535_v53 }
 0x63b   : > { %v12693_v35 = vpop.f32.mrf.mxu1 }
 0x63c   : > { %9168 = vst.msk [vmem:[%s18598_s12 + $0xd0] sm:$0xff] %vm497_vm2, %v9127_v2  ;;  %v9080_v6 = vmul.f32 %v18583_v7, %v9032_v12  ;;  %v8992_v45 = vadd.f32 %v18573_v38, %v8944_v62 }
 0x63d   : > { %v8857_v55 = vpop.f32.mrf.mxu1 }
 0x63e   : > { %v9128_v10 = vadd.f32 %v18589_v0, %v9080_v6  ;;  %v9033_v63 = vmax.f32 %v8992_v45, 0.0  ;;  %v8945_v16 = vadd.f32 %v8857_v55, %v18542_v40 }
 0x63f   : > { %v12696_v31 = vpop.f32.mrf.mxu1 }
 0x640   : > { %9169 = vst.msk [vmem:[%s18598_s12 + $0xd8] sm:$0xff] %vm497_vm2, %v9128_v10  ;;  %v9081_v53 = vmul.f32 %v18583_v7, %v9033_v63  ;;  %v8993_v34 = vadd.f32 %v18573_v38, %v8945_v16 }
 0x641   : > { %v8862_v46 = vpop.f32.mrf.mxu1 }
 0x642   : > { %v9129_v51 = vadd.f32 %v18589_v0, %v9081_v53  ;;  %v9034_v28 = vmax.f32 %v8993_v34, 0.0  ;;  %v8946_v18 = vadd.f32 %v8862_v46, %v18547_v33 }
 0x643   : > { %v12699_v25 = vpop.f32.mrf.mxu1 }
 0x644   : > { %9170 = vst.msk [vmem:[%s18598_s12 + $0xe0] sm:$0xff] %vm497_vm2, %v9129_v51  ;;  %v9082_v40 = vmul.f32 %v18583_v7, %v9034_v28  ;;  %v8994_v47 = vadd.f32 %v18573_v38, %v8946_v18 }
 0x645   : > { %v8867_v17 = vpop.f32.mrf.mxu1 }
 0x646   : > { %v9130_v52 = vadd.f32 %v18589_v0, %v9082_v40  ;;  %v9035_v58 = vmax.f32 %v8994_v47, 0.0  ;;  %v8947_v8 = vadd.f32 %v8867_v17, %v18550_v39 }
 0x647   : > { %v12702_v49 = vpop.f32.mrf.mxu1 }
 0x648   : > { %9171 = vst.msk [vmem:[%s18598_s12 + $0xe8] sm:$0xff] %vm497_vm2, %v9130_v52  ;;  %v9083_v33 = vmul.f32 %v18583_v7, %v9035_v58  ;;  %v8995_v42 = vadd.f32 %v18573_v38, %v8947_v8 }
 0x649   : > { %v8872_v56 = vpop.f32.mrf.mxu1 }
 0x64a   : > { %v9131_v26 = vadd.f32 %v18589_v0, %v9083_v33  ;;  %v9036_v43 = vmax.f32 %v8995_v42, 0.0  ;;  %v8948_v54 = vadd.f32 %v8872_v56, %v18553_v36 }
 0x64b   : > { %v12705_v50 = vpop.f32.mrf.mxu1 }
 0x64c   : > { %9172 = vst.msk [vmem:[%s18598_s12 + $0xf0] sm:$0xff] %vm497_vm2, %v9131_v26  ;;  %v9084_v39 = vmul.f32 %v18583_v7, %v9036_v43  ;;  %v8996_v60 = vadd.f32 %v18573_v38, %v8948_v54 }
 0x64d   : > { %v8877_v57 = vpop.f32.mrf.mxu1 }
 0x64e   : > { %v9132_v9 = vadd.f32 %v18589_v0, %v9084_v39  ;;  %v9037_v48 = vmax.f32 %v8996_v60, 0.0  ;;  %v8949_v21 = vadd.f32 %v8877_v57, %v18556_v32 }
 0x64f   : > { %v12708_v15 = vpop.f32.mrf.mxu1 }
 0x650   : > { %9173 = vst.msk [vmem:[%s18598_s12 + $0xf8] sm:$0xff] %vm497_vm2, %v9132_v9  ;;  %v9085_v36 = vmul.f32 %v18583_v7, %v9037_v48  ;;  %v8997_v24 = vadd.f32 %v18573_v38, %v8949_v21 }
 0x651   : > { %v8882_v5 = vpop.f32.mrf.mxu1 }
 0x652   : > { %v9133_v59 = vadd.f32 %v18589_v0, %v9085_v36  ;;  %v9038_v11 = vmax.f32 %v8997_v24, 0.0  ;;  %v8950_v37 = vadd.f32 %v8882_v5, %v18559_v44 }
 0x653   : > { %v12711_v3 = vpop.f32.mrf.mxu1 }
 0x654   : > { %9174 = vst.msk [vmem:[%s18598_s12 + $0x100] sm:$0xff] %vm497_vm2, %v9133_v59  ;;  %v9086_v32 = vmul.f32 %v18583_v7, %v9038_v11  ;;  %v8998_v22 = vadd.f32 %v18573_v38, %v8950_v37 }
 0x655   : > { %v8887_v30 = vpop.f32.mrf.mxu1 }
 0x656   : > { %v9134_v27 = vadd.f32 %v18589_v0, %v9086_v32  ;;  %v9039_v4 = vmax.f32 %v8998_v22, 0.0  ;;  %v8951_v61 = vadd.f32 %v8887_v30, %v18562_v14 }
 0x657   : > { %v12714_v13 = vpop.f32.mrf.mxu1 }
 0x658   : > { %9175 = vst.msk [vmem:[%s18598_s12 + $0x108] sm:$0xff] %vm497_vm2, %v9134_v27  ;;  %v9087_v44 = vmul.f32 %v18583_v7, %v9039_v4  ;;  %v8999_v41 = vadd.f32 %v18573_v38, %v8951_v61 }
 0x659   : > { %v8892_v2 = vpop.f32.mrf.mxu1 }
 0x65a   : > { %v9135_v12 = vadd.f32 %v18589_v0, %v9087_v44  ;;  %v9040_v62 = vmax.f32 %v8999_v41, 0.0  ;;  %v8952_v35 = vadd.f32 %v8892_v2, %v18565_v23 }
 0x65b   : > { %v12717_v6 = vpop.f32.mrf.mxu1 }
 0x65c   : > { %9176 = vst.msk [vmem:[%s18598_s12 + $0x110] sm:$0xff] %vm497_vm2, %v9135_v12  ;;  %v9088_v14 = vmul.f32 %v18583_v7, %v9040_v62  ;;  %v9000_v45 = vadd.f32 %v18573_v38, %v8952_v35 }
 0x65d   : > { %v8897_v55 = vpop.f32.mrf.mxu1 }
 0x65e   : > { %v9136_v10 = vadd.f32 %v18589_v0, %v9088_v14  ;;  %v9041_v63 = vmax.f32 %v9000_v45, 0.0  ;;  %v8953_v16 = vadd.f32 %v8897_v55, %v18568_v29 }
 0x65f   : > { %v12720_v31 = vpop.f32.mrf.mxu1 }
 0x660   : > { %9177 = vst.msk [vmem:[%s18598_s12 + $0x118] sm:$0xff] %vm497_vm2, %v9136_v10  ;;  %v9089_v23 = vmul.f32 %v18583_v7, %v9041_v63  ;;  %v9001_v53 = vadd.f32 %v18573_v38, %v8953_v16 }
 0x661   : > { %v8902_v34 = vpop.f32.mrf.mxu1 }
 0x662   : > { %v9137_v46 = vadd.f32 %v18589_v0, %v9089_v23  ;;  %v9042_v51 = vmax.f32 %v9001_v53, 0.0  ;;  %v8954_v28 = vadd.f32 %v8902_v34, %v18576_v1 }
 0x663   : > { %v12723_v18 = vpop.f32.mrf.mxu1 }
 0x664   : > { %9178 = vst.msk [vmem:[%s18598_s12 + $0x120] sm:$0xff] %vm497_vm2, %v9137_v46  ;;  %v9090_v29 = vmul.f32 %v18583_v7, %v9042_v51  ;;  %v9002_v25 = vadd.f32 %v18573_v38, %v8954_v28 }
 0x665   : > { %v8907_v40 = vpop.f32.mrf.mxu1 }
 0x666   : > { %v9138_v47 = vadd.f32 %v18589_v0, %v9090_v29  ;;  %v9043_v17 = vmax.f32 %v9002_v25, 0.0  ;;  %v8955_v52 = vadd.f32 %v8907_v40, %v18591_v20 }
 0x667   : > { %v12726_v58 = vpop.f32.mrf.mxu1 }
 0x668   : > { %9179 = vst.msk [vmem:[%s18598_s12 + $0x128] sm:$0xff] %vm497_vm2, %v9138_v47  ;;  %v9091_v1 = vmul.f32 %v18583_v7, %v9043_v17  ;;  %v9003_v8 = vadd.f32 %v18573_v38, %v8955_v52 }
 0x669   : > { %v8912_v49 = vpop.f32.mrf.mxu1 }
 0x66a   : > { %v9139_v33 = vadd.f32 %v18589_v0, %v9091_v1  ;;  %v9044_v42 = vmax.f32 %v9003_v8, 0.0  ;;  %v8956_v56 = vadd.f32 %v8912_v49, %v18602_v19 }
 0x66b   : > { %v12729_v26 = vpop.f32.mrf.mxu1 }
 0x66c   : > { %9180 = vst.msk [vmem:[%s18598_s12 + $0x130] sm:$0xff] %vm497_vm2, %v9139_v33  ;;  %v9092_v43 = vmul.f32 %v18583_v7, %v9044_v42  ;;  %v9004_v20 = vadd.f32 %v18573_v38, %v8956_v56 }
 0x66e   : > { %v9140_v54 = vadd.f32 %v18589_v0, %v9092_v43  ;;  %v9045_v50 = vmax.f32 %v9004_v20, 0.0 }
 0x670   : > { %9181 = vst.msk [vmem:[%s18598_s12 + $0x138] sm:$0xff] %vm497_vm2, %v9140_v54  ;;  %v9093_v39 = vmul.f32 %v18583_v7, %v9045_v50 }
 0x672   : > { %v9141_v60 = vadd.f32 %v18589_v0, %v9093_v39 }
 0x674   : > { %9183 = vst.msk [vmem:[%s18598_s12 + $0x140] sm:$0xf] %vm9182_vm9, %v9141_v60 }
 0x675 PF: > { %s18_s27 = sadd.s32 1, %s12845_s27  }
 0x676   : > { %p15_p4 = scmp.ge.s32.totalorder %s18_s27, 4  }
 0x678   :  { %17 = sbr.rel (!%p15_p4) target bundleno = 1 (0x1), region = 98 }

</bundles_post_ra>
